<compile_context>
chip_gen: v5e
topology: v5e:2x2
jax: 0.10.0
libtpu: 0.0.40
codegen_flags: <defaults>
</compile_context>

<pallas_src>
import functools
import math

import jax
import jax.numpy as jnp
from jax.experimental import pallas as pl
from jax.experimental.pallas import tpu as pltpu

BN_EPS = 1e-5


# ----------------------------- helpers --------------------------------------

def _ceil_to(v, m):
    return ((v + m - 1) // m) * m


def _pick_tile(size, prefs):
    for t in prefs:
        if size % t == 0:
            return t
    return size


# ----------------------------- Pallas kernels -------------------------------

def _mm_kernel(*refs, relu_a, has_res):
    """K-tiled matmul with f32 VMEM accumulator.

    Optional fused pre-activation ReLU on A (the conv input) and a fused
    residual add in the epilogue.
    """
    if has_res:
        a_ref, b_ref, r_ref, o_ref, acc_ref = refs
    else:
        a_ref, b_ref, o_ref, acc_ref = refs
        r_ref = None
    k = pl.program_id(2)

    @pl.when(k == 0)
    def _():
        acc_ref[...] = jnp.zeros_like(acc_ref)

    a = a_ref[...]
    if relu_a:
        a = jnp.maximum(a, 0)
    acc_ref[...] += jnp.dot(a, b_ref[...], preferred_element_type=jnp.float32)

    @pl.when(k == pl.num_programs(2) - 1)
    def _():
        acc = acc_ref[...]
        if has_res:
            acc = acc + r_ref[...].astype(jnp.float32)
        o_ref[...] = acc.astype(o_ref.dtype)


def _softmax_c_kernel(x_ref, o_ref):
    # Block is (C, TS): channels on sublanes (full dim), voxels lane-dense.
    x = x_ref[...].astype(jnp.float32)
    m = jnp.max(x, axis=0, keepdims=True)
    e = jnp.exp(x - m)
    o_ref[...] = e / jnp.sum(e, axis=0, keepdims=True)


# ----------------------------- Pallas wrappers -------------------------------

def matmul_fused(a, b, *, relu_a=False, residual=None, out_dtype=jnp.bfloat16):
    """(M, K) @ (K, N) on the MXU: bf16 operands, f32 accumulation in VMEM."""
    M, K = a.shape
    K2, N = b.shape
    assert K == K2
    Mp, Kp, Np = _ceil_to(M, 128), _ceil_to(K, 128), _ceil_to(N, 128)
    TM = 256 if Mp % 256 == 0 else 128
    TN = 128
    TK = _pick_tile(Kp, (512, 256, 128))

    a_p = jnp.pad(a, ((0, Mp - M), (0, Kp - K))).astype(jnp.bfloat16)
    b_p = jnp.pad(b, ((0, Kp - K), (0, Np - N))).astype(jnp.bfloat16)

    has_res = residual is not None
    in_specs = [pl.BlockSpec((TM, TK), lambda i, j, k: (i, k)),
                pl.BlockSpec((TK, TN), lambda i, j, k: (k, j))]
    args = [a_p, b_p]
    if has_res:
        r_p = jnp.pad(residual, ((0, Mp - M), (0, Np - N))).astype(jnp.bfloat16)
        in_specs.append(pl.BlockSpec((TM, TN), lambda i, j, k: (i, j)))
        args.append(r_p)

    out = pl.pallas_call(
        functools.partial(_mm_kernel, relu_a=relu_a, has_res=has_res),
        out_shape=jax.ShapeDtypeStruct((Mp, Np), out_dtype),
        grid=(Mp // TM, Np // TN, Kp // TK),
        in_specs=in_specs,
        out_specs=pl.BlockSpec((TM, TN), lambda i, j, k: (i, j)),
        scratch_shapes=[pltpu.VMEM((TM, TN), jnp.float32)],
        compiler_params=pltpu.CompilerParams(
            dimension_semantics=("parallel", "parallel", "arbitrary"),
            vmem_limit_bytes=32 * 1024 * 1024),
    )(*args)
    return out[:M, :N]


def softmax_channels(y):
    """Channel softmax of an NCDHW tensor with a lane-dense voxel axis."""
    N, C, D, H, W = y.shape
    S = D * H * W
    x = y.reshape(N, C, S).astype(jnp.float32)
    Sp = _ceil_to(S, 128)
    if Sp != S:
        x = jnp.pad(x, ((0, 0), (0, 0), (0, Sp - S)))
    TS = _pick_tile(Sp, (2048, 1024, 512, 256, 128))
    out = pl.pallas_call(
        _softmax_c_kernel,
        out_shape=jax.ShapeDtypeStruct((N, C, Sp), jnp.float32),
        grid=(N, Sp // TS),
        in_specs=[pl.BlockSpec((None, C, TS), lambda n, s: (n, 0, s))],
        out_specs=pl.BlockSpec((None, C, TS), lambda n, s: (n, 0, s)),
        compiler_params=pltpu.CompilerParams(
            dimension_semantics=("parallel", "parallel")),
    )(x)
    return out[:, :, :S].reshape(N, C, D, H, W)


# ----------------------------- Conv glue -------------------------------------

def conv3d(x, w, stride, padding, dilation, *, pre_bn_relu=False,
           residual=None, out_dtype=jnp.bfloat16):
    """3-D conv (grouped / strided / dilated) = im2col + fused Pallas matmul.

    pre_bn_relu=True implements the reference Conv3d_Block/DilatedConv3DBlock:
    BatchNorm3d (eval-mode identity stats) + ReLU on the input. The constant
    BN scale is folded into the weights; the ReLU runs inside the kernel.
    TODO(synk): replace the XLA im2col glue with a tap-accumulating direct
    conv kernel (halo blocks / manual DMA) to cut HBM traffic further.
    """
    N, D, H, W, Cin = x.shape
    Cout, Cin_g, kD, kH, kW = w.shape
    groups = Cin // Cin_g
    sd, sh, sw = stride
    pd, ph, pw = padding
    dd, dh, dw = dilation

    w = w.astype(jnp.float32)
    if pre_bn_relu:
        # BN(x) = x / sqrt(1 + eps); the positive scale commutes with ReLU,
        # so fold it into the weights and ReLU the conv input in-kernel.
        w = w * (1.0 / math.sqrt(1.0 + BN_EPS))

    if groups > 1:
        # Dense block-diagonal weight: one matmul covers all groups.
        Cout_g = Cout // groups
        wd = jnp.zeros((Cout, Cin, kD, kH, kW), w.dtype)
        for g in range(groups):
            wd = wd.at[g * Cout_g:(g + 1) * Cout_g,
                       g * Cin_g:(g + 1) * Cin_g].set(
                w[g * Cout_g:(g + 1) * Cout_g])
        w = wd

    if (kD, kH, kW) == (1, 1, 1) and stride == (1, 1, 1) and padding == (0, 0, 0):
        oD, oH, oW = D, H, W
        patches = x.reshape(N * D * H * W, Cin)
    else:
        xp = jnp.pad(x, ((0, 0), (pd, pd), (ph, ph), (pw, pw), (0, 0)))
        Dp, Hp, Wp = D + 2 * pd, H + 2 * ph, W + 2 * pw
        oD = (Dp - dd * (kD - 1) - 1) // sd + 1
        oH = (Hp - dh * (kH - 1) - 1) // sh + 1
        oW = (Wp - dw * (kW - 1) - 1) // sw + 1
        cols = []
        for a in range(kD):
            for b in range(kH):
                for c_ in range(kW):
                    cols.append(xp[:,
                                   a * dd: a * dd + sd * (oD - 1) + 1: sd,
                                   b * dh: b * dh + sh * (oH - 1) + 1: sh,
                                   c_ * dw: c_ * dw + sw * (oW - 1) + 1: sw,
                                   :])
        patches = jnp.concatenate(cols, axis=-1).reshape(
            N * oD * oH * oW, kD * kH * kW * Cin)

    wm = jnp.transpose(w, (2, 3, 4, 1, 0)).reshape(kD * kH * kW * Cin, Cout)
    res2d = None
    if residual is not None:
        res2d = residual.reshape(N * oD * oH * oW, Cout)
    out = matmul_fused(patches, wm, relu_a=pre_bn_relu, residual=res2d,
                       out_dtype=out_dtype)
    return out.reshape(N, oD, oH, oW, Cout)


def upsample2x(x):
    # TODO(synk): trilinear 2x upsample (align_corners=False) kept as
    # jax.image.resize glue; a fused 8-tap Pallas kernel is future work.
    N, D, H, W, C = x.shape
    return jax.image.resize(x, (N, 2 * D, 2 * H, 2 * W, C), method="trilinear")


# ----------------------------- Parameter init --------------------------------

class KeyGen:
    def __init__(self, key):
        self.key = key
        self.i = 0

    def __call__(self):
        k = jax.random.fold_in(self.key, self.i)
        self.i += 1
        return k


def kaiming(key, shape):
    # shape = (Cout, Cin_per_group, kD, kH, kW); fan_in-based, gain sqrt(2).
    fan_in = shape[1] * shape[2] * shape[3] * shape[4]
    return jax.random.normal(key, shape, jnp.float32) * math.sqrt(2.0 / fan_in)


def mfunit_init(kg, num_in, num_out, g, stride):
    # Params are arrays only; strides / groups are re-derived from shapes so
    # the whole forward jits with the params pytree as an argument.
    num_mid = num_in if num_in <= num_out else num_out
    p = {}
    p["w_in1"] = kaiming(kg(), (num_in // 4, num_in, 1, 1, 1))
    p["w_in2"] = kaiming(kg(), (num_mid, num_in // 4, 1, 1, 1))
    p["w_m1"] = kaiming(kg(), (num_out, num_mid // g, 3, 3, 3))
    p["w_m2"] = kaiming(kg(), (num_out, num_out // g, 3, 3, 1))
    if num_in != num_out or stride != 1:
        if stride == 1:
            p["w_sc"] = kaiming(kg(), (num_out, num_in, 1, 1, 1))
        else:  # stride == 2
            p["w_sc"] = kaiming(kg(), (num_out, num_in, 2, 2, 2))
    return p


def mfnet_init(key, c, n, channels, groups, num_classes):
    kg = KeyGen(key)
    P = {}
    P["enc1_w"] = kaiming(kg(), (n, c, 3, 3, 3))
    P["enc2"] = [mfunit_init(kg, n, channels, groups, 2),
                 mfunit_init(kg, channels, channels, groups, 1),
                 mfunit_init(kg, channels, channels, groups, 1)]
    P["enc3"] = [mfunit_init(kg, channels, channels * 2, groups, 2),
                 mfunit_init(kg, channels * 2, channels * 2, groups, 1),
                 mfunit_init(kg, channels * 2, channels * 2, groups, 1)]
    P["enc4"] = [mfunit_init(kg, channels * 2, channels * 3, groups, 2),
                 mfunit_init(kg, channels * 3, channels * 3, groups, 1),
                 mfunit_init(kg, channels * 3, channels * 2, groups, 1)]
    P["dec1"] = mfunit_init(kg, channels * 2 + channels * 2, channels * 2, groups, 1)
    P["dec2"] = mfunit_init(kg, channels * 2 + channels, channels, groups, 1)
    P["dec3"] = mfunit_init(kg, channels + n, n, groups, 1)
    P["seg_w"] = kaiming(kg(), (num_classes, n, 1, 1, 1))
    return P


# --------------------------------- Forward -----------------------------------

def mfunit_fwd(p, x):
    # Static config derived from weight shapes (keeps params arrays-only).
    stride = 2 if ("w_sc" in p and p["w_sc"].shape[2] == 2) else 1
    s = (stride, stride, stride)

    x1 = conv3d(x, p["w_in1"], (1, 1, 1), (0, 0, 0), (1, 1, 1), pre_bn_relu=True)
    x2 = conv3d(x1, p["w_in2"], (1, 1, 1), (0, 0, 0), (1, 1, 1), pre_bn_relu=True)
    x3 = conv3d(x2, p["w_m1"], s, (1, 1, 1), (1, 1, 1), pre_bn_relu=True)

    if "w_sc" in p:
        if stride == 1:
            shortcut = conv3d(x, p["w_sc"], (1, 1, 1), (0, 0, 0), (1, 1, 1),
                              pre_bn_relu=True)
        else:
            shortcut = conv3d(x, p["w_sc"], (2, 2, 2), (0, 0, 0), (1, 1, 1),
                              pre_bn_relu=True)
    else:
        shortcut = x

    # Last conv of the unit with the residual add fused into its epilogue.
    x4 = conv3d(x3, p["w_m2"], (1, 1, 1), (1, 1, 0), (1, 1, 1),
                pre_bn_relu=True, residual=shortcut)
    return x4


def mfnet_forward(P, x_ncdhw):
    x = jnp.transpose(x_ncdhw, (0, 2, 3, 4, 1)).astype(jnp.bfloat16)  # NDHWC

    x1 = conv3d(x, P["enc1_w"], (2, 2, 2), (1, 1, 1), (1, 1, 1))
    x2 = x1
    for p in P["enc2"]:
        x2 = mfunit_fwd(p, x2)
    x3 = x2
    for p in P["enc3"]:
        x3 = mfunit_fwd(p, x3)
    x4 = x3
    for p in P["enc4"]:
        x4 = mfunit_fwd(p, x4)

    y1 = mfunit_fwd(P["dec1"], jnp.concatenate([x3, upsample2x(x4)], axis=-1))
    y2 = mfunit_fwd(P["dec2"], jnp.concatenate([x2, upsample2x(y1)], axis=-1))
    y3 = mfunit_fwd(P["dec3"], jnp.concatenate([x1, upsample2x(y2)], axis=-1))

    y4 = upsample2x(y3)
    y4 = conv3d(y4, P["seg_w"], (1, 1, 1), (0, 0, 0), (1, 1, 1),
                out_dtype=jnp.float32)

    y = jnp.transpose(y4, (0, 4, 1, 2, 3))          # back to NCDHW
    return softmax_channels(y)                       # softmax over channels


# ----------------------------------- Main ------------------------------------

if __name__ == "__main__":
    key = jax.random.PRNGKey(0)
    # Small but forward-consistent config: spatial divisible by 16 (4 stride-2
    # encoders); channel counts keep the //4 and group divisibility intact.
    c, n, channels, groups, num_classes = 4, 8, 16, 4, 4
    params = mfnet_init(jax.random.fold_in(key, 1), c, n, channels, groups,
                        num_classes)
    x = jax.random.normal(jax.random.fold_in(key, 2),
                          (1, c, 16, 16, 16), jnp.float32)
    fwd = jax.jit(mfnet_forward)
    y = jax.block_until_ready(fwd(params, x))
    assert y.shape == (1, num_classes, 16, 16, 16)
    assert bool(jnp.all(jnp.isfinite(y)))
    print("KERNEL_OK")
</pallas_src>

<mosaic_0001>
module attributes {stable_mosaic.version = 11 : i64} {
  func.func @_mm_kernel(%arg0: i32, %arg1: i32, %arg2: i32, %arg3: memref<256x128xbf16, #tpu.memory_space<vmem>>, %arg4: memref<128x128xbf16, #tpu.memory_space<vmem>>, %arg5: memref<256x128xbf16, #tpu.memory_space<vmem>>, %arg6: memref<256x128xf32, #tpu.memory_space<vmem>>) attributes {dimension_semantics = [#tpu.dimension_semantics<parallel>, #tpu.dimension_semantics<parallel>, #tpu.dimension_semantics<arbitrary>], iteration_bounds = array<i64: 2, 1, 1>, scalar_prefetch = 0 : i64, scratch_operands = 1 : i64, tpu.core_type = #tpu.core_type<tc>, window_params = [{transform_indices = @transform_0, window_bounds = array<i64: 256, 128>}, {transform_indices = @transform_1, window_bounds = array<i64: 128, 128>}, {transform_indices = @transform_2, window_bounds = array<i64: 256, 128>}]} {
    %c0_i32 = arith.constant 0 : i32
    %0 = arith.cmpi eq, %arg2, %c0_i32 : i32
    %1 = arith.extui %0 : i1 to i32
    %c0_i32_0 = arith.constant 0 : i32
    %2 = arith.cmpi ne, %1, %c0_i32_0 : i32
    scf.if %2 {
      %cst_10 = arith.constant 0.000000e+00 : f32
      %12 = vector.broadcast %cst_10 : f32 to vector<256x128xf32>
      %c0_11 = arith.constant 0 : index
      %c0_12 = arith.constant 0 : index
      %13 = vector.load %arg6[%c0_11, %c0_12] : memref<256x128xf32, #tpu.memory_space<vmem>>, vector<256x128xf32>
      tpu.vector_store %arg6[%c0_11, %c0_12], %12 {strides = array<i32>} : memref<256x128xf32, #tpu.memory_space<vmem>>, vector<256x128xf32>,
    } else {
    }
    %c0 = arith.constant 0 : index
    %c0_1 = arith.constant 0 : index
    %3 = vector.load %arg3[%c0, %c0_1] : memref<256x128xbf16, #tpu.memory_space<vmem>>, vector<256x128xbf16>
    %c0_2 = arith.constant 0 : index
    %c0_3 = arith.constant 0 : index
    %4 = vector.load %arg6[%c0_2, %c0_3] : memref<256x128xf32, #tpu.memory_space<vmem>>, vector<256x128xf32>
    %c0_4 = arith.constant 0 : index
    %c0_5 = arith.constant 0 : index
    %5 = vector.load %arg4[%c0_4, %c0_5] : memref<128x128xbf16, #tpu.memory_space<vmem>>, vector<128x128xbf16>
    %cst = arith.constant dense<0.000000e+00> : vector<256x128xf32>
    %6 = tpu.matmul %3, %5, %cst {dimension_numbers = #tpu.dot_dimension_numbers<[1], [0], [0], [1], [0, 0, 1, 1], [], []>} : vector<256x128xbf16>, vector<128x128xbf16>, vector<256x128xf32> -> vector<256x128xf32>
    %7 = arith.addf %4, %6 : vector<256x128xf32>
    %c0_6 = arith.constant 0 : index
    %c0_7 = arith.constant 0 : index
    %8 = vector.load %arg6[%c0_6, %c0_7] : memref<256x128xf32, #tpu.memory_space<vmem>>, vector<256x128xf32>
    tpu.vector_store %arg6[%c0_6, %c0_7], %7 {strides = array<i32>} : memref<256x128xf32, #tpu.memory_space<vmem>>, vector<256x128xf32>,
    %c0_i32_8 = arith.constant 0 : i32
    %9 = arith.cmpi eq, %arg2, %c0_i32_8 : i32
    %10 = arith.extui %9 : i1 to i32
    %c0_i32_9 = arith.constant 0 : i32
    %11 = arith.cmpi ne, %10, %c0_i32_9 : i32
    scf.if %11 {
      %c0_10 = arith.constant 0 : index
      %c0_11 = arith.constant 0 : index
      %12 = vector.load %arg6[%c0_10, %c0_11] : memref<256x128xf32, #tpu.memory_space<vmem>>, vector<256x128xf32>
      %13 = arith.truncf %12 : vector<256x128xf32> to vector<256x128xbf16>
      %c0_12 = arith.constant 0 : index
      %c0_13 = arith.constant 0 : index
      %14 = vector.load %arg5[%c0_12, %c0_13] : memref<256x128xbf16, #tpu.memory_space<vmem>>, vector<256x128xbf16>
      tpu.vector_store %arg5[%c0_12, %c0_13], %13 {strides = array<i32>} : memref<256x128xbf16, #tpu.memory_space<vmem>>, vector<256x128xbf16>,
    } else {
    }
    return
  }
  func.func @transform_0(%arg0: i32, %arg1: i32, %arg2: i32) -> (i32, i32) {
    %c0_i32 = arith.constant 0 : i32
    return %arg0, %arg2 : i32, i32
  }
  func.func @transform_1(%arg0: i32, %arg1: i32, %arg2: i32) -> (i32, i32) {
    %c0_i32 = arith.constant 0 : i32
    return %arg2, %arg1 : i32, i32
  }
  func.func @transform_2(%arg0: i32, %arg1: i32, %arg2: i32) -> (i32, i32) {
    %c0_i32 = arith.constant 0 : i32
    return %arg0, %arg1 : i32, i32
  }
}

module attributes {stable_mosaic.version = 11 : i64} {
  func.func @_mm_kernel(%arg0: i32, %arg1: i32, %arg2: i32, %arg3: memref<128x128xbf16, #tpu.memory_space<vmem>>, %arg4: memref<128x128xbf16, #tpu.memory_space<vmem>>, %arg5: memref<128x128xbf16, #tpu.memory_space<vmem>>, %arg6: memref<128x128xf32, #tpu.memory_space<vmem>>) attributes {dimension_semantics = [#tpu.dimension_semantics<parallel>, #tpu.dimension_semantics<parallel>, #tpu.dimension_semantics<arbitrary>], iteration_bounds = array<i64: 1, 1, 1>, scalar_prefetch = 0 : i64, scratch_operands = 1 : i64, tpu.core_type = #tpu.core_type<tc>, window_params = [{transform_indices = @transform_0, window_bounds = array<i64: 128, 128>}, {transform_indices = @transform_1, window_bounds = array<i64: 128, 128>}, {transform_indices = @transform_2, window_bounds = array<i64: 128, 128>}]} {
    %c0_i32 = arith.constant 0 : i32
    %0 = arith.cmpi eq, %arg2, %c0_i32 : i32
    %1 = arith.extui %0 : i1 to i32
    %c0_i32_0 = arith.constant 0 : i32
    %2 = arith.cmpi ne, %1, %c0_i32_0 : i32
    scf.if %2 {
      %cst_11 = arith.constant 0.000000e+00 : f32
      %14 = vector.broadcast %cst_11 : f32 to vector<128x128xf32>
      %c0_12 = arith.constant 0 : index
      %c0_13 = arith.constant 0 : index
      %15 = vector.load %arg6[%c0_12, %c0_13] : memref<128x128xf32, #tpu.memory_space<vmem>>, vector<128x128xf32>
      tpu.vector_store %arg6[%c0_12, %c0_13], %14 {strides = array<i32>} : memref<128x128xf32, #tpu.memory_space<vmem>>, vector<128x128xf32>,
    } else {
    }
    %c0 = arith.constant 0 : index
    %c0_1 = arith.constant 0 : index
    %3 = vector.load %arg3[%c0, %c0_1] : memref<128x128xbf16, #tpu.memory_space<vmem>>, vector<128x128xbf16>
    %cst = arith.constant 0.000000e+00 : bf16
    %4 = vector.broadcast %cst : bf16 to vector<128x128xbf16>
    %5 = arith.maximumf %3, %4 : vector<128x128xbf16>
    %c0_2 = arith.constant 0 : index
    %c0_3 = arith.constant 0 : index
    %6 = vector.load %arg6[%c0_2, %c0_3] : memref<128x128xf32, #tpu.memory_space<vmem>>, vector<128x128xf32>
    %c0_4 = arith.constant 0 : index
    %c0_5 = arith.constant 0 : index
    %7 = vector.load %arg4[%c0_4, %c0_5] : memref<128x128xbf16, #tpu.memory_space<vmem>>, vector<128x128xbf16>
    %cst_6 = arith.constant dense<0.000000e+00> : vector<128x128xf32>
    %8 = tpu.matmul %5, %7, %cst_6 {dimension_numbers = #tpu.dot_dimension_numbers<[1], [0], [0], [1], [0, 0, 1, 1], [], []>} : vector<128x128xbf16>, vector<128x128xbf16>, vector<128x128xf32> -> vector<128x128xf32>
    %9 = arith.addf %6, %8 : vector<128x128xf32>
    %c0_7 = arith.constant 0 : index
    %c0_8 = arith.constant 0 : index
    %10 = vector.load %arg6[%c0_7, %c0_8] : memref<128x128xf32, #tpu.memory_space<vmem>>, vector<128x128xf32>
    tpu.vector_store %arg6[%c0_7, %c0_8], %9 {strides = array<i32>} : memref<128x128xf32, #tpu.memory_space<vmem>>, vector<128x128xf32>,
    %c0_i32_9 = arith.constant 0 : i32
    %11 = arith.cmpi eq, %arg2, %c0_i32_9 : i32
    %12 = arith.extui %11 : i1 to i32
    %c0_i32_10 = arith.constant 0 : i32
    %13 = arith.cmpi ne, %12, %c0_i32_10 : i32
    scf.if %13 {
      %c0_11 = arith.constant 0 : index
      %c0_12 = arith.constant 0 : index
      %14 = vector.load %arg6[%c0_11, %c0_12] : memref<128x128xf32, #tpu.memory_space<vmem>>, vector<128x128xf32>
      %15 = arith.truncf %14 : vector<128x128xf32> to vector<128x128xbf16>
      %c0_13 = arith.constant 0 : index
      %c0_14 = arith.constant 0 : index
      %16 = vector.load %arg5[%c0_13, %c0_14] : memref<128x128xbf16, #tpu.memory_space<vmem>>, vector<128x128xbf16>
      tpu.vector_store %arg5[%c0_13, %c0_14], %15 {strides = array<i32>} : memref<128x128xbf16, #tpu.memory_space<vmem>>, vector<128x128xbf16>,
    } else {
    }
    return
  }
  func.func @transform_0(%arg0: i32, %arg1: i32, %arg2: i32) -> (i32, i32) {
    %c0_i32 = arith.constant 0 : i32
    return %arg0, %arg2 : i32, i32
  }
  func.func @transform_1(%arg0: i32, %arg1: i32, %arg2: i32) -> (i32, i32) {
    %c0_i32 = arith.constant 0 : i32
    return %arg2, %arg1 : i32, i32
  }
  func.func @transform_2(%arg0: i32, %arg1: i32, %arg2: i32) -> (i32, i32) {
    %c0_i32 = arith.constant 0 : i32
    return %arg0, %arg1 : i32, i32
  }
}

module attributes {stable_mosaic.version = 11 : i64} {
  func.func @_mm_kernel(%arg0: i32, %arg1: i32, %arg2: i32, %arg3: memref<256x128xbf16, #tpu.memory_space<vmem>>, %arg4: memref<128x128xbf16, #tpu.memory_space<vmem>>, %arg5: memref<256x128xbf16, #tpu.memory_space<vmem>>, %arg6: memref<256x128xf32, #tpu.memory_space<vmem>>) attributes {dimension_semantics = [#tpu.dimension_semantics<parallel>, #tpu.dimension_semantics<parallel>, #tpu.dimension_semantics<arbitrary>], iteration_bounds = array<i64: 2, 1, 1>, scalar_prefetch = 0 : i64, scratch_operands = 1 : i64, tpu.core_type = #tpu.core_type<tc>, window_params = [{transform_indices = @transform_0, window_bounds = array<i64: 256, 128>}, {transform_indices = @transform_1, window_bounds = array<i64: 128, 128>}, {transform_indices = @transform_2, window_bounds = array<i64: 256, 128>}]} {
    %c0_i32 = arith.constant 0 : i32
    %0 = arith.cmpi eq, %arg2, %c0_i32 : i32
    %1 = arith.extui %0 : i1 to i32
    %c0_i32_0 = arith.constant 0 : i32
    %2 = arith.cmpi ne, %1, %c0_i32_0 : i32
    scf.if %2 {
      %cst_11 = arith.constant 0.000000e+00 : f32
      %14 = vector.broadcast %cst_11 : f32 to vector<256x128xf32>
      %c0_12 = arith.constant 0 : index
      %c0_13 = arith.constant 0 : index
      %15 = vector.load %arg6[%c0_12, %c0_13] : memref<256x128xf32, #tpu.memory_space<vmem>>, vector<256x128xf32>
      tpu.vector_store %arg6[%c0_12, %c0_13], %14 {strides = array<i32>} : memref<256x128xf32, #tpu.memory_space<vmem>>, vector<256x128xf32>,
    } else {
    }
    %c0 = arith.constant 0 : index
    %c0_1 = arith.constant 0 : index
    %3 = vector.load %arg3[%c0, %c0_1] : memref<256x128xbf16, #tpu.memory_space<vmem>>, vector<256x128xbf16>
    %cst = arith.constant 0.000000e+00 : bf16
    %4 = vector.broadcast %cst : bf16 to vector<256x128xbf16>
    %5 = arith.maximumf %3, %4 : vector<256x128xbf16>
    %c0_2 = arith.constant 0 : index
    %c0_3 = arith.constant 0 : index
    %6 = vector.load %arg6[%c0_2, %c0_3] : memref<256x128xf32, #tpu.memory_space<vmem>>, vector<256x128xf32>
    %c0_4 = arith.constant 0 : index
    %c0_5 = arith.constant 0 : index
    %7 = vector.load %arg4[%c0_4, %c0_5] : memref<128x128xbf16, #tpu.memory_space<vmem>>, vector<128x128xbf16>
    %cst_6 = arith.constant dense<0.000000e+00> : vector<256x128xf32>
    %8 = tpu.matmul %5, %7, %cst_6 {dimension_numbers = #tpu.dot_dimension_numbers<[1], [0], [0], [1], [0, 0, 1, 1], [], []>} : vector<256x128xbf16>, vector<128x128xbf16>, vector<256x128xf32> -> vector<256x128xf32>
    %9 = arith.addf %6, %8 : vector<256x128xf32>
    %c0_7 = arith.constant 0 : index
    %c0_8 = arith.constant 0 : index
    %10 = vector.load %arg6[%c0_7, %c0_8] : memref<256x128xf32, #tpu.memory_space<vmem>>, vector<256x128xf32>
    tpu.vector_store %arg6[%c0_7, %c0_8], %9 {strides = array<i32>} : memref<256x128xf32, #tpu.memory_space<vmem>>, vector<256x128xf32>,
    %c0_i32_9 = arith.constant 0 : i32
    %11 = arith.cmpi eq, %arg2, %c0_i32_9 : i32
    %12 = arith.extui %11 : i1 to i32
    %c0_i32_10 = arith.constant 0 : i32
    %13 = arith.cmpi ne, %12, %c0_i32_10 : i32
    scf.if %13 {
      %c0_11 = arith.constant 0 : index
      %c0_12 = arith.constant 0 : index
      %14 = vector.load %arg6[%c0_11, %c0_12] : memref<256x128xf32, #tpu.memory_space<vmem>>, vector<256x128xf32>
      %15 = arith.truncf %14 : vector<256x128xf32> to vector<256x128xbf16>
      %c0_13 = arith.constant 0 : index
      %c0_14 = arith.constant 0 : index
      %16 = vector.load %arg5[%c0_13, %c0_14] : memref<256x128xbf16, #tpu.memory_space<vmem>>, vector<256x128xbf16>
      tpu.vector_store %arg5[%c0_13, %c0_14], %15 {strides = array<i32>} : memref<256x128xbf16, #tpu.memory_space<vmem>>, vector<256x128xbf16>,
    } else {
    }
    return
  }
  func.func @transform_0(%arg0: i32, %arg1: i32, %arg2: i32) -> (i32, i32) {
    %c0_i32 = arith.constant 0 : i32
    return %arg0, %arg2 : i32, i32
  }
  func.func @transform_1(%arg0: i32, %arg1: i32, %arg2: i32) -> (i32, i32) {
    %c0_i32 = arith.constant 0 : i32
    return %arg2, %arg1 : i32, i32
  }
  func.func @transform_2(%arg0: i32, %arg1: i32, %arg2: i32) -> (i32, i32) {
    %c0_i32 = arith.constant 0 : i32
    return %arg0, %arg1 : i32, i32
  }
}

module attributes {stable_mosaic.version = 11 : i64} {
  func.func @_mm_kernel(%arg0: i32, %arg1: i32, %arg2: i32, %arg3: memref<128x256xbf16, #tpu.memory_space<vmem>>, %arg4: memref<256x128xbf16, #tpu.memory_space<vmem>>, %arg5: memref<128x128xbf16, #tpu.memory_space<vmem>>, %arg6: memref<128x128xf32, #tpu.memory_space<vmem>>) attributes {dimension_semantics = [#tpu.dimension_semantics<parallel>, #tpu.dimension_semantics<parallel>, #tpu.dimension_semantics<arbitrary>], iteration_bounds = array<i64: 1, 1, 1>, scalar_prefetch = 0 : i64, scratch_operands = 1 : i64, tpu.core_type = #tpu.core_type<tc>, window_params = [{transform_indices = @transform_0, window_bounds = array<i64: 128, 256>}, {transform_indices = @transform_1, window_bounds = array<i64: 256, 128>}, {transform_indices = @transform_2, window_bounds = array<i64: 128, 128>}]} {
    %c0_i32 = arith.constant 0 : i32
    %0 = arith.cmpi eq, %arg2, %c0_i32 : i32
    %1 = arith.extui %0 : i1 to i32
    %c0_i32_0 = arith.constant 0 : i32
    %2 = arith.cmpi ne, %1, %c0_i32_0 : i32
    scf.if %2 {
      %cst_11 = arith.constant 0.000000e+00 : f32
      %14 = vector.broadcast %cst_11 : f32 to vector<128x128xf32>
      %c0_12 = arith.constant 0 : index
      %c0_13 = arith.constant 0 : index
      %15 = vector.load %arg6[%c0_12, %c0_13] : memref<128x128xf32, #tpu.memory_space<vmem>>, vector<128x128xf32>
      tpu.vector_store %arg6[%c0_12, %c0_13], %14 {strides = array<i32>} : memref<128x128xf32, #tpu.memory_space<vmem>>, vector<128x128xf32>,
    } else {
    }
    %c0 = arith.constant 0 : index
    %c0_1 = arith.constant 0 : index
    %3 = vector.load %arg3[%c0, %c0_1] : memref<128x256xbf16, #tpu.memory_space<vmem>>, vector<128x256xbf16>
    %cst = arith.constant 0.000000e+00 : bf16
    %4 = vector.broadcast %cst : bf16 to vector<128x256xbf16>
    %5 = arith.maximumf %3, %4 : vector<128x256xbf16>
    %c0_2 = arith.constant 0 : index
    %c0_3 = arith.constant 0 : index
    %6 = vector.load %arg6[%c0_2, %c0_3] : memref<128x128xf32, #tpu.memory_space<vmem>>, vector<128x128xf32>
    %c0_4 = arith.constant 0 : index
    %c0_5 = arith.constant 0 : index
    %7 = vector.load %arg4[%c0_4, %c0_5] : memref<256x128xbf16, #tpu.memory_space<vmem>>, vector<256x128xbf16>
    %cst_6 = arith.constant dense<0.000000e+00> : vector<128x128xf32>
    %8 = tpu.matmul %5, %7, %cst_6 {dimension_numbers = #tpu.dot_dimension_numbers<[1], [0], [0], [1], [0, 0, 1, 1], [], []>} : vector<128x256xbf16>, vector<256x128xbf16>, vector<128x128xf32> -> vector<128x128xf32>
    %9 = arith.addf %6, %8 : vector<128x128xf32>
    %c0_7 = arith.constant 0 : index
    %c0_8 = arith.constant 0 : index
    %10 = vector.load %arg6[%c0_7, %c0_8] : memref<128x128xf32, #tpu.memory_space<vmem>>, vector<128x128xf32>
    tpu.vector_store %arg6[%c0_7, %c0_8], %9 {strides = array<i32>} : memref<128x128xf32, #tpu.memory_space<vmem>>, vector<128x128xf32>,
    %c0_i32_9 = arith.constant 0 : i32
    %11 = arith.cmpi eq, %arg2, %c0_i32_9 : i32
    %12 = arith.extui %11 : i1 to i32
    %c0_i32_10 = arith.constant 0 : i32
    %13 = arith.cmpi ne, %12, %c0_i32_10 : i32
    scf.if %13 {
      %c0_11 = arith.constant 0 : index
      %c0_12 = arith.constant 0 : index
      %14 = vector.load %arg6[%c0_11, %c0_12] : memref<128x128xf32, #tpu.memory_space<vmem>>, vector<128x128xf32>
      %15 = arith.truncf %14 : vector<128x128xf32> to vector<128x128xbf16>
      %c0_13 = arith.constant 0 : index
      %c0_14 = arith.constant 0 : index
      %16 = vector.load %arg5[%c0_13, %c0_14] : memref<128x128xbf16, #tpu.memory_space<vmem>>, vector<128x128xbf16>
      tpu.vector_store %arg5[%c0_13, %c0_14], %15 {strides = array<i32>} : memref<128x128xbf16, #tpu.memory_space<vmem>>, vector<128x128xbf16>,
    } else {
    }
    return
  }
  func.func @transform_0(%arg0: i32, %arg1: i32, %arg2: i32) -> (i32, i32) {
    %c0_i32 = arith.constant 0 : i32
    return %arg0, %arg2 : i32, i32
  }
  func.func @transform_1(%arg0: i32, %arg1: i32, %arg2: i32) -> (i32, i32) {
    %c0_i32 = arith.constant 0 : i32
    return %arg2, %arg1 : i32, i32
  }
  func.func @transform_2(%arg0: i32, %arg1: i32, %arg2: i32) -> (i32, i32) {
    %c0_i32 = arith.constant 0 : i32
    return %arg0, %arg1 : i32, i32
  }
}

module attributes {stable_mosaic.version = 11 : i64} {
  func.func @_mm_kernel(%arg0: i32, %arg1: i32, %arg2: i32, %arg3: memref<128x256xbf16, #tpu.memory_space<vmem>>, %arg4: memref<256x128xbf16, #tpu.memory_space<vmem>>, %arg5: memref<128x128xbf16, #tpu.memory_space<vmem>>, %arg6: memref<128x128xbf16, #tpu.memory_space<vmem>>, %arg7: memref<128x128xf32, #tpu.memory_space<vmem>>) attributes {dimension_semantics = [#tpu.dimension_semantics<parallel>, #tpu.dimension_semantics<parallel>, #tpu.dimension_semantics<arbitrary>], iteration_bounds = array<i64: 1, 1, 1>, scalar_prefetch = 0 : i64, scratch_operands = 1 : i64, tpu.core_type = #tpu.core_type<tc>, window_params = [{transform_indices = @transform_0, window_bounds = array<i64: 128, 256>}, {transform_indices = @transform_1, window_bounds = array<i64: 256, 128>}, {transform_indices = @transform_2, window_bounds = array<i64: 128, 128>}, {transform_indices = @transform_3, window_bounds = array<i64: 128, 128>}]} {
    %c0_i32 = arith.constant 0 : i32
    %0 = arith.cmpi eq, %arg2, %c0_i32 : i32
    %1 = arith.extui %0 : i1 to i32
    %c0_i32_0 = arith.constant 0 : i32
    %2 = arith.cmpi ne, %1, %c0_i32_0 : i32
    scf.if %2 {
      %cst_11 = arith.constant 0.000000e+00 : f32
      %14 = vector.broadcast %cst_11 : f32 to vector<128x128xf32>
      %c0_12 = arith.constant 0 : index
      %c0_13 = arith.constant 0 : index
      %15 = vector.load %arg7[%c0_12, %c0_13] : memref<128x128xf32, #tpu.memory_space<vmem>>, vector<128x128xf32>
      tpu.vector_store %arg7[%c0_12, %c0_13], %14 {strides = array<i32>} : memref<128x128xf32, #tpu.memory_space<vmem>>, vector<128x128xf32>,
    } else {
    }
    %c0 = arith.constant 0 : index
    %c0_1 = arith.constant 0 : index
    %3 = vector.load %arg3[%c0, %c0_1] : memref<128x256xbf16, #tpu.memory_space<vmem>>, vector<128x256xbf16>
    %cst = arith.constant 0.000000e+00 : bf16
    %4 = vector.broadcast %cst : bf16 to vector<128x256xbf16>
    %5 = arith.maximumf %3, %4 : vector<128x256xbf16>
    %c0_2 = arith.constant 0 : index
    %c0_3 = arith.constant 0 : index
    %6 = vector.load %arg7[%c0_2, %c0_3] : memref<128x128xf32, #tpu.memory_space<vmem>>, vector<128x128xf32>
    %c0_4 = arith.constant 0 : index
    %c0_5 = arith.constant 0 : index
    %7 = vector.load %arg4[%c0_4, %c0_5] : memref<256x128xbf16, #tpu.memory_space<vmem>>, vector<256x128xbf16>
    %cst_6 = arith.constant dense<0.000000e+00> : vector<128x128xf32>
    %8 = tpu.matmul %5, %7, %cst_6 {dimension_numbers = #tpu.dot_dimension_numbers<[1], [0], [0], [1], [0, 0, 1, 1], [], []>} : vector<128x256xbf16>, vector<256x128xbf16>, vector<128x128xf32> -> vector<128x128xf32>
    %9 = arith.addf %6, %8 : vector<128x128xf32>
    %c0_7 = arith.constant 0 : index
    %c0_8 = arith.constant 0 : index
    %10 = vector.load %arg7[%c0_7, %c0_8] : memref<128x128xf32, #tpu.memory_space<vmem>>, vector<128x128xf32>
    tpu.vector_store %arg7[%c0_7, %c0_8], %9 {strides = array<i32>} : memref<128x128xf32, #tpu.memory_space<vmem>>, vector<128x128xf32>,
    %c0_i32_9 = arith.constant 0 : i32
    %11 = arith.cmpi eq, %arg2, %c0_i32_9 : i32
    %12 = arith.extui %11 : i1 to i32
    %c0_i32_10 = arith.constant 0 : i32
    %13 = arith.cmpi ne, %12, %c0_i32_10 : i32
    scf.if %13 {
      %c0_11 = arith.constant 0 : index
      %c0_12 = arith.constant 0 : index
      %14 = vector.load %arg7[%c0_11, %c0_12] : memref<128x128xf32, #tpu.memory_space<vmem>>, vector<128x128xf32>
      %c0_13 = arith.constant 0 : index
      %c0_14 = arith.constant 0 : index
      %15 = vector.load %arg5[%c0_13, %c0_14] : memref<128x128xbf16, #tpu.memory_space<vmem>>, vector<128x128xbf16>
      %16 = arith.extf %15 : vector<128x128xbf16> to vector<128x128xf32>
      %17 = arith.addf %14, %16 : vector<128x128xf32>
      %18 = arith.truncf %17 : vector<128x128xf32> to vector<128x128xbf16>
      %c0_15 = arith.constant 0 : index
      %c0_16 = arith.constant 0 : index
      %19 = vector.load %arg6[%c0_15, %c0_16] : memref<128x128xbf16, #tpu.memory_space<vmem>>, vector<128x128xbf16>
      tpu.vector_store %arg6[%c0_15, %c0_16], %18 {strides = array<i32>} : memref<128x128xbf16, #tpu.memory_space<vmem>>, vector<128x128xbf16>,
    } else {
    }
    return
  }
  func.func @transform_0(%arg0: i32, %arg1: i32, %arg2: i32) -> (i32, i32) {
    %c0_i32 = arith.constant 0 : i32
    return %arg0, %arg2 : i32, i32
  }
  func.func @transform_1(%arg0: i32, %arg1: i32, %arg2: i32) -> (i32, i32) {
    %c0_i32 = arith.constant 0 : i32
    return %arg2, %arg1 : i32, i32
  }
  func.func @transform_2(%arg0: i32, %arg1: i32, %arg2: i32) -> (i32, i32) {
    %c0_i32 = arith.constant 0 : i32
    return %arg0, %arg1 : i32, i32
  }
  func.func @transform_3(%arg0: i32, %arg1: i32, %arg2: i32) -> (i32, i32) {
    %c0_i32 = arith.constant 0 : i32
    return %arg0, %arg1 : i32, i32
  }
}

module attributes {stable_mosaic.version = 11 : i64} {
  func.func @_mm_kernel(%arg0: i32, %arg1: i32, %arg2: i32, %arg3: memref<128x512xbf16, #tpu.memory_space<vmem>>, %arg4: memref<512x128xbf16, #tpu.memory_space<vmem>>, %arg5: memref<128x128xbf16, #tpu.memory_space<vmem>>, %arg6: memref<128x128xf32, #tpu.memory_space<vmem>>) attributes {dimension_semantics = [#tpu.dimension_semantics<parallel>, #tpu.dimension_semantics<parallel>, #tpu.dimension_semantics<arbitrary>], iteration_bounds = array<i64: 1, 1, 1>, scalar_prefetch = 0 : i64, scratch_operands = 1 : i64, tpu.core_type = #tpu.core_type<tc>, window_params = [{transform_indices = @transform_0, window_bounds = array<i64: 128, 512>}, {transform_indices = @transform_1, window_bounds = array<i64: 512, 128>}, {transform_indices = @transform_2, window_bounds = array<i64: 128, 128>}]} {
    %c0_i32 = arith.constant 0 : i32
    %0 = arith.cmpi eq, %arg2, %c0_i32 : i32
    %1 = arith.extui %0 : i1 to i32
    %c0_i32_0 = arith.constant 0 : i32
    %2 = arith.cmpi ne, %1, %c0_i32_0 : i32
    scf.if %2 {
      %cst_11 = arith.constant 0.000000e+00 : f32
      %14 = vector.broadcast %cst_11 : f32 to vector<128x128xf32>
      %c0_12 = arith.constant 0 : index
      %c0_13 = arith.constant 0 : index
      %15 = vector.load %arg6[%c0_12, %c0_13] : memref<128x128xf32, #tpu.memory_space<vmem>>, vector<128x128xf32>
      tpu.vector_store %arg6[%c0_12, %c0_13], %14 {strides = array<i32>} : memref<128x128xf32, #tpu.memory_space<vmem>>, vector<128x128xf32>,
    } else {
    }
    %c0 = arith.constant 0 : index
    %c0_1 = arith.constant 0 : index
    %3 = vector.load %arg3[%c0, %c0_1] : memref<128x512xbf16, #tpu.memory_space<vmem>>, vector<128x512xbf16>
    %cst = arith.constant 0.000000e+00 : bf16
    %4 = vector.broadcast %cst : bf16 to vector<128x512xbf16>
    %5 = arith.maximumf %3, %4 : vector<128x512xbf16>
    %c0_2 = arith.constant 0 : index
    %c0_3 = arith.constant 0 : index
    %6 = vector.load %arg6[%c0_2, %c0_3] : memref<128x128xf32, #tpu.memory_space<vmem>>, vector<128x128xf32>
    %c0_4 = arith.constant 0 : index
    %c0_5 = arith.constant 0 : index
    %7 = vector.load %arg4[%c0_4, %c0_5] : memref<512x128xbf16, #tpu.memory_space<vmem>>, vector<512x128xbf16>
    %cst_6 = arith.constant dense<0.000000e+00> : vector<128x128xf32>
    %8 = tpu.matmul %5, %7, %cst_6 {dimension_numbers = #tpu.dot_dimension_numbers<[1], [0], [0], [1], [0, 0, 1, 1], [], []>} : vector<128x512xbf16>, vector<512x128xbf16>, vector<128x128xf32> -> vector<128x128xf32>
    %9 = arith.addf %6, %8 : vector<128x128xf32>
    %c0_7 = arith.constant 0 : index
    %c0_8 = arith.constant 0 : index
    %10 = vector.load %arg6[%c0_7, %c0_8] : memref<128x128xf32, #tpu.memory_space<vmem>>, vector<128x128xf32>
    tpu.vector_store %arg6[%c0_7, %c0_8], %9 {strides = array<i32>} : memref<128x128xf32, #tpu.memory_space<vmem>>, vector<128x128xf32>,
    %c0_i32_9 = arith.constant 0 : i32
    %11 = arith.cmpi eq, %arg2, %c0_i32_9 : i32
    %12 = arith.extui %11 : i1 to i32
    %c0_i32_10 = arith.constant 0 : i32
    %13 = arith.cmpi ne, %12, %c0_i32_10 : i32
    scf.if %13 {
      %c0_11 = arith.constant 0 : index
      %c0_12 = arith.constant 0 : index
      %14 = vector.load %arg6[%c0_11, %c0_12] : memref<128x128xf32, #tpu.memory_space<vmem>>, vector<128x128xf32>
      %15 = arith.truncf %14 : vector<128x128xf32> to vector<128x128xbf16>
      %c0_13 = arith.constant 0 : index
      %c0_14 = arith.constant 0 : index
      %16 = vector.load %arg5[%c0_13, %c0_14] : memref<128x128xbf16, #tpu.memory_space<vmem>>, vector<128x128xbf16>
      tpu.vector_store %arg5[%c0_13, %c0_14], %15 {strides = array<i32>} : memref<128x128xbf16, #tpu.memory_space<vmem>>, vector<128x128xbf16>,
    } else {
    }
    return
  }
  func.func @transform_0(%arg0: i32, %arg1: i32, %arg2: i32) -> (i32, i32) {
    %c0_i32 = arith.constant 0 : i32
    return %arg0, %arg2 : i32, i32
  }
  func.func @transform_1(%arg0: i32, %arg1: i32, %arg2: i32) -> (i32, i32) {
    %c0_i32 = arith.constant 0 : i32
    return %arg2, %arg1 : i32, i32
  }
  func.func @transform_2(%arg0: i32, %arg1: i32, %arg2: i32) -> (i32, i32) {
    %c0_i32 = arith.constant 0 : i32
    return %arg0, %arg1 : i32, i32
  }
}

module attributes {stable_mosaic.version = 11 : i64} {
  func.func @_mm_kernel(%arg0: i32, %arg1: i32, %arg2: i32, %arg3: memref<128x128xbf16, #tpu.memory_space<vmem>>, %arg4: memref<128x128xbf16, #tpu.memory_space<vmem>>, %arg5: memref<128x128xbf16, #tpu.memory_space<vmem>>, %arg6: memref<128x128xbf16, #tpu.memory_space<vmem>>, %arg7: memref<128x128xf32, #tpu.memory_space<vmem>>) attributes {dimension_semantics = [#tpu.dimension_semantics<parallel>, #tpu.dimension_semantics<parallel>, #tpu.dimension_semantics<arbitrary>], iteration_bounds = array<i64: 1, 1, 3>, scalar_prefetch = 0 : i64, scratch_operands = 1 : i64, tpu.core_type = #tpu.core_type<tc>, window_params = [{transform_indices = @transform_0, window_bounds = array<i64: 128, 128>}, {transform_indices = @transform_1, window_bounds = array<i64: 128, 128>}, {transform_indices = @transform_2, window_bounds = array<i64: 128, 128>}, {transform_indices = @transform_3, window_bounds = array<i64: 128, 128>}]} {
    %c0_i32 = arith.constant 0 : i32
    %0 = arith.cmpi eq, %arg2, %c0_i32 : i32
    %1 = arith.extui %0 : i1 to i32
    %c0_i32_0 = arith.constant 0 : i32
    %2 = arith.cmpi ne, %1, %c0_i32_0 : i32
    scf.if %2 {
      %cst_10 = arith.constant 0.000000e+00 : f32
      %14 = vector.broadcast %cst_10 : f32 to vector<128x128xf32>
      %c0_11 = arith.constant 0 : index
      %c0_12 = arith.constant 0 : index
      %15 = vector.load %arg7[%c0_11, %c0_12] : memref<128x128xf32, #tpu.memory_space<vmem>>, vector<128x128xf32>
      tpu.vector_store %arg7[%c0_11, %c0_12], %14 {strides = array<i32>} : memref<128x128xf32, #tpu.memory_space<vmem>>, vector<128x128xf32>,
    } else {
    }
    %c0 = arith.constant 0 : index
    %c0_1 = arith.constant 0 : index
    %3 = vector.load %arg3[%c0, %c0_1] : memref<128x128xbf16, #tpu.memory_space<vmem>>, vector<128x128xbf16>
    %cst = arith.constant 0.000000e+00 : bf16
    %4 = vector.broadcast %cst : bf16 to vector<128x128xbf16>
    %5 = arith.maximumf %3, %4 : vector<128x128xbf16>
    %c0_2 = arith.constant 0 : index
    %c0_3 = arith.constant 0 : index
    %6 = vector.load %arg7[%c0_2, %c0_3] : memref<128x128xf32, #tpu.memory_space<vmem>>, vector<128x128xf32>
    %c0_4 = arith.constant 0 : index
    %c0_5 = arith.constant 0 : index
    %7 = vector.load %arg4[%c0_4, %c0_5] : memref<128x128xbf16, #tpu.memory_space<vmem>>, vector<128x128xbf16>
    %cst_6 = arith.constant dense<0.000000e+00> : vector<128x128xf32>
    %8 = tpu.matmul %5, %7, %cst_6 {dimension_numbers = #tpu.dot_dimension_numbers<[1], [0], [0], [1], [0, 0, 1, 1], [], []>} : vector<128x128xbf16>, vector<128x128xbf16>, vector<128x128xf32> -> vector<128x128xf32>
    %9 = arith.addf %6, %8 : vector<128x128xf32>
    %c0_7 = arith.constant 0 : index
    %c0_8 = arith.constant 0 : index
    %10 = vector.load %arg7[%c0_7, %c0_8] : memref<128x128xf32, #tpu.memory_space<vmem>>, vector<128x128xf32>
    tpu.vector_store %arg7[%c0_7, %c0_8], %9 {strides = array<i32>} : memref<128x128xf32, #tpu.memory_space<vmem>>, vector<128x128xf32>,
    %c2_i32 = arith.constant 2 : i32
    %11 = arith.cmpi eq, %arg2, %c2_i32 : i32
    %12 = arith.extui %11 : i1 to i32
    %c0_i32_9 = arith.constant 0 : i32
    %13 = arith.cmpi ne, %12, %c0_i32_9 : i32
    scf.if %13 {
      %c0_10 = arith.constant 0 : index
      %c0_11 = arith.constant 0 : index
      %14 = vector.load %arg7[%c0_10, %c0_11] : memref<128x128xf32, #tpu.memory_space<vmem>>, vector<128x128xf32>
      %c0_12 = arith.constant 0 : index
      %c0_13 = arith.constant 0 : index
      %15 = vector.load %arg5[%c0_12, %c0_13] : memref<128x128xbf16, #tpu.memory_space<vmem>>, vector<128x128xbf16>
      %16 = arith.extf %15 : vector<128x128xbf16> to vector<128x128xf32>
      %17 = arith.addf %14, %16 : vector<128x128xf32>
      %18 = arith.truncf %17 : vector<128x128xf32> to vector<128x128xbf16>
      %c0_14 = arith.constant 0 : index
      %c0_15 = arith.constant 0 : index
      %19 = vector.load %arg6[%c0_14, %c0_15] : memref<128x128xbf16, #tpu.memory_space<vmem>>, vector<128x128xbf16>
      tpu.vector_store %arg6[%c0_14, %c0_15], %18 {strides = array<i32>} : memref<128x128xbf16, #tpu.memory_space<vmem>>, vector<128x128xbf16>,
    } else {
    }
    return
  }
  func.func @transform_0(%arg0: i32, %arg1: i32, %arg2: i32) -> (i32, i32) {
    %c0_i32 = arith.constant 0 : i32
    return %arg0, %arg2 : i32, i32
  }
  func.func @transform_1(%arg0: i32, %arg1: i32, %arg2: i32) -> (i32, i32) {
    %c0_i32 = arith.constant 0 : i32
    return %arg2, %arg1 : i32, i32
  }
  func.func @transform_2(%arg0: i32, %arg1: i32, %arg2: i32) -> (i32, i32) {
    %c0_i32 = arith.constant 0 : i32
    return %arg0, %arg1 : i32, i32
  }
  func.func @transform_3(%arg0: i32, %arg1: i32, %arg2: i32) -> (i32, i32) {
    %c0_i32 = arith.constant 0 : i32
    return %arg0, %arg1 : i32, i32
  }
}

module attributes {stable_mosaic.version = 11 : i64} {
  func.func @_mm_kernel(%arg0: i32, %arg1: i32, %arg2: i32, %arg3: memref<128x128xbf16, #tpu.memory_space<vmem>>, %arg4: memref<128x128xbf16, #tpu.memory_space<vmem>>, %arg5: memref<128x128xbf16, #tpu.memory_space<vmem>>, %arg6: memref<128x128xf32, #tpu.memory_space<vmem>>) attributes {dimension_semantics = [#tpu.dimension_semantics<parallel>, #tpu.dimension_semantics<parallel>, #tpu.dimension_semantics<arbitrary>], iteration_bounds = array<i64: 1, 1, 7>, scalar_prefetch = 0 : i64, scratch_operands = 1 : i64, tpu.core_type = #tpu.core_type<tc>, window_params = [{transform_indices = @transform_0, window_bounds = array<i64: 128, 128>}, {transform_indices = @transform_1, window_bounds = array<i64: 128, 128>}, {transform_indices = @transform_2, window_bounds = array<i64: 128, 128>}]} {
    %c0_i32 = arith.constant 0 : i32
    %0 = arith.cmpi eq, %arg2, %c0_i32 : i32
    %1 = arith.extui %0 : i1 to i32
    %c0_i32_0 = arith.constant 0 : i32
    %2 = arith.cmpi ne, %1, %c0_i32_0 : i32
    scf.if %2 {
      %cst_10 = arith.constant 0.000000e+00 : f32
      %14 = vector.broadcast %cst_10 : f32 to vector<128x128xf32>
      %c0_11 = arith.constant 0 : index
      %c0_12 = arith.constant 0 : index
      %15 = vector.load %arg6[%c0_11, %c0_12] : memref<128x128xf32, #tpu.memory_space<vmem>>, vector<128x128xf32>
      tpu.vector_store %arg6[%c0_11, %c0_12], %14 {strides = array<i32>} : memref<128x128xf32, #tpu.memory_space<vmem>>, vector<128x128xf32>,
    } else {
    }
    %c0 = arith.constant 0 : index
    %c0_1 = arith.constant 0 : index
    %3 = vector.load %arg3[%c0, %c0_1] : memref<128x128xbf16, #tpu.memory_space<vmem>>, vector<128x128xbf16>
    %cst = arith.constant 0.000000e+00 : bf16
    %4 = vector.broadcast %cst : bf16 to vector<128x128xbf16>
    %5 = arith.maximumf %3, %4 : vector<128x128xbf16>
    %c0_2 = arith.constant 0 : index
    %c0_3 = arith.constant 0 : index
    %6 = vector.load %arg6[%c0_2, %c0_3] : memref<128x128xf32, #tpu.memory_space<vmem>>, vector<128x128xf32>
    %c0_4 = arith.constant 0 : index
    %c0_5 = arith.constant 0 : index
    %7 = vector.load %arg4[%c0_4, %c0_5] : memref<128x128xbf16, #tpu.memory_space<vmem>>, vector<128x128xbf16>
    %cst_6 = arith.constant dense<0.000000e+00> : vector<128x128xf32>
    %8 = tpu.matmul %5, %7, %cst_6 {dimension_numbers = #tpu.dot_dimension_numbers<[1], [0], [0], [1], [0, 0, 1, 1], [], []>} : vector<128x128xbf16>, vector<128x128xbf16>, vector<128x128xf32> -> vector<128x128xf32>
    %9 = arith.addf %6, %8 : vector<128x128xf32>
    %c0_7 = arith.constant 0 : index
    %c0_8 = arith.constant 0 : index
    %10 = vector.load %arg6[%c0_7, %c0_8] : memref<128x128xf32, #tpu.memory_space<vmem>>, vector<128x128xf32>
    tpu.vector_store %arg6[%c0_7, %c0_8], %9 {strides = array<i32>} : memref<128x128xf32, #tpu.memory_space<vmem>>, vector<128x128xf32>,
    %c6_i32 = arith.constant 6 : i32
    %11 = arith.cmpi eq, %arg2, %c6_i32 : i32
    %12 = arith.extui %11 : i1 to i32
    %c0_i32_9 = arith.constant 0 : i32
    %13 = arith.cmpi ne, %12, %c0_i32_9 : i32
    scf.if %13 {
      %c0_10 = arith.constant 0 : index
      %c0_11 = arith.constant 0 : index
      %14 = vector.load %arg6[%c0_10, %c0_11] : memref<128x128xf32, #tpu.memory_space<vmem>>, vector<128x128xf32>
      %15 = arith.truncf %14 : vector<128x128xf32> to vector<128x128xbf16>
      %c0_12 = arith.constant 0 : index
      %c0_13 = arith.constant 0 : index
      %16 = vector.load %arg5[%c0_12, %c0_13] : memref<128x128xbf16, #tpu.memory_space<vmem>>, vector<128x128xbf16>
      tpu.vector_store %arg5[%c0_12, %c0_13], %15 {strides = array<i32>} : memref<128x128xbf16, #tpu.memory_space<vmem>>, vector<128x128xbf16>,
    } else {
    }
    return
  }
  func.func @transform_0(%arg0: i32, %arg1: i32, %arg2: i32) -> (i32, i32) {
    %c0_i32 = arith.constant 0 : i32
    return %arg0, %arg2 : i32, i32
  }
  func.func @transform_1(%arg0: i32, %arg1: i32, %arg2: i32) -> (i32, i32) {
    %c0_i32 = arith.constant 0 : i32
    return %arg2, %arg1 : i32, i32
  }
  func.func @transform_2(%arg0: i32, %arg1: i32, %arg2: i32) -> (i32, i32) {
    %c0_i32 = arith.constant 0 : i32
    return %arg0, %arg1 : i32, i32
  }
}

module attributes {stable_mosaic.version = 11 : i64} {
  func.func @_mm_kernel(%arg0: i32, %arg1: i32, %arg2: i32, %arg3: memref<128x512xbf16, #tpu.memory_space<vmem>>, %arg4: memref<512x128xbf16, #tpu.memory_space<vmem>>, %arg5: memref<128x128xbf16, #tpu.memory_space<vmem>>, %arg6: memref<128x128xbf16, #tpu.memory_space<vmem>>, %arg7: memref<128x128xf32, #tpu.memory_space<vmem>>) attributes {dimension_semantics = [#tpu.dimension_semantics<parallel>, #tpu.dimension_semantics<parallel>, #tpu.dimension_semantics<arbitrary>], iteration_bounds = array<i64: 1, 1, 1>, scalar_prefetch = 0 : i64, scratch_operands = 1 : i64, tpu.core_type = #tpu.core_type<tc>, window_params = [{transform_indices = @transform_0, window_bounds = array<i64: 128, 512>}, {transform_indices = @transform_1, window_bounds = array<i64: 512, 128>}, {transform_indices = @transform_2, window_bounds = array<i64: 128, 128>}, {transform_indices = @transform_3, window_bounds = array<i64: 128, 128>}]} {
    %c0_i32 = arith.constant 0 : i32
    %0 = arith.cmpi eq, %arg2, %c0_i32 : i32
    %1 = arith.extui %0 : i1 to i32
    %c0_i32_0 = arith.constant 0 : i32
    %2 = arith.cmpi ne, %1, %c0_i32_0 : i32
    scf.if %2 {
      %cst_11 = arith.constant 0.000000e+00 : f32
      %14 = vector.broadcast %cst_11 : f32 to vector<128x128xf32>
      %c0_12 = arith.constant 0 : index
      %c0_13 = arith.constant 0 : index
      %15 = vector.load %arg7[%c0_12, %c0_13] : memref<128x128xf32, #tpu.memory_space<vmem>>, vector<128x128xf32>
      tpu.vector_store %arg7[%c0_12, %c0_13], %14 {strides = array<i32>} : memref<128x128xf32, #tpu.memory_space<vmem>>, vector<128x128xf32>,
    } else {
    }
    %c0 = arith.constant 0 : index
    %c0_1 = arith.constant 0 : index
    %3 = vector.load %arg3[%c0, %c0_1] : memref<128x512xbf16, #tpu.memory_space<vmem>>, vector<128x512xbf16>
    %cst = arith.constant 0.000000e+00 : bf16
    %4 = vector.broadcast %cst : bf16 to vector<128x512xbf16>
    %5 = arith.maximumf %3, %4 : vector<128x512xbf16>
    %c0_2 = arith.constant 0 : index
    %c0_3 = arith.constant 0 : index
    %6 = vector.load %arg7[%c0_2, %c0_3] : memref<128x128xf32, #tpu.memory_space<vmem>>, vector<128x128xf32>
    %c0_4 = arith.constant 0 : index
    %c0_5 = arith.constant 0 : index
    %7 = vector.load %arg4[%c0_4, %c0_5] : memref<512x128xbf16, #tpu.memory_space<vmem>>, vector<512x128xbf16>
    %cst_6 = arith.constant dense<0.000000e+00> : vector<128x128xf32>
    %8 = tpu.matmul %5, %7, %cst_6 {dimension_numbers = #tpu.dot_dimension_numbers<[1], [0], [0], [1], [0, 0, 1, 1], [], []>} : vector<128x512xbf16>, vector<512x128xbf16>, vector<128x128xf32> -> vector<128x128xf32>
    %9 = arith.addf %6, %8 : vector<128x128xf32>
    %c0_7 = arith.constant 0 : index
    %c0_8 = arith.constant 0 : index
    %10 = vector.load %arg7[%c0_7, %c0_8] : memref<128x128xf32, #tpu.memory_space<vmem>>, vector<128x128xf32>
    tpu.vector_store %arg7[%c0_7, %c0_8], %9 {strides = array<i32>} : memref<128x128xf32, #tpu.memory_space<vmem>>, vector<128x128xf32>,
    %c0_i32_9 = arith.constant 0 : i32
    %11 = arith.cmpi eq, %arg2, %c0_i32_9 : i32
    %12 = arith.extui %11 : i1 to i32
    %c0_i32_10 = arith.constant 0 : i32
    %13 = arith.cmpi ne, %12, %c0_i32_10 : i32
    scf.if %13 {
      %c0_11 = arith.constant 0 : index
      %c0_12 = arith.constant 0 : index
      %14 = vector.load %arg7[%c0_11, %c0_12] : memref<128x128xf32, #tpu.memory_space<vmem>>, vector<128x128xf32>
      %c0_13 = arith.constant 0 : index
      %c0_14 = arith.constant 0 : index
      %15 = vector.load %arg5[%c0_13, %c0_14] : memref<128x128xbf16, #tpu.memory_space<vmem>>, vector<128x128xbf16>
      %16 = arith.extf %15 : vector<128x128xbf16> to vector<128x128xf32>
      %17 = arith.addf %14, %16 : vector<128x128xf32>
      %18 = arith.truncf %17 : vector<128x128xf32> to vector<128x128xbf16>
      %c0_15 = arith.constant 0 : index
      %c0_16 = arith.constant 0 : index
      %19 = vector.load %arg6[%c0_15, %c0_16] : memref<128x128xbf16, #tpu.memory_space<vmem>>, vector<128x128xbf16>
      tpu.vector_store %arg6[%c0_15, %c0_16], %18 {strides = array<i32>} : memref<128x128xbf16, #tpu.memory_space<vmem>>, vector<128x128xbf16>,
    } else {
    }
    return
  }
  func.func @transform_0(%arg0: i32, %arg1: i32, %arg2: i32) -> (i32, i32) {
    %c0_i32 = arith.constant 0 : i32
    return %arg0, %arg2 : i32, i32
  }
  func.func @transform_1(%arg0: i32, %arg1: i32, %arg2: i32) -> (i32, i32) {
    %c0_i32 = arith.constant 0 : i32
    return %arg2, %arg1 : i32, i32
  }
  func.func @transform_2(%arg0: i32, %arg1: i32, %arg2: i32) -> (i32, i32) {
    %c0_i32 = arith.constant 0 : i32
    return %arg0, %arg1 : i32, i32
  }
  func.func @transform_3(%arg0: i32, %arg1: i32, %arg2: i32) -> (i32, i32) {
    %c0_i32 = arith.constant 0 : i32
    return %arg0, %arg1 : i32, i32
  }
}

module attributes {stable_mosaic.version = 11 : i64} {
  func.func @_mm_kernel(%arg0: i32, %arg1: i32, %arg2: i32, %arg3: memref<128x128xbf16, #tpu.memory_space<vmem>>, %arg4: memref<128x128xbf16, #tpu.memory_space<vmem>>, %arg5: memref<128x128xbf16, #tpu.memory_space<vmem>>, %arg6: memref<128x128xf32, #tpu.memory_space<vmem>>) attributes {dimension_semantics = [#tpu.dimension_semantics<parallel>, #tpu.dimension_semantics<parallel>, #tpu.dimension_semantics<arbitrary>], iteration_bounds = array<i64: 1, 1, 11>, scalar_prefetch = 0 : i64, scratch_operands = 1 : i64, tpu.core_type = #tpu.core_type<tc>, window_params = [{transform_indices = @transform_0, window_bounds = array<i64: 128, 128>}, {transform_indices = @transform_1, window_bounds = array<i64: 128, 128>}, {transform_indices = @transform_2, window_bounds = array<i64: 128, 128>}]} {
    %c0_i32 = arith.constant 0 : i32
    %0 = arith.cmpi eq, %arg2, %c0_i32 : i32
    %1 = arith.extui %0 : i1 to i32
    %c0_i32_0 = arith.constant 0 : i32
    %2 = arith.cmpi ne, %1, %c0_i32_0 : i32
    scf.if %2 {
      %cst_10 = arith.constant 0.000000e+00 : f32
      %14 = vector.broadcast %cst_10 : f32 to vector<128x128xf32>
      %c0_11 = arith.constant 0 : index
      %c0_12 = arith.constant 0 : index
      %15 = vector.load %arg6[%c0_11, %c0_12] : memref<128x128xf32, #tpu.memory_space<vmem>>, vector<128x128xf32>
      tpu.vector_store %arg6[%c0_11, %c0_12], %14 {strides = array<i32>} : memref<128x128xf32, #tpu.memory_space<vmem>>, vector<128x128xf32>,
    } else {
    }
    %c0 = arith.constant 0 : index
    %c0_1 = arith.constant 0 : index
    %3 = vector.load %arg3[%c0, %c0_1] : memref<128x128xbf16, #tpu.memory_space<vmem>>, vector<128x128xbf16>
    %cst = arith.constant 0.000000e+00 : bf16
    %4 = vector.broadcast %cst : bf16 to vector<128x128xbf16>
    %5 = arith.maximumf %3, %4 : vector<128x128xbf16>
    %c0_2 = arith.constant 0 : index
    %c0_3 = arith.constant 0 : index
    %6 = vector.load %arg6[%c0_2, %c0_3] : memref<128x128xf32, #tpu.memory_space<vmem>>, vector<128x128xf32>
    %c0_4 = arith.constant 0 : index
    %c0_5 = arith.constant 0 : index
    %7 = vector.load %arg4[%c0_4, %c0_5] : memref<128x128xbf16, #tpu.memory_space<vmem>>, vector<128x128xbf16>
    %cst_6 = arith.constant dense<0.000000e+00> : vector<128x128xf32>
    %8 = tpu.matmul %5, %7, %cst_6 {dimension_numbers = #tpu.dot_dimension_numbers<[1], [0], [0], [1], [0, 0, 1, 1], [], []>} : vector<128x128xbf16>, vector<128x128xbf16>, vector<128x128xf32> -> vector<128x128xf32>
    %9 = arith.addf %6, %8 : vector<128x128xf32>
    %c0_7 = arith.constant 0 : index
    %c0_8 = arith.constant 0 : index
    %10 = vector.load %arg6[%c0_7, %c0_8] : memref<128x128xf32, #tpu.memory_space<vmem>>, vector<128x128xf32>
    tpu.vector_store %arg6[%c0_7, %c0_8], %9 {strides = array<i32>} : memref<128x128xf32, #tpu.memory_space<vmem>>, vector<128x128xf32>,
    %c10_i32 = arith.constant 10 : i32
    %11 = arith.cmpi eq, %arg2, %c10_i32 : i32
    %12 = arith.extui %11 : i1 to i32
    %c0_i32_9 = arith.constant 0 : i32
    %13 = arith.cmpi ne, %12, %c0_i32_9 : i32
    scf.if %13 {
      %c0_10 = arith.constant 0 : index
      %c0_11 = arith.constant 0 : index
      %14 = vector.load %arg6[%c0_10, %c0_11] : memref<128x128xf32, #tpu.memory_space<vmem>>, vector<128x128xf32>
      %15 = arith.truncf %14 : vector<128x128xf32> to vector<128x128xbf16>
      %c0_12 = arith.constant 0 : index
      %c0_13 = arith.constant 0 : index
      %16 = vector.load %arg5[%c0_12, %c0_13] : memref<128x128xbf16, #tpu.memory_space<vmem>>, vector<128x128xbf16>
      tpu.vector_store %arg5[%c0_12, %c0_13], %15 {strides = array<i32>} : memref<128x128xbf16, #tpu.memory_space<vmem>>, vector<128x128xbf16>,
    } else {
    }
    return
  }
  func.func @transform_0(%arg0: i32, %arg1: i32, %arg2: i32) -> (i32, i32) {
    %c0_i32 = arith.constant 0 : i32
    return %arg0, %arg2 : i32, i32
  }
  func.func @transform_1(%arg0: i32, %arg1: i32, %arg2: i32) -> (i32, i32) {
    %c0_i32 = arith.constant 0 : i32
    return %arg2, %arg1 : i32, i32
  }
  func.func @transform_2(%arg0: i32, %arg1: i32, %arg2: i32) -> (i32, i32) {
    %c0_i32 = arith.constant 0 : i32
    return %arg0, %arg1 : i32, i32
  }
}

module attributes {stable_mosaic.version = 11 : i64} {
  func.func @_mm_kernel(%arg0: i32, %arg1: i32, %arg2: i32, %arg3: memref<256x256xbf16, #tpu.memory_space<vmem>>, %arg4: memref<256x128xbf16, #tpu.memory_space<vmem>>, %arg5: memref<256x128xbf16, #tpu.memory_space<vmem>>, %arg6: memref<256x128xf32, #tpu.memory_space<vmem>>) attributes {dimension_semantics = [#tpu.dimension_semantics<parallel>, #tpu.dimension_semantics<parallel>, #tpu.dimension_semantics<arbitrary>], iteration_bounds = array<i64: 2, 1, 1>, scalar_prefetch = 0 : i64, scratch_operands = 1 : i64, tpu.core_type = #tpu.core_type<tc>, window_params = [{transform_indices = @transform_0, window_bounds = array<i64: 256, 256>}, {transform_indices = @transform_1, window_bounds = array<i64: 256, 128>}, {transform_indices = @transform_2, window_bounds = array<i64: 256, 128>}]} {
    %c0_i32 = arith.constant 0 : i32
    %0 = arith.cmpi eq, %arg2, %c0_i32 : i32
    %1 = arith.extui %0 : i1 to i32
    %c0_i32_0 = arith.constant 0 : i32
    %2 = arith.cmpi ne, %1, %c0_i32_0 : i32
    scf.if %2 {
      %cst_11 = arith.constant 0.000000e+00 : f32
      %14 = vector.broadcast %cst_11 : f32 to vector<256x128xf32>
      %c0_12 = arith.constant 0 : index
      %c0_13 = arith.constant 0 : index
      %15 = vector.load %arg6[%c0_12, %c0_13] : memref<256x128xf32, #tpu.memory_space<vmem>>, vector<256x128xf32>
      tpu.vector_store %arg6[%c0_12, %c0_13], %14 {strides = array<i32>} : memref<256x128xf32, #tpu.memory_space<vmem>>, vector<256x128xf32>,
    } else {
    }
    %c0 = arith.constant 0 : index
    %c0_1 = arith.constant 0 : index
    %3 = vector.load %arg3[%c0, %c0_1] : memref<256x256xbf16, #tpu.memory_space<vmem>>, vector<256x256xbf16>
    %cst = arith.constant 0.000000e+00 : bf16
    %4 = vector.broadcast %cst : bf16 to vector<256x256xbf16>
    %5 = arith.maximumf %3, %4 : vector<256x256xbf16>
    %c0_2 = arith.constant 0 : index
    %c0_3 = arith.constant 0 : index
    %6 = vector.load %arg6[%c0_2, %c0_3] : memref<256x128xf32, #tpu.memory_space<vmem>>, vector<256x128xf32>
    %c0_4 = arith.constant 0 : index
    %c0_5 = arith.constant 0 : index
    %7 = vector.load %arg4[%c0_4, %c0_5] : memref<256x128xbf16, #tpu.memory_space<vmem>>, vector<256x128xbf16>
    %cst_6 = arith.constant dense<0.000000e+00> : vector<256x128xf32>
    %8 = tpu.matmul %5, %7, %cst_6 {dimension_numbers = #tpu.dot_dimension_numbers<[1], [0], [0], [1], [0, 0, 1, 1], [], []>} : vector<256x256xbf16>, vector<256x128xbf16>, vector<256x128xf32> -> vector<256x128xf32>
    %9 = arith.addf %6, %8 : vector<256x128xf32>
    %c0_7 = arith.constant 0 : index
    %c0_8 = arith.constant 0 : index
    %10 = vector.load %arg6[%c0_7, %c0_8] : memref<256x128xf32, #tpu.memory_space<vmem>>, vector<256x128xf32>
    tpu.vector_store %arg6[%c0_7, %c0_8], %9 {strides = array<i32>} : memref<256x128xf32, #tpu.memory_space<vmem>>, vector<256x128xf32>,
    %c0_i32_9 = arith.constant 0 : i32
    %11 = arith.cmpi eq, %arg2, %c0_i32_9 : i32
    %12 = arith.extui %11 : i1 to i32
    %c0_i32_10 = arith.constant 0 : i32
    %13 = arith.cmpi ne, %12, %c0_i32_10 : i32
    scf.if %13 {
      %c0_11 = arith.constant 0 : index
      %c0_12 = arith.constant 0 : index
      %14 = vector.load %arg6[%c0_11, %c0_12] : memref<256x128xf32, #tpu.memory_space<vmem>>, vector<256x128xf32>
      %15 = arith.truncf %14 : vector<256x128xf32> to vector<256x128xbf16>
      %c0_13 = arith.constant 0 : index
      %c0_14 = arith.constant 0 : index
      %16 = vector.load %arg5[%c0_13, %c0_14] : memref<256x128xbf16, #tpu.memory_space<vmem>>, vector<256x128xbf16>
      tpu.vector_store %arg5[%c0_13, %c0_14], %15 {strides = array<i32>} : memref<256x128xbf16, #tpu.memory_space<vmem>>, vector<256x128xbf16>,
    } else {
    }
    return
  }
  func.func @transform_0(%arg0: i32, %arg1: i32, %arg2: i32) -> (i32, i32) {
    %c0_i32 = arith.constant 0 : i32
    return %arg0, %arg2 : i32, i32
  }
  func.func @transform_1(%arg0: i32, %arg1: i32, %arg2: i32) -> (i32, i32) {
    %c0_i32 = arith.constant 0 : i32
    return %arg2, %arg1 : i32, i32
  }
  func.func @transform_2(%arg0: i32, %arg1: i32, %arg2: i32) -> (i32, i32) {
    %c0_i32 = arith.constant 0 : i32
    return %arg0, %arg1 : i32, i32
  }
}

module attributes {stable_mosaic.version = 11 : i64} {
  func.func @_mm_kernel(%arg0: i32, %arg1: i32, %arg2: i32, %arg3: memref<256x128xbf16, #tpu.memory_space<vmem>>, %arg4: memref<128x128xbf16, #tpu.memory_space<vmem>>, %arg5: memref<256x128xbf16, #tpu.memory_space<vmem>>, %arg6: memref<256x128xbf16, #tpu.memory_space<vmem>>, %arg7: memref<256x128xf32, #tpu.memory_space<vmem>>) attributes {dimension_semantics = [#tpu.dimension_semantics<parallel>, #tpu.dimension_semantics<parallel>, #tpu.dimension_semantics<arbitrary>], iteration_bounds = array<i64: 2, 1, 1>, scalar_prefetch = 0 : i64, scratch_operands = 1 : i64, tpu.core_type = #tpu.core_type<tc>, window_params = [{transform_indices = @transform_0, window_bounds = array<i64: 256, 128>}, {transform_indices = @transform_1, window_bounds = array<i64: 128, 128>}, {transform_indices = @transform_2, window_bounds = array<i64: 256, 128>}, {transform_indices = @transform_3, window_bounds = array<i64: 256, 128>}]} {
    %c0_i32 = arith.constant 0 : i32
    %0 = arith.cmpi eq, %arg2, %c0_i32 : i32
    %1 = arith.extui %0 : i1 to i32
    %c0_i32_0 = arith.constant 0 : i32
    %2 = arith.cmpi ne, %1, %c0_i32_0 : i32
    scf.if %2 {
      %cst_11 = arith.constant 0.000000e+00 : f32
      %14 = vector.broadcast %cst_11 : f32 to vector<256x128xf32>
      %c0_12 = arith.constant 0 : index
      %c0_13 = arith.constant 0 : index
      %15 = vector.load %arg7[%c0_12, %c0_13] : memref<256x128xf32, #tpu.memory_space<vmem>>, vector<256x128xf32>
      tpu.vector_store %arg7[%c0_12, %c0_13], %14 {strides = array<i32>} : memref<256x128xf32, #tpu.memory_space<vmem>>, vector<256x128xf32>,
    } else {
    }
    %c0 = arith.constant 0 : index
    %c0_1 = arith.constant 0 : index
    %3 = vector.load %arg3[%c0, %c0_1] : memref<256x128xbf16, #tpu.memory_space<vmem>>, vector<256x128xbf16>
    %cst = arith.constant 0.000000e+00 : bf16
    %4 = vector.broadcast %cst : bf16 to vector<256x128xbf16>
    %5 = arith.maximumf %3, %4 : vector<256x128xbf16>
    %c0_2 = arith.constant 0 : index
    %c0_3 = arith.constant 0 : index
    %6 = vector.load %arg7[%c0_2, %c0_3] : memref<256x128xf32, #tpu.memory_space<vmem>>, vector<256x128xf32>
    %c0_4 = arith.constant 0 : index
    %c0_5 = arith.constant 0 : index
    %7 = vector.load %arg4[%c0_4, %c0_5] : memref<128x128xbf16, #tpu.memory_space<vmem>>, vector<128x128xbf16>
    %cst_6 = arith.constant dense<0.000000e+00> : vector<256x128xf32>
    %8 = tpu.matmul %5, %7, %cst_6 {dimension_numbers = #tpu.dot_dimension_numbers<[1], [0], [0], [1], [0, 0, 1, 1], [], []>} : vector<256x128xbf16>, vector<128x128xbf16>, vector<256x128xf32> -> vector<256x128xf32>
    %9 = arith.addf %6, %8 : vector<256x128xf32>
    %c0_7 = arith.constant 0 : index
    %c0_8 = arith.constant 0 : index
    %10 = vector.load %arg7[%c0_7, %c0_8] : memref<256x128xf32, #tpu.memory_space<vmem>>, vector<256x128xf32>
    tpu.vector_store %arg7[%c0_7, %c0_8], %9 {strides = array<i32>} : memref<256x128xf32, #tpu.memory_space<vmem>>, vector<256x128xf32>,
    %c0_i32_9 = arith.constant 0 : i32
    %11 = arith.cmpi eq, %arg2, %c0_i32_9 : i32
    %12 = arith.extui %11 : i1 to i32
    %c0_i32_10 = arith.constant 0 : i32
    %13 = arith.cmpi ne, %12, %c0_i32_10 : i32
    scf.if %13 {
      %c0_11 = arith.constant 0 : index
      %c0_12 = arith.constant 0 : index
      %14 = vector.load %arg7[%c0_11, %c0_12] : memref<256x128xf32, #tpu.memory_space<vmem>>, vector<256x128xf32>
      %c0_13 = arith.constant 0 : index
      %c0_14 = arith.constant 0 : index
      %15 = vector.load %arg5[%c0_13, %c0_14] : memref<256x128xbf16, #tpu.memory_space<vmem>>, vector<256x128xbf16>
      %16 = arith.extf %15 : vector<256x128xbf16> to vector<256x128xf32>
      %17 = arith.addf %14, %16 : vector<256x128xf32>
      %18 = arith.truncf %17 : vector<256x128xf32> to vector<256x128xbf16>
      %c0_15 = arith.constant 0 : index
      %c0_16 = arith.constant 0 : index
      %19 = vector.load %arg6[%c0_15, %c0_16] : memref<256x128xbf16, #tpu.memory_space<vmem>>, vector<256x128xbf16>
      tpu.vector_store %arg6[%c0_15, %c0_16], %18 {strides = array<i32>} : memref<256x128xbf16, #tpu.memory_space<vmem>>, vector<256x128xbf16>,
    } else {
    }
    return
  }
  func.func @transform_0(%arg0: i32, %arg1: i32, %arg2: i32) -> (i32, i32) {
    %c0_i32 = arith.constant 0 : i32
    return %arg0, %arg2 : i32, i32
  }
  func.func @transform_1(%arg0: i32, %arg1: i32, %arg2: i32) -> (i32, i32) {
    %c0_i32 = arith.constant 0 : i32
    return %arg2, %arg1 : i32, i32
  }
  func.func @transform_2(%arg0: i32, %arg1: i32, %arg2: i32) -> (i32, i32) {
    %c0_i32 = arith.constant 0 : i32
    return %arg0, %arg1 : i32, i32
  }
  func.func @transform_3(%arg0: i32, %arg1: i32, %arg2: i32) -> (i32, i32) {
    %c0_i32 = arith.constant 0 : i32
    return %arg0, %arg1 : i32, i32
  }
}

module attributes {stable_mosaic.version = 11 : i64} {
  func.func @_mm_kernel(%arg0: i32, %arg1: i32, %arg2: i32, %arg3: memref<256x128xbf16, #tpu.memory_space<vmem>>, %arg4: memref<128x128xbf16, #tpu.memory_space<vmem>>, %arg5: memref<256x128xf32, #tpu.memory_space<vmem>>, %arg6: memref<256x128xf32, #tpu.memory_space<vmem>>) attributes {dimension_semantics = [#tpu.dimension_semantics<parallel>, #tpu.dimension_semantics<parallel>, #tpu.dimension_semantics<arbitrary>], iteration_bounds = array<i64: 16, 1, 1>, scalar_prefetch = 0 : i64, scratch_operands = 1 : i64, tpu.core_type = #tpu.core_type<tc>, window_params = [{transform_indices = @transform_0, window_bounds = array<i64: 256, 128>}, {transform_indices = @transform_1, window_bounds = array<i64: 128, 128>}, {transform_indices = @transform_2, window_bounds = array<i64: 256, 128>}]} {
    %c0_i32 = arith.constant 0 : i32
    %0 = arith.cmpi eq, %arg2, %c0_i32 : i32
    %1 = arith.extui %0 : i1 to i32
    %c0_i32_0 = arith.constant 0 : i32
    %2 = arith.cmpi ne, %1, %c0_i32_0 : i32
    scf.if %2 {
      %cst_10 = arith.constant 0.000000e+00 : f32
      %12 = vector.broadcast %cst_10 : f32 to vector<256x128xf32>
      %c0_11 = arith.constant 0 : index
      %c0_12 = arith.constant 0 : index
      %13 = vector.load %arg6[%c0_11, %c0_12] : memref<256x128xf32, #tpu.memory_space<vmem>>, vector<256x128xf32>
      tpu.vector_store %arg6[%c0_11, %c0_12], %12 {strides = array<i32>} : memref<256x128xf32, #tpu.memory_space<vmem>>, vector<256x128xf32>,
    } else {
    }
    %c0 = arith.constant 0 : index
    %c0_1 = arith.constant 0 : index
    %3 = vector.load %arg3[%c0, %c0_1] : memref<256x128xbf16, #tpu.memory_space<vmem>>, vector<256x128xbf16>
    %c0_2 = arith.constant 0 : index
    %c0_3 = arith.constant 0 : index
    %4 = vector.load %arg6[%c0_2, %c0_3] : memref<256x128xf32, #tpu.memory_space<vmem>>, vector<256x128xf32>
    %c0_4 = arith.constant 0 : index
    %c0_5 = arith.constant 0 : index
    %5 = vector.load %arg4[%c0_4, %c0_5] : memref<128x128xbf16, #tpu.memory_space<vmem>>, vector<128x128xbf16>
    %cst = arith.constant dense<0.000000e+00> : vector<256x128xf32>
    %6 = tpu.matmul %3, %5, %cst {dimension_numbers = #tpu.dot_dimension_numbers<[1], [0], [0], [1], [0, 0, 1, 1], [], []>} : vector<256x128xbf16>, vector<128x128xbf16>, vector<256x128xf32> -> vector<256x128xf32>
    %7 = arith.addf %4, %6 : vector<256x128xf32>
    %c0_6 = arith.constant 0 : index
    %c0_7 = arith.constant 0 : index
    %8 = vector.load %arg6[%c0_6, %c0_7] : memref<256x128xf32, #tpu.memory_space<vmem>>, vector<256x128xf32>
    tpu.vector_store %arg6[%c0_6, %c0_7], %7 {strides = array<i32>} : memref<256x128xf32, #tpu.memory_space<vmem>>, vector<256x128xf32>,
    %c0_i32_8 = arith.constant 0 : i32
    %9 = arith.cmpi eq, %arg2, %c0_i32_8 : i32
    %10 = arith.extui %9 : i1 to i32
    %c0_i32_9 = arith.constant 0 : i32
    %11 = arith.cmpi ne, %10, %c0_i32_9 : i32
    scf.if %11 {
      %c0_10 = arith.constant 0 : index
      %c0_11 = arith.constant 0 : index
      %12 = vector.load %arg6[%c0_10, %c0_11] : memref<256x128xf32, #tpu.memory_space<vmem>>, vector<256x128xf32>
      %c0_12 = arith.constant 0 : index
      %c0_13 = arith.constant 0 : index
      %13 = vector.load %arg5[%c0_12, %c0_13] : memref<256x128xf32, #tpu.memory_space<vmem>>, vector<256x128xf32>
      tpu.vector_store %arg5[%c0_12, %c0_13], %12 {strides = array<i32>} : memref<256x128xf32, #tpu.memory_space<vmem>>, vector<256x128xf32>,
    } else {
    }
    return
  }
  func.func @transform_0(%arg0: i32, %arg1: i32, %arg2: i32) -> (i32, i32) {
    %c0_i32 = arith.constant 0 : i32
    return %arg0, %arg2 : i32, i32
  }
  func.func @transform_1(%arg0: i32, %arg1: i32, %arg2: i32) -> (i32, i32) {
    %c0_i32 = arith.constant 0 : i32
    return %arg2, %arg1 : i32, i32
  }
  func.func @transform_2(%arg0: i32, %arg1: i32, %arg2: i32) -> (i32, i32) {
    %c0_i32 = arith.constant 0 : i32
    return %arg0, %arg1 : i32, i32
  }
}

module attributes {stable_mosaic.version = 11 : i64} {
  func.func @_softmax_c_kernel(%arg0: i32, %arg1: i32, %arg2: memref<1x4x2048xf32, #tpu.memory_space<vmem>>, %arg3: memref<1x4x2048xf32, #tpu.memory_space<vmem>>) attributes {dimension_semantics = [#tpu.dimension_semantics<parallel>, #tpu.dimension_semantics<parallel>], iteration_bounds = array<i64: 1, 2>, scalar_prefetch = 0 : i64, scratch_operands = 0 : i64, tpu.core_type = #tpu.core_type<tc>, window_params = [{transform_indices = @transform_0, window_bounds = array<i64: 1, 4, 2048>}, {transform_indices = @transform_1, window_bounds = array<i64: 1, 4, 2048>}]} {
    %c0 = arith.constant 0 : index
    %c0_0 = arith.constant 0 : index
    %c0_1 = arith.constant 0 : index
    %0 = vector.load %arg2[%c0, %c0_0, %c0_1] : memref<1x4x2048xf32, #tpu.memory_space<vmem>>, vector<1x4x2048xf32>
    %1 = vector.shape_cast %0 : vector<1x4x2048xf32> to vector<4x2048xf32>
    %cst = arith.constant dense<0xFF800000> : vector<2048xf32>
    %2 = vector.multi_reduction <maximumf>, %1, %cst [0] : vector<4x2048xf32> to vector<2048xf32>
    %3 = vector.shape_cast %2 : vector<2048xf32> to vector<1x2048xf32>
    %4 = vector.broadcast %3 : vector<1x2048xf32> to vector<4x2048xf32>
    %5 = arith.subf %1, %4 : vector<4x2048xf32>
    %6 = math.exp %5 : vector<4x2048xf32>
    %cst_2 = arith.constant dense<0.000000e+00> : vector<2048xf32>
    %7 = vector.multi_reduction <add>, %6, %cst_2 [0] : vector<4x2048xf32> to vector<2048xf32>
    %8 = vector.shape_cast %7 : vector<2048xf32> to vector<1x2048xf32>
    %9 = vector.broadcast %8 : vector<1x2048xf32> to vector<4x2048xf32>
    %10 = arith.divf %6, %9 : vector<4x2048xf32>
    %c0_3 = arith.constant 0 : index
    %c0_4 = arith.constant 0 : index
    %c0_5 = arith.constant 0 : index
    %11 = vector.load %arg3[%c0_3, %c0_4, %c0_5] : memref<1x4x2048xf32, #tpu.memory_space<vmem>>, vector<1x4x2048xf32>
    %12 = vector.shape_cast %11 : vector<1x4x2048xf32> to vector<4x2048xf32>
    %13 = vector.shape_cast %10 : vector<4x2048xf32> to vector<1x4x2048xf32>
    tpu.vector_store %arg3[%c0_3, %c0_4, %c0_5], %13 {strides = array<i32>} : memref<1x4x2048xf32, #tpu.memory_space<vmem>>, vector<1x4x2048xf32>,
    return
  }
  func.func @transform_0(%arg0: i32, %arg1: i32) -> (i32, i32, i32) {
    %c0_i32 = arith.constant 0 : i32
    %c0_i32_0 = arith.constant 0 : i32
    return %arg0, %c0_i32, %arg1 : i32, i32, i32
  }
  func.func @transform_1(%arg0: i32, %arg1: i32) -> (i32, i32, i32) {
    %c0_i32 = arith.constant 0 : i32
    %c0_i32_0 = arith.constant 0 : i32
    return %arg0, %c0_i32, %arg1 : i32, i32, i32
  }
}

</mosaic_0001>

<bundles_post_ra>
// kernel: mfnet_forward.58
= control target key start
LH: loop header
LB: loop body
LE: loop exit
PB: predicated region body
PF: predicated region fallthrough
CT: control target
= control target key end

     0   :  { %s1143_s9 = smov 0   ;;  %s1145_s10 = smov 0   ;;  %s1246_s0 = inlined_call_operand.vmem [shape: bf16[512,128], index: 0, kind: input, shape index: {}]   ;;  %s1247_s1 = inlined_call_operand.vmem [shape: bf16[128,128], index: 1, kind: input, shape index: {}]   ;;  %s1248_s2 = inlined_call_operand.vmem [shape: bf16[512,128], index: 2, kind: output, shape index: {}]  }
   0x1   :  { %s1147_s11 = smov 0  }
   0x2 LB: > { %s31_s12 = sadd.s32 1, %s1122_s10  ;;  %p834_p0 = scmp.ge.s32.totalorder %s1126_s11, 1  ;;  %s1126_s11 = sphi %s1147_s11, %s12_s11   ;;  %s1122_s10 = sphi %s1145_s10, %s1250_s10   ;;  %s1118_s9 = sphi %s1143_s9, %s1249_s9  }
   0x3   : > { %p33_p1 = scmp.ge.s32.totalorder %s31_s12, 2  ;;  %p155_p2 = scmp.lt.s32.totalorder %s1126_s11, 3 }
   0x5   : > { %s1252_s12 = smov (%p33_p1, %s31_s12), 0  ;;  %p156_p3 = pnand %p834_p0, %p155_p2 }
   0x6   : > { %s835_s21 = sshll.u32 (!%p156_p3), %s1118_s9, 5 }
   0x7   : > { %159 = sbr.rel (%p156_p3) target bundleno = 237 (0xed), region = 28  ;;  %p192_p4 = scmp.lt.s32.totalorder (!%p156_p3), %s835_s21, 63 }
   0xc   : > { %v960_v0 = vld [vmem:[%s1247_s1 + $0x38] sm:$0xff]  ;;  %v959_v1 = vld [vmem:[%s1247_s1 + $0x30] sm:$0xff]  ;;  %v958_v2 = vld [vmem:[%s1247_s1 + $0x28] sm:$0xff]  ;;  %s1254_s21 = smov (!%p192_p4, %s835_s21), 63 }
   0xd   : > { %478 = vmatpush.bf16.msra.mxu0 %v960_v0  ;;  %1056 = vmatpush.bf16.msra.mxu1 %v960_v0  ;;  %v957_v3 = vld [vmem:[%s1247_s1 + $0x20] sm:$0xff]  ;;  %v956_v4 = vld [vmem:[%s1247_s1 + $0x18] sm:$0xff]  ;;  %v955_v5 = vld [vmem:[%s1247_s1 + $0x10] sm:$0xff]  ;;  %s836_s28 = sshll.u32 %s1254_s21, 2 }
   0xe   : > { %1057 = vmatpush.bf16.msra.mxu2 %v960_v0  ;;  %1058 = vmatpush.bf16.msra.mxu3 %v960_v0  ;;  %v954_v6 = vld [vmem:[%s1247_s1 + $0x8] sm:$0xff]  ;;  %v953_v7 = vld [vmem:[%s1247_s1] sm:$0xff]  ;;  %s1196_s5 = scalar_lea.vmem %s1246_s0, %s836_s28  ;;  %s1219_s8 = scalar_lea.vmem %s1248_s2, %s836_s28 }
   0xf   : > { %v937_v8 = vld [vmem:[%s1196_s5] sm:$0xff]  ;;  %v938_v12 = vld [vmem:[%s1196_s5 + $0x8] sm:$0xff]  ;;  %v939_v16 = vld [vmem:[%s1196_s5 + $0x10] sm:$0xff] }
  0x10   : > { %v941_v9 = vld [vmem:[%s1196_s5 + $0x20] sm:$0xff]  ;;  %v942_v13 = vld [vmem:[%s1196_s5 + $0x28] sm:$0xff]  ;;  %v943_v17 = vld [vmem:[%s1196_s5 + $0x30] sm:$0xff] }
  0x11   : > { %479 = vmatpush.bf16.msra.mxu0 %v959_v1  ;;  %1059 = vmatpush.bf16.msra.mxu1 %v959_v1  ;;  %v945_v10 = vld [vmem:[%s1196_s5 + $0x40] sm:$0xff]  ;;  %v946_v14 = vld [vmem:[%s1196_s5 + $0x48] sm:$0xff]  ;;  %v947_v18 = vld [vmem:[%s1196_s5 + $0x50] sm:$0xff] }
  0x12   : > { %1060 = vmatpush.bf16.msra.mxu2 %v959_v1  ;;  %1061 = vmatpush.bf16.msra.mxu3 %v959_v1  ;;  %v949_v11 = vld [vmem:[%s1196_s5 + $0x60] sm:$0xff]  ;;  %v950_v15 = vld [vmem:[%s1196_s5 + $0x68] sm:$0xff]  ;;  %v951_v19 = vld [vmem:[%s1196_s5 + $0x70] sm:$0xff] }
  0x13   : > { %v940_v20 = vld [vmem:[%s1196_s5 + $0x18] sm:$0xff] }
  0x14   : > { %v944_v21 = vld [vmem:[%s1196_s5 + $0x38] sm:$0xff] }
  0x15   : > { %480 = vmatpush.bf16.msra.mxu0 %v958_v2  ;;  %1062 = vmatpush.bf16.msra.mxu1 %v958_v2  ;;  %v948_v22 = vld [vmem:[%s1196_s5 + $0x58] sm:$0xff] }
  0x16   : > { %1063 = vmatpush.bf16.msra.mxu2 %v958_v2  ;;  %1064 = vmatpush.bf16.msra.mxu3 %v958_v2  ;;  %v952_v23 = vld [vmem:[%s1196_s5 + $0x78] sm:$0xff] }
  0x19   : > { %481 = vmatpush.bf16.msra.mxu0 %v957_v3  ;;  %1065 = vmatpush.bf16.msra.mxu1 %v957_v3 }
  0x1a   : > { %1066 = vmatpush.bf16.msra.mxu2 %v957_v3  ;;  %1067 = vmatpush.bf16.msra.mxu3 %v957_v3 }
  0x1d   : > { %482 = vmatpush.bf16.msra.mxu0 %v956_v4  ;;  %1068 = vmatpush.bf16.msra.mxu1 %v956_v4 }
  0x1e   : > { %1069 = vmatpush.bf16.msra.mxu2 %v956_v4  ;;  %1070 = vmatpush.bf16.msra.mxu3 %v956_v4 }
  0x21   : > { %483 = vmatpush.bf16.msra.mxu0 %v955_v5  ;;  %1071 = vmatpush.bf16.msra.mxu1 %v955_v5 }
  0x22   : > { %1072 = vmatpush.bf16.msra.mxu2 %v955_v5  ;;  %1073 = vmatpush.bf16.msra.mxu3 %v955_v5 }
  0x25   : > { %484 = vmatpush.bf16.msra.mxu0 %v954_v6  ;;  %1074 = vmatpush.bf16.msra.mxu1 %v954_v6 }
  0x26   : > { %1075 = vmatpush.bf16.msra.mxu2 %v954_v6  ;;  %1076 = vmatpush.bf16.msra.mxu3 %v954_v6 }
  0x29   : > { %485 = vmatpush.bf16.msra.mxu0 %v953_v7  ;;  %1077 = vmatpush.bf16.msra.mxu1 %v953_v7 }
  0x2a   : > { %1078 = vmatpush.bf16.msra.mxu2 %v953_v7  ;;  %1079 = vmatpush.bf16.msra.mxu3 %v953_v7 }
  0x2c   : > { %486 = vmatmul.bf16.vlgmr.msra.gmra.mxu0 %v937_v8  ;;  %506 = vmatmul.bf16.vlgmr.msra.gmra.mxu1 %v941_v9 }
  0x2d   : > { %526 = vmatmul.bf16.vlgmr.msra.gmra.mxu2 %v945_v10  ;;  %546 = vmatmul.bf16.vlgmr.msra.gmra.mxu3 %v949_v11 }
  0x3c   : > { %491 = vmatmul.bf16.gmra.mxu0 %v938_v12  ;;  %511 = vmatmul.bf16.gmra.mxu1 %v942_v13 }
  0x3d   : > { %531 = vmatmul.bf16.gmra.mxu2 %v946_v14  ;;  %551 = vmatmul.bf16.gmra.mxu3 %v950_v15 }
  0x4c   : > { %496 = vmatmul.bf16.gmra.mxu0 %v939_v16  ;;  %516 = vmatmul.bf16.gmra.mxu1 %v943_v17 }
  0x4d   : > { %536 = vmatmul.bf16.gmra.mxu2 %v947_v18  ;;  %556 = vmatmul.bf16.gmra.mxu3 %v951_v19 }
  0x5c   : > { %501 = vmatmul.bf16.gmra.mxu0 %v940_v20  ;;  %521 = vmatmul.bf16.gmra.mxu1 %v944_v21 }
  0x5d   : > { %541 = vmatmul.bf16.gmra.mxu2 %v948_v22  ;;  %561 = vmatmul.bf16.gmra.mxu3 %v952_v23 }
  0xa9   : > { %v487_v24 = vpop.f32.mrf.mxu0  ;;  %v507_v25 = vpop.f32.mrf.mxu1 }
  0xb0   : > { %v527_v26 = vpop.f32.mrf.mxu2  ;;  %v547_v27 = vpop.f32.mrf.mxu3 }
  0xb1   : > { %v489_v28 = vpop.f32.mrf.mxu0  ;;  %v509_v29 = vpop.f32.mrf.mxu1 }
  0xb2   : > { %v964_v30 = vpack.c.bf16 %v489_v28, %v487_v24  ;;  %v984_v31 = vpack.c.bf16 %v509_v29, %v507_v25 }
  0xb4   : > { %965 = vst [vmem:[%s1219_s8] sm:$0xff] %v964_v30  }
  0xb5   : > { %1044 = vst [vmem:[%s1219_s8 + $0x20] sm:$0xff] %v984_v31  }
  0xb8   : > { %v529_v32 = vpop.f32.mrf.mxu2  ;;  %v549_v33 = vpop.f32.mrf.mxu3 }
  0xb9   : > { %v1004_v34 = vpack.c.bf16 %v529_v32, %v527_v26  ;;  %v1024_v35 = vpack.c.bf16 %v549_v33, %v547_v27  ;;  %v492_v36 = vpop.f32.mrf.mxu0  ;;  %v512_v37 = vpop.f32.mrf.mxu1 }
  0xbb   : > { %1048 = vst [vmem:[%s1219_s8 + $0x40] sm:$0xff] %v1004_v34  }
  0xbc   : > { %1052 = vst [vmem:[%s1219_s8 + $0x60] sm:$0xff] %v1024_v35  }
  0xc0   : > { %v532_v38 = vpop.f32.mrf.mxu2  ;;  %v552_v39 = vpop.f32.mrf.mxu3 }
  0xc1   : > { %v494_v40 = vpop.f32.mrf.mxu0  ;;  %v514_v41 = vpop.f32.mrf.mxu1 }
  0xc2   : > { %v969_v42 = vpack.c.bf16 %v494_v40, %v492_v36  ;;  %v989_v43 = vpack.c.bf16 %v514_v41, %v512_v37 }
  0xc4   : > { %1041 = vst [vmem:[%s1219_s8 + $0x8] sm:$0xff] %v969_v42  }
  0xc5   : > { %1045 = vst [vmem:[%s1219_s8 + $0x28] sm:$0xff] %v989_v43  }
  0xc8   : > { %v534_v44 = vpop.f32.mrf.mxu2  ;;  %v554_v45 = vpop.f32.mrf.mxu3 }
  0xc9   : > { %v1009_v46 = vpack.c.bf16 %v534_v44, %v532_v38  ;;  %v1029_v47 = vpack.c.bf16 %v554_v45, %v552_v39  ;;  %v497_v48 = vpop.f32.mrf.mxu0  ;;  %v517_v49 = vpop.f32.mrf.mxu1 }
  0xcb   : > { %1049 = vst [vmem:[%s1219_s8 + $0x48] sm:$0xff] %v1009_v46  }
  0xcc   : > { %1053 = vst [vmem:[%s1219_s8 + $0x68] sm:$0xff] %v1029_v47  }
  0xd0   : > { %v537_v50 = vpop.f32.mrf.mxu2  ;;  %v557_v51 = vpop.f32.mrf.mxu3 }
  0xd1   : > { %v499_v52 = vpop.f32.mrf.mxu0  ;;  %v519_v53 = vpop.f32.mrf.mxu1 }
  0xd2   : > { %v974_v54 = vpack.c.bf16 %v499_v52, %v497_v48  ;;  %v994_v55 = vpack.c.bf16 %v519_v53, %v517_v49 }
  0xd4   : > { %1042 = vst [vmem:[%s1219_s8 + $0x10] sm:$0xff] %v974_v54  }
  0xd5   : > { %1046 = vst [vmem:[%s1219_s8 + $0x30] sm:$0xff] %v994_v55  }
  0xd8   : > { %v539_v56 = vpop.f32.mrf.mxu2  ;;  %v559_v57 = vpop.f32.mrf.mxu3 }
  0xd9   : > { %v1014_v58 = vpack.c.bf16 %v539_v56, %v537_v50  ;;  %v1034_v59 = vpack.c.bf16 %v559_v57, %v557_v51  ;;  %v502_v60 = vpop.f32.mrf.mxu0  ;;  %v522_v61 = vpop.f32.mrf.mxu1 }
  0xdb   : > { %1050 = vst [vmem:[%s1219_s8 + $0x50] sm:$0xff] %v1014_v58  }
  0xdc   : > { %1054 = vst [vmem:[%s1219_s8 + $0x70] sm:$0xff] %v1034_v59  }
  0xe0   : > { %v542_v62 = vpop.f32.mrf.mxu2  ;;  %v562_v63 = vpop.f32.mrf.mxu3 }
  0xe1   : > { %v504_v0 = vpop.f32.mrf.mxu0  ;;  %v524_v1 = vpop.f32.mrf.mxu1 }
  0xe2   : > { %v979_v2 = vpack.c.bf16 %v504_v0, %v502_v60  ;;  %v999_v3 = vpack.c.bf16 %v524_v1, %v522_v61 }
  0xe4   : > { %1043 = vst [vmem:[%s1219_s8 + $0x18] sm:$0xff] %v979_v2  }
  0xe5   : > { %1047 = vst [vmem:[%s1219_s8 + $0x38] sm:$0xff] %v999_v3  }
  0xe8   : > { %v544_v4 = vpop.f32.mrf.mxu2  ;;  %v564_v5 = vpop.f32.mrf.mxu3 }
  0xe9   : > { %v1019_v6 = vpack.c.bf16 %v544_v4, %v542_v62  ;;  %v1039_v7 = vpack.c.bf16 %v564_v5, %v562_v63 }
  0xeb   : > { %1051 = vst [vmem:[%s1219_s8 + $0x58] sm:$0xff] %v1019_v6  }
  0xec   : > { %1055 = vst [vmem:[%s1219_s8 + $0x78] sm:$0xff] %v1039_v7  }
  0xed PF: > { %s12_s11 = sadd.s32 1, %s1126_s11   ;;  %s1249_s9 = smov %s1122_s10 }
  0xee   : > { %p9_p5 = scmp.ge.s32.totalorder %s12_s11, 4   ;;  %s1250_s10 = smov %s1252_s12 }
  0xf0   :  { %11 = sbr.rel (!%p9_p5) target bundleno = 2 (0x2), region = 69 }

// kernel: mfnet_forward.62
= control target key start
LH: loop header
LB: loop body
LE: loop exit
PB: predicated region body
PF: predicated region fallthrough
CT: control target
= control target key end

     0   :  { %s540_s1 = inlined_call_operand.vmem [shape: bf16[128,128], index: 1, kind: input, shape index: {}]   ;;  %s541_s0 = inlined_call_operand.vmem [shape: bf16[128,128], index: 0, kind: input, shape index: {}]   ;;  %s542_s2 = inlined_call_operand.vmem [shape: bf16[128,128], index: 2, kind: output, shape index: {}]  }
   0x1   :  { %v342_v0 = vld [vmem:[%s540_s1 + $0x38] sm:$0xff]  ;;  %v341_v1 = vld [vmem:[%s540_s1 + $0x30] sm:$0xff]  ;;  %v340_v2 = vld [vmem:[%s540_s1 + $0x28] sm:$0xff] }
   0x2   :  { %167 = vmatpush.bf16.msra.mxu0 %v342_v0  ;;  %429 = vmatpush.bf16.msra.mxu1 %v342_v0  ;;  %v339_v3 = vld [vmem:[%s540_s1 + $0x20] sm:$0xff]  ;;  %v338_v4 = vld [vmem:[%s540_s1 + $0x18] sm:$0xff]  ;;  %v337_v5 = vld [vmem:[%s540_s1 + $0x10] sm:$0xff] }
   0x3   :  { %430 = vmatpush.bf16.msra.mxu2 %v342_v0  ;;  %431 = vmatpush.bf16.msra.mxu3 %v342_v0  ;;  %v344_v6 = vld [vmem:[%s541_s0] sm:$0xff]   ;;  %v416_v7 = vld [vmem:[%s541_s0 + $0x10] sm:$0xff]   ;;  %v336_v14 = vld [vmem:[%s540_s1 + $0x8] sm:$0xff] }
   0x4   :  { %v418_v8 = vld [vmem:[%s541_s0 + $0x20] sm:$0xff]   ;;  %v420_v9 = vld [vmem:[%s541_s0 + $0x30] sm:$0xff]   ;;  %v345_v10 = vunpack.c.l.bf16 %v344_v6  ;;  %v346_v11 = vunpack.c.h.bf16 %v344_v6  ;;  %v353_v12 = vunpack.c.l.bf16 %v416_v7  ;;  %v354_v13 = vunpack.c.h.bf16 %v416_v7  ;;  %v415_v32 = vld [vmem:[%s541_s0 + $0x8] sm:$0xff]  }
   0x5   :  { %v361_v15 = vunpack.c.l.bf16 %v418_v8  ;;  %v362_v16 = vunpack.c.h.bf16 %v418_v8  ;;  %v369_v17 = vunpack.c.l.bf16 %v420_v9  ;;  %v370_v18 = vunpack.c.h.bf16 %v420_v9  ;;  %v335_v23 = vld [vmem:[%s540_s1] sm:$0xff]  ;;  %v417_v33 = vld [vmem:[%s541_s0 + $0x18] sm:$0xff]   ;;  %v419_v34 = vld [vmem:[%s541_s0 + $0x28] sm:$0xff]  }
   0x6   :  { %168 = vmatpush.bf16.msra.mxu0 %v341_v1  ;;  %432 = vmatpush.bf16.msra.mxu1 %v341_v1  ;;  %v63_v19 = vmax.f32 %v345_v10, 0.0  ;;  %v64_v20 = vmax.f32 %v346_v11, 0.0  ;;  %v67_v21 = vmax.f32 %v353_v12, 0.0  ;;  %v68_v22 = vmax.f32 %v354_v13, 0.0  ;;  %v421_v35 = vld [vmem:[%s541_s0 + $0x38] sm:$0xff]  }
   0x7   :  { %433 = vmatpush.bf16.msra.mxu2 %v341_v1  ;;  %434 = vmatpush.bf16.msra.mxu3 %v341_v1  ;;  %v71_v24 = vmax.f32 %v361_v15, 0.0  ;;  %v72_v25 = vmax.f32 %v362_v16, 0.0  ;;  %v75_v26 = vmax.f32 %v369_v17, 0.0  ;;  %v76_v27 = vmax.f32 %v370_v18, 0.0 }
   0x8   :  { %v79_v28 = vpack.c.bf16 %v64_v20, %v63_v19  ;;  %v81_v29 = vpack.c.bf16 %v68_v22, %v67_v21  ;;  %v349_v36 = vunpack.c.l.bf16 %v415_v32  ;;  %v350_v37 = vunpack.c.h.bf16 %v415_v32 }
   0x9   :  { %v83_v30 = vpack.c.bf16 %v72_v25, %v71_v24  ;;  %v85_v31 = vpack.c.bf16 %v76_v27, %v75_v26  ;;  %v357_v38 = vunpack.c.l.bf16 %v417_v33  ;;  %v358_v39 = vunpack.c.h.bf16 %v417_v33 }
   0xa   :  { %169 = vmatpush.bf16.msra.mxu0 %v340_v2  ;;  %435 = vmatpush.bf16.msra.mxu1 %v340_v2  ;;  %v365_v40 = vunpack.c.l.bf16 %v419_v34  ;;  %v366_v41 = vunpack.c.h.bf16 %v419_v34  ;;  %v373_v42 = vunpack.c.l.bf16 %v421_v35  ;;  %v374_v43 = vunpack.c.h.bf16 %v421_v35 }
   0xb   :  { %436 = vmatpush.bf16.msra.mxu2 %v340_v2  ;;  %437 = vmatpush.bf16.msra.mxu3 %v340_v2  ;;  %v65_v44 = vmax.f32 %v349_v36, 0.0  ;;  %v66_v45 = vmax.f32 %v350_v37, 0.0  ;;  %v69_v46 = vmax.f32 %v357_v38, 0.0  ;;  %v70_v47 = vmax.f32 %v358_v39, 0.0 }
   0xc   :  { %v73_v48 = vmax.f32 %v365_v40, 0.0  ;;  %v74_v49 = vmax.f32 %v366_v41, 0.0  ;;  %v77_v50 = vmax.f32 %v373_v42, 0.0  ;;  %v78_v51 = vmax.f32 %v374_v43, 0.0 }
   0xd   :  { %v80_v52 = vpack.c.bf16 %v66_v45, %v65_v44  ;;  %v82_v53 = vpack.c.bf16 %v70_v47, %v69_v46 }
   0xe   :  { %170 = vmatpush.bf16.msra.mxu0 %v339_v3  ;;  %438 = vmatpush.bf16.msra.mxu1 %v339_v3  ;;  %v84_v54 = vpack.c.bf16 %v74_v49, %v73_v48  ;;  %v86_v55 = vpack.c.bf16 %v78_v51, %v77_v50 }
   0xf   :  { %439 = vmatpush.bf16.msra.mxu2 %v339_v3  ;;  %440 = vmatpush.bf16.msra.mxu3 %v339_v3 }
  0x12   :  { %171 = vmatpush.bf16.msra.mxu0 %v338_v4  ;;  %441 = vmatpush.bf16.msra.mxu1 %v338_v4 }
  0x13   :  { %442 = vmatpush.bf16.msra.mxu2 %v338_v4  ;;  %443 = vmatpush.bf16.msra.mxu3 %v338_v4 }
  0x16   :  { %172 = vmatpush.bf16.msra.mxu0 %v337_v5  ;;  %444 = vmatpush.bf16.msra.mxu1 %v337_v5 }
  0x17   :  { %445 = vmatpush.bf16.msra.mxu2 %v337_v5  ;;  %446 = vmatpush.bf16.msra.mxu3 %v337_v5 }
  0x1a   :  { %173 = vmatpush.bf16.msra.mxu0 %v336_v14  ;;  %447 = vmatpush.bf16.msra.mxu1 %v336_v14 }
  0x1b   :  { %448 = vmatpush.bf16.msra.mxu2 %v336_v14  ;;  %449 = vmatpush.bf16.msra.mxu3 %v336_v14 }
  0x1e   :  { %174 = vmatpush.bf16.msra.mxu0 %v335_v23  ;;  %450 = vmatpush.bf16.msra.mxu1 %v335_v23 }
  0x1f   :  { %451 = vmatpush.bf16.msra.mxu2 %v335_v23  ;;  %452 = vmatpush.bf16.msra.mxu3 %v335_v23 }
  0x21   :  { %175 = vmatmul.bf16.vlgmr.msra.gmra.mxu0 %v79_v28  ;;  %185 = vmatmul.bf16.vlgmr.msra.gmra.mxu1 %v81_v29 }
  0x22   :  { %195 = vmatmul.bf16.vlgmr.msra.gmra.mxu2 %v83_v30  ;;  %205 = vmatmul.bf16.vlgmr.msra.gmra.mxu3 %v85_v31 }
  0x31   :  { %180 = vmatmul.bf16.gmra.mxu0 %v80_v52  ;;  %190 = vmatmul.bf16.gmra.mxu1 %v82_v53 }
  0x32   :  { %200 = vmatmul.bf16.gmra.mxu2 %v84_v54  ;;  %210 = vmatmul.bf16.gmra.mxu3 %v86_v55 }
  0x9e   :  { %v176_v56 = vpop.f32.mrf.mxu0  ;;  %v186_v57 = vpop.f32.mrf.mxu1 }
  0xa5   :  { %v196_v58 = vpop.f32.mrf.mxu2  ;;  %v206_v59 = vpop.f32.mrf.mxu3 }
  0xa6   :  { %v178_v60 = vpop.f32.mrf.mxu0  ;;  %v188_v61 = vpop.f32.mrf.mxu1 }
  0xa7   :  { %v378_v62 = vpack.c.bf16 %v178_v60, %v176_v56  ;;  %v388_v63 = vpack.c.bf16 %v188_v61, %v186_v57 }
  0xa9   :  { %379 = vst [vmem:[%s542_s2] sm:$0xff] %v378_v62  }
  0xaa   :  { %423 = vst [vmem:[%s542_s2 + $0x10] sm:$0xff] %v388_v63  }
  0xad   :  { %v198_v0 = vpop.f32.mrf.mxu2  ;;  %v208_v1 = vpop.f32.mrf.mxu3 }
  0xae   :  { %v398_v2 = vpack.c.bf16 %v198_v0, %v196_v58  ;;  %v408_v3 = vpack.c.bf16 %v208_v1, %v206_v59  ;;  %v181_v4 = vpop.f32.mrf.mxu0  ;;  %v191_v5 = vpop.f32.mrf.mxu1 }
  0xb0   :  { %425 = vst [vmem:[%s542_s2 + $0x20] sm:$0xff] %v398_v2  }
  0xb1   :  { %427 = vst [vmem:[%s542_s2 + $0x30] sm:$0xff] %v408_v3  }
  0xb5   :  { %v201_v6 = vpop.f32.mrf.mxu2  ;;  %v211_v7 = vpop.f32.mrf.mxu3 }
  0xb6   :  { %v183_v8 = vpop.f32.mrf.mxu0  ;;  %v193_v9 = vpop.f32.mrf.mxu1 }
  0xb7   :  { %v383_v10 = vpack.c.bf16 %v183_v8, %v181_v4  ;;  %v393_v11 = vpack.c.bf16 %v193_v9, %v191_v5 }
  0xb9   :  { %422 = vst [vmem:[%s542_s2 + $0x8] sm:$0xff] %v383_v10  }
  0xba   :  { %424 = vst [vmem:[%s542_s2 + $0x18] sm:$0xff] %v393_v11  }
  0xbd   :  { %v203_v12 = vpop.f32.mrf.mxu2  ;;  %v213_v13 = vpop.f32.mrf.mxu3 }
  0xbe   :  { %v403_v14 = vpack.c.bf16 %v203_v12, %v201_v6  ;;  %v413_v15 = vpack.c.bf16 %v213_v13, %v211_v7 }
  0xc0   :  { %426 = vst [vmem:[%s542_s2 + $0x28] sm:$0xff] %v403_v14  }
  0xc1   :  { %428 = vst [vmem:[%s542_s2 + $0x38] sm:$0xff] %v413_v15  }

// kernel: mfnet_forward.59
= control target key start
LH: loop header
LB: loop body
LE: loop exit
PB: predicated region body
PF: predicated region fallthrough
CT: control target
= control target key end

     0   :  { %s1126_s9 = smov 0   ;;  %s1128_s10 = smov 0   ;;  %s1226_s0 = inlined_call_operand.vmem [shape: bf16[512,128], index: 0, kind: input, shape index: {}]   ;;  %s1227_s1 = inlined_call_operand.vmem [shape: bf16[128,128], index: 1, kind: input, shape index: {}]   ;;  %s1228_s2 = inlined_call_operand.vmem [shape: bf16[512,128], index: 2, kind: output, shape index: {}]  }
   0x1   :  { %s1130_s11 = smov 0  }
   0x2 LB: > { %s31_s12 = sadd.s32 1, %s1105_s10  ;;  %p818_p0 = scmp.ge.s32.totalorder %s1109_s11, 1  ;;  %s1109_s11 = sphi %s1130_s11, %s12_s11   ;;  %s1105_s10 = sphi %s1128_s10, %s1230_s10   ;;  %s1101_s9 = sphi %s1126_s9, %s1229_s9  }
   0x3   : > { %p33_p1 = scmp.ge.s32.totalorder %s31_s12, 2  ;;  %p155_p2 = scmp.lt.s32.totalorder %s1109_s11, 3 }
   0x5   : > { %s1232_s12 = smov (%p33_p1, %s31_s12), 0  ;;  %p156_p3 = pnand %p818_p0, %p155_p2 }
   0x6   : > { %s819_s15 = sshll.u32 (!%p156_p3), %s1101_s9, 5 }
   0x7   : > { %159 = sbr.rel (%p156_p3) target bundleno = 237 (0xed), region = 28  ;;  %p192_p4 = scmp.lt.s32.totalorder (!%p156_p3), %s819_s15, 63 }
   0xc   : > { %v864_v0 = vld [vmem:[%s1227_s1 + $0x38] sm:$0xff]  ;;  %v863_v1 = vld [vmem:[%s1227_s1 + $0x30] sm:$0xff]  ;;  %v862_v2 = vld [vmem:[%s1227_s1 + $0x28] sm:$0xff]  ;;  %s1234_s15 = smov (!%p192_p4, %s819_s15), 63 }
   0xd   : > { %462 = vmatpush.bf16.msra.mxu0 %v864_v0  ;;  %1039 = vmatpush.bf16.msra.mxu1 %v864_v0  ;;  %v861_v3 = vld [vmem:[%s1227_s1 + $0x20] sm:$0xff]  ;;  %s820_s22 = sshll.u32 %s1234_s15, 2  ;;  %v860_v4 = vld [vmem:[%s1227_s1 + $0x18] sm:$0xff]  ;;  %v859_v5 = vld [vmem:[%s1227_s1 + $0x10] sm:$0xff] }
   0xe   : > { %1040 = vmatpush.bf16.msra.mxu2 %v864_v0  ;;  %1041 = vmatpush.bf16.msra.mxu3 %v864_v0  ;;  %s1167_s27 = scalar_lea.vmem %s1226_s0, %s820_s22  ;;  %v858_v14 = vld [vmem:[%s1227_s1 + $0x8] sm:$0xff]  ;;  %v857_v23 = vld [vmem:[%s1227_s1] sm:$0xff]  ;;  %s1199_s8 = scalar_lea.vmem %s1228_s2, %s820_s22 }
   0xf   : > { %v866_v6 = vld [vmem:[%s1167_s27] sm:$0xff]   ;;  %v1009_v32 = vld [vmem:[%s1167_s27 + $0x8] sm:$0xff]   ;;  %v1010_v56 = vld [vmem:[%s1167_s27 + $0x10] sm:$0xff]  }
  0x10   : > { %v1012_v7 = vld [vmem:[%s1167_s27 + $0x20] sm:$0xff]   ;;  %v867_v10 = vunpack.c.l.bf16 %v866_v6  ;;  %v868_v11 = vunpack.c.h.bf16 %v866_v6  ;;  %v1013_v33 = vld [vmem:[%s1167_s27 + $0x28] sm:$0xff]   ;;  %v871_v36 = vunpack.c.l.bf16 %v1009_v32  ;;  %v872_v37 = vunpack.c.h.bf16 %v1009_v32  ;;  %v1014_v57 = vld [vmem:[%s1167_s27 + $0x30] sm:$0xff]  }
  0x11   : > { %463 = vmatpush.bf16.msra.mxu0 %v863_v1  ;;  %1042 = vmatpush.bf16.msra.mxu1 %v863_v1  ;;  %v1016_v8 = vld [vmem:[%s1167_s27 + $0x40] sm:$0xff]   ;;  %v883_v12 = vunpack.c.l.bf16 %v1012_v7  ;;  %v884_v13 = vunpack.c.h.bf16 %v1012_v7  ;;  %v1017_v34 = vld [vmem:[%s1167_s27 + $0x48] sm:$0xff]   ;;  %v887_v38 = vunpack.c.l.bf16 %v1013_v33  ;;  %v888_v39 = vunpack.c.h.bf16 %v1013_v33  ;;  %v1018_v58 = vld [vmem:[%s1167_s27 + $0x50] sm:$0xff]  }
  0x12   : > { %1043 = vmatpush.bf16.msra.mxu2 %v863_v1  ;;  %1044 = vmatpush.bf16.msra.mxu3 %v863_v1  ;;  %v1020_v9 = vld [vmem:[%s1167_s27 + $0x60] sm:$0xff]   ;;  %v899_v15 = vunpack.c.l.bf16 %v1016_v8  ;;  %v900_v16 = vunpack.c.h.bf16 %v1016_v8  ;;  %v318_v19 = vmax.f32 %v867_v10, 0.0  ;;  %v319_v20 = vmax.f32 %v868_v11, 0.0  ;;  %v1021_v35 = vld [vmem:[%s1167_s27 + $0x68] sm:$0xff]   ;;  %v1022_v59 = vld [vmem:[%s1167_s27 + $0x70] sm:$0xff]  }
  0x13   : > { %v915_v17 = vunpack.c.l.bf16 %v1020_v9  ;;  %v916_v18 = vunpack.c.h.bf16 %v1020_v9  ;;  %v326_v21 = vmax.f32 %v883_v12, 0.0  ;;  %v327_v22 = vmax.f32 %v884_v13, 0.0 }
  0x14   : > { %v334_v24 = vmax.f32 %v899_v15, 0.0  ;;  %v335_v25 = vmax.f32 %v900_v16, 0.0  ;;  %v350_v28 = vpack.c.bf16 %v319_v20, %v318_v19  ;;  %v903_v40 = vunpack.c.l.bf16 %v1017_v34  ;;  %v1011_v16 = vld [vmem:[%s1167_s27 + $0x18] sm:$0xff]  }
  0x15   : > { %464 = vmatpush.bf16.msra.mxu0 %v862_v2  ;;  %1045 = vmatpush.bf16.msra.mxu1 %v862_v2  ;;  %v342_v26 = vmax.f32 %v915_v17, 0.0  ;;  %v343_v27 = vmax.f32 %v916_v18, 0.0  ;;  %v354_v29 = vpack.c.bf16 %v327_v22, %v326_v21  ;;  %v904_v41 = vunpack.c.h.bf16 %v1017_v34  ;;  %v1015_v17 = vld [vmem:[%s1167_s27 + $0x38] sm:$0xff]  }
  0x16   : > { %1046 = vmatpush.bf16.msra.mxu2 %v862_v2  ;;  %1047 = vmatpush.bf16.msra.mxu3 %v862_v2  ;;  %v358_v30 = vpack.c.bf16 %v335_v25, %v334_v24  ;;  %v919_v42 = vunpack.c.l.bf16 %v1021_v35  ;;  %v920_v43 = vunpack.c.h.bf16 %v1021_v35  ;;  %v320_v44 = vmax.f32 %v871_v36, 0.0  ;;  %v1019_v18 = vld [vmem:[%s1167_s27 + $0x58] sm:$0xff]  }
  0x17   : > { %v362_v31 = vpack.c.bf16 %v343_v27, %v342_v26  ;;  %v321_v45 = vmax.f32 %v872_v37, 0.0  ;;  %v328_v46 = vmax.f32 %v887_v38, 0.0  ;;  %v329_v47 = vmax.f32 %v888_v39, 0.0  ;;  %v1023_v19 = vld [vmem:[%s1167_s27 + $0x78] sm:$0xff]  }
  0x18   : > { %v336_v48 = vmax.f32 %v903_v40, 0.0  ;;  %v337_v49 = vmax.f32 %v904_v41, 0.0  ;;  %v344_v50 = vmax.f32 %v919_v42, 0.0  ;;  %v345_v51 = vmax.f32 %v920_v43, 0.0 }
  0x19   : > { %465 = vmatpush.bf16.msra.mxu0 %v861_v3  ;;  %1048 = vmatpush.bf16.msra.mxu1 %v861_v3  ;;  %v351_v52 = vpack.c.bf16 %v321_v45, %v320_v44  ;;  %v355_v53 = vpack.c.bf16 %v329_v47, %v328_v46  ;;  %v875_v60 = vunpack.c.l.bf16 %v1010_v56  ;;  %v876_v61 = vunpack.c.h.bf16 %v1010_v56 }
  0x1a   : > { %1049 = vmatpush.bf16.msra.mxu2 %v861_v3  ;;  %1050 = vmatpush.bf16.msra.mxu3 %v861_v3  ;;  %v359_v54 = vpack.c.bf16 %v337_v49, %v336_v48  ;;  %v363_v55 = vpack.c.bf16 %v345_v51, %v344_v50  ;;  %v891_v62 = vunpack.c.l.bf16 %v1014_v57  ;;  %v892_v63 = vunpack.c.h.bf16 %v1014_v57 }
  0x1b   : > { %v907_v0 = vunpack.c.l.bf16 %v1018_v58  ;;  %v908_v1 = vunpack.c.h.bf16 %v1018_v58  ;;  %v923_v2 = vunpack.c.l.bf16 %v1022_v59  ;;  %v924_v3 = vunpack.c.h.bf16 %v1022_v59 }
  0x1c   : > { %v330_v6 = vmax.f32 %v891_v62, 0.0  ;;  %v331_v7 = vmax.f32 %v892_v63, 0.0  ;;  %v879_v20 = vunpack.c.l.bf16 %v1011_v16  ;;  %v880_v21 = vunpack.c.h.bf16 %v1011_v16 }
  0x1d   : > { %466 = vmatpush.bf16.msra.mxu0 %v860_v4  ;;  %1051 = vmatpush.bf16.msra.mxu1 %v860_v4  ;;  %v338_v8 = vmax.f32 %v907_v0, 0.0  ;;  %v339_v9 = vmax.f32 %v908_v1, 0.0  ;;  %v346_v10 = vmax.f32 %v923_v2, 0.0  ;;  %v347_v11 = vmax.f32 %v924_v3, 0.0 }
  0x1e   : > { %1052 = vmatpush.bf16.msra.mxu2 %v860_v4  ;;  %1053 = vmatpush.bf16.msra.mxu3 %v860_v4  ;;  %v322_v4 = vmax.f32 %v875_v60, 0.0  ;;  %v356_v13 = vpack.c.bf16 %v331_v7, %v330_v6  ;;  %v895_v22 = vunpack.c.l.bf16 %v1015_v17  ;;  %v911_v24 = vunpack.c.l.bf16 %v1019_v18 }
  0x1f   : > { %v364_v15 = vpack.c.bf16 %v347_v11, %v346_v10  ;;  %v912_v25 = vunpack.c.h.bf16 %v1019_v18  ;;  %v927_v26 = vunpack.c.l.bf16 %v1023_v19  ;;  %v928_v27 = vunpack.c.h.bf16 %v1023_v19 }
  0x20   : > { %v340_v32 = vmax.f32 %v911_v24, 0.0 }
  0x21   : > { %467 = vmatpush.bf16.msra.mxu0 %v859_v5  ;;  %1054 = vmatpush.bf16.msra.mxu1 %v859_v5  ;;  %v341_v33 = vmax.f32 %v912_v25, 0.0  ;;  %v348_v34 = vmax.f32 %v927_v26, 0.0  ;;  %v349_v35 = vmax.f32 %v928_v27, 0.0 }
  0x22   : > { %1055 = vmatpush.bf16.msra.mxu2 %v859_v5  ;;  %1056 = vmatpush.bf16.msra.mxu3 %v859_v5  ;;  %v323_v5 = vmax.f32 %v876_v61, 0.0 }
  0x23   : > { %v361_v38 = vpack.c.bf16 %v341_v33, %v340_v32  ;;  %v365_v39 = vpack.c.bf16 %v349_v35, %v348_v34 }
  0x24   : > { %v352_v12 = vpack.c.bf16 %v323_v5, %v322_v4 }
  0x25   : > { %468 = vmatpush.bf16.msra.mxu0 %v858_v14  ;;  %1057 = vmatpush.bf16.msra.mxu1 %v858_v14 }
  0x26   : > { %1058 = vmatpush.bf16.msra.mxu2 %v858_v14  ;;  %1059 = vmatpush.bf16.msra.mxu3 %v858_v14  ;;  %v360_v14 = vpack.c.bf16 %v339_v9, %v338_v8 }
  0x29   : > { %469 = vmatpush.bf16.msra.mxu0 %v857_v23  ;;  %1060 = vmatpush.bf16.msra.mxu1 %v857_v23 }
  0x2a   : > { %1061 = vmatpush.bf16.msra.mxu2 %v857_v23  ;;  %1062 = vmatpush.bf16.msra.mxu3 %v857_v23  ;;  %v896_v23 = vunpack.c.h.bf16 %v1015_v17 }
  0x2c   : > { %470 = vmatmul.bf16.vlgmr.msra.gmra.mxu0 %v350_v28  ;;  %490 = vmatmul.bf16.vlgmr.msra.gmra.mxu1 %v354_v29  ;;  %v324_v28 = vmax.f32 %v879_v20, 0.0  ;;  %v325_v29 = vmax.f32 %v880_v21, 0.0 }
  0x2d   : > { %510 = vmatmul.bf16.vlgmr.msra.gmra.mxu2 %v358_v30  ;;  %530 = vmatmul.bf16.vlgmr.msra.gmra.mxu3 %v362_v31  ;;  %v332_v30 = vmax.f32 %v895_v22, 0.0  ;;  %v333_v31 = vmax.f32 %v896_v23, 0.0 }
  0x2e   : > { %v353_v36 = vpack.c.bf16 %v325_v29, %v324_v28 }
  0x2f   : > { %v357_v37 = vpack.c.bf16 %v333_v31, %v332_v30 }
  0x3c   : > { %475 = vmatmul.bf16.gmra.mxu0 %v351_v52  ;;  %495 = vmatmul.bf16.gmra.mxu1 %v355_v53 }
  0x3d   : > { %515 = vmatmul.bf16.gmra.mxu2 %v359_v54  ;;  %535 = vmatmul.bf16.gmra.mxu3 %v363_v55 }
  0x4c   : > { %480 = vmatmul.bf16.gmra.mxu0 %v352_v12  ;;  %500 = vmatmul.bf16.gmra.mxu1 %v356_v13 }
  0x4d   : > { %520 = vmatmul.bf16.gmra.mxu2 %v360_v14  ;;  %540 = vmatmul.bf16.gmra.mxu3 %v364_v15 }
  0x5c   : > { %485 = vmatmul.bf16.gmra.mxu0 %v353_v36  ;;  %505 = vmatmul.bf16.gmra.mxu1 %v357_v37 }
  0x5d   : > { %525 = vmatmul.bf16.gmra.mxu2 %v361_v38  ;;  %545 = vmatmul.bf16.gmra.mxu3 %v365_v39 }
  0xa9   : > { %v471_v40 = vpop.f32.mrf.mxu0  ;;  %v491_v41 = vpop.f32.mrf.mxu1 }
  0xb0   : > { %v511_v42 = vpop.f32.mrf.mxu2  ;;  %v531_v43 = vpop.f32.mrf.mxu3 }
  0xb1   : > { %v473_v44 = vpop.f32.mrf.mxu0  ;;  %v493_v45 = vpop.f32.mrf.mxu1 }
  0xb2   : > { %v932_v46 = vpack.c.bf16 %v473_v44, %v471_v40  ;;  %v952_v47 = vpack.c.bf16 %v493_v45, %v491_v41 }
  0xb4   : > { %933 = vst [vmem:[%s1199_s8] sm:$0xff] %v932_v46  }
  0xb5   : > { %1027 = vst [vmem:[%s1199_s8 + $0x20] sm:$0xff] %v952_v47  }
  0xb8   : > { %v513_v48 = vpop.f32.mrf.mxu2  ;;  %v533_v49 = vpop.f32.mrf.mxu3 }
  0xb9   : > { %v972_v50 = vpack.c.bf16 %v513_v48, %v511_v42  ;;  %v992_v51 = vpack.c.bf16 %v533_v49, %v531_v43  ;;  %v476_v52 = vpop.f32.mrf.mxu0  ;;  %v496_v53 = vpop.f32.mrf.mxu1 }
  0xbb   : > { %1031 = vst [vmem:[%s1199_s8 + $0x40] sm:$0xff] %v972_v50  }
  0xbc   : > { %1035 = vst [vmem:[%s1199_s8 + $0x60] sm:$0xff] %v992_v51  }
  0xc0   : > { %v516_v54 = vpop.f32.mrf.mxu2  ;;  %v536_v55 = vpop.f32.mrf.mxu3 }
  0xc1   : > { %v478_v56 = vpop.f32.mrf.mxu0  ;;  %v498_v57 = vpop.f32.mrf.mxu1 }
  0xc2   : > { %v937_v58 = vpack.c.bf16 %v478_v56, %v476_v52  ;;  %v957_v59 = vpack.c.bf16 %v498_v57, %v496_v53 }
  0xc4   : > { %1024 = vst [vmem:[%s1199_s8 + $0x8] sm:$0xff] %v937_v58  }
  0xc5   : > { %1028 = vst [vmem:[%s1199_s8 + $0x28] sm:$0xff] %v957_v59  }
  0xc8   : > { %v518_v60 = vpop.f32.mrf.mxu2  ;;  %v538_v61 = vpop.f32.mrf.mxu3 }
  0xc9   : > { %v977_v62 = vpack.c.bf16 %v518_v60, %v516_v54  ;;  %v997_v63 = vpack.c.bf16 %v538_v61, %v536_v55  ;;  %v481_v0 = vpop.f32.mrf.mxu0  ;;  %v501_v1 = vpop.f32.mrf.mxu1 }
  0xcb   : > { %1032 = vst [vmem:[%s1199_s8 + $0x48] sm:$0xff] %v977_v62  }
  0xcc   : > { %1036 = vst [vmem:[%s1199_s8 + $0x68] sm:$0xff] %v997_v63  }
  0xd0   : > { %v521_v2 = vpop.f32.mrf.mxu2  ;;  %v541_v3 = vpop.f32.mrf.mxu3 }
  0xd1   : > { %v483_v4 = vpop.f32.mrf.mxu0  ;;  %v503_v5 = vpop.f32.mrf.mxu1 }
  0xd2   : > { %v942_v6 = vpack.c.bf16 %v483_v4, %v481_v0  ;;  %v962_v7 = vpack.c.bf16 %v503_v5, %v501_v1 }
  0xd4   : > { %1025 = vst [vmem:[%s1199_s8 + $0x10] sm:$0xff] %v942_v6  }
  0xd5   : > { %1029 = vst [vmem:[%s1199_s8 + $0x30] sm:$0xff] %v962_v7  }
  0xd8   : > { %v523_v8 = vpop.f32.mrf.mxu2  ;;  %v543_v9 = vpop.f32.mrf.mxu3 }
  0xd9   : > { %v982_v10 = vpack.c.bf16 %v523_v8, %v521_v2  ;;  %v1002_v11 = vpack.c.bf16 %v543_v9, %v541_v3  ;;  %v486_v12 = vpop.f32.mrf.mxu0  ;;  %v506_v13 = vpop.f32.mrf.mxu1 }
  0xdb   : > { %1033 = vst [vmem:[%s1199_s8 + $0x50] sm:$0xff] %v982_v10  }
  0xdc   : > { %1037 = vst [vmem:[%s1199_s8 + $0x70] sm:$0xff] %v1002_v11  }
  0xe0   : > { %v526_v14 = vpop.f32.mrf.mxu2  ;;  %v546_v15 = vpop.f32.mrf.mxu3 }
  0xe1   : > { %v488_v16 = vpop.f32.mrf.mxu0  ;;  %v508_v17 = vpop.f32.mrf.mxu1 }
  0xe2   : > { %v947_v18 = vpack.c.bf16 %v488_v16, %v486_v12  ;;  %v967_v19 = vpack.c.bf16 %v508_v17, %v506_v13 }
  0xe4   : > { %1026 = vst [vmem:[%s1199_s8 + $0x18] sm:$0xff] %v947_v18  }
  0xe5   : > { %1030 = vst [vmem:[%s1199_s8 + $0x38] sm:$0xff] %v967_v19  }
  0xe8   : > { %v528_v20 = vpop.f32.mrf.mxu2  ;;  %v548_v21 = vpop.f32.mrf.mxu3 }
  0xe9   : > { %v987_v22 = vpack.c.bf16 %v528_v20, %v526_v14  ;;  %v1007_v23 = vpack.c.bf16 %v548_v21, %v546_v15 }
  0xeb   : > { %1034 = vst [vmem:[%s1199_s8 + $0x58] sm:$0xff] %v987_v22  }
  0xec   : > { %1038 = vst [vmem:[%s1199_s8 + $0x78] sm:$0xff] %v1007_v23  }
  0xed PF: > { %s12_s11 = sadd.s32 1, %s1109_s11   ;;  %s1229_s9 = smov %s1105_s10 }
  0xee   : > { %p9_p5 = scmp.ge.s32.totalorder %s12_s11, 4   ;;  %s1230_s10 = smov %s1232_s12 }
  0xf0   :  { %11 = sbr.rel (!%p9_p5) target bundleno = 2 (0x2), region = 69 }

// kernel: mfnet_forward.61
= control target key start
LH: loop header
LB: loop body
LE: loop exit
PB: predicated region body
PF: predicated region fallthrough
CT: control target
= control target key end

     0   :  { %s734_s1 = inlined_call_operand.vmem [shape: bf16[256,128], index: 1, kind: input, shape index: {}]   ;;  %s735_s0 = inlined_call_operand.vmem [shape: bf16[128,256], index: 0, kind: input, shape index: {}]   ;;  %s736_s2 = inlined_call_operand.vmem [shape: bf16[128,128], index: 2, kind: output, shape index: {}]  }
   0x1   :  { %v527_v0 = vld [vmem:[%s734_s1 + $0x38] sm:$0xff]  ;;  %v526_v2 = vld [vmem:[%s734_s1 + $0x30] sm:$0xff]  ;;  %v525_v4 = vld [vmem:[%s734_s1 + $0x28] sm:$0xff] }
   0x2   :  { %v535_v1 = vld [vmem:[%s734_s1 + $0x78] sm:$0xff]  ;;  %271 = vmatpush.bf16.msra.mxu0 %v527_v0  ;;  %583 = vmatpush.bf16.msra.mxu2 %v527_v0  ;;  %v534_v3 = vld [vmem:[%s734_s1 + $0x70] sm:$0xff]  ;;  %v533_v5 = vld [vmem:[%s734_s1 + $0x68] sm:$0xff] }
   0x3   :  { %320 = vmatpush.bf16.msra.mxu1 %v535_v1  ;;  %591 = vmatpush.bf16.msra.mxu3 %v535_v1  ;;  %v524_v6 = vld [vmem:[%s734_s1 + $0x20] sm:$0xff]  ;;  %v523_v8 = vld [vmem:[%s734_s1 + $0x18] sm:$0xff]  ;;  %v522_v10 = vld [vmem:[%s734_s1 + $0x10] sm:$0xff] }
   0x4   :  { %v532_v7 = vld [vmem:[%s734_s1 + $0x60] sm:$0xff]  ;;  %v531_v9 = vld [vmem:[%s734_s1 + $0x58] sm:$0xff]  ;;  %v32_v12 = vld [vmem:[%s735_s0 + $0x8] sm:$0xff] }
   0x5   :  { %v31_v11 = vld [vmem:[%s735_s0] sm:$0xff]  ;;  %v40_v14 = vld [vmem:[%s735_s0 + $0x48] sm:$0xff]  ;;  %v530_v15 = vld [vmem:[%s734_s1 + $0x50] sm:$0xff]  ;;  %v49_v17 = vunpack.c.l.bf16 %v32_v12  ;;  %v50_v22 = vunpack.c.h.bf16 %v32_v12 }
   0x6   :  { %272 = vmatpush.bf16.msra.mxu0 %v526_v2  ;;  %584 = vmatpush.bf16.msra.mxu2 %v526_v2  ;;  %v39_v13 = vld [vmem:[%s735_s0 + $0x40] sm:$0xff]  ;;  %v47_v16 = vunpack.c.l.bf16 %v31_v11  ;;  %v65_v19 = vunpack.c.l.bf16 %v40_v14  ;;  %v521_v20 = vld [vmem:[%s734_s1 + $0x8] sm:$0xff]  ;;  %v48_v21 = vunpack.c.h.bf16 %v31_v11  ;;  %v66_v24 = vunpack.c.h.bf16 %v40_v14  ;;  %v33_v40 = vld [vmem:[%s735_s0 + $0x10] sm:$0xff] }
   0x7   :  { %321 = vmatpush.bf16.msra.mxu1 %v534_v3  ;;  %592 = vmatpush.bf16.msra.mxu3 %v534_v3  ;;  %v63_v18 = vunpack.c.l.bf16 %v39_v13  ;;  %v64_v23 = vunpack.c.h.bf16 %v39_v13  ;;  %v529_v25 = vld [vmem:[%s734_s1 + $0x48] sm:$0xff]  ;;  %v81_v27 = vmax.f32 %v49_v17, 0.0  ;;  %v520_v30 = vld [vmem:[%s734_s1] sm:$0xff]  ;;  %v82_v32 = vmax.f32 %v50_v22, 0.0  ;;  %v34_v41 = vld [vmem:[%s735_s0 + $0x18] sm:$0xff] }
   0x8   :  { %v79_v26 = vmax.f32 %v47_v16, 0.0  ;;  %v97_v29 = vmax.f32 %v65_v19, 0.0  ;;  %v80_v31 = vmax.f32 %v48_v21, 0.0  ;;  %v98_v34 = vmax.f32 %v66_v24, 0.0  ;;  %v528_v35 = vld [vmem:[%s734_s1 + $0x40] sm:$0xff]  ;;  %v41_v42 = vld [vmem:[%s735_s0 + $0x50] sm:$0xff] }
   0x9   :  { %v95_v28 = vmax.f32 %v63_v18, 0.0  ;;  %v96_v33 = vmax.f32 %v64_v23, 0.0  ;;  %v42_v43 = vld [vmem:[%s735_s0 + $0x58] sm:$0xff]  ;;  %v51_v44 = vunpack.c.l.bf16 %v33_v40  ;;  %v53_v45 = vunpack.c.l.bf16 %v34_v41  ;;  %v35_v0 = vld [vmem:[%s735_s0 + $0x20] sm:$0xff]  ;;  %v36_v1 = vld [vmem:[%s735_s0 + $0x28] sm:$0xff] }
   0xa   :  { %273 = vmatpush.bf16.msra.mxu0 %v525_v4  ;;  %585 = vmatpush.bf16.msra.mxu2 %v525_v4  ;;  %v111_v36 = vpack.c.bf16 %v81_v27, %v79_v26  ;;  %v112_v38 = vpack.c.bf16 %v82_v32, %v80_v31  ;;  %v67_v46 = vunpack.c.l.bf16 %v41_v42  ;;  %v69_v47 = vunpack.c.l.bf16 %v42_v43  ;;  %v43_v2 = vld [vmem:[%s735_s0 + $0x60] sm:$0xff]  ;;  %v44_v3 = vld [vmem:[%s735_s0 + $0x68] sm:$0xff]  ;;  %v37_v24 = vld [vmem:[%s735_s0 + $0x30] sm:$0xff] }
   0xb   :  { %322 = vmatpush.bf16.msra.mxu1 %v533_v5  ;;  %593 = vmatpush.bf16.msra.mxu3 %v533_v5  ;;  %v119_v37 = vpack.c.bf16 %v97_v29, %v95_v28  ;;  %v120_v39 = vpack.c.bf16 %v98_v34, %v96_v33  ;;  %v52_v48 = vunpack.c.h.bf16 %v33_v40  ;;  %v54_v49 = vunpack.c.h.bf16 %v34_v41  ;;  %v45_v26 = vld [vmem:[%s735_s0 + $0x70] sm:$0xff]  ;;  %v46_v27 = vld [vmem:[%s735_s0 + $0x78] sm:$0xff] }
   0xc   :  { %v68_v50 = vunpack.c.h.bf16 %v41_v42  ;;  %v70_v51 = vunpack.c.h.bf16 %v42_v43  ;;  %v83_v52 = vmax.f32 %v51_v44, 0.0  ;;  %v85_v53 = vmax.f32 %v53_v45, 0.0 }
   0xd   :  { %v99_v54 = vmax.f32 %v67_v46, 0.0  ;;  %v101_v55 = vmax.f32 %v69_v47, 0.0  ;;  %v84_v56 = vmax.f32 %v52_v48, 0.0  ;;  %v86_v57 = vmax.f32 %v54_v49, 0.0 }
   0xe   :  { %274 = vmatpush.bf16.msra.mxu0 %v524_v6  ;;  %586 = vmatpush.bf16.msra.mxu2 %v524_v6  ;;  %v100_v58 = vmax.f32 %v68_v50, 0.0  ;;  %v102_v59 = vmax.f32 %v70_v51, 0.0  ;;  %v113_v60 = vpack.c.bf16 %v85_v53, %v83_v52  ;;  %v55_v4 = vunpack.c.l.bf16 %v35_v0 }
   0xf   :  { %323 = vmatpush.bf16.msra.mxu1 %v532_v7  ;;  %594 = vmatpush.bf16.msra.mxu3 %v532_v7  ;;  %v121_v61 = vpack.c.bf16 %v101_v55, %v99_v54  ;;  %v114_v62 = vpack.c.bf16 %v86_v57, %v84_v56  ;;  %v57_v5 = vunpack.c.l.bf16 %v36_v1  ;;  %v71_v6 = vunpack.c.l.bf16 %v43_v2 }
  0x10   :  { %v122_v63 = vpack.c.bf16 %v102_v59, %v100_v58  ;;  %v73_v7 = vunpack.c.l.bf16 %v44_v3  ;;  %v74_v11 = vunpack.c.h.bf16 %v44_v3  ;;  %v87_v12 = vmax.f32 %v55_v4, 0.0 }
  0x11   :  { %v89_v13 = vmax.f32 %v57_v5, 0.0  ;;  %v103_v14 = vmax.f32 %v71_v6, 0.0  ;;  %v59_v28 = vunpack.c.l.bf16 %v37_v24  ;;  %v77_v31 = vunpack.c.l.bf16 %v46_v27 }
  0x12   :  { %275 = vmatpush.bf16.msra.mxu0 %v523_v8  ;;  %587 = vmatpush.bf16.msra.mxu2 %v523_v8  ;;  %v56_v8 = vunpack.c.h.bf16 %v35_v0  ;;  %v106_v19 = vmax.f32 %v74_v11, 0.0  ;;  %v60_v32 = vunpack.c.h.bf16 %v37_v24  ;;  %v76_v34 = vunpack.c.h.bf16 %v45_v26 }
  0x13   :  { %324 = vmatpush.bf16.msra.mxu1 %v531_v9  ;;  %595 = vmatpush.bf16.msra.mxu3 %v531_v9  ;;  %v58_v9 = vunpack.c.h.bf16 %v36_v1 }
  0x14   :  { %v88_v16 = vmax.f32 %v56_v8, 0.0  ;;  %v92_v40 = vmax.f32 %v60_v32, 0.0  ;;  %v108_v42 = vmax.f32 %v76_v34, 0.0 }
  0x15   :  { %v90_v17 = vmax.f32 %v58_v9, 0.0 }
  0x16   :  { %276 = vmatpush.bf16.msra.mxu0 %v522_v10  ;;  %588 = vmatpush.bf16.msra.mxu2 %v522_v10  ;;  %v72_v10 = vunpack.c.h.bf16 %v43_v2 }
  0x17   :  { %325 = vmatpush.bf16.msra.mxu1 %v530_v15  ;;  %596 = vmatpush.bf16.msra.mxu3 %v530_v15  ;;  %v105_v15 = vmax.f32 %v73_v7, 0.0  ;;  %v116_v22 = vpack.c.bf16 %v90_v17, %v88_v16 }
  0x18   :  { %v104_v18 = vmax.f32 %v72_v10, 0.0 }
  0x19   :  { %v123_v21 = vpack.c.bf16 %v105_v15, %v103_v14 }
  0x1a   :  { %277 = vmatpush.bf16.msra.mxu0 %v521_v20  ;;  %589 = vmatpush.bf16.msra.mxu2 %v521_v20  ;;  %v115_v20 = vpack.c.bf16 %v89_v13, %v87_v12  ;;  %v124_v23 = vpack.c.bf16 %v106_v19, %v104_v18 }
  0x1b   :  { %326 = vmatpush.bf16.msra.mxu1 %v529_v25  ;;  %597 = vmatpush.bf16.msra.mxu3 %v529_v25  ;;  %v38_v25 = vld [vmem:[%s735_s0 + $0x38] sm:$0xff] }
  0x1c   :  { %v61_v29 = vunpack.c.l.bf16 %v38_v25  ;;  %v62_v33 = vunpack.c.h.bf16 %v38_v25 }
  0x1e   :  { %278 = vmatpush.bf16.msra.mxu0 %v520_v30  ;;  %590 = vmatpush.bf16.msra.mxu2 %v520_v30  ;;  %v75_v30 = vunpack.c.l.bf16 %v45_v26  ;;  %v94_v41 = vmax.f32 %v62_v33, 0.0 }
  0x1f   :  { %327 = vmatpush.bf16.msra.mxu1 %v528_v35  ;;  %598 = vmatpush.bf16.msra.mxu3 %v528_v35  ;;  %v78_v35 = vunpack.c.h.bf16 %v46_v27 }
  0x20   :  { %v118_v46 = vpack.c.bf16 %v94_v41, %v92_v40 }
  0x21   :  { %279 = vmatmul.bf16.vlgmr.msra.gmra.mxu0 %v111_v36  ;;  %299 = vmatmul.bf16.vlgmr.msra.gmra.mxu2 %v119_v37  ;;  %v91_v36 = vmax.f32 %v59_v28, 0.0  ;;  %v93_v37 = vmax.f32 %v61_v29, 0.0  ;;  %v110_v43 = vmax.f32 %v78_v35, 0.0 }
  0x22   :  { %328 = vmatmul.bf16.vlgmr.msra.gmra.mxu1 %v112_v38  ;;  %348 = vmatmul.bf16.vlgmr.msra.gmra.mxu3 %v120_v39  ;;  %v107_v38 = vmax.f32 %v75_v30, 0.0  ;;  %v109_v39 = vmax.f32 %v77_v31, 0.0 }
  0x23   :  { %v117_v44 = vpack.c.bf16 %v93_v37, %v91_v36  ;;  %v126_v47 = vpack.c.bf16 %v110_v43, %v108_v42 }
  0x24   :  { %v125_v45 = vpack.c.bf16 %v109_v39, %v107_v38 }
  0x31   :  { %284 = vmatmul.bf16.gmra.mxu0 %v113_v60  ;;  %304 = vmatmul.bf16.gmra.mxu2 %v121_v61 }
  0x32   :  { %333 = vmatmul.bf16.gmra.mxu1 %v114_v62  ;;  %353 = vmatmul.bf16.gmra.mxu3 %v122_v63 }
  0x41   :  { %289 = vmatmul.bf16.gmra.mxu0 %v115_v20  ;;  %309 = vmatmul.bf16.gmra.mxu2 %v123_v21 }
  0x42   :  { %338 = vmatmul.bf16.gmra.mxu1 %v116_v22  ;;  %358 = vmatmul.bf16.gmra.mxu3 %v124_v23 }
  0x51   :  { %294 = vmatmul.bf16.gmra.mxu0 %v117_v44  ;;  %314 = vmatmul.bf16.gmra.mxu2 %v125_v45 }
  0x52   :  { %343 = vmatmul.bf16.gmra.mxu1 %v118_v46  ;;  %363 = vmatmul.bf16.gmra.mxu3 %v126_v47 }
  0x9e   :  { %v280_v48 = vpop.f32.mrf.mxu0 }
  0x9f   :  { %v329_v49 = vpop.f32.mrf.mxu1 }
  0xa0   :  { %v330_v54 = vadd.f32 %v329_v49, %v280_v48 }
  0xa4   :  { %v300_v50 = vpop.f32.mrf.mxu2 }
  0xa5   :  { %v349_v51 = vpop.f32.mrf.mxu3 }
  0xa6   :  { %v282_v52 = vpop.f32.mrf.mxu0  ;;  %v350_v59 = vadd.f32 %v349_v51, %v300_v50 }
  0xa7   :  { %v331_v53 = vpop.f32.mrf.mxu1 }
  0xa8   :  { %v332_v55 = vadd.f32 %v331_v53, %v282_v52 }
  0xaa   :  { %v539_v56 = vpack.c.bf16 %v332_v55, %v330_v54 }
  0xac   :  { %540 = vst [vmem:[%s736_s2] sm:$0xff] %v539_v56   ;;  %v302_v57 = vpop.f32.mrf.mxu2 }
  0xad   :  { %v351_v58 = vpop.f32.mrf.mxu3 }
  0xae   :  { %v352_v60 = vadd.f32 %v351_v58, %v302_v57  ;;  %v285_v61 = vpop.f32.mrf.mxu0 }
  0xaf   :  { %v334_v62 = vpop.f32.mrf.mxu1 }
  0xb0   :  { %v559_v63 = vpack.c.bf16 %v352_v60, %v350_v59  ;;  %v335_v4 = vadd.f32 %v334_v62, %v285_v61 }
  0xb2   :  { %579 = vst [vmem:[%s736_s2 + $0x20] sm:$0xff] %v559_v63  }
  0xb4   :  { %v305_v0 = vpop.f32.mrf.mxu2 }
  0xb5   :  { %v354_v1 = vpop.f32.mrf.mxu3 }
  0xb6   :  { %v287_v2 = vpop.f32.mrf.mxu0  ;;  %v355_v9 = vadd.f32 %v354_v1, %v305_v0 }
  0xb7   :  { %v336_v3 = vpop.f32.mrf.mxu1 }
  0xb8   :  { %v337_v5 = vadd.f32 %v336_v3, %v287_v2 }
  0xba   :  { %v544_v6 = vpack.c.bf16 %v337_v5, %v335_v4 }
  0xbc   :  { %576 = vst [vmem:[%s736_s2 + $0x8] sm:$0xff] %v544_v6   ;;  %v307_v7 = vpop.f32.mrf.mxu2 }
  0xbd   :  { %v356_v8 = vpop.f32.mrf.mxu3 }
  0xbe   :  { %v357_v10 = vadd.f32 %v356_v8, %v307_v7  ;;  %v290_v11 = vpop.f32.mrf.mxu0 }
  0xbf   :  { %v339_v12 = vpop.f32.mrf.mxu1 }
  0xc0   :  { %v564_v13 = vpack.c.bf16 %v357_v10, %v355_v9  ;;  %v340_v18 = vadd.f32 %v339_v12, %v290_v11 }
  0xc2   :  { %580 = vst [vmem:[%s736_s2 + $0x28] sm:$0xff] %v564_v13  }
  0xc4   :  { %v310_v14 = vpop.f32.mrf.mxu2 }
  0xc5   :  { %v359_v15 = vpop.f32.mrf.mxu3 }
  0xc6   :  { %v292_v16 = vpop.f32.mrf.mxu0  ;;  %v360_v23 = vadd.f32 %v359_v15, %v310_v14 }
  0xc7   :  { %v341_v17 = vpop.f32.mrf.mxu1 }
  0xc8   :  { %v342_v19 = vadd.f32 %v341_v17, %v292_v16 }
  0xca   :  { %v549_v20 = vpack.c.bf16 %v342_v19, %v340_v18 }
  0xcc   :  { %577 = vst [vmem:[%s736_s2 + $0x10] sm:$0xff] %v549_v20   ;;  %v312_v21 = vpop.f32.mrf.mxu2 }
  0xcd   :  { %v361_v22 = vpop.f32.mrf.mxu3 }
  0xce   :  { %v362_v24 = vadd.f32 %v361_v22, %v312_v21  ;;  %v295_v25 = vpop.f32.mrf.mxu0 }
  0xcf   :  { %v344_v26 = vpop.f32.mrf.mxu1 }
  0xd0   :  { %v569_v27 = vpack.c.bf16 %v362_v24, %v360_v23  ;;  %v345_v32 = vadd.f32 %v344_v26, %v295_v25 }
  0xd2   :  { %581 = vst [vmem:[%s736_s2 + $0x30] sm:$0xff] %v569_v27  }
  0xd4   :  { %v315_v28 = vpop.f32.mrf.mxu2 }
  0xd5   :  { %v364_v29 = vpop.f32.mrf.mxu3 }
  0xd6   :  { %v297_v30 = vpop.f32.mrf.mxu0  ;;  %v365_v37 = vadd.f32 %v364_v29, %v315_v28 }
  0xd7   :  { %v346_v31 = vpop.f32.mrf.mxu1 }
  0xd8   :  { %v347_v33 = vadd.f32 %v346_v31, %v297_v30 }
  0xda   :  { %v554_v34 = vpack.c.bf16 %v347_v33, %v345_v32 }
  0xdc   :  { %578 = vst [vmem:[%s736_s2 + $0x18] sm:$0xff] %v554_v34   ;;  %v317_v35 = vpop.f32.mrf.mxu2 }
  0xdd   :  { %v366_v36 = vpop.f32.mrf.mxu3 }
  0xde   :  { %v367_v38 = vadd.f32 %v366_v36, %v317_v35 }
  0xe0   :  { %v574_v39 = vpack.c.bf16 %v367_v38, %v365_v37 }
  0xe2   :  { %582 = vst [vmem:[%s736_s2 + $0x38] sm:$0xff] %v574_v39  }

// kernel: mfnet_forward.63
= control target key start
LH: loop header
LB: loop body
LE: loop exit
PB: predicated region body
PF: predicated region fallthrough
CT: control target
= control target key end

     0   :  { %s853_s1 = inlined_call_operand.vmem [shape: bf16[256,128], index: 1, kind: input, shape index: {}]   ;;  %s854_s0 = inlined_call_operand.vmem [shape: bf16[128,256], index: 0, kind: input, shape index: {}]   ;;  %s855_s2 = inlined_call_operand.vmem [shape: bf16[128,128], index: 2, kind: input, shape index: {}]   ;;  %s856_s3 = inlined_call_operand.vmem [shape: bf16[128,128], index: 3, kind: output, shape index: {}]  }
   0x1   :  { %v578_v0 = vld [vmem:[%s853_s1 + $0x38] sm:$0xff]  ;;  %v577_v2 = vld [vmem:[%s853_s1 + $0x30] sm:$0xff]  ;;  %v576_v4 = vld [vmem:[%s853_s1 + $0x28] sm:$0xff] }
   0x2   :  { %v586_v1 = vld [vmem:[%s853_s1 + $0x78] sm:$0xff]  ;;  %274 = vmatpush.bf16.msra.mxu0 %v578_v0  ;;  %673 = vmatpush.bf16.msra.mxu2 %v578_v0  ;;  %v585_v3 = vld [vmem:[%s853_s1 + $0x70] sm:$0xff]  ;;  %v584_v5 = vld [vmem:[%s853_s1 + $0x68] sm:$0xff] }
   0x3   :  { %323 = vmatpush.bf16.msra.mxu1 %v586_v1  ;;  %681 = vmatpush.bf16.msra.mxu3 %v586_v1  ;;  %v575_v6 = vld [vmem:[%s853_s1 + $0x20] sm:$0xff]  ;;  %v574_v8 = vld [vmem:[%s853_s1 + $0x18] sm:$0xff]  ;;  %v573_v10 = vld [vmem:[%s853_s1 + $0x10] sm:$0xff] }
   0x4   :  { %v583_v7 = vld [vmem:[%s853_s1 + $0x60] sm:$0xff]  ;;  %v582_v9 = vld [vmem:[%s853_s1 + $0x58] sm:$0xff]  ;;  %v35_v12 = vld [vmem:[%s854_s0 + $0x8] sm:$0xff] }
   0x5   :  { %v34_v11 = vld [vmem:[%s854_s0] sm:$0xff]  ;;  %v43_v14 = vld [vmem:[%s854_s0 + $0x48] sm:$0xff]  ;;  %v581_v15 = vld [vmem:[%s853_s1 + $0x50] sm:$0xff]  ;;  %v52_v17 = vunpack.c.l.bf16 %v35_v12  ;;  %v53_v22 = vunpack.c.h.bf16 %v35_v12 }
   0x6   :  { %275 = vmatpush.bf16.msra.mxu0 %v577_v2  ;;  %674 = vmatpush.bf16.msra.mxu2 %v577_v2  ;;  %v42_v13 = vld [vmem:[%s854_s0 + $0x40] sm:$0xff]  ;;  %v50_v16 = vunpack.c.l.bf16 %v34_v11  ;;  %v68_v19 = vunpack.c.l.bf16 %v43_v14  ;;  %v572_v20 = vld [vmem:[%s853_s1 + $0x8] sm:$0xff]  ;;  %v51_v21 = vunpack.c.h.bf16 %v34_v11  ;;  %v69_v24 = vunpack.c.h.bf16 %v43_v14  ;;  %v36_v40 = vld [vmem:[%s854_s0 + $0x10] sm:$0xff] }
   0x7   :  { %324 = vmatpush.bf16.msra.mxu1 %v585_v3  ;;  %682 = vmatpush.bf16.msra.mxu3 %v585_v3  ;;  %v66_v18 = vunpack.c.l.bf16 %v42_v13  ;;  %v67_v23 = vunpack.c.h.bf16 %v42_v13  ;;  %v580_v25 = vld [vmem:[%s853_s1 + $0x48] sm:$0xff]  ;;  %v84_v27 = vmax.f32 %v52_v17, 0.0  ;;  %v571_v30 = vld [vmem:[%s853_s1] sm:$0xff]  ;;  %v85_v32 = vmax.f32 %v53_v22, 0.0  ;;  %v37_v41 = vld [vmem:[%s854_s0 + $0x18] sm:$0xff] }
   0x8   :  { %v82_v26 = vmax.f32 %v50_v16, 0.0  ;;  %v100_v29 = vmax.f32 %v68_v19, 0.0  ;;  %v83_v31 = vmax.f32 %v51_v21, 0.0  ;;  %v101_v34 = vmax.f32 %v69_v24, 0.0  ;;  %v579_v35 = vld [vmem:[%s853_s1 + $0x40] sm:$0xff]  ;;  %v44_v42 = vld [vmem:[%s854_s0 + $0x50] sm:$0xff] }
   0x9   :  { %v98_v28 = vmax.f32 %v66_v18, 0.0  ;;  %v99_v33 = vmax.f32 %v67_v23, 0.0  ;;  %v45_v43 = vld [vmem:[%s854_s0 + $0x58] sm:$0xff]  ;;  %v54_v44 = vunpack.c.l.bf16 %v36_v40  ;;  %v56_v45 = vunpack.c.l.bf16 %v37_v41  ;;  %v38_v0 = vld [vmem:[%s854_s0 + $0x20] sm:$0xff]  ;;  %v39_v1 = vld [vmem:[%s854_s0 + $0x28] sm:$0xff] }
   0xa   :  { %276 = vmatpush.bf16.msra.mxu0 %v576_v4  ;;  %675 = vmatpush.bf16.msra.mxu2 %v576_v4  ;;  %v114_v36 = vpack.c.bf16 %v84_v27, %v82_v26  ;;  %v115_v38 = vpack.c.bf16 %v85_v32, %v83_v31  ;;  %v70_v46 = vunpack.c.l.bf16 %v44_v42  ;;  %v72_v47 = vunpack.c.l.bf16 %v45_v43  ;;  %v46_v2 = vld [vmem:[%s854_s0 + $0x60] sm:$0xff]  ;;  %v47_v3 = vld [vmem:[%s854_s0 + $0x68] sm:$0xff]  ;;  %v40_v24 = vld [vmem:[%s854_s0 + $0x30] sm:$0xff] }
   0xb   :  { %325 = vmatpush.bf16.msra.mxu1 %v584_v5  ;;  %683 = vmatpush.bf16.msra.mxu3 %v584_v5  ;;  %v122_v37 = vpack.c.bf16 %v100_v29, %v98_v28  ;;  %v123_v39 = vpack.c.bf16 %v101_v34, %v99_v33  ;;  %v55_v48 = vunpack.c.h.bf16 %v36_v40  ;;  %v57_v49 = vunpack.c.h.bf16 %v37_v41  ;;  %v48_v26 = vld [vmem:[%s854_s0 + $0x70] sm:$0xff]  ;;  %v49_v27 = vld [vmem:[%s854_s0 + $0x78] sm:$0xff] }
   0xc   :  { %v71_v50 = vunpack.c.h.bf16 %v44_v42  ;;  %v73_v51 = vunpack.c.h.bf16 %v45_v43  ;;  %v86_v52 = vmax.f32 %v54_v44, 0.0  ;;  %v88_v53 = vmax.f32 %v56_v45, 0.0 }
   0xd   :  { %v102_v54 = vmax.f32 %v70_v46, 0.0  ;;  %v104_v55 = vmax.f32 %v72_v47, 0.0  ;;  %v87_v56 = vmax.f32 %v55_v48, 0.0  ;;  %v89_v57 = vmax.f32 %v57_v49, 0.0 }
   0xe   :  { %277 = vmatpush.bf16.msra.mxu0 %v575_v6  ;;  %676 = vmatpush.bf16.msra.mxu2 %v575_v6  ;;  %v103_v58 = vmax.f32 %v71_v50, 0.0  ;;  %v105_v59 = vmax.f32 %v73_v51, 0.0  ;;  %v116_v60 = vpack.c.bf16 %v88_v53, %v86_v52  ;;  %v58_v4 = vunpack.c.l.bf16 %v38_v0  ;;  %v588_v50 = vld [vmem:[%s855_s2] sm:$0xff]  }
   0xf   :  { %326 = vmatpush.bf16.msra.mxu1 %v583_v7  ;;  %684 = vmatpush.bf16.msra.mxu3 %v583_v7  ;;  %v124_v61 = vpack.c.bf16 %v104_v55, %v102_v54  ;;  %v117_v62 = vpack.c.bf16 %v89_v57, %v87_v56  ;;  %v60_v5 = vunpack.c.l.bf16 %v39_v1  ;;  %v74_v6 = vunpack.c.l.bf16 %v46_v2 }
  0x10   :  { %v125_v63 = vpack.c.bf16 %v105_v59, %v103_v58  ;;  %v76_v7 = vunpack.c.l.bf16 %v47_v3  ;;  %v77_v11 = vunpack.c.h.bf16 %v47_v3  ;;  %v90_v12 = vmax.f32 %v58_v4, 0.0  ;;  %v662_v59 = vld [vmem:[%s855_s2 + $0x20] sm:$0xff]  }
  0x11   :  { %v92_v13 = vmax.f32 %v60_v5, 0.0  ;;  %v106_v14 = vmax.f32 %v74_v6, 0.0  ;;  %v62_v28 = vunpack.c.l.bf16 %v40_v24  ;;  %v80_v31 = vunpack.c.l.bf16 %v49_v27 }
  0x12   :  { %278 = vmatpush.bf16.msra.mxu0 %v574_v8  ;;  %677 = vmatpush.bf16.msra.mxu2 %v574_v8  ;;  %v59_v8 = vunpack.c.h.bf16 %v38_v0  ;;  %v109_v19 = vmax.f32 %v77_v11, 0.0  ;;  %v63_v32 = vunpack.c.h.bf16 %v40_v24  ;;  %v79_v34 = vunpack.c.h.bf16 %v48_v26 }
  0x13   :  { %327 = vmatpush.bf16.msra.mxu1 %v582_v9  ;;  %685 = vmatpush.bf16.msra.mxu3 %v582_v9  ;;  %v61_v9 = vunpack.c.h.bf16 %v39_v1  ;;  %v589_v54 = vunpack.c.l.bf16 %v588_v50  ;;  %v590_v56 = vunpack.c.h.bf16 %v588_v50 }
  0x14   :  { %v91_v16 = vmax.f32 %v59_v8, 0.0  ;;  %v95_v40 = vmax.f32 %v63_v32, 0.0  ;;  %v111_v42 = vmax.f32 %v79_v34, 0.0  ;;  %v660_v34 = vld [vmem:[%s855_s2 + $0x10] sm:$0xff]  }
  0x15   :  { %v93_v17 = vmax.f32 %v61_v9, 0.0 }
  0x16   :  { %279 = vmatpush.bf16.msra.mxu0 %v573_v10  ;;  %678 = vmatpush.bf16.msra.mxu2 %v573_v10  ;;  %v75_v10 = vunpack.c.h.bf16 %v46_v2  ;;  %v606_v2 = vunpack.c.h.bf16 %v662_v59 }
  0x17   :  { %328 = vmatpush.bf16.msra.mxu1 %v581_v15  ;;  %686 = vmatpush.bf16.msra.mxu3 %v581_v15  ;;  %v108_v15 = vmax.f32 %v76_v7, 0.0  ;;  %v119_v22 = vpack.c.bf16 %v93_v17, %v91_v16 }
  0x18   :  { %v107_v18 = vmax.f32 %v75_v10, 0.0  ;;  %v659_v10 = vld [vmem:[%s855_s2 + $0x8] sm:$0xff]  }
  0x19   :  { %v126_v21 = vpack.c.bf16 %v108_v15, %v106_v14  ;;  %v593_v14 = vunpack.c.l.bf16 %v659_v10  ;;  %v594_v16 = vunpack.c.h.bf16 %v659_v10 }
  0x1a   :  { %280 = vmatpush.bf16.msra.mxu0 %v572_v20  ;;  %679 = vmatpush.bf16.msra.mxu2 %v572_v20  ;;  %v118_v20 = vpack.c.bf16 %v92_v13, %v90_v12  ;;  %v127_v23 = vpack.c.bf16 %v109_v19, %v107_v18  ;;  %v663_v19 = vld [vmem:[%s855_s2 + $0x28] sm:$0xff]  }
  0x1b   :  { %329 = vmatpush.bf16.msra.mxu1 %v580_v25  ;;  %687 = vmatpush.bf16.msra.mxu3 %v580_v25  ;;  %v41_v25 = vld [vmem:[%s854_s0 + $0x38] sm:$0xff] }
  0x1c   :  { %v64_v29 = vunpack.c.l.bf16 %v41_v25  ;;  %v65_v33 = vunpack.c.h.bf16 %v41_v25 }
  0x1e   :  { %281 = vmatpush.bf16.msra.mxu0 %v571_v30  ;;  %680 = vmatpush.bf16.msra.mxu2 %v571_v30  ;;  %v78_v30 = vunpack.c.l.bf16 %v48_v26  ;;  %v97_v41 = vmax.f32 %v65_v33, 0.0  ;;  %v610_v26 = vunpack.c.h.bf16 %v663_v19 }
  0x1f   :  { %330 = vmatpush.bf16.msra.mxu1 %v579_v35  ;;  %688 = vmatpush.bf16.msra.mxu3 %v579_v35  ;;  %v81_v35 = vunpack.c.h.bf16 %v49_v27 }
  0x20   :  { %v121_v46 = vpack.c.bf16 %v97_v41, %v95_v40  ;;  %v598_v40 = vunpack.c.h.bf16 %v660_v34 }
  0x21   :  { %282 = vmatmul.bf16.vlgmr.msra.gmra.mxu0 %v114_v36  ;;  %302 = vmatmul.bf16.vlgmr.msra.gmra.mxu2 %v122_v37  ;;  %v94_v36 = vmax.f32 %v62_v28, 0.0  ;;  %v96_v37 = vmax.f32 %v64_v29, 0.0  ;;  %v113_v43 = vmax.f32 %v81_v35, 0.0 }
  0x22   :  { %331 = vmatmul.bf16.vlgmr.msra.gmra.mxu1 %v115_v38  ;;  %351 = vmatmul.bf16.vlgmr.msra.gmra.mxu3 %v123_v39  ;;  %v110_v38 = vmax.f32 %v78_v30, 0.0  ;;  %v112_v39 = vmax.f32 %v80_v31, 0.0 }
  0x23   :  { %v120_v44 = vpack.c.bf16 %v96_v37, %v94_v36  ;;  %v129_v47 = vpack.c.bf16 %v113_v43, %v111_v42  ;;  %v664_v43 = vld [vmem:[%s855_s2 + $0x30] sm:$0xff]  }
  0x24   :  { %v128_v45 = vpack.c.bf16 %v112_v39, %v110_v38  ;;  %v597_v38 = vunpack.c.l.bf16 %v660_v34  ;;  %v614_v50 = vunpack.c.h.bf16 %v664_v43 }
  0x31   :  { %287 = vmatmul.bf16.gmra.mxu0 %v116_v60  ;;  %307 = vmatmul.bf16.gmra.mxu2 %v124_v61 }
  0x32   :  { %336 = vmatmul.bf16.gmra.mxu1 %v117_v62  ;;  %356 = vmatmul.bf16.gmra.mxu3 %v125_v63  ;;  %v605_v63 = vunpack.c.l.bf16 %v662_v59 }
  0x41   :  { %292 = vmatmul.bf16.gmra.mxu0 %v118_v20  ;;  %312 = vmatmul.bf16.gmra.mxu2 %v126_v21 }
  0x42   :  { %341 = vmatmul.bf16.gmra.mxu1 %v119_v22  ;;  %361 = vmatmul.bf16.gmra.mxu3 %v127_v23  ;;  %v609_v23 = vunpack.c.l.bf16 %v663_v19 }
  0x51   :  { %297 = vmatmul.bf16.gmra.mxu0 %v120_v44  ;;  %317 = vmatmul.bf16.gmra.mxu2 %v128_v45 }
  0x52   :  { %346 = vmatmul.bf16.gmra.mxu1 %v121_v46  ;;  %366 = vmatmul.bf16.gmra.mxu3 %v129_v47  ;;  %v613_v47 = vunpack.c.l.bf16 %v664_v43 }
  0x9e   :  { %v283_v48 = vpop.f32.mrf.mxu0 }
  0x9f   :  { %v332_v49 = vpop.f32.mrf.mxu1 }
  0xa0   :  { %v333_v53 = vadd.f32 %v332_v49, %v283_v48 }
  0xa2   :  { %v455_v60 = vadd.f32 %v589_v54, %v333_v53 }
  0xa4   :  { %v303_v51 = vpop.f32.mrf.mxu2 }
  0xa5   :  { %v352_v52 = vpop.f32.mrf.mxu3 }
  0xa6   :  { %v285_v55 = vpop.f32.mrf.mxu0  ;;  %v353_v62 = vadd.f32 %v352_v52, %v303_v51 }
  0xa7   :  { %v334_v57 = vpop.f32.mrf.mxu1 }
  0xa8   :  { %v335_v58 = vadd.f32 %v334_v57, %v285_v55  ;;  %v463_v7 = vadd.f32 %v605_v63, %v353_v62 }
  0xaa   :  { %v456_v61 = vadd.f32 %v590_v56, %v335_v58  ;;  %v661_v58 = vld [vmem:[%s855_s2 + $0x18] sm:$0xff]  }
  0xab   :  { %v601_v62 = vunpack.c.l.bf16 %v661_v58 }
  0xac   :  { %v622_v0 = vpack.c.bf16 %v456_v61, %v455_v60  ;;  %v305_v1 = vpop.f32.mrf.mxu2 }
  0xad   :  { %v354_v3 = vpop.f32.mrf.mxu3 }
  0xae   :  { %623 = vst [vmem:[%s856_s3] sm:$0xff] %v622_v0   ;;  %v355_v4 = vadd.f32 %v354_v3, %v305_v1  ;;  %v288_v5 = vpop.f32.mrf.mxu0  ;;  %v602_v0 = vunpack.c.h.bf16 %v661_v58  ;;  %v665_v3 = vld [vmem:[%s855_s2 + $0x38] sm:$0xff]  }
  0xaf   :  { %v337_v6 = vpop.f32.mrf.mxu1  ;;  %v618_v10 = vunpack.c.h.bf16 %v665_v3 }
  0xb0   :  { %v464_v8 = vadd.f32 %v606_v2, %v355_v4  ;;  %v338_v13 = vadd.f32 %v337_v6, %v288_v5 }
  0xb2   :  { %v642_v9 = vpack.c.bf16 %v464_v8, %v463_v7  ;;  %v457_v20 = vadd.f32 %v593_v14, %v338_v13  ;;  %v617_v7 = vunpack.c.l.bf16 %v665_v3 }
  0xb4   :  { %669 = vst [vmem:[%s856_s3 + $0x20] sm:$0xff] %v642_v9   ;;  %v308_v11 = vpop.f32.mrf.mxu2 }
  0xb5   :  { %v357_v12 = vpop.f32.mrf.mxu3 }
  0xb6   :  { %v290_v15 = vpop.f32.mrf.mxu0  ;;  %v358_v22 = vadd.f32 %v357_v12, %v308_v11 }
  0xb7   :  { %v339_v17 = vpop.f32.mrf.mxu1 }
  0xb8   :  { %v340_v18 = vadd.f32 %v339_v17, %v290_v15  ;;  %v465_v31 = vadd.f32 %v609_v23, %v358_v22 }
  0xba   :  { %v458_v21 = vadd.f32 %v594_v16, %v340_v18 }
  0xbc   :  { %v627_v24 = vpack.c.bf16 %v458_v21, %v457_v20  ;;  %v310_v25 = vpop.f32.mrf.mxu2 }
  0xbd   :  { %v359_v27 = vpop.f32.mrf.mxu3 }
  0xbe   :  { %666 = vst [vmem:[%s856_s3 + $0x8] sm:$0xff] %v627_v24   ;;  %v360_v28 = vadd.f32 %v359_v27, %v310_v25  ;;  %v293_v29 = vpop.f32.mrf.mxu0 }
  0xbf   :  { %v342_v30 = vpop.f32.mrf.mxu1 }
  0xc0   :  { %v466_v32 = vadd.f32 %v610_v26, %v360_v28  ;;  %v343_v37 = vadd.f32 %v342_v30, %v293_v29 }
  0xc2   :  { %v647_v33 = vpack.c.bf16 %v466_v32, %v465_v31  ;;  %v459_v44 = vadd.f32 %v597_v38, %v343_v37 }
  0xc4   :  { %670 = vst [vmem:[%s856_s3 + $0x28] sm:$0xff] %v647_v33   ;;  %v313_v35 = vpop.f32.mrf.mxu2 }
  0xc5   :  { %v362_v36 = vpop.f32.mrf.mxu3 }
  0xc6   :  { %v295_v39 = vpop.f32.mrf.mxu0  ;;  %v363_v46 = vadd.f32 %v362_v36, %v313_v35 }
  0xc7   :  { %v344_v41 = vpop.f32.mrf.mxu1 }
  0xc8   :  { %v345_v42 = vadd.f32 %v344_v41, %v295_v39  ;;  %v467_v55 = vadd.f32 %v613_v47, %v363_v46 }
  0xca   :  { %v460_v45 = vadd.f32 %v598_v40, %v345_v42 }
  0xcc   :  { %v632_v48 = vpack.c.bf16 %v460_v45, %v459_v44  ;;  %v315_v49 = vpop.f32.mrf.mxu2 }
  0xcd   :  { %v364_v51 = vpop.f32.mrf.mxu3 }
  0xce   :  { %667 = vst [vmem:[%s856_s3 + $0x10] sm:$0xff] %v632_v48   ;;  %v365_v52 = vadd.f32 %v364_v51, %v315_v49  ;;  %v298_v53 = vpop.f32.mrf.mxu0 }
  0xcf   :  { %v347_v54 = vpop.f32.mrf.mxu1 }
  0xd0   :  { %v468_v56 = vadd.f32 %v614_v50, %v365_v52  ;;  %v348_v61 = vadd.f32 %v347_v54, %v298_v53 }
  0xd2   :  { %v652_v57 = vpack.c.bf16 %v468_v56, %v467_v55  ;;  %v461_v4 = vadd.f32 %v601_v62, %v348_v61 }
  0xd4   :  { %671 = vst [vmem:[%s856_s3 + $0x30] sm:$0xff] %v652_v57   ;;  %v318_v59 = vpop.f32.mrf.mxu2 }
  0xd5   :  { %v367_v60 = vpop.f32.mrf.mxu3 }
  0xd6   :  { %v300_v63 = vpop.f32.mrf.mxu0  ;;  %v368_v6 = vadd.f32 %v367_v60, %v318_v59 }
  0xd7   :  { %v349_v1 = vpop.f32.mrf.mxu1 }
  0xd8   :  { %v350_v2 = vadd.f32 %v349_v1, %v300_v63  ;;  %v469_v13 = vadd.f32 %v617_v7, %v368_v6 }
  0xda   :  { %v462_v5 = vadd.f32 %v602_v0, %v350_v2 }
  0xdc   :  { %v637_v8 = vpack.c.bf16 %v462_v5, %v461_v4  ;;  %v320_v9 = vpop.f32.mrf.mxu2 }
  0xdd   :  { %v369_v11 = vpop.f32.mrf.mxu3 }
  0xde   :  { %668 = vst [vmem:[%s856_s3 + $0x18] sm:$0xff] %v637_v8   ;;  %v370_v12 = vadd.f32 %v369_v11, %v320_v9 }
  0xe0   :  { %v470_v14 = vadd.f32 %v618_v10, %v370_v12 }
  0xe2   :  { %v657_v15 = vpack.c.bf16 %v470_v14, %v469_v13 }
  0xe4   :  { %672 = vst [vmem:[%s856_s3 + $0x38] sm:$0xff] %v657_v15  }

// kernel: mfnet_forward.66
= control target key start
LH: loop header
LB: loop body
LE: loop exit
PB: predicated region body
PF: predicated region fallthrough
CT: control target
= control target key end

     0   :  { %s1216_s1 = inlined_call_operand.vmem [shape: bf16[512,128], index: 1, kind: input, shape index: {}]   ;;  %s1217_s0 = inlined_call_operand.vmem [shape: bf16[128,512], index: 0, kind: input, shape index: {}]   ;;  %s1218_s2 = inlined_call_operand.vmem [shape: bf16[128,128], index: 2, kind: output, shape index: {}]  }
   0x1   :  { %v913_v0 = vld [vmem:[%s1216_s1 + $0x38] sm:$0xff]  ;;  %v912_v4 = vld [vmem:[%s1216_s1 + $0x30] sm:$0xff]  ;;  %v911_v8 = vld [vmem:[%s1216_s1 + $0x28] sm:$0xff] }
   0x2   :  { %v921_v1 = vld [vmem:[%s1216_s1 + $0x78] sm:$0xff]  ;;  %495 = vmatpush.bf16.msra.mxu0 %v913_v0  ;;  %v920_v5 = vld [vmem:[%s1216_s1 + $0x70] sm:$0xff]  ;;  %v919_v9 = vld [vmem:[%s1216_s1 + $0x68] sm:$0xff] }
   0x3   :  { %v929_v2 = vld [vmem:[%s1216_s1 + $0xb8] sm:$0xff]  ;;  %544 = vmatpush.bf16.msra.mxu1 %v921_v1  ;;  %v928_v6 = vld [vmem:[%s1216_s1 + $0xb0] sm:$0xff]  ;;  %v927_v10 = vld [vmem:[%s1216_s1 + $0xa8] sm:$0xff] }
   0x4   :  { %v937_v3 = vld [vmem:[%s1216_s1 + $0xf8] sm:$0xff]  ;;  %593 = vmatpush.bf16.msra.mxu2 %v929_v2  ;;  %v936_v7 = vld [vmem:[%s1216_s1 + $0xf0] sm:$0xff]  ;;  %v935_v11 = vld [vmem:[%s1216_s1 + $0xe8] sm:$0xff] }
   0x5   :  { %642 = vmatpush.bf16.msra.mxu3 %v937_v3  ;;  %v910_v12 = vld [vmem:[%s1216_s1 + $0x20] sm:$0xff]  ;;  %v909_v16 = vld [vmem:[%s1216_s1 + $0x18] sm:$0xff]  ;;  %v908_v20 = vld [vmem:[%s1216_s1 + $0x10] sm:$0xff] }
   0x6   :  { %496 = vmatpush.bf16.msra.mxu0 %v912_v4  ;;  %v918_v13 = vld [vmem:[%s1216_s1 + $0x60] sm:$0xff]  ;;  %v917_v17 = vld [vmem:[%s1216_s1 + $0x58] sm:$0xff]  ;;  %v916_v21 = vld [vmem:[%s1216_s1 + $0x50] sm:$0xff] }
   0x7   :  { %545 = vmatpush.bf16.msra.mxu1 %v920_v5  ;;  %v926_v14 = vld [vmem:[%s1216_s1 + $0xa0] sm:$0xff]  ;;  %v925_v18 = vld [vmem:[%s1216_s1 + $0x98] sm:$0xff]  ;;  %v924_v22 = vld [vmem:[%s1216_s1 + $0x90] sm:$0xff] }
   0x8   :  { %594 = vmatpush.bf16.msra.mxu2 %v928_v6  ;;  %v934_v15 = vld [vmem:[%s1216_s1 + $0xe0] sm:$0xff]  ;;  %v933_v19 = vld [vmem:[%s1216_s1 + $0xd8] sm:$0xff]  ;;  %v33_v24 = vld [vmem:[%s1217_s0 + $0x10] sm:$0xff] }
   0x9   :  { %643 = vmatpush.bf16.msra.mxu3 %v936_v7  ;;  %v31_v23 = vld [vmem:[%s1217_s0] sm:$0xff]  ;;  %v932_v25 = vld [vmem:[%s1216_s1 + $0xd0] sm:$0xff]  ;;  %v32_v26 = vld [vmem:[%s1217_s0 + $0x8] sm:$0xff]  ;;  %v67_v29 = vunpack.c.l.bf16 %v33_v24  ;;  %v68_v31 = vunpack.c.h.bf16 %v33_v24 }
   0xa   :  { %497 = vmatpush.bf16.msra.mxu0 %v911_v8  ;;  %v34_v27 = vld [vmem:[%s1217_s0 + $0x18] sm:$0xff]  ;;  %v63_v28 = vunpack.c.l.bf16 %v31_v23  ;;  %v64_v30 = vunpack.c.h.bf16 %v31_v23  ;;  %v907_v32 = vld [vmem:[%s1216_s1 + $0x8] sm:$0xff]  ;;  %v65_v34 = vunpack.c.l.bf16 %v32_v26  ;;  %v66_v36 = vunpack.c.h.bf16 %v32_v26  ;;  %v906_v44 = vld [vmem:[%s1216_s1] sm:$0xff] }
   0xb   :  { %546 = vmatpush.bf16.msra.mxu1 %v919_v9  ;;  %v915_v33 = vld [vmem:[%s1216_s1 + $0x48] sm:$0xff]  ;;  %v69_v35 = vunpack.c.l.bf16 %v34_v27  ;;  %v70_v37 = vunpack.c.h.bf16 %v34_v27  ;;  %v131_v41 = vmax.f32 %v67_v29, 0.0  ;;  %v132_v43 = vmax.f32 %v68_v31, 0.0  ;;  %v914_v45 = vld [vmem:[%s1216_s1 + $0x40] sm:$0xff]  ;;  %v37_v57 = vld [vmem:[%s1217_s0 + $0x30] sm:$0xff] }
   0xc   :  { %595 = vmatpush.bf16.msra.mxu2 %v927_v10  ;;  %v923_v38 = vld [vmem:[%s1216_s1 + $0x88] sm:$0xff]  ;;  %v127_v40 = vmax.f32 %v63_v28, 0.0  ;;  %v128_v42 = vmax.f32 %v64_v30, 0.0  ;;  %v129_v46 = vmax.f32 %v65_v34, 0.0  ;;  %v130_v48 = vmax.f32 %v66_v36, 0.0  ;;  %v922_v50 = vld [vmem:[%s1216_s1 + $0x80] sm:$0xff] }
   0xd   :  { %644 = vmatpush.bf16.msra.mxu3 %v935_v11  ;;  %v931_v39 = vld [vmem:[%s1216_s1 + $0xc8] sm:$0xff]  ;;  %v133_v47 = vmax.f32 %v69_v35, 0.0  ;;  %v134_v49 = vmax.f32 %v70_v37, 0.0  ;;  %v930_v51 = vld [vmem:[%s1216_s1 + $0xc0] sm:$0xff]  ;;  %v38_v59 = vld [vmem:[%s1217_s0 + $0x38] sm:$0xff]  ;;  %v75_v61 = vunpack.c.l.bf16 %v37_v57  ;;  %v76_v63 = vunpack.c.h.bf16 %v37_v57 }
   0xe   :  { %498 = vmatpush.bf16.msra.mxu0 %v910_v12  ;;  %v191_v52 = vpack.c.bf16 %v131_v41, %v127_v40  ;;  %v192_v53 = vpack.c.bf16 %v132_v43, %v128_v42  ;;  %v35_v56 = vld [vmem:[%s1217_s0 + $0x20] sm:$0xff]  ;;  %v36_v58 = vld [vmem:[%s1217_s0 + $0x28] sm:$0xff]  ;;  %v77_v1 = vunpack.c.l.bf16 %v38_v59  ;;  %v78_v3 = vunpack.c.h.bf16 %v38_v59  ;;  %v45_v41 = vld [vmem:[%s1217_s0 + $0x70] sm:$0xff] }
   0xf   :  { %547 = vmatpush.bf16.msra.mxu1 %v918_v13  ;;  %v193_v54 = vpack.c.bf16 %v133_v47, %v129_v46  ;;  %v194_v55 = vpack.c.bf16 %v134_v49, %v130_v48  ;;  %v71_v60 = vunpack.c.l.bf16 %v35_v56  ;;  %v72_v62 = vunpack.c.h.bf16 %v35_v56  ;;  %v43_v40 = vld [vmem:[%s1217_s0 + $0x60] sm:$0xff]  ;;  %v44_v42 = vld [vmem:[%s1217_s0 + $0x68] sm:$0xff]  ;;  %v46_v43 = vld [vmem:[%s1217_s0 + $0x78] sm:$0xff] }
  0x10   :  { %596 = vmatpush.bf16.msra.mxu2 %v926_v14  ;;  %v73_v0 = vunpack.c.l.bf16 %v36_v58  ;;  %v74_v2 = vunpack.c.h.bf16 %v36_v58  ;;  %v139_v5 = vmax.f32 %v75_v61, 0.0  ;;  %v140_v7 = vmax.f32 %v76_v63, 0.0 }
  0x11   :  { %645 = vmatpush.bf16.msra.mxu3 %v934_v15  ;;  %v135_v4 = vmax.f32 %v71_v60, 0.0  ;;  %v136_v6 = vmax.f32 %v72_v62, 0.0  ;;  %v141_v9 = vmax.f32 %v77_v1, 0.0  ;;  %v142_v11 = vmax.f32 %v78_v3, 0.0  ;;  %v49_v1 = vld [vmem:[%s1217_s0 + $0x90] sm:$0xff]  ;;  %v50_v3 = vld [vmem:[%s1217_s0 + $0x98] sm:$0xff] }
  0x12   :  { %499 = vmatpush.bf16.msra.mxu0 %v909_v16  ;;  %v137_v8 = vmax.f32 %v73_v0, 0.0  ;;  %v138_v10 = vmax.f32 %v74_v2, 0.0  ;;  %v39_v16 = vld [vmem:[%s1217_s0 + $0x40] sm:$0xff]  ;;  %v88_v46 = vunpack.c.h.bf16 %v43_v40  ;;  %v92_v47 = vunpack.c.h.bf16 %v45_v41  ;;  %v48_v2 = vld [vmem:[%s1217_s0 + $0x88] sm:$0xff] }
  0x13   :  { %548 = vmatpush.bf16.msra.mxu1 %v917_v17  ;;  %v195_v12 = vpack.c.bf16 %v139_v5, %v135_v4  ;;  %v196_v13 = vpack.c.bf16 %v140_v7, %v136_v6  ;;  %v41_v17 = vld [vmem:[%s1217_s0 + $0x50] sm:$0xff]  ;;  %v89_v48 = vunpack.c.l.bf16 %v44_v42  ;;  %v93_v49 = vunpack.c.l.bf16 %v46_v43  ;;  %v47_v0 = vld [vmem:[%s1217_s0 + $0x80] sm:$0xff] }
  0x14   :  { %597 = vmatpush.bf16.msra.mxu2 %v925_v18  ;;  %v197_v14 = vpack.c.bf16 %v141_v9, %v137_v8  ;;  %v198_v15 = vpack.c.bf16 %v142_v11, %v138_v10  ;;  %v40_v18 = vld [vmem:[%s1217_s0 + $0x48] sm:$0xff]  ;;  %v84_v23 = vunpack.c.h.bf16 %v41_v17  ;;  %v95_v4 = vunpack.c.l.bf16 %v47_v0 }
  0x15   :  { %646 = vmatpush.bf16.msra.mxu3 %v933_v19  ;;  %v42_v19 = vld [vmem:[%s1217_s0 + $0x58] sm:$0xff]  ;;  %v81_v24 = vunpack.c.l.bf16 %v40_v18  ;;  %v82_v26 = vunpack.c.h.bf16 %v40_v18  ;;  %v153_v56 = vmax.f32 %v89_v48, 0.0  ;;  %v157_v57 = vmax.f32 %v93_v49, 0.0  ;;  %v55_v48 = vld [vmem:[%s1217_s0 + $0xc0] sm:$0xff]  ;;  %v57_v49 = vld [vmem:[%s1217_s0 + $0xd0] sm:$0xff] }
  0x16   :  { %500 = vmatpush.bf16.msra.mxu0 %v908_v20  ;;  %v79_v20 = vunpack.c.l.bf16 %v39_v16  ;;  %v86_v27 = vunpack.c.h.bf16 %v42_v19  ;;  %v148_v31 = vmax.f32 %v84_v23, 0.0  ;;  %v99_v5 = vunpack.c.l.bf16 %v49_v1 }
  0x17   :  { %549 = vmatpush.bf16.msra.mxu1 %v916_v21  ;;  %v83_v21 = vunpack.c.l.bf16 %v41_v17  ;;  %v146_v34 = vmax.f32 %v82_v26, 0.0  ;;  %v205_v62 = vpack.c.bf16 %v157_v57, %v153_v56  ;;  %v96_v6 = vunpack.c.h.bf16 %v47_v0  ;;  %v52_v26 = vld [vmem:[%s1217_s0 + $0xa8] sm:$0xff] }
  0x18   :  { %598 = vmatpush.bf16.msra.mxu2 %v924_v22  ;;  %v80_v22 = vunpack.c.h.bf16 %v39_v16  ;;  %v143_v28 = vmax.f32 %v79_v20, 0.0  ;;  %v150_v35 = vmax.f32 %v86_v27, 0.0  ;;  %v100_v7 = vunpack.c.h.bf16 %v49_v1  ;;  %v54_v27 = vld [vmem:[%s1217_s0 + $0xb8] sm:$0xff] }
  0x19   :  { %647 = vmatpush.bf16.msra.mxu3 %v932_v25  ;;  %v85_v25 = vunpack.c.l.bf16 %v42_v19  ;;  %v147_v29 = vmax.f32 %v83_v21, 0.0  ;;  %v97_v8 = vunpack.c.l.bf16 %v48_v2  ;;  %v101_v9 = vunpack.c.l.bf16 %v50_v3 }
  0x1a   :  { %501 = vmatpush.bf16.msra.mxu0 %v907_v32  ;;  %v144_v30 = vmax.f32 %v80_v22, 0.0  ;;  %v145_v32 = vmax.f32 %v81_v24, 0.0  ;;  %v98_v10 = vunpack.c.h.bf16 %v48_v2  ;;  %v102_v11 = vunpack.c.h.bf16 %v50_v3  ;;  %v51_v24 = vld [vmem:[%s1217_s0 + $0xa0] sm:$0xff] }
  0x1b   :  { %550 = vmatpush.bf16.msra.mxu1 %v915_v33  ;;  %v149_v33 = vmax.f32 %v85_v25, 0.0  ;;  %v199_v36 = vpack.c.bf16 %v147_v29, %v143_v28  ;;  %v161_v16 = vmax.f32 %v97_v8, 0.0  ;;  %v165_v17 = vmax.f32 %v101_v9, 0.0  ;;  %v53_v25 = vld [vmem:[%s1217_s0 + $0xb0] sm:$0xff]  ;;  %v59_v8 = vld [vmem:[%s1217_s0 + $0xe0] sm:$0xff] }
  0x1c   :  { %599 = vmatpush.bf16.msra.mxu2 %v923_v38  ;;  %v200_v37 = vpack.c.bf16 %v148_v31, %v144_v30  ;;  %v162_v18 = vmax.f32 %v98_v10, 0.0  ;;  %v166_v19 = vmax.f32 %v102_v11, 0.0  ;;  %v103_v28 = vunpack.c.l.bf16 %v51_v24  ;;  %v61_v9 = vld [vmem:[%s1217_s0 + $0xf0] sm:$0xff]  ;;  %v60_v10 = vld [vmem:[%s1217_s0 + $0xe8] sm:$0xff]  ;;  %v62_v11 = vld [vmem:[%s1217_s0 + $0xf8] sm:$0xff] }
  0x1d   :  { %648 = vmatpush.bf16.msra.mxu3 %v931_v39  ;;  %v201_v38 = vpack.c.bf16 %v149_v33, %v145_v32  ;;  %v202_v39 = vpack.c.bf16 %v150_v35, %v146_v34  ;;  %v209_v22 = vpack.c.bf16 %v165_v17, %v161_v16  ;;  %v107_v29 = vunpack.c.l.bf16 %v53_v25 }
  0x1e   :  { %502 = vmatpush.bf16.msra.mxu0 %v906_v44  ;;  %v87_v44 = vunpack.c.l.bf16 %v43_v40  ;;  %v210_v23 = vpack.c.bf16 %v166_v19, %v162_v18  ;;  %v104_v30 = vunpack.c.h.bf16 %v51_v24  ;;  %v108_v31 = vunpack.c.h.bf16 %v53_v25 }
  0x1f   :  { %551 = vmatpush.bf16.msra.mxu1 %v914_v45  ;;  %v91_v45 = vunpack.c.l.bf16 %v45_v41  ;;  %v105_v32 = vunpack.c.l.bf16 %v52_v26  ;;  %v109_v33 = vunpack.c.l.bf16 %v54_v27  ;;  %v106_v34 = vunpack.c.h.bf16 %v52_v26 }
  0x20   :  { %600 = vmatpush.bf16.msra.mxu2 %v922_v50  ;;  %v90_v50 = vunpack.c.h.bf16 %v44_v42  ;;  %v110_v35 = vunpack.c.h.bf16 %v54_v27  ;;  %v121_v16 = vunpack.c.l.bf16 %v60_v10  ;;  %v125_v17 = vunpack.c.l.bf16 %v62_v11 }
  0x21   :  { %649 = vmatpush.bf16.msra.mxu3 %v930_v51  ;;  %503 = vmatmul.bf16.vlgmr.msra.gmra.mxu0 %v191_v52  ;;  %v94_v51 = vunpack.c.h.bf16 %v46_v43  ;;  %v151_v52 = vmax.f32 %v87_v44, 0.0  ;;  %v169_v40 = vmax.f32 %v105_v32, 0.0  ;;  %v173_v41 = vmax.f32 %v109_v33, 0.0 }
  0x22   :  { %552 = vmatmul.bf16.vlgmr.msra.gmra.mxu1 %v192_v53  ;;  %v155_v53 = vmax.f32 %v91_v45, 0.0  ;;  %v154_v58 = vmax.f32 %v90_v50, 0.0  ;;  %v170_v42 = vmax.f32 %v106_v34, 0.0  ;;  %v174_v43 = vmax.f32 %v110_v35, 0.0  ;;  %v56_v50 = vld [vmem:[%s1217_s0 + $0xc8] sm:$0xff] }
  0x23   :  { %601 = vmatmul.bf16.vlgmr.msra.gmra.mxu2 %v193_v54  ;;  %v152_v54 = vmax.f32 %v88_v46, 0.0  ;;  %v158_v59 = vmax.f32 %v94_v51, 0.0  ;;  %v213_v46 = vpack.c.bf16 %v173_v41, %v169_v40  ;;  %v58_v51 = vld [vmem:[%s1217_s0 + $0xd8] sm:$0xff]  ;;  %v113_v56 = vunpack.c.l.bf16 %v56_v50 }
  0x24   :  { %650 = vmatmul.bf16.vlgmr.msra.gmra.mxu3 %v194_v55  ;;  %v156_v55 = vmax.f32 %v92_v47, 0.0  ;;  %v203_v60 = vpack.c.bf16 %v155_v53, %v151_v52  ;;  %v214_v47 = vpack.c.bf16 %v174_v43, %v170_v42  ;;  %v111_v52 = vunpack.c.l.bf16 %v55_v48 }
  0x25   :  { %v206_v63 = vpack.c.bf16 %v158_v59, %v154_v58  ;;  %v115_v53 = vunpack.c.l.bf16 %v57_v49  ;;  %v117_v57 = vunpack.c.l.bf16 %v58_v51  ;;  %v114_v58 = vunpack.c.h.bf16 %v56_v50 }
  0x26   :  { %v204_v61 = vpack.c.bf16 %v156_v55, %v152_v54  ;;  %v112_v54 = vunpack.c.h.bf16 %v55_v48  ;;  %v116_v55 = vunpack.c.h.bf16 %v57_v49  ;;  %v118_v59 = vunpack.c.h.bf16 %v58_v51 }
  0x27   :  { %v177_v0 = vmax.f32 %v113_v56, 0.0  ;;  %v181_v1 = vmax.f32 %v117_v57, 0.0  ;;  %v178_v2 = vmax.f32 %v114_v58, 0.0  ;;  %v122_v18 = vunpack.c.h.bf16 %v60_v10 }
  0x28   :  { %v182_v3 = vmax.f32 %v118_v59, 0.0  ;;  %v126_v19 = vunpack.c.h.bf16 %v62_v11  ;;  %v185_v24 = vmax.f32 %v121_v16, 0.0  ;;  %v189_v25 = vmax.f32 %v125_v17, 0.0 }
  0x29   :  { %v186_v26 = vmax.f32 %v122_v18, 0.0 }
  0x2a   :  { %v190_v27 = vmax.f32 %v126_v19, 0.0 }
  0x31   :  { %508 = vmatmul.bf16.gmra.mxu0 %v195_v12  ;;  %v159_v12 = vmax.f32 %v95_v4, 0.0 }
  0x32   :  { %557 = vmatmul.bf16.gmra.mxu1 %v196_v13  ;;  %v163_v13 = vmax.f32 %v99_v5, 0.0 }
  0x33   :  { %606 = vmatmul.bf16.gmra.mxu2 %v197_v14  ;;  %v160_v14 = vmax.f32 %v96_v6, 0.0  ;;  %v217_v6 = vpack.c.bf16 %v181_v1, %v177_v0 }
  0x34   :  { %655 = vmatmul.bf16.gmra.mxu3 %v198_v15  ;;  %v164_v15 = vmax.f32 %v100_v7, 0.0  ;;  %v207_v20 = vpack.c.bf16 %v163_v13, %v159_v12  ;;  %v218_v7 = vpack.c.bf16 %v182_v3, %v178_v2  ;;  %v119_v12 = vunpack.c.l.bf16 %v59_v8 }
  0x35   :  { %v123_v13 = vunpack.c.l.bf16 %v61_v9 }
  0x36   :  { %v208_v21 = vpack.c.bf16 %v164_v15, %v160_v14  ;;  %v120_v14 = vunpack.c.h.bf16 %v59_v8  ;;  %v124_v15 = vunpack.c.h.bf16 %v61_v9 }
  0x41   :  { %513 = vmatmul.bf16.gmra.mxu0 %v199_v36  ;;  %v167_v36 = vmax.f32 %v103_v28, 0.0 }
  0x42   :  { %562 = vmatmul.bf16.gmra.mxu1 %v200_v37  ;;  %v171_v37 = vmax.f32 %v107_v29, 0.0 }
  0x43   :  { %611 = vmatmul.bf16.gmra.mxu2 %v201_v38  ;;  %v168_v38 = vmax.f32 %v104_v30, 0.0  ;;  %v221_v30 = vpack.c.bf16 %v189_v25, %v185_v24 }
  0x44   :  { %660 = vmatmul.bf16.gmra.mxu3 %v202_v39  ;;  %v172_v39 = vmax.f32 %v108_v31, 0.0  ;;  %v211_v44 = vpack.c.bf16 %v171_v37, %v167_v36  ;;  %v222_v31 = vpack.c.bf16 %v190_v27, %v186_v26 }
  0x46   :  { %v212_v45 = vpack.c.bf16 %v172_v39, %v168_v38 }
  0x51   :  { %518 = vmatmul.bf16.gmra.mxu0 %v203_v60  ;;  %v175_v60 = vmax.f32 %v111_v52, 0.0 }
  0x52   :  { %567 = vmatmul.bf16.gmra.mxu1 %v204_v61  ;;  %v179_v61 = vmax.f32 %v115_v53, 0.0 }
  0x53   :  { %616 = vmatmul.bf16.gmra.mxu2 %v205_v62  ;;  %v176_v62 = vmax.f32 %v112_v54, 0.0 }
  0x54   :  { %665 = vmatmul.bf16.gmra.mxu3 %v206_v63  ;;  %v180_v63 = vmax.f32 %v116_v55, 0.0  ;;  %v215_v4 = vpack.c.bf16 %v179_v61, %v175_v60 }
  0x56   :  { %v216_v5 = vpack.c.bf16 %v180_v63, %v176_v62 }
  0x61   :  { %523 = vmatmul.bf16.gmra.mxu0 %v207_v20  ;;  %v183_v20 = vmax.f32 %v119_v12, 0.0 }
  0x62   :  { %572 = vmatmul.bf16.gmra.mxu1 %v208_v21  ;;  %v187_v21 = vmax.f32 %v123_v13, 0.0 }
  0x63   :  { %621 = vmatmul.bf16.gmra.mxu2 %v209_v22  ;;  %v184_v22 = vmax.f32 %v120_v14, 0.0 }
  0x64   :  { %670 = vmatmul.bf16.gmra.mxu3 %v210_v23  ;;  %v188_v23 = vmax.f32 %v124_v15, 0.0  ;;  %v219_v28 = vpack.c.bf16 %v187_v21, %v183_v20 }
  0x66   :  { %v220_v29 = vpack.c.bf16 %v188_v23, %v184_v22 }
  0x71   :  { %528 = vmatmul.bf16.gmra.mxu0 %v211_v44 }
  0x72   :  { %577 = vmatmul.bf16.gmra.mxu1 %v212_v45 }
  0x73   :  { %626 = vmatmul.bf16.gmra.mxu2 %v213_v46 }
  0x74   :  { %675 = vmatmul.bf16.gmra.mxu3 %v214_v47 }
  0x81   :  { %533 = vmatmul.bf16.gmra.mxu0 %v215_v4 }
  0x82   :  { %582 = vmatmul.bf16.gmra.mxu1 %v216_v5 }
  0x83   :  { %631 = vmatmul.bf16.gmra.mxu2 %v217_v6 }
  0x84   :  { %680 = vmatmul.bf16.gmra.mxu3 %v218_v7 }
  0x91   :  { %538 = vmatmul.bf16.gmra.mxu0 %v219_v28 }
  0x92   :  { %587 = vmatmul.bf16.gmra.mxu1 %v220_v29 }
  0x93   :  { %636 = vmatmul.bf16.gmra.mxu2 %v221_v30 }
  0x94   :  { %685 = vmatmul.bf16.gmra.mxu3 %v222_v31 }
  0x9e   :  { %v504_v32 = vpop.f32.mrf.mxu0 }
  0x9f   :  { %v553_v33 = vpop.f32.mrf.mxu1 }
  0xa0   :  { %v554_v38 = vadd.f32 %v553_v33, %v504_v32 }
  0xa6   :  { %v602_v34 = vpop.f32.mrf.mxu2  ;;  %v506_v36 = vpop.f32.mrf.mxu0 }
  0xa7   :  { %v651_v35 = vpop.f32.mrf.mxu3  ;;  %v555_v37 = vpop.f32.mrf.mxu1  ;;  %v603_v39 = vadd.f32 %v602_v34, %v554_v38 }
  0xa8   :  { %v556_v40 = vadd.f32 %v555_v37, %v506_v36 }
  0xa9   :  { %v652_v46 = vadd.f32 %v651_v35, %v603_v39 }
  0xae   :  { %v604_v41 = vpop.f32.mrf.mxu2  ;;  %v509_v44 = vpop.f32.mrf.mxu0 }
  0xaf   :  { %v653_v42 = vpop.f32.mrf.mxu3  ;;  %v605_v43 = vadd.f32 %v604_v41, %v556_v40  ;;  %v558_v45 = vpop.f32.mrf.mxu1 }
  0xb0   :  { %v559_v53 = vadd.f32 %v558_v45, %v509_v44 }
  0xb1   :  { %v654_v47 = vadd.f32 %v653_v42, %v605_v43 }
  0xb3   :  { %v941_v48 = vpack.c.bf16 %v654_v47, %v652_v46 }
  0xb5   :  { %942 = vst [vmem:[%s1218_s2] sm:$0xff] %v941_v48  }
  0xb6   :  { %v607_v49 = vpop.f32.mrf.mxu2  ;;  %v511_v51 = vpop.f32.mrf.mxu0 }
  0xb7   :  { %v656_v50 = vpop.f32.mrf.mxu3  ;;  %v560_v52 = vpop.f32.mrf.mxu1  ;;  %v608_v54 = vadd.f32 %v607_v49, %v559_v53 }
  0xb8   :  { %v561_v55 = vadd.f32 %v560_v52, %v511_v51 }
  0xb9   :  { %v657_v61 = vadd.f32 %v656_v50, %v608_v54 }
  0xbe   :  { %v609_v56 = vpop.f32.mrf.mxu2  ;;  %v514_v59 = vpop.f32.mrf.mxu0 }
  0xbf   :  { %v658_v57 = vpop.f32.mrf.mxu3  ;;  %v610_v58 = vadd.f32 %v609_v56, %v561_v55  ;;  %v563_v60 = vpop.f32.mrf.mxu1 }
  0xc0   :  { %v564_v4 = vadd.f32 %v563_v60, %v514_v59 }
  0xc1   :  { %v659_v62 = vadd.f32 %v658_v57, %v610_v58 }
  0xc3   :  { %v946_v63 = vpack.c.bf16 %v659_v62, %v657_v61 }
  0xc5   :  { %978 = vst [vmem:[%s1218_s2 + $0x8] sm:$0xff] %v946_v63  }
  0xc6   :  { %v612_v0 = vpop.f32.mrf.mxu2  ;;  %v516_v2 = vpop.f32.mrf.mxu0 }
  0xc7   :  { %v661_v1 = vpop.f32.mrf.mxu3  ;;  %v565_v3 = vpop.f32.mrf.mxu1  ;;  %v613_v5 = vadd.f32 %v612_v0, %v564_v4 }
  0xc8   :  { %v566_v6 = vadd.f32 %v565_v3, %v516_v2 }
  0xc9   :  { %v662_v12 = vadd.f32 %v661_v1, %v613_v5 }
  0xce   :  { %v614_v7 = vpop.f32.mrf.mxu2  ;;  %v519_v10 = vpop.f32.mrf.mxu0 }
  0xcf   :  { %v663_v8 = vpop.f32.mrf.mxu3  ;;  %v615_v9 = vadd.f32 %v614_v7, %v566_v6  ;;  %v568_v11 = vpop.f32.mrf.mxu1 }
  0xd0   :  { %v569_v19 = vadd.f32 %v568_v11, %v519_v10 }
  0xd1   :  { %v664_v13 = vadd.f32 %v663_v8, %v615_v9 }
  0xd3   :  { %v951_v14 = vpack.c.bf16 %v664_v13, %v662_v12 }
  0xd5   :  { %979 = vst [vmem:[%s1218_s2 + $0x10] sm:$0xff] %v951_v14  }
  0xd6   :  { %v617_v15 = vpop.f32.mrf.mxu2  ;;  %v521_v17 = vpop.f32.mrf.mxu0 }
  0xd7   :  { %v666_v16 = vpop.f32.mrf.mxu3  ;;  %v570_v18 = vpop.f32.mrf.mxu1  ;;  %v618_v20 = vadd.f32 %v617_v15, %v569_v19 }
  0xd8   :  { %v571_v21 = vadd.f32 %v570_v18, %v521_v17 }
  0xd9   :  { %v667_v27 = vadd.f32 %v666_v16, %v618_v20 }
  0xde   :  { %v619_v22 = vpop.f32.mrf.mxu2  ;;  %v524_v25 = vpop.f32.mrf.mxu0 }
  0xdf   :  { %v668_v23 = vpop.f32.mrf.mxu3  ;;  %v620_v24 = vadd.f32 %v619_v22, %v571_v21  ;;  %v573_v26 = vpop.f32.mrf.mxu1 }
  0xe0   :  { %v574_v34 = vadd.f32 %v573_v26, %v524_v25 }
  0xe1   :  { %v669_v28 = vadd.f32 %v668_v23, %v620_v24 }
  0xe3   :  { %v956_v29 = vpack.c.bf16 %v669_v28, %v667_v27 }
  0xe5   :  { %980 = vst [vmem:[%s1218_s2 + $0x18] sm:$0xff] %v956_v29  }
  0xe6   :  { %v622_v30 = vpop.f32.mrf.mxu2  ;;  %v526_v32 = vpop.f32.mrf.mxu0 }
  0xe7   :  { %v671_v31 = vpop.f32.mrf.mxu3  ;;  %v575_v33 = vpop.f32.mrf.mxu1  ;;  %v623_v35 = vadd.f32 %v622_v30, %v574_v34 }
  0xe8   :  { %v576_v36 = vadd.f32 %v575_v33, %v526_v32 }
  0xe9   :  { %v672_v42 = vadd.f32 %v671_v31, %v623_v35 }
  0xee   :  { %v624_v37 = vpop.f32.mrf.mxu2  ;;  %v529_v40 = vpop.f32.mrf.mxu0 }
  0xef   :  { %v673_v38 = vpop.f32.mrf.mxu3  ;;  %v625_v39 = vadd.f32 %v624_v37, %v576_v36  ;;  %v578_v41 = vpop.f32.mrf.mxu1 }
  0xf0   :  { %v579_v49 = vadd.f32 %v578_v41, %v529_v40 }
  0xf1   :  { %v674_v43 = vadd.f32 %v673_v38, %v625_v39 }
  0xf3   :  { %v961_v44 = vpack.c.bf16 %v674_v43, %v672_v42 }
  0xf5   :  { %981 = vst [vmem:[%s1218_s2 + $0x20] sm:$0xff] %v961_v44  }
  0xf6   :  { %v627_v45 = vpop.f32.mrf.mxu2  ;;  %v531_v47 = vpop.f32.mrf.mxu0 }
  0xf7   :  { %v676_v46 = vpop.f32.mrf.mxu3  ;;  %v580_v48 = vpop.f32.mrf.mxu1  ;;  %v628_v50 = vadd.f32 %v627_v45, %v579_v49 }
  0xf8   :  { %v581_v51 = vadd.f32 %v580_v48, %v531_v47 }
  0xf9   :  { %v677_v57 = vadd.f32 %v676_v46, %v628_v50 }
  0xfe   :  { %v629_v52 = vpop.f32.mrf.mxu2  ;;  %v534_v55 = vpop.f32.mrf.mxu0 }
  0xff   :  { %v678_v53 = vpop.f32.mrf.mxu3  ;;  %v630_v54 = vadd.f32 %v629_v52, %v581_v51  ;;  %v583_v56 = vpop.f32.mrf.mxu1 }
 0x100   :  { %v584_v0 = vadd.f32 %v583_v56, %v534_v55 }
 0x101   :  { %v679_v58 = vadd.f32 %v678_v53, %v630_v54 }
 0x103   :  { %v966_v59 = vpack.c.bf16 %v679_v58, %v677_v57 }
 0x105   :  { %982 = vst [vmem:[%s1218_s2 + $0x28] sm:$0xff] %v966_v59  }
 0x106   :  { %v632_v60 = vpop.f32.mrf.mxu2  ;;  %v536_v62 = vpop.f32.mrf.mxu0 }
 0x107   :  { %v681_v61 = vpop.f32.mrf.mxu3  ;;  %v585_v63 = vpop.f32.mrf.mxu1  ;;  %v633_v1 = vadd.f32 %v632_v60, %v584_v0 }
 0x108   :  { %v586_v2 = vadd.f32 %v585_v63, %v536_v62 }
 0x109   :  { %v682_v8 = vadd.f32 %v681_v61, %v633_v1 }
 0x10e   :  { %v634_v3 = vpop.f32.mrf.mxu2  ;;  %v539_v6 = vpop.f32.mrf.mxu0 }
 0x10f   :  { %v683_v4 = vpop.f32.mrf.mxu3  ;;  %v635_v5 = vadd.f32 %v634_v3, %v586_v2  ;;  %v588_v7 = vpop.f32.mrf.mxu1 }
 0x110   :  { %v589_v13 = vadd.f32 %v588_v7, %v539_v6 }
 0x111   :  { %v684_v9 = vadd.f32 %v683_v4, %v635_v5 }
 0x113   :  { %v971_v10 = vpack.c.bf16 %v684_v9, %v682_v8 }
 0x115   :  { %983 = vst [vmem:[%s1218_s2 + $0x30] sm:$0xff] %v971_v10  }
 0x116   :  { %v637_v11 = vpop.f32.mrf.mxu2  ;;  %v541_v14 = vpop.f32.mrf.mxu0 }
 0x117   :  { %v686_v12 = vpop.f32.mrf.mxu3  ;;  %v590_v15 = vpop.f32.mrf.mxu1  ;;  %v638_v16 = vadd.f32 %v637_v11, %v589_v13 }
 0x118   :  { %v591_v17 = vadd.f32 %v590_v15, %v541_v14 }
 0x119   :  { %v687_v21 = vadd.f32 %v686_v12, %v638_v16 }
 0x11e   :  { %v639_v18 = vpop.f32.mrf.mxu2 }
 0x11f   :  { %v640_v19 = vadd.f32 %v639_v18, %v591_v17  ;;  %v688_v20 = vpop.f32.mrf.mxu3 }
 0x121   :  { %v689_v22 = vadd.f32 %v688_v20, %v640_v19 }
 0x123   :  { %v976_v23 = vpack.c.bf16 %v689_v22, %v687_v21 }
 0x125   :  { %984 = vst [vmem:[%s1218_s2 + $0x38] sm:$0xff] %v976_v23  }

// kernel: mfnet_forward.76
= control target key start
LH: loop header
LB: loop body
LE: loop exit
PB: predicated region body
PF: predicated region fallthrough
CT: control target
= control target key end

     0   :  { %s1134_s12 = smov 0   ;;  %s1136_s13 = smov 0   ;;  %s1287_s0 = inlined_call_operand.vmem [shape: bf16[128,384], index: 0, kind: input, shape index: {}]   ;;  %s1288_s1 = inlined_call_operand.vmem [shape: bf16[384,128], index: 1, kind: input, shape index: {}]   ;;  %s1289_s2 = inlined_call_operand.vmem [shape: bf16[128,128], index: 2, kind: input, shape index: {}]   ;;  %s1290_s3 = inlined_call_operand.vmem [shape: bf16[128,128], index: 3, kind: output, shape index: {}]  }
   0x1   :  { %s1138_s14 = smov 0   ;;  %s1140_s15 = smov 0  }
   0x2   :  { %s1142_s16 = smov 0  }
   0x3 LB: > { %s25_s17 = sadd.s32 1, %s1107_s15  ;;  %p48_p1 = scmp.ne.s32.totalorder %s1099_s13, %s1095_s12  ;;  %s1111_s16 = sphi %s1142_s16, %s13_s16   ;;  %s1107_s15 = sphi %s1140_s15, %s1294_s15   ;;  %s1103_s14 = sphi %s1138_s14, %s1293_s14   ;;  %s1099_s13 = sphi %s1136_s13, %s1292_s13   ;;  %s1095_s12 = sphi %s1134_s12, %s1291_s12  }
   0x4   : > { %p26_p0 = scmp.ge.s32.totalorder %s25_s17, 3  ;;  %p49_p2 = scmp.eq.s32.totalorder %s1111_s16, 0 }
   0x5   : > { %s41_s19 = sadd.s32 1, %s1099_s13  ;;  %p830_p5 = scmp.ge.s32.totalorder %s1111_s16, 3 }
   0x6   : > { %s1296_s17 = smov (%p26_p0, %s25_s17), 0  ;;  %p50_p3 = por %p49_p2, %p48_p1 }
   0x7   : > { %s37_s18 = ssub.s32 %s1107_s15, %s1296_s17  ;;  %170 = sbr.rel (%p830_p5) target bundleno = 32 (0x20), region = 20 }
   0x8   : > { %p39_p4 = scmp.eq.s32.totalorder %s37_s18, 0 }
   0xa   : > { %s1169_s20 = scalar_select %p39_p4, %s1099_s13, %s41_s19  }
   0xc   : > { %173 = sbr.rel (!%p50_p3) target bundleno = 32 (0x20), region = 24  ;;  %s175_s21 = sand.u32 (%p50_p3), 1, %s1099_s13  }
   0xd   : > { %s832_s22 = sshll.u32 (%p50_p3), %s1107_s15, 2  ;;  %s831_s23 = sshll.u32 (%p50_p3), %s175_s21, 6 }
   0xe   : > { %s1177_s26 = scalar_lea.vmem (%p50_p3), %s1287_s0, %s832_s22  ;;  %s177_s27 = scalar_lea.vmem (%p50_p3), [#allocation3], %s831_s23 }
   0xf   : > { %v199_v0 = vld [vmem:[%s1177_s26] sm:$0xf] (%p50_p3)  ;;  %v201_v1 = vld [vmem:[%s1177_s26 + $0xc] sm:$0xf] (%p50_p3)  ;;  %v203_v2 = vld [vmem:[%s1177_s26 + $0x18] sm:$0xf] (%p50_p3) }
  0x10   : > { %200 = vst [vmem:[%s177_s27] sm:$0xf] (%p50_p3), %v199_v0  ;;  %v205_v3 = vld [vmem:[%s1177_s26 + $0x24] sm:$0xf] (%p50_p3)  ;;  %v207_v4 = vld [vmem:[%s1177_s26 + $0x30] sm:$0xf] (%p50_p3) }
  0x11   : > { %202 = vst [vmem:[%s177_s27 + $0x4] sm:$0xf] %v201_v1  ;;  %v209_v5 = vld [vmem:[%s1177_s26 + $0x3c] sm:$0xf]  ;;  %v211_v6 = vld [vmem:[%s1177_s26 + $0x48] sm:$0xf] }
  0x12   : > { %204 = vst [vmem:[%s177_s27 + $0x8] sm:$0xf] %v203_v2  ;;  %v213_v7 = vld [vmem:[%s1177_s26 + $0x54] sm:$0xf]  ;;  %v215_v8 = vld [vmem:[%s1177_s26 + $0x60] sm:$0xf] }
  0x13   : > { %206 = vst [vmem:[%s177_s27 + $0xc] sm:$0xf] %v205_v3  ;;  %v217_v9 = vld [vmem:[%s1177_s26 + $0x6c] sm:$0xf]  ;;  %v219_v10 = vld [vmem:[%s1177_s26 + $0x78] sm:$0xf] }
  0x14   : > { %208 = vst [vmem:[%s177_s27 + $0x10] sm:$0xf] %v207_v4  ;;  %v221_v11 = vld [vmem:[%s1177_s26 + $0x84] sm:$0xf]  ;;  %v223_v12 = vld [vmem:[%s1177_s26 + $0x90] sm:$0xf] }
  0x15   : > { %210 = vst [vmem:[%s177_s27 + $0x14] sm:$0xf] %v209_v5  ;;  %v225_v13 = vld [vmem:[%s1177_s26 + $0x9c] sm:$0xf]  ;;  %v227_v14 = vld [vmem:[%s1177_s26 + $0xa8] sm:$0xf] }
  0x16   : > { %212 = vst [vmem:[%s177_s27 + $0x18] sm:$0xf] %v211_v6  ;;  %v229_v15 = vld [vmem:[%s1177_s26 + $0xb4] sm:$0xf] }
  0x17   : > { %214 = vst [vmem:[%s177_s27 + $0x1c] sm:$0xf] %v213_v7 }
  0x18   : > { %216 = vst [vmem:[%s177_s27 + $0x20] sm:$0xf] %v215_v8 }
  0x19   : > { %218 = vst [vmem:[%s177_s27 + $0x24] sm:$0xf] %v217_v9 }
  0x1a   : > { %220 = vst [vmem:[%s177_s27 + $0x28] sm:$0xf] %v219_v10 }
  0x1b   : > { %222 = vst [vmem:[%s177_s27 + $0x2c] sm:$0xf] %v221_v11 }
  0x1c   : > { %224 = vst [vmem:[%s177_s27 + $0x30] sm:$0xf] %v223_v12 }
  0x1d   : > { %226 = vst [vmem:[%s177_s27 + $0x34] sm:$0xf] %v225_v13 }
  0x1e   : > { %228 = vst [vmem:[%s177_s27 + $0x38] sm:$0xf] %v227_v14 }
  0x1f   : > { %230 = vst [vmem:[%s177_s27 + $0x3c] sm:$0xf] %v229_v15 }
  0x20 PF: > { %p833_p6 = scmp.ge.s32.totalorder %s1111_s16, 1  ;;  %p297_p7 = scmp.lt.s32.totalorder %s1111_s16, 4 }
  0x22   : > { %p298_p8 = pnand %p833_p6, %p297_p7 }
  0x23   : > { %s304_s28 = sand.u32 (!%p298_p8), 1, %s1095_s12   ;;  %s835_s29 = sshll.u32 (!%p298_p8), %s1103_s14, 4 }
  0x24   : > { %301 = sbr.rel (%p298_p8) target bundleno = 273 (0x111), region = 69  ;;  %s834_s30 = sshll.u32 (!%p298_p8), %s304_s28, 6 }
  0x25   : > { %p348_p9 = scmp.lt.s32.totalorder (!%p298_p8), %s835_s29, 47  ;;  %s1204_s8 = scalar_lea.vmem (!%p298_p8), [#allocation3], %s834_s30 }
  0x26   : > { %p837_p10 = scmp.ne.s32.totalorder (!%p298_p8), %s1103_s14, 0 }
  0x29   : > { %s1298_s29 = smov (!%p348_p9, %s835_s29), 47  ;;  %377 = sbr.rel (%p837_p10) target bundleno = 63 (0x3f), region = 77 }
  0x2a   : > { %s836_s4 = sshll.u32 %s1298_s29, 2 }
  0x2b   : > { %s1202_s7 = scalar_lea.vmem %s1288_s1, %s836_s4 }
  0x2e   : > { %v1113_v16 = vmov 0.0  }
  0x2f   : > { %378 = vst [vmem:[#allocation2 + $0x30] sm:$0xff] %v1113_v16 }
  0x30   : > { %379 = vst [vmem:[#allocation2] sm:$0xff] %v1113_v16 }
  0x31   : > { %380 = vst [vmem:[#allocation2 + $0x58] sm:$0xff] %v1113_v16 }
  0x32   : > { %381 = vst [vmem:[#allocation2 + $0x18] sm:$0xff] %v1113_v16 }
  0x33   : > { %382 = vst [vmem:[#allocation2 + $0x50] sm:$0xff] %v1113_v16 }
  0x34   : > { %383 = vst [vmem:[#allocation2 + $0x68] sm:$0xff] %v1113_v16 }
  0x35   : > { %384 = vst [vmem:[#allocation2 + $0x8] sm:$0xff] %v1113_v16 }
  0x36   : > { %385 = vst [vmem:[#allocation2 + $0x48] sm:$0xff] %v1113_v16 }
  0x37   : > { %386 = vst [vmem:[#allocation2 + $0x40] sm:$0xff] %v1113_v16 }
  0x38   : > { %387 = vst [vmem:[#allocation2 + $0x20] sm:$0xff] %v1113_v16 }
  0x39   : > { %388 = vst [vmem:[#allocation2 + $0x10] sm:$0xff] %v1113_v16 }
  0x3a   : > { %389 = vst [vmem:[#allocation2 + $0x38] sm:$0xff] %v1113_v16 }
  0x3b   : > { %390 = vst [vmem:[#allocation2 + $0x60] sm:$0xff] %v1113_v16 }
  0x3c   : > { %391 = vst [vmem:[#allocation2 + $0x70] sm:$0xff] %v1113_v16 }
  0x3d   : > { %392 = vst [vmem:[#allocation2 + $0x78] sm:$0xff] %v1113_v16 }
  0x3e   : > { %393 = vst [vmem:[#allocation2 + $0x28] sm:$0xff] %v1113_v16 }
  0x3f PF: > { %v882_v17 = vld [vmem:[%s1202_s7 + $0x38] sm:$0xff]  ;;  %v881_v18 = vld [vmem:[%s1202_s7 + $0x30] sm:$0xff]  ;;  %v880_v19 = vld [vmem:[%s1202_s7 + $0x28] sm:$0xff]  ;;  %p870_p11 = scmp.ne.s32.totalorder %s1103_s14, 2 }
  0x40   : > { %530 = vmatpush.bf16.msra.mxu0 %v882_v17  ;;  %1008 = vmatpush.bf16.msra.mxu1 %v882_v17  ;;  %v879_v20 = vld [vmem:[%s1202_s7 + $0x20] sm:$0xff]  ;;  %v878_v21 = vld [vmem:[%s1202_s7 + $0x18] sm:$0xff]  ;;  %v877_v22 = vld [vmem:[%s1202_s7 + $0x10] sm:$0xff] }
  0x41   : > { %1009 = vmatpush.bf16.msra.mxu2 %v882_v17  ;;  %1010 = vmatpush.bf16.msra.mxu3 %v882_v17  ;;  %v884_v23 = vld [vmem:[%s1204_s8] sm:$0xff]   ;;  %v988_v24 = vld [vmem:[%s1204_s8 + $0x10] sm:$0xff]   ;;  %v876_v31 = vld [vmem:[%s1202_s7 + $0x8] sm:$0xff] }
  0x42   : > { %v990_v25 = vld [vmem:[%s1204_s8 + $0x20] sm:$0xff]   ;;  %v992_v26 = vld [vmem:[%s1204_s8 + $0x30] sm:$0xff]   ;;  %v885_v27 = vunpack.c.l.bf16 %v884_v23  ;;  %v886_v28 = vunpack.c.h.bf16 %v884_v23  ;;  %v893_v29 = vunpack.c.l.bf16 %v988_v24  ;;  %v894_v30 = vunpack.c.h.bf16 %v988_v24  ;;  %v987_v49 = vld [vmem:[%s1204_s8 + $0x8] sm:$0xff]  }
  0x43   : > { %v901_v32 = vunpack.c.l.bf16 %v990_v25  ;;  %v902_v33 = vunpack.c.h.bf16 %v990_v25  ;;  %v909_v34 = vunpack.c.l.bf16 %v992_v26  ;;  %v910_v35 = vunpack.c.h.bf16 %v992_v26  ;;  %v875_v40 = vld [vmem:[%s1202_s7] sm:$0xff]  ;;  %v989_v50 = vld [vmem:[%s1204_s8 + $0x18] sm:$0xff]   ;;  %v991_v51 = vld [vmem:[%s1204_s8 + $0x28] sm:$0xff]  }
  0x44   : > { %531 = vmatpush.bf16.msra.mxu0 %v881_v18  ;;  %1011 = vmatpush.bf16.msra.mxu1 %v881_v18  ;;  %v426_v36 = vmax.f32 %v885_v27, 0.0  ;;  %v427_v37 = vmax.f32 %v886_v28, 0.0  ;;  %v430_v38 = vmax.f32 %v893_v29, 0.0  ;;  %v431_v39 = vmax.f32 %v894_v30, 0.0  ;;  %v993_v52 = vld [vmem:[%s1204_s8 + $0x38] sm:$0xff]   ;;  %v450_v9 = vld [vmem:[#allocation2 + $0x30] sm:$0xff] }
  0x45   : > { %1012 = vmatpush.bf16.msra.mxu2 %v881_v18  ;;  %1013 = vmatpush.bf16.msra.mxu3 %v881_v18  ;;  %v434_v41 = vmax.f32 %v901_v32, 0.0  ;;  %v435_v42 = vmax.f32 %v902_v33, 0.0  ;;  %v438_v43 = vmax.f32 %v909_v34, 0.0  ;;  %v439_v44 = vmax.f32 %v910_v35, 0.0  ;;  %v454_v10 = vld [vmem:[#allocation2 + $0x50] sm:$0xff]  ;;  %v458_v15 = vld [vmem:[#allocation2 + $0x40] sm:$0xff] }
  0x46   : > { %v442_v45 = vpack.c.bf16 %v427_v37, %v426_v36  ;;  %v444_v46 = vpack.c.bf16 %v431_v39, %v430_v38  ;;  %v889_v53 = vunpack.c.l.bf16 %v987_v49  ;;  %v890_v54 = vunpack.c.h.bf16 %v987_v49  ;;  %v462_v16 = vld [vmem:[#allocation2 + $0x60] sm:$0xff]  ;;  %v455_v18 = vld [vmem:[#allocation2 + $0x68] sm:$0xff]  ;;  %v463_v28 = vld [vmem:[#allocation2 + $0x70] sm:$0xff] }
  0x47   : > { %v446_v47 = vpack.c.bf16 %v435_v42, %v434_v41  ;;  %v448_v48 = vpack.c.bf16 %v439_v44, %v438_v43  ;;  %v897_v55 = vunpack.c.l.bf16 %v989_v50  ;;  %v898_v56 = vunpack.c.h.bf16 %v989_v50  ;;  %v451_v17 = vld [vmem:[#allocation2] sm:$0xff]  ;;  %v452_v29 = vld [vmem:[#allocation2 + $0x58] sm:$0xff]  ;;  %v456_v30 = vld [vmem:[#allocation2 + $0x8] sm:$0xff] }
  0x48   : > { %532 = vmatpush.bf16.msra.mxu0 %v880_v19  ;;  %1014 = vmatpush.bf16.msra.mxu1 %v880_v19  ;;  %v905_v57 = vunpack.c.l.bf16 %v991_v51  ;;  %v906_v58 = vunpack.c.h.bf16 %v991_v51  ;;  %v913_v59 = vunpack.c.l.bf16 %v993_v52  ;;  %v914_v60 = vunpack.c.h.bf16 %v993_v52  ;;  %v459_v27 = vld [vmem:[#allocation2 + $0x20] sm:$0xff]  ;;  %v460_v39 = vld [vmem:[#allocation2 + $0x10] sm:$0xff]  ;;  %v453_v41 = vld [vmem:[#allocation2 + $0x18] sm:$0xff] }
  0x49   : > { %1015 = vmatpush.bf16.msra.mxu2 %v880_v19  ;;  %1016 = vmatpush.bf16.msra.mxu3 %v880_v19  ;;  %v428_v61 = vmax.f32 %v889_v53, 0.0  ;;  %v429_v62 = vmax.f32 %v890_v54, 0.0  ;;  %v432_v63 = vmax.f32 %v897_v55, 0.0  ;;  %v433_v0 = vmax.f32 %v898_v56, 0.0  ;;  %v457_v42 = vld [vmem:[#allocation2 + $0x48] sm:$0xff]  ;;  %v461_v51 = vld [vmem:[#allocation2 + $0x38] sm:$0xff] }
  0x4a   : > { %v436_v1 = vmax.f32 %v905_v57, 0.0  ;;  %v437_v2 = vmax.f32 %v906_v58, 0.0  ;;  %v440_v3 = vmax.f32 %v913_v59, 0.0  ;;  %v441_v4 = vmax.f32 %v914_v60, 0.0  ;;  %v465_v52 = vld [vmem:[#allocation2 + $0x28] sm:$0xff] }
  0x4b   : > { %v443_v5 = vpack.c.bf16 %v429_v62, %v428_v61  ;;  %v445_v6 = vpack.c.bf16 %v433_v0, %v432_v63 }
  0x4c   : > { %533 = vmatpush.bf16.msra.mxu0 %v879_v20  ;;  %1017 = vmatpush.bf16.msra.mxu1 %v879_v20  ;;  %v447_v7 = vpack.c.bf16 %v437_v2, %v436_v1  ;;  %v449_v8 = vpack.c.bf16 %v441_v4, %v440_v3 }
  0x4d   : > { %1018 = vmatpush.bf16.msra.mxu2 %v879_v20  ;;  %1019 = vmatpush.bf16.msra.mxu3 %v879_v20 }
  0x50   : > { %534 = vmatpush.bf16.msra.mxu0 %v878_v21  ;;  %1020 = vmatpush.bf16.msra.mxu1 %v878_v21 }
  0x51   : > { %1021 = vmatpush.bf16.msra.mxu2 %v878_v21  ;;  %1022 = vmatpush.bf16.msra.mxu3 %v878_v21 }
  0x54   : > { %535 = vmatpush.bf16.msra.mxu0 %v877_v22  ;;  %1023 = vmatpush.bf16.msra.mxu1 %v877_v22 }
  0x55   : > { %1024 = vmatpush.bf16.msra.mxu2 %v877_v22  ;;  %1025 = vmatpush.bf16.msra.mxu3 %v877_v22 }
  0x58   : > { %536 = vmatpush.bf16.msra.mxu0 %v876_v31  ;;  %1026 = vmatpush.bf16.msra.mxu1 %v876_v31 }
  0x59   : > { %1027 = vmatpush.bf16.msra.mxu2 %v876_v31  ;;  %1028 = vmatpush.bf16.msra.mxu3 %v876_v31 }
  0x5c   : > { %537 = vmatpush.bf16.msra.mxu0 %v875_v40  ;;  %1029 = vmatpush.bf16.msra.mxu1 %v875_v40 }
  0x5d   : > { %1030 = vmatpush.bf16.msra.mxu2 %v875_v40  ;;  %1031 = vmatpush.bf16.msra.mxu3 %v875_v40  ;;  %v464_v40 = vld [vmem:[#allocation2 + $0x78] sm:$0xff] }
  0x5f   : > { %538 = vmatmul.bf16.vlgmr.msra.gmra.mxu0 %v442_v45  ;;  %548 = vmatmul.bf16.vlgmr.msra.gmra.mxu1 %v444_v46 }
  0x60   : > { %558 = vmatmul.bf16.vlgmr.msra.gmra.mxu2 %v446_v47  ;;  %568 = vmatmul.bf16.vlgmr.msra.gmra.mxu3 %v448_v48 }
  0x6f   : > { %543 = vmatmul.bf16.gmra.mxu0 %v443_v5  ;;  %553 = vmatmul.bf16.gmra.mxu1 %v445_v6 }
  0x70   : > { %563 = vmatmul.bf16.gmra.mxu2 %v447_v7  ;;  %573 = vmatmul.bf16.gmra.mxu3 %v449_v8 }
  0xdc   : > { %v539_v11 = vpop.f32.mrf.mxu0  ;;  %v549_v12 = vpop.f32.mrf.mxu1 }
  0xdd   : > { %v579_v13 = vadd.f32 %v539_v11, %v450_v9  ;;  %v583_v14 = vadd.f32 %v549_v12, %v454_v10 }
  0xdf   : > { %595 = vst [vmem:[#allocation2 + $0x30] sm:$0xff] %v579_v13 }
  0xe0   : > { %599 = vst [vmem:[#allocation2 + $0x50] sm:$0xff] %v583_v14 }
  0xe3   : > { %v559_v19 = vpop.f32.mrf.mxu2  ;;  %v569_v20 = vpop.f32.mrf.mxu3 }
  0xe4   : > { %v587_v21 = vadd.f32 %v559_v19, %v458_v15  ;;  %v591_v22 = vadd.f32 %v569_v20, %v462_v16  ;;  %v541_v23 = vpop.f32.mrf.mxu0  ;;  %v551_v24 = vpop.f32.mrf.mxu1 }
  0xe5   : > { %v580_v25 = vadd.f32 %v541_v23, %v451_v17  ;;  %v584_v26 = vadd.f32 %v551_v24, %v455_v18 }
  0xe6   : > { %603 = vst [vmem:[#allocation2 + $0x40] sm:$0xff] %v587_v21 }
  0xe7   : > { %607 = vst [vmem:[#allocation2 + $0x60] sm:$0xff] %v591_v22 }
  0xe8   : > { %596 = vst [vmem:[#allocation2] sm:$0xff] %v580_v25 }
  0xe9   : > { %600 = vst [vmem:[#allocation2 + $0x68] sm:$0xff] %v584_v26 }
  0xeb   : > { %v561_v31 = vpop.f32.mrf.mxu2  ;;  %v571_v32 = vpop.f32.mrf.mxu3 }
  0xec   : > { %v588_v33 = vadd.f32 %v561_v31, %v459_v27  ;;  %v592_v34 = vadd.f32 %v571_v32, %v463_v28  ;;  %v544_v35 = vpop.f32.mrf.mxu0  ;;  %v554_v36 = vpop.f32.mrf.mxu1 }
  0xed   : > { %v581_v37 = vadd.f32 %v544_v35, %v452_v29  ;;  %v585_v38 = vadd.f32 %v554_v36, %v456_v30 }
  0xee   : > { %604 = vst [vmem:[#allocation2 + $0x20] sm:$0xff] %v588_v33 }
  0xef   : > { %608 = vst [vmem:[#allocation2 + $0x70] sm:$0xff] %v592_v34 }
  0xf0   : > { %597 = vst [vmem:[#allocation2 + $0x58] sm:$0xff] %v581_v37 }
  0xf1   : > { %601 = vst [vmem:[#allocation2 + $0x8] sm:$0xff] %v585_v38 }
  0xf3   : > { %v564_v43 = vpop.f32.mrf.mxu2  ;;  %v574_v44 = vpop.f32.mrf.mxu3 }
  0xf4   : > { %v589_v45 = vadd.f32 %v564_v43, %v460_v39  ;;  %v593_v46 = vadd.f32 %v574_v44, %v464_v40  ;;  %v546_v47 = vpop.f32.mrf.mxu0  ;;  %v556_v48 = vpop.f32.mrf.mxu1 }
  0xf5   : > { %v582_v49 = vadd.f32 %v546_v47, %v453_v41  ;;  %v586_v50 = vadd.f32 %v556_v48, %v457_v42 }
  0xf6   : > { %605 = vst [vmem:[#allocation2 + $0x10] sm:$0xff] %v589_v45 }
  0xf7   : > { %609 = vst [vmem:[#allocation2 + $0x78] sm:$0xff] %v593_v46 }
  0xf8   : > { %598 = vst [vmem:[#allocation2 + $0x18] sm:$0xff] %v582_v49 }
  0xf9   : > { %602 = vst [vmem:[#allocation2 + $0x48] sm:$0xff] %v586_v50 }
  0xfb   : > { %v566_v53 = vpop.f32.mrf.mxu2  ;;  %v576_v54 = vpop.f32.mrf.mxu3  ;;  %614 = sbr.rel (%p870_p11) target bundleno = 273 (0x111), region = 81 }
  0xfc   : > { %v590_v55 = vadd.f32 %v566_v53, %v461_v51  ;;  %v594_v56 = vadd.f32 %v576_v54, %v465_v52 }
  0xfe   : > { %606 = vst [vmem:[#allocation2 + $0x38] sm:$0xff] %v590_v55 }
  0xff   : > { %610 = vst [vmem:[#allocation2 + $0x28] sm:$0xff] %v594_v56 }
 0x100   : > { %v615_v57 = vld [vmem:[#allocation2 + $0x30] sm:$0xff]  ;;  %v616_v58 = vld [vmem:[#allocation2] sm:$0xff]  ;;  %v617_v62 = vld [vmem:[#allocation2 + $0x58] sm:$0xff] }
 0x101   : > { %v916_v59 = vld [vmem:[%s1289_s2] sm:$0xff]   ;;  %v618_v63 = vld [vmem:[#allocation2 + $0x18] sm:$0xff]  ;;  %v994_v0 = vld [vmem:[%s1289_s2 + $0x8] sm:$0xff]  }
 0x102   : > { %v917_v60 = vunpack.c.l.bf16 %v916_v59  ;;  %v918_v61 = vunpack.c.h.bf16 %v916_v59  ;;  %v921_v1 = vunpack.c.l.bf16 %v994_v0  ;;  %v922_v2 = vunpack.c.h.bf16 %v994_v0  ;;  %v619_v3 = vld [vmem:[#allocation2 + $0x50] sm:$0xff]  ;;  %v620_v4 = vld [vmem:[#allocation2 + $0x68] sm:$0xff]  ;;  %v996_v12 = vld [vmem:[%s1289_s2 + $0x18] sm:$0xff]  }
 0x103   : > { %v995_v5 = vld [vmem:[%s1289_s2 + $0x10] sm:$0xff]   ;;  %v621_v10 = vld [vmem:[#allocation2 + $0x8] sm:$0xff]  ;;  %v929_v15 = vunpack.c.l.bf16 %v996_v12  ;;  %v930_v16 = vunpack.c.h.bf16 %v996_v12  ;;  %v623_v17 = vld [vmem:[#allocation2 + $0x40] sm:$0xff] }
 0x104   : > { %v663_v6 = vadd.f32 %v917_v60, %v615_v57  ;;  %v664_v7 = vadd.f32 %v918_v61, %v616_v58  ;;  %v925_v8 = vunpack.c.l.bf16 %v995_v5  ;;  %v926_v9 = vunpack.c.h.bf16 %v995_v5  ;;  %v622_v11 = vld [vmem:[#allocation2 + $0x48] sm:$0xff]  ;;  %v997_v18 = vld [vmem:[%s1289_s2 + $0x20] sm:$0xff]   ;;  %v625_v29 = vld [vmem:[#allocation2 + $0x10] sm:$0xff] }
 0x105   : > { %v665_v13 = vadd.f32 %v921_v1, %v617_v62  ;;  %v666_v14 = vadd.f32 %v922_v2, %v618_v63  ;;  %v624_v22 = vld [vmem:[#allocation2 + $0x20] sm:$0xff]  ;;  %v933_v23 = vunpack.c.l.bf16 %v997_v18  ;;  %v998_v24 = vld [vmem:[%s1289_s2 + $0x28] sm:$0xff]   ;;  %v669_v26 = vadd.f32 %v929_v15, %v621_v10  ;;  %v626_v30 = vld [vmem:[#allocation2 + $0x38] sm:$0xff] }
 0x106   : > { %v950_v19 = vpack.c.bf16 %v664_v7, %v663_v6  ;;  %v667_v20 = vadd.f32 %v925_v8, %v619_v3  ;;  %v668_v21 = vadd.f32 %v926_v9, %v620_v4  ;;  %v670_v27 = vadd.f32 %v930_v16, %v622_v11  ;;  %v999_v31 = vld [vmem:[%s1289_s2 + $0x30] sm:$0xff]   ;;  %v627_v36 = vld [vmem:[#allocation2 + $0x60] sm:$0xff]  ;;  %v1000_v38 = vld [vmem:[%s1289_s2 + $0x38] sm:$0xff]  }
 0x107   : > { %v955_v25 = vpack.c.bf16 %v666_v14, %v665_v13  ;;  %v934_v28 = vunpack.c.h.bf16 %v997_v18  ;;  %v671_v33 = vadd.f32 %v933_v23, %v623_v17  ;;  %v937_v34 = vunpack.c.l.bf16 %v998_v24  ;;  %v628_v37 = vld [vmem:[#allocation2 + $0x70] sm:$0xff]  ;;  %v629_v43 = vld [vmem:[#allocation2 + $0x78] sm:$0xff]  ;;  %v630_v44 = vld [vmem:[#allocation2 + $0x28] sm:$0xff] }
 0x108   : > { %951 = vst [vmem:[%s1290_s3] sm:$0xff] %v950_v19   ;;  %v960_v32 = vpack.c.bf16 %v668_v21, %v667_v20  ;;  %v938_v35 = vunpack.c.h.bf16 %v998_v24  ;;  %v965_v39 = vpack.c.bf16 %v670_v27, %v669_v26  ;;  %v941_v41 = vunpack.c.l.bf16 %v999_v31 }
 0x109   : > { %1001 = vst [vmem:[%s1290_s3 + $0x8] sm:$0xff] %v955_v25   ;;  %v672_v40 = vadd.f32 %v934_v28, %v624_v22  ;;  %v942_v42 = vunpack.c.h.bf16 %v999_v31  ;;  %v673_v45 = vadd.f32 %v937_v34, %v625_v29  ;;  %v945_v47 = vunpack.c.l.bf16 %v1000_v38 }
 0x10a   : > { %1002 = vst [vmem:[%s1290_s3 + $0x10] sm:$0xff] %v960_v32   ;;  %v674_v46 = vadd.f32 %v938_v35, %v626_v30  ;;  %v946_v48 = vunpack.c.h.bf16 %v1000_v38  ;;  %v675_v50 = vadd.f32 %v941_v41, %v627_v36 }
 0x10b   : > { %1003 = vst [vmem:[%s1290_s3 + $0x18] sm:$0xff] %v965_v39   ;;  %v970_v49 = vpack.c.bf16 %v672_v40, %v671_v33  ;;  %v676_v51 = vadd.f32 %v942_v42, %v628_v37  ;;  %v677_v53 = vadd.f32 %v945_v47, %v629_v43 }
 0x10c   : > { %v975_v52 = vpack.c.bf16 %v674_v46, %v673_v45  ;;  %v678_v54 = vadd.f32 %v946_v48, %v630_v44 }
 0x10d   : > { %1004 = vst [vmem:[%s1290_s3 + $0x20] sm:$0xff] %v970_v49   ;;  %v980_v55 = vpack.c.bf16 %v676_v51, %v675_v50 }
 0x10e   : > { %1005 = vst [vmem:[%s1290_s3 + $0x28] sm:$0xff] %v975_v52   ;;  %v985_v56 = vpack.c.bf16 %v678_v54, %v677_v53 }
 0x10f   : > { %1006 = vst [vmem:[%s1290_s3 + $0x30] sm:$0xff] %v980_v55  }
 0x110   : > { %1007 = vst [vmem:[%s1290_s3 + $0x38] sm:$0xff] %v985_v56  }
 0x111 PF: > { %s13_s16 = sadd.s32 1, %s1111_s16   ;;  %s1291_s12 = smov %s1099_s13 }
 0x112   : > { %p10_p12 = scmp.ge.s32.totalorder %s13_s16, 5   ;;  %s1292_s13 = smov %s1169_s20 }
 0x113   : > { %s1293_s14 = smov %s1107_s15  ;;  %s1294_s15 = smov %s1296_s17 }
 0x114   :  { %12 = sbr.rel (!%p10_p12) target bundleno = 3 (0x3), region = 122 }

// kernel: mfnet_forward.79
= control target key start
LH: loop header
LB: loop body
LE: loop exit
PB: predicated region body
PF: predicated region fallthrough
CT: control target
= control target key end

     0   :  { %s963_s9 = smov 0   ;;  %s965_s10 = smov 0   ;;  %s1092_s0 = inlined_call_operand.vmem [shape: bf16[128,896], index: 0, kind: input, shape index: {}]   ;;  %s1093_s1 = inlined_call_operand.vmem [shape: bf16[896,128], index: 1, kind: input, shape index: {}]   ;;  %s1094_s2 = inlined_call_operand.vmem [shape: bf16[128,128], index: 2, kind: output, shape index: {}]  }
   0x1   :  { %s967_s11 = smov 0   ;;  %s969_s12 = smov 0  }
   0x2   :  { %s971_s13 = smov 0  }
   0x3 LB: > { %s24_s14 = sadd.s32 1, %s941_s12  ;;  %p47_p1 = scmp.ne.s32.totalorder %s933_s10, %s929_s9  ;;  %s945_s13 = sphi %s971_s13, %s12_s13   ;;  %s941_s12 = sphi %s969_s12, %s1098_s12   ;;  %s937_s11 = sphi %s967_s11, %s1097_s11   ;;  %s933_s10 = sphi %s965_s10, %s1096_s10   ;;  %s929_s9 = sphi %s963_s9, %s1095_s9  }
   0x4   : > { %p25_p0 = scmp.ge.s32.totalorder %s24_s14, 7  ;;  %p48_p2 = scmp.eq.s32.totalorder %s945_s13, 0 }
   0x5   : > { %s40_s16 = sadd.s32 1, %s933_s10  ;;  %p703_p5 = scmp.ge.s32.totalorder %s945_s13, 7 }
   0x6   : > { %s1100_s14 = smov (%p25_p0, %s24_s14), 0  ;;  %p49_p3 = por %p48_p2, %p47_p1 }
   0x7   : > { %s36_s15 = ssub.s32 %s941_s12, %s1100_s14  ;;  %129 = sbr.rel (%p703_p5) target bundleno = 32 (0x20), region = 16 }
   0x8   : > { %p38_p4 = scmp.eq.s32.totalorder %s36_s15, 0 }
   0xa   : > { %s998_s17 = scalar_select %p38_p4, %s933_s10, %s40_s16  }
   0xc   : > { %132 = sbr.rel (!%p49_p3) target bundleno = 32 (0x20), region = 20  ;;  %s134_s18 = sand.u32 (%p49_p3), 1, %s933_s10  }
   0xd   : > { %s705_s19 = sshll.u32 (%p49_p3), %s941_s12, 2  ;;  %s704_s20 = sshll.u32 (%p49_p3), %s134_s18, 6 }
   0xe   : > { %s1006_s23 = scalar_lea.vmem (%p49_p3), %s1092_s0, %s705_s19  ;;  %s136_s24 = scalar_lea.vmem (%p49_p3), [#allocation3], %s704_s20 }
   0xf   : > { %v158_v0 = vld [vmem:[%s1006_s23] sm:$0xf] (%p49_p3)  ;;  %v160_v1 = vld [vmem:[%s1006_s23 + $0x1c] sm:$0xf] (%p49_p3)  ;;  %v162_v2 = vld [vmem:[%s1006_s23 + $0x38] sm:$0xf] (%p49_p3) }
  0x10   : > { %159 = vst [vmem:[%s136_s24] sm:$0xf] (%p49_p3), %v158_v0  ;;  %v164_v3 = vld [vmem:[%s1006_s23 + $0x54] sm:$0xf] (%p49_p3)  ;;  %v166_v4 = vld [vmem:[%s1006_s23 + $0x70] sm:$0xf] (%p49_p3) }
  0x11   : > { %161 = vst [vmem:[%s136_s24 + $0x4] sm:$0xf] %v160_v1  ;;  %v168_v5 = vld [vmem:[%s1006_s23 + $0x8c] sm:$0xf]  ;;  %v170_v6 = vld [vmem:[%s1006_s23 + $0xa8] sm:$0xf] }
  0x12   : > { %163 = vst [vmem:[%s136_s24 + $0x8] sm:$0xf] %v162_v2  ;;  %v172_v7 = vld [vmem:[%s1006_s23 + $0xc4] sm:$0xf]  ;;  %v174_v8 = vld [vmem:[%s1006_s23 + $0xe0] sm:$0xf] }
  0x13   : > { %165 = vst [vmem:[%s136_s24 + $0xc] sm:$0xf] %v164_v3  ;;  %v176_v9 = vld [vmem:[%s1006_s23 + $0xfc] sm:$0xf]  ;;  %v178_v10 = vld [vmem:[%s1006_s23 + $0x118] sm:$0xf] }
  0x14   : > { %167 = vst [vmem:[%s136_s24 + $0x10] sm:$0xf] %v166_v4  ;;  %v180_v11 = vld [vmem:[%s1006_s23 + $0x134] sm:$0xf]  ;;  %v182_v12 = vld [vmem:[%s1006_s23 + $0x150] sm:$0xf] }
  0x15   : > { %169 = vst [vmem:[%s136_s24 + $0x14] sm:$0xf] %v168_v5  ;;  %v184_v13 = vld [vmem:[%s1006_s23 + $0x16c] sm:$0xf]  ;;  %v186_v14 = vld [vmem:[%s1006_s23 + $0x188] sm:$0xf] }
  0x16   : > { %171 = vst [vmem:[%s136_s24 + $0x18] sm:$0xf] %v170_v6  ;;  %v188_v15 = vld [vmem:[%s1006_s23 + $0x1a4] sm:$0xf] }
  0x17   : > { %173 = vst [vmem:[%s136_s24 + $0x1c] sm:$0xf] %v172_v7 }
  0x18   : > { %175 = vst [vmem:[%s136_s24 + $0x20] sm:$0xf] %v174_v8 }
  0x19   : > { %177 = vst [vmem:[%s136_s24 + $0x24] sm:$0xf] %v176_v9 }
  0x1a   : > { %179 = vst [vmem:[%s136_s24 + $0x28] sm:$0xf] %v178_v10 }
  0x1b   : > { %181 = vst [vmem:[%s136_s24 + $0x2c] sm:$0xf] %v180_v11 }
  0x1c   : > { %183 = vst [vmem:[%s136_s24 + $0x30] sm:$0xf] %v182_v12 }
  0x1d   : > { %185 = vst [vmem:[%s136_s24 + $0x34] sm:$0xf] %v184_v13 }
  0x1e   : > { %187 = vst [vmem:[%s136_s24 + $0x38] sm:$0xf] %v186_v14 }
  0x1f   : > { %189 = vst [vmem:[%s136_s24 + $0x3c] sm:$0xf] %v188_v15 }
  0x20 PF: > { %p706_p6 = scmp.ge.s32.totalorder %s945_s13, 1  ;;  %p256_p7 = scmp.lt.s32.totalorder %s945_s13, 8 }
  0x22   : > { %p257_p8 = pnand %p706_p6, %p256_p7 }
  0x23   : > { %s263_s25 = sand.u32 (!%p257_p8), 1, %s929_s9   ;;  %s708_s26 = sshll.u32 (!%p257_p8), %s937_s11, 4 }
  0x24   : > { %260 = sbr.rel (%p257_p8) target bundleno = 267 (0x10b), region = 65  ;;  %s707_s27 = sshll.u32 (!%p257_p8), %s263_s25, 6 }
  0x25   : > { %p297_p9 = scmp.lt.s32.totalorder (!%p257_p8), %s708_s26, 111  ;;  %s1033_s4 = scalar_lea.vmem (!%p257_p8), [#allocation3], %s707_s27 }
  0x26   : > { %p710_p10 = scmp.ne.s32.totalorder (!%p257_p8), %s937_s11, 0 }
  0x29   : > { %s1102_s26 = smov (!%p297_p9, %s708_s26), 111  ;;  %317 = sbr.rel (%p710_p10) target bundleno = 63 (0x3f), region = 73 }
  0x2a   : > { %s709_s28 = sshll.u32 %s1102_s26, 2 }
  0x2b   : > { %s1031_s3 = scalar_lea.vmem %s1093_s1, %s709_s28 }
  0x2e   : > { %v947_v16 = vmov 0.0  }
  0x2f   : > { %318 = vst [vmem:[#allocation2 + $0x30] sm:$0xff] %v947_v16 }
  0x30   : > { %319 = vst [vmem:[#allocation2] sm:$0xff] %v947_v16 }
  0x31   : > { %320 = vst [vmem:[#allocation2 + $0x58] sm:$0xff] %v947_v16 }
  0x32   : > { %321 = vst [vmem:[#allocation2 + $0x18] sm:$0xff] %v947_v16 }
  0x33   : > { %322 = vst [vmem:[#allocation2 + $0x50] sm:$0xff] %v947_v16 }
  0x34   : > { %323 = vst [vmem:[#allocation2 + $0x68] sm:$0xff] %v947_v16 }
  0x35   : > { %324 = vst [vmem:[#allocation2 + $0x8] sm:$0xff] %v947_v16 }
  0x36   : > { %325 = vst [vmem:[#allocation2 + $0x48] sm:$0xff] %v947_v16 }
  0x37   : > { %326 = vst [vmem:[#allocation2 + $0x40] sm:$0xff] %v947_v16 }
  0x38   : > { %327 = vst [vmem:[#allocation2 + $0x20] sm:$0xff] %v947_v16 }
  0x39   : > { %328 = vst [vmem:[#allocation2 + $0x10] sm:$0xff] %v947_v16 }
  0x3a   : > { %329 = vst [vmem:[#allocation2 + $0x38] sm:$0xff] %v947_v16 }
  0x3b   : > { %330 = vst [vmem:[#allocation2 + $0x60] sm:$0xff] %v947_v16 }
  0x3c   : > { %331 = vst [vmem:[#allocation2 + $0x70] sm:$0xff] %v947_v16 }
  0x3d   : > { %332 = vst [vmem:[#allocation2 + $0x78] sm:$0xff] %v947_v16 }
  0x3e   : > { %333 = vst [vmem:[#allocation2 + $0x28] sm:$0xff] %v947_v16 }
  0x3f PF: > { %v755_v17 = vld [vmem:[%s1031_s3 + $0x38] sm:$0xff]  ;;  %v754_v18 = vld [vmem:[%s1031_s3 + $0x30] sm:$0xff]  ;;  %v753_v19 = vld [vmem:[%s1031_s3 + $0x28] sm:$0xff]  ;;  %p743_p11 = scmp.ne.s32.totalorder %s937_s11, 6 }
  0x40   : > { %470 = vmatpush.bf16.msra.mxu0 %v755_v17  ;;  %842 = vmatpush.bf16.msra.mxu1 %v755_v17  ;;  %v752_v20 = vld [vmem:[%s1031_s3 + $0x20] sm:$0xff]  ;;  %v751_v21 = vld [vmem:[%s1031_s3 + $0x18] sm:$0xff]  ;;  %v750_v22 = vld [vmem:[%s1031_s3 + $0x10] sm:$0xff] }
  0x41   : > { %843 = vmatpush.bf16.msra.mxu2 %v755_v17  ;;  %844 = vmatpush.bf16.msra.mxu3 %v755_v17  ;;  %v757_v23 = vld [vmem:[%s1033_s4] sm:$0xff]   ;;  %v829_v24 = vld [vmem:[%s1033_s4 + $0x10] sm:$0xff]   ;;  %v749_v31 = vld [vmem:[%s1031_s3 + $0x8] sm:$0xff] }
  0x42   : > { %v831_v25 = vld [vmem:[%s1033_s4 + $0x20] sm:$0xff]   ;;  %v833_v26 = vld [vmem:[%s1033_s4 + $0x30] sm:$0xff]   ;;  %v758_v27 = vunpack.c.l.bf16 %v757_v23  ;;  %v759_v28 = vunpack.c.h.bf16 %v757_v23  ;;  %v766_v29 = vunpack.c.l.bf16 %v829_v24  ;;  %v767_v30 = vunpack.c.h.bf16 %v829_v24  ;;  %v828_v49 = vld [vmem:[%s1033_s4 + $0x8] sm:$0xff]  }
  0x43   : > { %v774_v32 = vunpack.c.l.bf16 %v831_v25  ;;  %v775_v33 = vunpack.c.h.bf16 %v831_v25  ;;  %v782_v34 = vunpack.c.l.bf16 %v833_v26  ;;  %v783_v35 = vunpack.c.h.bf16 %v833_v26  ;;  %v748_v40 = vld [vmem:[%s1031_s3] sm:$0xff]  ;;  %v830_v50 = vld [vmem:[%s1033_s4 + $0x18] sm:$0xff]   ;;  %v832_v51 = vld [vmem:[%s1033_s4 + $0x28] sm:$0xff]  }
  0x44   : > { %471 = vmatpush.bf16.msra.mxu0 %v754_v18  ;;  %845 = vmatpush.bf16.msra.mxu1 %v754_v18  ;;  %v366_v36 = vmax.f32 %v758_v27, 0.0  ;;  %v367_v37 = vmax.f32 %v759_v28, 0.0  ;;  %v370_v38 = vmax.f32 %v766_v29, 0.0  ;;  %v371_v39 = vmax.f32 %v767_v30, 0.0  ;;  %v834_v52 = vld [vmem:[%s1033_s4 + $0x38] sm:$0xff]   ;;  %v390_v9 = vld [vmem:[#allocation2 + $0x30] sm:$0xff] }
  0x45   : > { %846 = vmatpush.bf16.msra.mxu2 %v754_v18  ;;  %847 = vmatpush.bf16.msra.mxu3 %v754_v18  ;;  %v374_v41 = vmax.f32 %v774_v32, 0.0  ;;  %v375_v42 = vmax.f32 %v775_v33, 0.0  ;;  %v378_v43 = vmax.f32 %v782_v34, 0.0  ;;  %v379_v44 = vmax.f32 %v783_v35, 0.0  ;;  %v394_v10 = vld [vmem:[#allocation2 + $0x50] sm:$0xff]  ;;  %v398_v15 = vld [vmem:[#allocation2 + $0x40] sm:$0xff] }
  0x46   : > { %v382_v45 = vpack.c.bf16 %v367_v37, %v366_v36  ;;  %v384_v46 = vpack.c.bf16 %v371_v39, %v370_v38  ;;  %v762_v53 = vunpack.c.l.bf16 %v828_v49  ;;  %v763_v54 = vunpack.c.h.bf16 %v828_v49  ;;  %v402_v16 = vld [vmem:[#allocation2 + $0x60] sm:$0xff]  ;;  %v395_v18 = vld [vmem:[#allocation2 + $0x68] sm:$0xff]  ;;  %v403_v28 = vld [vmem:[#allocation2 + $0x70] sm:$0xff] }
  0x47   : > { %v386_v47 = vpack.c.bf16 %v375_v42, %v374_v41  ;;  %v388_v48 = vpack.c.bf16 %v379_v44, %v378_v43  ;;  %v770_v55 = vunpack.c.l.bf16 %v830_v50  ;;  %v771_v56 = vunpack.c.h.bf16 %v830_v50  ;;  %v391_v17 = vld [vmem:[#allocation2] sm:$0xff]  ;;  %v392_v29 = vld [vmem:[#allocation2 + $0x58] sm:$0xff]  ;;  %v396_v30 = vld [vmem:[#allocation2 + $0x8] sm:$0xff] }
  0x48   : > { %472 = vmatpush.bf16.msra.mxu0 %v753_v19  ;;  %848 = vmatpush.bf16.msra.mxu1 %v753_v19  ;;  %v778_v57 = vunpack.c.l.bf16 %v832_v51  ;;  %v779_v58 = vunpack.c.h.bf16 %v832_v51  ;;  %v786_v59 = vunpack.c.l.bf16 %v834_v52  ;;  %v787_v60 = vunpack.c.h.bf16 %v834_v52  ;;  %v399_v27 = vld [vmem:[#allocation2 + $0x20] sm:$0xff]  ;;  %v400_v39 = vld [vmem:[#allocation2 + $0x10] sm:$0xff]  ;;  %v393_v41 = vld [vmem:[#allocation2 + $0x18] sm:$0xff] }
  0x49   : > { %849 = vmatpush.bf16.msra.mxu2 %v753_v19  ;;  %850 = vmatpush.bf16.msra.mxu3 %v753_v19  ;;  %v368_v61 = vmax.f32 %v762_v53, 0.0  ;;  %v369_v62 = vmax.f32 %v763_v54, 0.0  ;;  %v372_v63 = vmax.f32 %v770_v55, 0.0  ;;  %v373_v0 = vmax.f32 %v771_v56, 0.0  ;;  %v397_v42 = vld [vmem:[#allocation2 + $0x48] sm:$0xff]  ;;  %v401_v51 = vld [vmem:[#allocation2 + $0x38] sm:$0xff] }
  0x4a   : > { %v376_v1 = vmax.f32 %v778_v57, 0.0  ;;  %v377_v2 = vmax.f32 %v779_v58, 0.0  ;;  %v380_v3 = vmax.f32 %v786_v59, 0.0  ;;  %v381_v4 = vmax.f32 %v787_v60, 0.0  ;;  %v405_v52 = vld [vmem:[#allocation2 + $0x28] sm:$0xff] }
  0x4b   : > { %v383_v5 = vpack.c.bf16 %v369_v62, %v368_v61  ;;  %v385_v6 = vpack.c.bf16 %v373_v0, %v372_v63 }
  0x4c   : > { %473 = vmatpush.bf16.msra.mxu0 %v752_v20  ;;  %851 = vmatpush.bf16.msra.mxu1 %v752_v20  ;;  %v387_v7 = vpack.c.bf16 %v377_v2, %v376_v1  ;;  %v389_v8 = vpack.c.bf16 %v381_v4, %v380_v3 }
  0x4d   : > { %852 = vmatpush.bf16.msra.mxu2 %v752_v20  ;;  %853 = vmatpush.bf16.msra.mxu3 %v752_v20 }
  0x50   : > { %474 = vmatpush.bf16.msra.mxu0 %v751_v21  ;;  %854 = vmatpush.bf16.msra.mxu1 %v751_v21 }
  0x51   : > { %855 = vmatpush.bf16.msra.mxu2 %v751_v21  ;;  %856 = vmatpush.bf16.msra.mxu3 %v751_v21 }
  0x54   : > { %475 = vmatpush.bf16.msra.mxu0 %v750_v22  ;;  %857 = vmatpush.bf16.msra.mxu1 %v750_v22 }
  0x55   : > { %858 = vmatpush.bf16.msra.mxu2 %v750_v22  ;;  %859 = vmatpush.bf16.msra.mxu3 %v750_v22 }
  0x58   : > { %476 = vmatpush.bf16.msra.mxu0 %v749_v31  ;;  %860 = vmatpush.bf16.msra.mxu1 %v749_v31 }
  0x59   : > { %861 = vmatpush.bf16.msra.mxu2 %v749_v31  ;;  %862 = vmatpush.bf16.msra.mxu3 %v749_v31 }
  0x5c   : > { %477 = vmatpush.bf16.msra.mxu0 %v748_v40  ;;  %863 = vmatpush.bf16.msra.mxu1 %v748_v40 }
  0x5d   : > { %864 = vmatpush.bf16.msra.mxu2 %v748_v40  ;;  %865 = vmatpush.bf16.msra.mxu3 %v748_v40  ;;  %v404_v40 = vld [vmem:[#allocation2 + $0x78] sm:$0xff] }
  0x5f   : > { %478 = vmatmul.bf16.vlgmr.msra.gmra.mxu0 %v382_v45  ;;  %488 = vmatmul.bf16.vlgmr.msra.gmra.mxu1 %v384_v46 }
  0x60   : > { %498 = vmatmul.bf16.vlgmr.msra.gmra.mxu2 %v386_v47  ;;  %508 = vmatmul.bf16.vlgmr.msra.gmra.mxu3 %v388_v48 }
  0x6f   : > { %483 = vmatmul.bf16.gmra.mxu0 %v383_v5  ;;  %493 = vmatmul.bf16.gmra.mxu1 %v385_v6 }
  0x70   : > { %503 = vmatmul.bf16.gmra.mxu2 %v387_v7  ;;  %513 = vmatmul.bf16.gmra.mxu3 %v389_v8 }
  0xdc   : > { %v479_v11 = vpop.f32.mrf.mxu0  ;;  %v489_v12 = vpop.f32.mrf.mxu1 }
  0xdd   : > { %v519_v13 = vadd.f32 %v479_v11, %v390_v9  ;;  %v523_v14 = vadd.f32 %v489_v12, %v394_v10 }
  0xdf   : > { %535 = vst [vmem:[#allocation2 + $0x30] sm:$0xff] %v519_v13 }
  0xe0   : > { %539 = vst [vmem:[#allocation2 + $0x50] sm:$0xff] %v523_v14 }
  0xe3   : > { %v499_v19 = vpop.f32.mrf.mxu2  ;;  %v509_v20 = vpop.f32.mrf.mxu3 }
  0xe4   : > { %v527_v21 = vadd.f32 %v499_v19, %v398_v15  ;;  %v531_v22 = vadd.f32 %v509_v20, %v402_v16  ;;  %v481_v23 = vpop.f32.mrf.mxu0  ;;  %v491_v24 = vpop.f32.mrf.mxu1 }
  0xe5   : > { %v520_v25 = vadd.f32 %v481_v23, %v391_v17  ;;  %v524_v26 = vadd.f32 %v491_v24, %v395_v18 }
  0xe6   : > { %543 = vst [vmem:[#allocation2 + $0x40] sm:$0xff] %v527_v21 }
  0xe7   : > { %547 = vst [vmem:[#allocation2 + $0x60] sm:$0xff] %v531_v22 }
  0xe8   : > { %536 = vst [vmem:[#allocation2] sm:$0xff] %v520_v25 }
  0xe9   : > { %540 = vst [vmem:[#allocation2 + $0x68] sm:$0xff] %v524_v26 }
  0xeb   : > { %v501_v31 = vpop.f32.mrf.mxu2  ;;  %v511_v32 = vpop.f32.mrf.mxu3 }
  0xec   : > { %v528_v33 = vadd.f32 %v501_v31, %v399_v27  ;;  %v532_v34 = vadd.f32 %v511_v32, %v403_v28  ;;  %v484_v35 = vpop.f32.mrf.mxu0  ;;  %v494_v36 = vpop.f32.mrf.mxu1 }
  0xed   : > { %v521_v37 = vadd.f32 %v484_v35, %v392_v29  ;;  %v525_v38 = vadd.f32 %v494_v36, %v396_v30 }
  0xee   : > { %544 = vst [vmem:[#allocation2 + $0x20] sm:$0xff] %v528_v33 }
  0xef   : > { %548 = vst [vmem:[#allocation2 + $0x70] sm:$0xff] %v532_v34 }
  0xf0   : > { %537 = vst [vmem:[#allocation2 + $0x58] sm:$0xff] %v521_v37 }
  0xf1   : > { %541 = vst [vmem:[#allocation2 + $0x8] sm:$0xff] %v525_v38 }
  0xf3   : > { %v504_v43 = vpop.f32.mrf.mxu2  ;;  %v514_v44 = vpop.f32.mrf.mxu3 }
  0xf4   : > { %v529_v45 = vadd.f32 %v504_v43, %v400_v39  ;;  %v533_v46 = vadd.f32 %v514_v44, %v404_v40  ;;  %v486_v47 = vpop.f32.mrf.mxu0  ;;  %v496_v48 = vpop.f32.mrf.mxu1 }
  0xf5   : > { %v522_v49 = vadd.f32 %v486_v47, %v393_v41  ;;  %v526_v50 = vadd.f32 %v496_v48, %v397_v42 }
  0xf6   : > { %545 = vst [vmem:[#allocation2 + $0x10] sm:$0xff] %v529_v45 }
  0xf7   : > { %549 = vst [vmem:[#allocation2 + $0x78] sm:$0xff] %v533_v46 }
  0xf8   : > { %538 = vst [vmem:[#allocation2 + $0x18] sm:$0xff] %v522_v49 }
  0xf9   : > { %542 = vst [vmem:[#allocation2 + $0x48] sm:$0xff] %v526_v50 }
  0xfb   : > { %v506_v53 = vpop.f32.mrf.mxu2  ;;  %v516_v54 = vpop.f32.mrf.mxu3  ;;  %554 = sbr.rel (%p743_p11) target bundleno = 267 (0x10b), region = 77 }
  0xfc   : > { %v530_v55 = vadd.f32 %v506_v53, %v401_v51  ;;  %v534_v56 = vadd.f32 %v516_v54, %v405_v52 }
  0xfe   : > { %546 = vst [vmem:[#allocation2 + $0x38] sm:$0xff] %v530_v55 }
  0xff   : > { %550 = vst [vmem:[#allocation2 + $0x28] sm:$0xff] %v534_v56 }
 0x100   : > { %v555_v57 = vld [vmem:[#allocation2 + $0x30] sm:$0xff]  ;;  %v556_v58 = vld [vmem:[#allocation2] sm:$0xff]  ;;  %v557_v59 = vld [vmem:[#allocation2 + $0x58] sm:$0xff] }
 0x101   : > { %v791_v60 = vpack.c.bf16 %v556_v58, %v555_v57  ;;  %v558_v61 = vld [vmem:[#allocation2 + $0x18] sm:$0xff]  ;;  %v559_v62 = vld [vmem:[#allocation2 + $0x50] sm:$0xff]  ;;  %v560_v63 = vld [vmem:[#allocation2 + $0x68] sm:$0xff] }
 0x102   : > { %v796_v0 = vpack.c.bf16 %v558_v61, %v557_v59  ;;  %v801_v1 = vpack.c.bf16 %v560_v63, %v559_v62  ;;  %v561_v2 = vld [vmem:[#allocation2 + $0x8] sm:$0xff]  ;;  %v563_v4 = vld [vmem:[#allocation2 + $0x40] sm:$0xff]  ;;  %v565_v7 = vld [vmem:[#allocation2 + $0x10] sm:$0xff] }
 0x103   : > { %v562_v3 = vld [vmem:[#allocation2 + $0x48] sm:$0xff]  ;;  %792 = vst [vmem:[%s1094_s2] sm:$0xff] %v791_v60   ;;  %v564_v6 = vld [vmem:[#allocation2 + $0x20] sm:$0xff]  ;;  %v568_v12 = vld [vmem:[#allocation2 + $0x70] sm:$0xff] }
 0x104   : > { %v806_v5 = vpack.c.bf16 %v562_v3, %v561_v2  ;;  %835 = vst [vmem:[%s1094_s2 + $0x8] sm:$0xff] %v796_v0   ;;  %v811_v9 = vpack.c.bf16 %v564_v6, %v563_v4  ;;  %v567_v11 = vld [vmem:[#allocation2 + $0x60] sm:$0xff]  ;;  %v569_v13 = vld [vmem:[#allocation2 + $0x78] sm:$0xff] }
 0x105   : > { %v566_v8 = vld [vmem:[#allocation2 + $0x38] sm:$0xff]  ;;  %836 = vst [vmem:[%s1094_s2 + $0x10] sm:$0xff] %v801_v1   ;;  %v821_v14 = vpack.c.bf16 %v568_v12, %v567_v11 }
 0x106   : > { %v816_v10 = vpack.c.bf16 %v566_v8, %v565_v7  ;;  %v570_v15 = vld [vmem:[#allocation2 + $0x28] sm:$0xff]  ;;  %837 = vst [vmem:[%s1094_s2 + $0x18] sm:$0xff] %v806_v5  }
 0x107   : > { %v826_v16 = vpack.c.bf16 %v570_v15, %v569_v13  ;;  %838 = vst [vmem:[%s1094_s2 + $0x20] sm:$0xff] %v811_v9  }
 0x108   : > { %839 = vst [vmem:[%s1094_s2 + $0x28] sm:$0xff] %v816_v10  }
 0x109   : > { %840 = vst [vmem:[%s1094_s2 + $0x30] sm:$0xff] %v821_v14  }
 0x10a   : > { %841 = vst [vmem:[%s1094_s2 + $0x38] sm:$0xff] %v826_v16  }
 0x10b PF: > { %s12_s13 = sadd.s32 1, %s945_s13   ;;  %s1095_s9 = smov %s933_s10 }
 0x10c   : > { %p9_p12 = scmp.ge.s32.totalorder %s12_s13, 9   ;;  %s1096_s10 = smov %s998_s17 }
 0x10d   : > { %s1097_s11 = smov %s941_s12  ;;  %s1098_s12 = smov %s1100_s14 }
 0x10e   :  { %11 = sbr.rel (!%p9_p12) target bundleno = 3 (0x3), region = 115 }

// kernel: mfnet_forward.89
= control target key start
LH: loop header
LB: loop body
LE: loop exit
PB: predicated region body
PF: predicated region fallthrough
CT: control target
= control target key end

     0   :  { %s1335_s1 = inlined_call_operand.vmem [shape: bf16[512,128], index: 1, kind: input, shape index: {}]   ;;  %s1336_s0 = inlined_call_operand.vmem [shape: bf16[128,512], index: 0, kind: input, shape index: {}]   ;;  %s1337_s2 = inlined_call_operand.vmem [shape: bf16[128,128], index: 2, kind: input, shape index: {}]   ;;  %s1338_s3 = inlined_call_operand.vmem [shape: bf16[128,128], index: 3, kind: output, shape index: {}]  }
   0x1   :  { %v964_v0 = vld [vmem:[%s1335_s1 + $0x38] sm:$0xff]  ;;  %v963_v4 = vld [vmem:[%s1335_s1 + $0x30] sm:$0xff]  ;;  %v962_v8 = vld [vmem:[%s1335_s1 + $0x28] sm:$0xff] }
   0x2   :  { %v972_v1 = vld [vmem:[%s1335_s1 + $0x78] sm:$0xff]  ;;  %498 = vmatpush.bf16.msra.mxu0 %v964_v0  ;;  %v971_v5 = vld [vmem:[%s1335_s1 + $0x70] sm:$0xff]  ;;  %v970_v9 = vld [vmem:[%s1335_s1 + $0x68] sm:$0xff] }
   0x3   :  { %v980_v2 = vld [vmem:[%s1335_s1 + $0xb8] sm:$0xff]  ;;  %547 = vmatpush.bf16.msra.mxu1 %v972_v1  ;;  %v979_v6 = vld [vmem:[%s1335_s1 + $0xb0] sm:$0xff]  ;;  %v978_v10 = vld [vmem:[%s1335_s1 + $0xa8] sm:$0xff] }
   0x4   :  { %v988_v3 = vld [vmem:[%s1335_s1 + $0xf8] sm:$0xff]  ;;  %596 = vmatpush.bf16.msra.mxu2 %v980_v2  ;;  %v987_v7 = vld [vmem:[%s1335_s1 + $0xf0] sm:$0xff]  ;;  %v986_v11 = vld [vmem:[%s1335_s1 + $0xe8] sm:$0xff] }
   0x5   :  { %645 = vmatpush.bf16.msra.mxu3 %v988_v3  ;;  %v961_v12 = vld [vmem:[%s1335_s1 + $0x20] sm:$0xff]  ;;  %v960_v16 = vld [vmem:[%s1335_s1 + $0x18] sm:$0xff]  ;;  %v959_v20 = vld [vmem:[%s1335_s1 + $0x10] sm:$0xff] }
   0x6   :  { %499 = vmatpush.bf16.msra.mxu0 %v963_v4  ;;  %v969_v13 = vld [vmem:[%s1335_s1 + $0x60] sm:$0xff]  ;;  %v968_v17 = vld [vmem:[%s1335_s1 + $0x58] sm:$0xff]  ;;  %v967_v21 = vld [vmem:[%s1335_s1 + $0x50] sm:$0xff] }
   0x7   :  { %548 = vmatpush.bf16.msra.mxu1 %v971_v5  ;;  %v977_v14 = vld [vmem:[%s1335_s1 + $0xa0] sm:$0xff]  ;;  %v976_v18 = vld [vmem:[%s1335_s1 + $0x98] sm:$0xff]  ;;  %v975_v22 = vld [vmem:[%s1335_s1 + $0x90] sm:$0xff] }
   0x8   :  { %597 = vmatpush.bf16.msra.mxu2 %v979_v6  ;;  %v985_v15 = vld [vmem:[%s1335_s1 + $0xe0] sm:$0xff]  ;;  %v984_v19 = vld [vmem:[%s1335_s1 + $0xd8] sm:$0xff]  ;;  %v36_v24 = vld [vmem:[%s1336_s0 + $0x10] sm:$0xff] }
   0x9   :  { %646 = vmatpush.bf16.msra.mxu3 %v987_v7  ;;  %v34_v23 = vld [vmem:[%s1336_s0] sm:$0xff]  ;;  %v983_v25 = vld [vmem:[%s1335_s1 + $0xd0] sm:$0xff]  ;;  %v35_v26 = vld [vmem:[%s1336_s0 + $0x8] sm:$0xff]  ;;  %v70_v29 = vunpack.c.l.bf16 %v36_v24  ;;  %v71_v31 = vunpack.c.h.bf16 %v36_v24 }
   0xa   :  { %500 = vmatpush.bf16.msra.mxu0 %v962_v8  ;;  %v37_v27 = vld [vmem:[%s1336_s0 + $0x18] sm:$0xff]  ;;  %v66_v28 = vunpack.c.l.bf16 %v34_v23  ;;  %v67_v30 = vunpack.c.h.bf16 %v34_v23  ;;  %v958_v32 = vld [vmem:[%s1335_s1 + $0x8] sm:$0xff]  ;;  %v68_v34 = vunpack.c.l.bf16 %v35_v26  ;;  %v69_v36 = vunpack.c.h.bf16 %v35_v26  ;;  %v957_v44 = vld [vmem:[%s1335_s1] sm:$0xff] }
   0xb   :  { %549 = vmatpush.bf16.msra.mxu1 %v970_v9  ;;  %v966_v33 = vld [vmem:[%s1335_s1 + $0x48] sm:$0xff]  ;;  %v72_v35 = vunpack.c.l.bf16 %v37_v27  ;;  %v73_v37 = vunpack.c.h.bf16 %v37_v27  ;;  %v134_v41 = vmax.f32 %v70_v29, 0.0  ;;  %v135_v43 = vmax.f32 %v71_v31, 0.0  ;;  %v965_v45 = vld [vmem:[%s1335_s1 + $0x40] sm:$0xff]  ;;  %v40_v57 = vld [vmem:[%s1336_s0 + $0x30] sm:$0xff] }
   0xc   :  { %598 = vmatpush.bf16.msra.mxu2 %v978_v10  ;;  %v974_v38 = vld [vmem:[%s1335_s1 + $0x88] sm:$0xff]  ;;  %v130_v40 = vmax.f32 %v66_v28, 0.0  ;;  %v131_v42 = vmax.f32 %v67_v30, 0.0  ;;  %v132_v46 = vmax.f32 %v68_v34, 0.0  ;;  %v133_v48 = vmax.f32 %v69_v36, 0.0  ;;  %v973_v50 = vld [vmem:[%s1335_s1 + $0x80] sm:$0xff] }
   0xd   :  { %647 = vmatpush.bf16.msra.mxu3 %v986_v11  ;;  %v982_v39 = vld [vmem:[%s1335_s1 + $0xc8] sm:$0xff]  ;;  %v136_v47 = vmax.f32 %v72_v35, 0.0  ;;  %v137_v49 = vmax.f32 %v73_v37, 0.0  ;;  %v981_v51 = vld [vmem:[%s1335_s1 + $0xc0] sm:$0xff]  ;;  %v41_v59 = vld [vmem:[%s1336_s0 + $0x38] sm:$0xff]  ;;  %v78_v61 = vunpack.c.l.bf16 %v40_v57  ;;  %v79_v63 = vunpack.c.h.bf16 %v40_v57 }
   0xe   :  { %501 = vmatpush.bf16.msra.mxu0 %v961_v12  ;;  %v194_v52 = vpack.c.bf16 %v134_v41, %v130_v40  ;;  %v195_v53 = vpack.c.bf16 %v135_v43, %v131_v42  ;;  %v38_v56 = vld [vmem:[%s1336_s0 + $0x20] sm:$0xff]  ;;  %v39_v58 = vld [vmem:[%s1336_s0 + $0x28] sm:$0xff]  ;;  %v80_v1 = vunpack.c.l.bf16 %v41_v59  ;;  %v81_v3 = vunpack.c.h.bf16 %v41_v59  ;;  %v48_v41 = vld [vmem:[%s1336_s0 + $0x70] sm:$0xff] }
   0xf   :  { %550 = vmatpush.bf16.msra.mxu1 %v969_v13  ;;  %v196_v54 = vpack.c.bf16 %v136_v47, %v132_v46  ;;  %v197_v55 = vpack.c.bf16 %v137_v49, %v133_v48  ;;  %v74_v60 = vunpack.c.l.bf16 %v38_v56  ;;  %v75_v62 = vunpack.c.h.bf16 %v38_v56  ;;  %v46_v40 = vld [vmem:[%s1336_s0 + $0x60] sm:$0xff]  ;;  %v47_v42 = vld [vmem:[%s1336_s0 + $0x68] sm:$0xff]  ;;  %v49_v43 = vld [vmem:[%s1336_s0 + $0x78] sm:$0xff] }
  0x10   :  { %599 = vmatpush.bf16.msra.mxu2 %v977_v14  ;;  %v76_v0 = vunpack.c.l.bf16 %v39_v58  ;;  %v77_v2 = vunpack.c.h.bf16 %v39_v58  ;;  %v142_v5 = vmax.f32 %v78_v61, 0.0  ;;  %v143_v7 = vmax.f32 %v79_v63, 0.0 }
  0x11   :  { %648 = vmatpush.bf16.msra.mxu3 %v985_v15  ;;  %v138_v4 = vmax.f32 %v74_v60, 0.0  ;;  %v139_v6 = vmax.f32 %v75_v62, 0.0  ;;  %v144_v9 = vmax.f32 %v80_v1, 0.0  ;;  %v145_v11 = vmax.f32 %v81_v3, 0.0  ;;  %v52_v1 = vld [vmem:[%s1336_s0 + $0x90] sm:$0xff]  ;;  %v53_v3 = vld [vmem:[%s1336_s0 + $0x98] sm:$0xff] }
  0x12   :  { %502 = vmatpush.bf16.msra.mxu0 %v960_v16  ;;  %v140_v8 = vmax.f32 %v76_v0, 0.0  ;;  %v141_v10 = vmax.f32 %v77_v2, 0.0  ;;  %v42_v16 = vld [vmem:[%s1336_s0 + $0x40] sm:$0xff]  ;;  %v91_v46 = vunpack.c.h.bf16 %v46_v40  ;;  %v95_v47 = vunpack.c.h.bf16 %v48_v41  ;;  %v51_v2 = vld [vmem:[%s1336_s0 + $0x88] sm:$0xff] }
  0x13   :  { %551 = vmatpush.bf16.msra.mxu1 %v968_v17  ;;  %v198_v12 = vpack.c.bf16 %v142_v5, %v138_v4  ;;  %v199_v13 = vpack.c.bf16 %v143_v7, %v139_v6  ;;  %v44_v17 = vld [vmem:[%s1336_s0 + $0x50] sm:$0xff]  ;;  %v92_v48 = vunpack.c.l.bf16 %v47_v42  ;;  %v96_v49 = vunpack.c.l.bf16 %v49_v43  ;;  %v50_v0 = vld [vmem:[%s1336_s0 + $0x80] sm:$0xff] }
  0x14   :  { %600 = vmatpush.bf16.msra.mxu2 %v976_v18  ;;  %v200_v14 = vpack.c.bf16 %v144_v9, %v140_v8  ;;  %v201_v15 = vpack.c.bf16 %v145_v11, %v141_v10  ;;  %v43_v18 = vld [vmem:[%s1336_s0 + $0x48] sm:$0xff]  ;;  %v87_v23 = vunpack.c.h.bf16 %v44_v17  ;;  %v98_v4 = vunpack.c.l.bf16 %v50_v0 }
  0x15   :  { %649 = vmatpush.bf16.msra.mxu3 %v984_v19  ;;  %v45_v19 = vld [vmem:[%s1336_s0 + $0x58] sm:$0xff]  ;;  %v84_v24 = vunpack.c.l.bf16 %v43_v18  ;;  %v85_v26 = vunpack.c.h.bf16 %v43_v18  ;;  %v156_v56 = vmax.f32 %v92_v48, 0.0  ;;  %v160_v57 = vmax.f32 %v96_v49, 0.0  ;;  %v58_v48 = vld [vmem:[%s1336_s0 + $0xc0] sm:$0xff]  ;;  %v60_v49 = vld [vmem:[%s1336_s0 + $0xd0] sm:$0xff] }
  0x16   :  { %503 = vmatpush.bf16.msra.mxu0 %v959_v20  ;;  %v82_v20 = vunpack.c.l.bf16 %v42_v16  ;;  %v89_v27 = vunpack.c.h.bf16 %v45_v19  ;;  %v151_v31 = vmax.f32 %v87_v23, 0.0  ;;  %v102_v5 = vunpack.c.l.bf16 %v52_v1 }
  0x17   :  { %552 = vmatpush.bf16.msra.mxu1 %v967_v21  ;;  %v86_v21 = vunpack.c.l.bf16 %v44_v17  ;;  %v149_v34 = vmax.f32 %v85_v26, 0.0  ;;  %v208_v62 = vpack.c.bf16 %v160_v57, %v156_v56  ;;  %v99_v6 = vunpack.c.h.bf16 %v50_v0  ;;  %v55_v26 = vld [vmem:[%s1336_s0 + $0xa8] sm:$0xff] }
  0x18   :  { %601 = vmatpush.bf16.msra.mxu2 %v975_v22  ;;  %v83_v22 = vunpack.c.h.bf16 %v42_v16  ;;  %v146_v28 = vmax.f32 %v82_v20, 0.0  ;;  %v153_v35 = vmax.f32 %v89_v27, 0.0  ;;  %v103_v7 = vunpack.c.h.bf16 %v52_v1  ;;  %v57_v27 = vld [vmem:[%s1336_s0 + $0xb8] sm:$0xff] }
  0x19   :  { %650 = vmatpush.bf16.msra.mxu3 %v983_v25  ;;  %v88_v25 = vunpack.c.l.bf16 %v45_v19  ;;  %v150_v29 = vmax.f32 %v86_v21, 0.0  ;;  %v100_v8 = vunpack.c.l.bf16 %v51_v2  ;;  %v104_v9 = vunpack.c.l.bf16 %v53_v3 }
  0x1a   :  { %504 = vmatpush.bf16.msra.mxu0 %v958_v32  ;;  %v147_v30 = vmax.f32 %v83_v22, 0.0  ;;  %v148_v32 = vmax.f32 %v84_v24, 0.0  ;;  %v101_v10 = vunpack.c.h.bf16 %v51_v2  ;;  %v105_v11 = vunpack.c.h.bf16 %v53_v3  ;;  %v54_v24 = vld [vmem:[%s1336_s0 + $0xa0] sm:$0xff] }
  0x1b   :  { %553 = vmatpush.bf16.msra.mxu1 %v966_v33  ;;  %v152_v33 = vmax.f32 %v88_v25, 0.0  ;;  %v202_v36 = vpack.c.bf16 %v150_v29, %v146_v28  ;;  %v164_v16 = vmax.f32 %v100_v8, 0.0  ;;  %v168_v17 = vmax.f32 %v104_v9, 0.0  ;;  %v56_v25 = vld [vmem:[%s1336_s0 + $0xb0] sm:$0xff]  ;;  %v62_v8 = vld [vmem:[%s1336_s0 + $0xe0] sm:$0xff] }
  0x1c   :  { %602 = vmatpush.bf16.msra.mxu2 %v974_v38  ;;  %v203_v37 = vpack.c.bf16 %v151_v31, %v147_v30  ;;  %v165_v18 = vmax.f32 %v101_v10, 0.0  ;;  %v169_v19 = vmax.f32 %v105_v11, 0.0  ;;  %v106_v28 = vunpack.c.l.bf16 %v54_v24  ;;  %v64_v9 = vld [vmem:[%s1336_s0 + $0xf0] sm:$0xff]  ;;  %v63_v10 = vld [vmem:[%s1336_s0 + $0xe8] sm:$0xff]  ;;  %v65_v11 = vld [vmem:[%s1336_s0 + $0xf8] sm:$0xff] }
  0x1d   :  { %651 = vmatpush.bf16.msra.mxu3 %v982_v39  ;;  %v204_v38 = vpack.c.bf16 %v152_v33, %v148_v32  ;;  %v205_v39 = vpack.c.bf16 %v153_v35, %v149_v34  ;;  %v212_v22 = vpack.c.bf16 %v168_v17, %v164_v16  ;;  %v110_v29 = vunpack.c.l.bf16 %v56_v25 }
  0x1e   :  { %505 = vmatpush.bf16.msra.mxu0 %v957_v44  ;;  %v90_v44 = vunpack.c.l.bf16 %v46_v40  ;;  %v213_v23 = vpack.c.bf16 %v169_v19, %v165_v18  ;;  %v107_v30 = vunpack.c.h.bf16 %v54_v24  ;;  %v111_v31 = vunpack.c.h.bf16 %v56_v25 }
  0x1f   :  { %554 = vmatpush.bf16.msra.mxu1 %v965_v45  ;;  %v94_v45 = vunpack.c.l.bf16 %v48_v41  ;;  %v108_v32 = vunpack.c.l.bf16 %v55_v26  ;;  %v112_v33 = vunpack.c.l.bf16 %v57_v27  ;;  %v109_v34 = vunpack.c.h.bf16 %v55_v26 }
  0x20   :  { %603 = vmatpush.bf16.msra.mxu2 %v973_v50  ;;  %v93_v50 = vunpack.c.h.bf16 %v47_v42  ;;  %v113_v35 = vunpack.c.h.bf16 %v57_v27  ;;  %v124_v16 = vunpack.c.l.bf16 %v63_v10  ;;  %v128_v17 = vunpack.c.l.bf16 %v65_v11 }
  0x21   :  { %652 = vmatpush.bf16.msra.mxu3 %v981_v51  ;;  %506 = vmatmul.bf16.vlgmr.msra.gmra.mxu0 %v194_v52  ;;  %v97_v51 = vunpack.c.h.bf16 %v49_v43  ;;  %v154_v52 = vmax.f32 %v90_v44, 0.0  ;;  %v172_v40 = vmax.f32 %v108_v32, 0.0  ;;  %v176_v41 = vmax.f32 %v112_v33, 0.0 }
  0x22   :  { %555 = vmatmul.bf16.vlgmr.msra.gmra.mxu1 %v195_v53  ;;  %v158_v53 = vmax.f32 %v94_v45, 0.0  ;;  %v157_v58 = vmax.f32 %v93_v50, 0.0  ;;  %v173_v42 = vmax.f32 %v109_v34, 0.0  ;;  %v177_v43 = vmax.f32 %v113_v35, 0.0  ;;  %v59_v50 = vld [vmem:[%s1336_s0 + $0xc8] sm:$0xff] }
  0x23   :  { %604 = vmatmul.bf16.vlgmr.msra.gmra.mxu2 %v196_v54  ;;  %v155_v54 = vmax.f32 %v91_v46, 0.0  ;;  %v161_v59 = vmax.f32 %v97_v51, 0.0  ;;  %v216_v46 = vpack.c.bf16 %v176_v41, %v172_v40  ;;  %v61_v51 = vld [vmem:[%s1336_s0 + $0xd8] sm:$0xff]  ;;  %v116_v56 = vunpack.c.l.bf16 %v59_v50  ;;  %v990_v40 = vld [vmem:[%s1337_s2] sm:$0xff]  }
  0x24   :  { %653 = vmatmul.bf16.vlgmr.msra.gmra.mxu3 %v197_v55  ;;  %v159_v55 = vmax.f32 %v95_v47, 0.0  ;;  %v206_v60 = vpack.c.bf16 %v158_v53, %v154_v52  ;;  %v217_v47 = vpack.c.bf16 %v177_v43, %v173_v42  ;;  %v114_v52 = vunpack.c.l.bf16 %v58_v48 }
  0x25   :  { %v209_v63 = vpack.c.bf16 %v161_v59, %v157_v58  ;;  %v118_v53 = vunpack.c.l.bf16 %v60_v49  ;;  %v120_v57 = vunpack.c.l.bf16 %v61_v51  ;;  %v117_v58 = vunpack.c.h.bf16 %v59_v50 }
  0x26   :  { %v207_v61 = vpack.c.bf16 %v159_v55, %v155_v54  ;;  %v115_v54 = vunpack.c.h.bf16 %v58_v48  ;;  %v119_v55 = vunpack.c.h.bf16 %v60_v49  ;;  %v121_v59 = vunpack.c.h.bf16 %v61_v51 }
  0x27   :  { %v180_v0 = vmax.f32 %v116_v56, 0.0  ;;  %v184_v1 = vmax.f32 %v120_v57, 0.0  ;;  %v181_v2 = vmax.f32 %v117_v58, 0.0  ;;  %v125_v18 = vunpack.c.h.bf16 %v63_v10 }
  0x28   :  { %v185_v3 = vmax.f32 %v121_v59, 0.0  ;;  %v129_v19 = vunpack.c.h.bf16 %v65_v11  ;;  %v188_v24 = vmax.f32 %v124_v16, 0.0  ;;  %v192_v25 = vmax.f32 %v128_v17, 0.0  ;;  %v1062_v16 = vld [vmem:[%s1337_s2 + $0x10] sm:$0xff]  }
  0x29   :  { %v189_v26 = vmax.f32 %v125_v18, 0.0 }
  0x2a   :  { %v193_v27 = vmax.f32 %v129_v19, 0.0 }
  0x31   :  { %511 = vmatmul.bf16.gmra.mxu0 %v198_v12  ;;  %v162_v12 = vmax.f32 %v98_v4, 0.0 }
  0x32   :  { %560 = vmatmul.bf16.gmra.mxu1 %v199_v13  ;;  %v166_v13 = vmax.f32 %v102_v5, 0.0 }
  0x33   :  { %609 = vmatmul.bf16.gmra.mxu2 %v200_v14  ;;  %v163_v14 = vmax.f32 %v99_v6, 0.0  ;;  %v220_v6 = vpack.c.bf16 %v184_v1, %v180_v0 }
  0x34   :  { %658 = vmatmul.bf16.gmra.mxu3 %v201_v15  ;;  %v167_v15 = vmax.f32 %v103_v7, 0.0  ;;  %v210_v20 = vpack.c.bf16 %v166_v13, %v162_v12  ;;  %v221_v7 = vpack.c.bf16 %v185_v3, %v181_v2  ;;  %v122_v12 = vunpack.c.l.bf16 %v62_v8 }
  0x35   :  { %v126_v13 = vunpack.c.l.bf16 %v64_v9 }
  0x36   :  { %v211_v21 = vpack.c.bf16 %v167_v15, %v163_v14  ;;  %v123_v14 = vunpack.c.h.bf16 %v62_v8  ;;  %v127_v15 = vunpack.c.h.bf16 %v64_v9 }
  0x41   :  { %516 = vmatmul.bf16.gmra.mxu0 %v202_v36  ;;  %v170_v36 = vmax.f32 %v106_v28, 0.0 }
  0x42   :  { %565 = vmatmul.bf16.gmra.mxu1 %v203_v37  ;;  %v174_v37 = vmax.f32 %v110_v29, 0.0 }
  0x43   :  { %614 = vmatmul.bf16.gmra.mxu2 %v204_v38  ;;  %v171_v38 = vmax.f32 %v107_v30, 0.0  ;;  %v224_v30 = vpack.c.bf16 %v192_v25, %v188_v24 }
  0x44   :  { %663 = vmatmul.bf16.gmra.mxu3 %v205_v39  ;;  %v175_v39 = vmax.f32 %v111_v31, 0.0  ;;  %v214_v44 = vpack.c.bf16 %v174_v37, %v170_v36  ;;  %v225_v31 = vpack.c.bf16 %v193_v27, %v189_v26 }
  0x46   :  { %v215_v45 = vpack.c.bf16 %v175_v39, %v171_v38 }
  0x51   :  { %521 = vmatmul.bf16.gmra.mxu0 %v206_v60  ;;  %v178_v60 = vmax.f32 %v114_v52, 0.0 }
  0x52   :  { %570 = vmatmul.bf16.gmra.mxu1 %v207_v61  ;;  %v182_v61 = vmax.f32 %v118_v53, 0.0 }
  0x53   :  { %619 = vmatmul.bf16.gmra.mxu2 %v208_v62  ;;  %v179_v62 = vmax.f32 %v115_v54, 0.0 }
  0x54   :  { %668 = vmatmul.bf16.gmra.mxu3 %v209_v63  ;;  %v183_v63 = vmax.f32 %v119_v55, 0.0  ;;  %v218_v4 = vpack.c.bf16 %v182_v61, %v178_v60  ;;  %v1061_v60 = vld [vmem:[%s1337_s2 + $0x8] sm:$0xff]  }
  0x55   :  { %v995_v1 = vunpack.c.l.bf16 %v1061_v60  ;;  %v996_v3 = vunpack.c.h.bf16 %v1061_v60 }
  0x56   :  { %v219_v5 = vpack.c.bf16 %v183_v63, %v179_v62 }
  0x61   :  { %526 = vmatmul.bf16.gmra.mxu0 %v210_v20  ;;  %v186_v20 = vmax.f32 %v122_v12, 0.0 }
  0x62   :  { %575 = vmatmul.bf16.gmra.mxu1 %v211_v21  ;;  %v190_v21 = vmax.f32 %v126_v13, 0.0 }
  0x63   :  { %624 = vmatmul.bf16.gmra.mxu2 %v212_v22  ;;  %v187_v22 = vmax.f32 %v123_v14, 0.0 }
  0x64   :  { %673 = vmatmul.bf16.gmra.mxu3 %v213_v23  ;;  %v191_v23 = vmax.f32 %v127_v15, 0.0  ;;  %v222_v28 = vpack.c.bf16 %v190_v21, %v186_v20  ;;  %v999_v21 = vunpack.c.l.bf16 %v1062_v16 }
  0x66   :  { %v223_v29 = vpack.c.bf16 %v191_v23, %v187_v22  ;;  %v1000_v23 = vunpack.c.h.bf16 %v1062_v16 }
  0x71   :  { %531 = vmatmul.bf16.gmra.mxu0 %v214_v44 }
  0x72   :  { %580 = vmatmul.bf16.gmra.mxu1 %v215_v45  ;;  %v991_v45 = vunpack.c.l.bf16 %v990_v40 }
  0x73   :  { %629 = vmatmul.bf16.gmra.mxu2 %v216_v46 }
  0x74   :  { %678 = vmatmul.bf16.gmra.mxu3 %v217_v47  ;;  %v992_v47 = vunpack.c.h.bf16 %v990_v40 }
  0x81   :  { %536 = vmatmul.bf16.gmra.mxu0 %v218_v4 }
  0x82   :  { %585 = vmatmul.bf16.gmra.mxu1 %v219_v5 }
  0x83   :  { %634 = vmatmul.bf16.gmra.mxu2 %v220_v6 }
  0x84   :  { %683 = vmatmul.bf16.gmra.mxu3 %v221_v7 }
  0x91   :  { %541 = vmatmul.bf16.gmra.mxu0 %v222_v28 }
  0x92   :  { %590 = vmatmul.bf16.gmra.mxu1 %v223_v29 }
  0x93   :  { %639 = vmatmul.bf16.gmra.mxu2 %v224_v30 }
  0x94   :  { %688 = vmatmul.bf16.gmra.mxu3 %v225_v31 }
  0x9e   :  { %v507_v32 = vpop.f32.mrf.mxu0 }
  0x9f   :  { %v556_v33 = vpop.f32.mrf.mxu1 }
  0xa0   :  { %v557_v36 = vadd.f32 %v556_v33, %v507_v32 }
  0xa6   :  { %v605_v34 = vpop.f32.mrf.mxu2  ;;  %v509_v37 = vpop.f32.mrf.mxu0 }
  0xa7   :  { %v654_v35 = vpop.f32.mrf.mxu3  ;;  %v558_v38 = vpop.f32.mrf.mxu1  ;;  %v606_v39 = vadd.f32 %v605_v34, %v557_v36  ;;  %v1063_v36 = vld [vmem:[%s1337_s2 + $0x18] sm:$0xff]  }
  0xa8   :  { %v559_v41 = vadd.f32 %v558_v38, %v509_v37 }
  0xa9   :  { %v655_v44 = vadd.f32 %v654_v35, %v606_v39 }
  0xab   :  { %v777_v51 = vadd.f32 %v991_v45, %v655_v44 }
  0xae   :  { %v607_v42 = vpop.f32.mrf.mxu2  ;;  %v512_v48 = vpop.f32.mrf.mxu0 }
  0xaf   :  { %v656_v43 = vpop.f32.mrf.mxu3  ;;  %v608_v46 = vadd.f32 %v607_v42, %v559_v41  ;;  %v561_v49 = vpop.f32.mrf.mxu1  ;;  %v1003_v41 = vunpack.c.l.bf16 %v1063_v36 }
  0xb0   :  { %v562_v56 = vadd.f32 %v561_v49, %v512_v48 }
  0xb1   :  { %v657_v50 = vadd.f32 %v656_v43, %v608_v46  ;;  %v1004_v43 = vunpack.c.h.bf16 %v1063_v36 }
  0xb3   :  { %v778_v52 = vadd.f32 %v992_v47, %v657_v50 }
  0xb5   :  { %v1024_v53 = vpack.c.bf16 %v778_v52, %v777_v51 }
  0xb6   :  { %v610_v54 = vpop.f32.mrf.mxu2  ;;  %v514_v57 = vpop.f32.mrf.mxu0 }
  0xb7   :  { %v659_v55 = vpop.f32.mrf.mxu3  ;;  %1025 = vst [vmem:[%s1338_s3] sm:$0xff] %v1024_v53   ;;  %v563_v58 = vpop.f32.mrf.mxu1  ;;  %v611_v59 = vadd.f32 %v610_v54, %v562_v56  ;;  %v1064_v56 = vld [vmem:[%s1337_s2 + $0x20] sm:$0xff]  }
  0xb8   :  { %v564_v61 = vadd.f32 %v563_v58, %v514_v57 }
  0xb9   :  { %v660_v0 = vadd.f32 %v659_v55, %v611_v59 }
  0xbb   :  { %v779_v7 = vadd.f32 %v995_v1, %v660_v0 }
  0xbe   :  { %v612_v62 = vpop.f32.mrf.mxu2  ;;  %v517_v4 = vpop.f32.mrf.mxu0 }
  0xbf   :  { %v661_v63 = vpop.f32.mrf.mxu3  ;;  %v613_v2 = vadd.f32 %v612_v62, %v564_v61  ;;  %v566_v5 = vpop.f32.mrf.mxu1  ;;  %v1007_v61 = vunpack.c.l.bf16 %v1064_v56 }
  0xc0   :  { %v567_v12 = vadd.f32 %v566_v5, %v517_v4 }
  0xc1   :  { %v662_v6 = vadd.f32 %v661_v63, %v613_v2  ;;  %v1008_v63 = vunpack.c.h.bf16 %v1064_v56 }
  0xc3   :  { %v780_v8 = vadd.f32 %v996_v3, %v662_v6 }
  0xc5   :  { %v1029_v9 = vpack.c.bf16 %v780_v8, %v779_v7 }
  0xc6   :  { %v615_v10 = vpop.f32.mrf.mxu2  ;;  %v519_v13 = vpop.f32.mrf.mxu0 }
  0xc7   :  { %v664_v11 = vpop.f32.mrf.mxu3  ;;  %1068 = vst [vmem:[%s1338_s3 + $0x8] sm:$0xff] %v1029_v9   ;;  %v568_v14 = vpop.f32.mrf.mxu1  ;;  %v616_v15 = vadd.f32 %v615_v10, %v567_v12  ;;  %v1065_v12 = vld [vmem:[%s1337_s2 + $0x28] sm:$0xff]  }
  0xc8   :  { %v569_v17 = vadd.f32 %v568_v14, %v519_v13 }
  0xc9   :  { %v665_v20 = vadd.f32 %v664_v11, %v616_v15 }
  0xcb   :  { %v781_v27 = vadd.f32 %v999_v21, %v665_v20 }
  0xce   :  { %v617_v18 = vpop.f32.mrf.mxu2  ;;  %v522_v24 = vpop.f32.mrf.mxu0 }
  0xcf   :  { %v666_v19 = vpop.f32.mrf.mxu3  ;;  %v618_v22 = vadd.f32 %v617_v18, %v569_v17  ;;  %v571_v25 = vpop.f32.mrf.mxu1  ;;  %v1011_v17 = vunpack.c.l.bf16 %v1065_v12 }
  0xd0   :  { %v572_v32 = vadd.f32 %v571_v25, %v522_v24 }
  0xd1   :  { %v667_v26 = vadd.f32 %v666_v19, %v618_v22  ;;  %v1012_v19 = vunpack.c.h.bf16 %v1065_v12 }
  0xd3   :  { %v782_v28 = vadd.f32 %v1000_v23, %v667_v26 }
  0xd5   :  { %v1034_v29 = vpack.c.bf16 %v782_v28, %v781_v27 }
  0xd6   :  { %v620_v30 = vpop.f32.mrf.mxu2  ;;  %v524_v33 = vpop.f32.mrf.mxu0 }
  0xd7   :  { %v669_v31 = vpop.f32.mrf.mxu3  ;;  %1069 = vst [vmem:[%s1338_s3 + $0x10] sm:$0xff] %v1034_v29   ;;  %v573_v34 = vpop.f32.mrf.mxu1  ;;  %v621_v35 = vadd.f32 %v620_v30, %v572_v32  ;;  %v1066_v32 = vld [vmem:[%s1337_s2 + $0x30] sm:$0xff]  }
  0xd8   :  { %v574_v37 = vadd.f32 %v573_v34, %v524_v33 }
  0xd9   :  { %v670_v40 = vadd.f32 %v669_v31, %v621_v35 }
  0xdb   :  { %v783_v47 = vadd.f32 %v1003_v41, %v670_v40 }
  0xde   :  { %v622_v38 = vpop.f32.mrf.mxu2  ;;  %v527_v44 = vpop.f32.mrf.mxu0 }
  0xdf   :  { %v671_v39 = vpop.f32.mrf.mxu3  ;;  %v623_v42 = vadd.f32 %v622_v38, %v574_v37  ;;  %v576_v45 = vpop.f32.mrf.mxu1  ;;  %v1015_v37 = vunpack.c.l.bf16 %v1066_v32 }
  0xe0   :  { %v577_v52 = vadd.f32 %v576_v45, %v527_v44 }
  0xe1   :  { %v672_v46 = vadd.f32 %v671_v39, %v623_v42  ;;  %v1016_v39 = vunpack.c.h.bf16 %v1066_v32 }
  0xe3   :  { %v784_v48 = vadd.f32 %v1004_v43, %v672_v46 }
  0xe5   :  { %v1039_v49 = vpack.c.bf16 %v784_v48, %v783_v47 }
  0xe6   :  { %v625_v50 = vpop.f32.mrf.mxu2  ;;  %v529_v53 = vpop.f32.mrf.mxu0 }
  0xe7   :  { %v674_v51 = vpop.f32.mrf.mxu3  ;;  %1070 = vst [vmem:[%s1338_s3 + $0x18] sm:$0xff] %v1039_v49   ;;  %v578_v54 = vpop.f32.mrf.mxu1  ;;  %v626_v55 = vadd.f32 %v625_v50, %v577_v52  ;;  %v1067_v52 = vld [vmem:[%s1337_s2 + $0x38] sm:$0xff]  }
  0xe8   :  { %v579_v57 = vadd.f32 %v578_v54, %v529_v53  ;;  %v1019_v56 = vunpack.c.l.bf16 %v1067_v52 }
  0xe9   :  { %v675_v60 = vadd.f32 %v674_v51, %v626_v55 }
  0xeb   :  { %v785_v3 = vadd.f32 %v1007_v61, %v675_v60 }
  0xee   :  { %v627_v58 = vpop.f32.mrf.mxu2  ;;  %v532_v0 = vpop.f32.mrf.mxu0 }
  0xef   :  { %v676_v59 = vpop.f32.mrf.mxu3  ;;  %v628_v62 = vadd.f32 %v627_v58, %v579_v57  ;;  %v581_v1 = vpop.f32.mrf.mxu1  ;;  %v1020_v58 = vunpack.c.h.bf16 %v1067_v52 }
  0xf0   :  { %v582_v8 = vadd.f32 %v581_v1, %v532_v0 }
  0xf1   :  { %v677_v2 = vadd.f32 %v676_v59, %v628_v62 }
  0xf3   :  { %v786_v4 = vadd.f32 %v1008_v63, %v677_v2 }
  0xf5   :  { %v1044_v5 = vpack.c.bf16 %v786_v4, %v785_v3 }
  0xf6   :  { %v630_v6 = vpop.f32.mrf.mxu2  ;;  %v534_v9 = vpop.f32.mrf.mxu0 }
  0xf7   :  { %v679_v7 = vpop.f32.mrf.mxu3  ;;  %1071 = vst [vmem:[%s1338_s3 + $0x20] sm:$0xff] %v1044_v5   ;;  %v583_v10 = vpop.f32.mrf.mxu1  ;;  %v631_v11 = vadd.f32 %v630_v6, %v582_v8 }
  0xf8   :  { %v584_v13 = vadd.f32 %v583_v10, %v534_v9 }
  0xf9   :  { %v680_v16 = vadd.f32 %v679_v7, %v631_v11 }
  0xfb   :  { %v787_v23 = vadd.f32 %v1011_v17, %v680_v16 }
  0xfe   :  { %v632_v14 = vpop.f32.mrf.mxu2  ;;  %v537_v20 = vpop.f32.mrf.mxu0 }
  0xff   :  { %v681_v15 = vpop.f32.mrf.mxu3  ;;  %v633_v18 = vadd.f32 %v632_v14, %v584_v13  ;;  %v586_v21 = vpop.f32.mrf.mxu1 }
 0x100   :  { %v587_v28 = vadd.f32 %v586_v21, %v537_v20 }
 0x101   :  { %v682_v22 = vadd.f32 %v681_v15, %v633_v18 }
 0x103   :  { %v788_v24 = vadd.f32 %v1012_v19, %v682_v22 }
 0x105   :  { %v1049_v25 = vpack.c.bf16 %v788_v24, %v787_v23 }
 0x106   :  { %v635_v26 = vpop.f32.mrf.mxu2  ;;  %v539_v29 = vpop.f32.mrf.mxu0 }
 0x107   :  { %v684_v27 = vpop.f32.mrf.mxu3  ;;  %1072 = vst [vmem:[%s1338_s3 + $0x28] sm:$0xff] %v1049_v25   ;;  %v588_v30 = vpop.f32.mrf.mxu1  ;;  %v636_v31 = vadd.f32 %v635_v26, %v587_v28 }
 0x108   :  { %v589_v33 = vadd.f32 %v588_v30, %v539_v29 }
 0x109   :  { %v685_v36 = vadd.f32 %v684_v27, %v636_v31 }
 0x10b   :  { %v789_v43 = vadd.f32 %v1015_v37, %v685_v36 }
 0x10e   :  { %v637_v34 = vpop.f32.mrf.mxu2  ;;  %v542_v40 = vpop.f32.mrf.mxu0 }
 0x10f   :  { %v686_v35 = vpop.f32.mrf.mxu3  ;;  %v638_v38 = vadd.f32 %v637_v34, %v589_v33  ;;  %v591_v41 = vpop.f32.mrf.mxu1 }
 0x110   :  { %v592_v48 = vadd.f32 %v591_v41, %v542_v40 }
 0x111   :  { %v687_v42 = vadd.f32 %v686_v35, %v638_v38 }
 0x113   :  { %v790_v44 = vadd.f32 %v1016_v39, %v687_v42 }
 0x115   :  { %v1054_v45 = vpack.c.bf16 %v790_v44, %v789_v43 }
 0x116   :  { %v640_v46 = vpop.f32.mrf.mxu2  ;;  %v544_v49 = vpop.f32.mrf.mxu0 }
 0x117   :  { %v689_v47 = vpop.f32.mrf.mxu3  ;;  %1073 = vst [vmem:[%s1338_s3 + $0x30] sm:$0xff] %v1054_v45   ;;  %v593_v50 = vpop.f32.mrf.mxu1  ;;  %v641_v51 = vadd.f32 %v640_v46, %v592_v48 }
 0x118   :  { %v594_v53 = vadd.f32 %v593_v50, %v544_v49 }
 0x119   :  { %v690_v55 = vadd.f32 %v689_v47, %v641_v51 }
 0x11b   :  { %v791_v61 = vadd.f32 %v1019_v56, %v690_v55 }
 0x11e   :  { %v642_v54 = vpop.f32.mrf.mxu2 }
 0x11f   :  { %v643_v57 = vadd.f32 %v642_v54, %v594_v53  ;;  %v691_v59 = vpop.f32.mrf.mxu3 }
 0x121   :  { %v692_v60 = vadd.f32 %v691_v59, %v643_v57 }
 0x123   :  { %v792_v62 = vadd.f32 %v1020_v58, %v692_v60 }
 0x125   :  { %v1059_v63 = vpack.c.bf16 %v792_v62, %v791_v61 }
 0x127   :  { %1074 = vst [vmem:[%s1338_s3 + $0x38] sm:$0xff] %v1059_v63  }

// kernel: mfnet_forward.92
= control target key start
LH: loop header
LB: loop body
LE: loop exit
PB: predicated region body
PF: predicated region fallthrough
CT: control target
= control target key end

     0   :  { %s963_s9 = smov 0   ;;  %s965_s10 = smov 0   ;;  %s1092_s0 = inlined_call_operand.vmem [shape: bf16[128,1408], index: 0, kind: input, shape index: {}]   ;;  %s1093_s1 = inlined_call_operand.vmem [shape: bf16[1408,128], index: 1, kind: input, shape index: {}]   ;;  %s1094_s2 = inlined_call_operand.vmem [shape: bf16[128,128], index: 2, kind: output, shape index: {}]  }
   0x1   :  { %s967_s11 = smov 0   ;;  %s969_s12 = smov 0  }
   0x2   :  { %s971_s13 = smov 0  }
   0x3 LB: > { %s24_s14 = sadd.s32 1, %s941_s12  ;;  %p47_p1 = scmp.ne.s32.totalorder %s933_s10, %s929_s9  ;;  %s945_s13 = sphi %s971_s13, %s12_s13   ;;  %s941_s12 = sphi %s969_s12, %s1098_s12   ;;  %s937_s11 = sphi %s967_s11, %s1097_s11   ;;  %s933_s10 = sphi %s965_s10, %s1096_s10   ;;  %s929_s9 = sphi %s963_s9, %s1095_s9  }
   0x4   : > { %p25_p0 = scmp.ge.s32.totalorder %s24_s14, 11  ;;  %p48_p2 = scmp.eq.s32.totalorder %s945_s13, 0 }
   0x5   : > { %s40_s16 = sadd.s32 1, %s933_s10  ;;  %p703_p5 = scmp.ge.s32.totalorder %s945_s13, 11 }
   0x6   : > { %s1100_s14 = smov (%p25_p0, %s24_s14), 0  ;;  %p49_p3 = por %p48_p2, %p47_p1 }
   0x7   : > { %s36_s15 = ssub.s32 %s941_s12, %s1100_s14  ;;  %129 = sbr.rel (%p703_p5) target bundleno = 32 (0x20), region = 16 }
   0x8   : > { %p38_p4 = scmp.eq.s32.totalorder %s36_s15, 0 }
   0xa   : > { %s998_s17 = scalar_select %p38_p4, %s933_s10, %s40_s16  }
   0xc   : > { %132 = sbr.rel (!%p49_p3) target bundleno = 32 (0x20), region = 20  ;;  %s134_s18 = sand.u32 (%p49_p3), 1, %s933_s10  }
   0xd   : > { %s705_s19 = sshll.u32 (%p49_p3), %s941_s12, 2  ;;  %s704_s20 = sshll.u32 (%p49_p3), %s134_s18, 6 }
   0xe   : > { %s1006_s23 = scalar_lea.vmem (%p49_p3), %s1092_s0, %s705_s19  ;;  %s136_s24 = scalar_lea.vmem (%p49_p3), [#allocation3], %s704_s20 }
   0xf   : > { %v158_v0 = vld [vmem:[%s1006_s23] sm:$0xf] (%p49_p3)  ;;  %v160_v1 = vld [vmem:[%s1006_s23 + $0x2c] sm:$0xf] (%p49_p3)  ;;  %v162_v2 = vld [vmem:[%s1006_s23 + $0x58] sm:$0xf] (%p49_p3) }
  0x10   : > { %159 = vst [vmem:[%s136_s24] sm:$0xf] (%p49_p3), %v158_v0  ;;  %v164_v3 = vld [vmem:[%s1006_s23 + $0x84] sm:$0xf] (%p49_p3)  ;;  %v166_v4 = vld [vmem:[%s1006_s23 + $0xb0] sm:$0xf] (%p49_p3) }
  0x11   : > { %161 = vst [vmem:[%s136_s24 + $0x4] sm:$0xf] %v160_v1  ;;  %v168_v5 = vld [vmem:[%s1006_s23 + $0xdc] sm:$0xf]  ;;  %v170_v6 = vld [vmem:[%s1006_s23 + $0x108] sm:$0xf] }
  0x12   : > { %163 = vst [vmem:[%s136_s24 + $0x8] sm:$0xf] %v162_v2  ;;  %v172_v7 = vld [vmem:[%s1006_s23 + $0x134] sm:$0xf]  ;;  %v174_v8 = vld [vmem:[%s1006_s23 + $0x160] sm:$0xf] }
  0x13   : > { %165 = vst [vmem:[%s136_s24 + $0xc] sm:$0xf] %v164_v3  ;;  %v176_v9 = vld [vmem:[%s1006_s23 + $0x18c] sm:$0xf]  ;;  %v178_v10 = vld [vmem:[%s1006_s23 + $0x1b8] sm:$0xf] }
  0x14   : > { %167 = vst [vmem:[%s136_s24 + $0x10] sm:$0xf] %v166_v4  ;;  %v180_v11 = vld [vmem:[%s1006_s23 + $0x1e4] sm:$0xf]  ;;  %v182_v12 = vld [vmem:[%s1006_s23 + $0x210] sm:$0xf] }
  0x15   : > { %169 = vst [vmem:[%s136_s24 + $0x14] sm:$0xf] %v168_v5  ;;  %v184_v13 = vld [vmem:[%s1006_s23 + $0x23c] sm:$0xf]  ;;  %v186_v14 = vld [vmem:[%s1006_s23 + $0x268] sm:$0xf] }
  0x16   : > { %171 = vst [vmem:[%s136_s24 + $0x18] sm:$0xf] %v170_v6  ;;  %v188_v15 = vld [vmem:[%s1006_s23 + $0x294] sm:$0xf] }
  0x17   : > { %173 = vst [vmem:[%s136_s24 + $0x1c] sm:$0xf] %v172_v7 }
  0x18   : > { %175 = vst [vmem:[%s136_s24 + $0x20] sm:$0xf] %v174_v8 }
  0x19   : > { %177 = vst [vmem:[%s136_s24 + $0x24] sm:$0xf] %v176_v9 }
  0x1a   : > { %179 = vst [vmem:[%s136_s24 + $0x28] sm:$0xf] %v178_v10 }
  0x1b   : > { %181 = vst [vmem:[%s136_s24 + $0x2c] sm:$0xf] %v180_v11 }
  0x1c   : > { %183 = vst [vmem:[%s136_s24 + $0x30] sm:$0xf] %v182_v12 }
  0x1d   : > { %185 = vst [vmem:[%s136_s24 + $0x34] sm:$0xf] %v184_v13 }
  0x1e   : > { %187 = vst [vmem:[%s136_s24 + $0x38] sm:$0xf] %v186_v14 }
  0x1f   : > { %189 = vst [vmem:[%s136_s24 + $0x3c] sm:$0xf] %v188_v15 }
  0x20 PF: > { %p706_p6 = scmp.ge.s32.totalorder %s945_s13, 1  ;;  %p256_p7 = scmp.lt.s32.totalorder %s945_s13, 12 }
  0x22   : > { %p257_p8 = pnand %p706_p6, %p256_p7 }
  0x23   : > { %s263_s25 = sand.u32 (!%p257_p8), 1, %s929_s9   ;;  %s708_s26 = sshll.u32 (!%p257_p8), %s937_s11, 4 }
  0x24   : > { %260 = sbr.rel (%p257_p8) target bundleno = 267 (0x10b), region = 65  ;;  %s707_s27 = sshll.u32 (!%p257_p8), %s263_s25, 6 }
  0x25   : > { %p297_p9 = scmp.lt.s32.totalorder (!%p257_p8), %s708_s26, 175  ;;  %s1033_s4 = scalar_lea.vmem (!%p257_p8), [#allocation3], %s707_s27 }
  0x26   : > { %p710_p10 = scmp.ne.s32.totalorder (!%p257_p8), %s937_s11, 0 }
  0x29   : > { %s1102_s26 = smov (!%p297_p9, %s708_s26), 175  ;;  %317 = sbr.rel (%p710_p10) target bundleno = 63 (0x3f), region = 73 }
  0x2a   : > { %s709_s28 = sshll.u32 %s1102_s26, 2 }
  0x2b   : > { %s1031_s3 = scalar_lea.vmem %s1093_s1, %s709_s28 }
  0x2e   : > { %v947_v16 = vmov 0.0  }
  0x2f   : > { %318 = vst [vmem:[#allocation2 + $0x30] sm:$0xff] %v947_v16 }
  0x30   : > { %319 = vst [vmem:[#allocation2] sm:$0xff] %v947_v16 }
  0x31   : > { %320 = vst [vmem:[#allocation2 + $0x58] sm:$0xff] %v947_v16 }
  0x32   : > { %321 = vst [vmem:[#allocation2 + $0x18] sm:$0xff] %v947_v16 }
  0x33   : > { %322 = vst [vmem:[#allocation2 + $0x50] sm:$0xff] %v947_v16 }
  0x34   : > { %323 = vst [vmem:[#allocation2 + $0x68] sm:$0xff] %v947_v16 }
  0x35   : > { %324 = vst [vmem:[#allocation2 + $0x8] sm:$0xff] %v947_v16 }
  0x36   : > { %325 = vst [vmem:[#allocation2 + $0x48] sm:$0xff] %v947_v16 }
  0x37   : > { %326 = vst [vmem:[#allocation2 + $0x40] sm:$0xff] %v947_v16 }
  0x38   : > { %327 = vst [vmem:[#allocation2 + $0x20] sm:$0xff] %v947_v16 }
  0x39   : > { %328 = vst [vmem:[#allocation2 + $0x10] sm:$0xff] %v947_v16 }
  0x3a   : > { %329 = vst [vmem:[#allocation2 + $0x38] sm:$0xff] %v947_v16 }
  0x3b   : > { %330 = vst [vmem:[#allocation2 + $0x60] sm:$0xff] %v947_v16 }
  0x3c   : > { %331 = vst [vmem:[#allocation2 + $0x70] sm:$0xff] %v947_v16 }
  0x3d   : > { %332 = vst [vmem:[#allocation2 + $0x78] sm:$0xff] %v947_v16 }
  0x3e   : > { %333 = vst [vmem:[#allocation2 + $0x28] sm:$0xff] %v947_v16 }
  0x3f PF: > { %v755_v17 = vld [vmem:[%s1031_s3 + $0x38] sm:$0xff]  ;;  %v754_v18 = vld [vmem:[%s1031_s3 + $0x30] sm:$0xff]  ;;  %v753_v19 = vld [vmem:[%s1031_s3 + $0x28] sm:$0xff]  ;;  %p743_p11 = scmp.ne.s32.totalorder %s937_s11, 10 }
  0x40   : > { %470 = vmatpush.bf16.msra.mxu0 %v755_v17  ;;  %842 = vmatpush.bf16.msra.mxu1 %v755_v17  ;;  %v752_v20 = vld [vmem:[%s1031_s3 + $0x20] sm:$0xff]  ;;  %v751_v21 = vld [vmem:[%s1031_s3 + $0x18] sm:$0xff]  ;;  %v750_v22 = vld [vmem:[%s1031_s3 + $0x10] sm:$0xff] }
  0x41   : > { %843 = vmatpush.bf16.msra.mxu2 %v755_v17  ;;  %844 = vmatpush.bf16.msra.mxu3 %v755_v17  ;;  %v757_v23 = vld [vmem:[%s1033_s4] sm:$0xff]   ;;  %v829_v24 = vld [vmem:[%s1033_s4 + $0x10] sm:$0xff]   ;;  %v749_v31 = vld [vmem:[%s1031_s3 + $0x8] sm:$0xff] }
  0x42   : > { %v831_v25 = vld [vmem:[%s1033_s4 + $0x20] sm:$0xff]   ;;  %v833_v26 = vld [vmem:[%s1033_s4 + $0x30] sm:$0xff]   ;;  %v758_v27 = vunpack.c.l.bf16 %v757_v23  ;;  %v759_v28 = vunpack.c.h.bf16 %v757_v23  ;;  %v766_v29 = vunpack.c.l.bf16 %v829_v24  ;;  %v767_v30 = vunpack.c.h.bf16 %v829_v24  ;;  %v828_v49 = vld [vmem:[%s1033_s4 + $0x8] sm:$0xff]  }
  0x43   : > { %v774_v32 = vunpack.c.l.bf16 %v831_v25  ;;  %v775_v33 = vunpack.c.h.bf16 %v831_v25  ;;  %v782_v34 = vunpack.c.l.bf16 %v833_v26  ;;  %v783_v35 = vunpack.c.h.bf16 %v833_v26  ;;  %v748_v40 = vld [vmem:[%s1031_s3] sm:$0xff]  ;;  %v830_v50 = vld [vmem:[%s1033_s4 + $0x18] sm:$0xff]   ;;  %v832_v51 = vld [vmem:[%s1033_s4 + $0x28] sm:$0xff]  }
  0x44   : > { %471 = vmatpush.bf16.msra.mxu0 %v754_v18  ;;  %845 = vmatpush.bf16.msra.mxu1 %v754_v18  ;;  %v366_v36 = vmax.f32 %v758_v27, 0.0  ;;  %v367_v37 = vmax.f32 %v759_v28, 0.0  ;;  %v370_v38 = vmax.f32 %v766_v29, 0.0  ;;  %v371_v39 = vmax.f32 %v767_v30, 0.0  ;;  %v834_v52 = vld [vmem:[%s1033_s4 + $0x38] sm:$0xff]   ;;  %v390_v9 = vld [vmem:[#allocation2 + $0x30] sm:$0xff] }
  0x45   : > { %846 = vmatpush.bf16.msra.mxu2 %v754_v18  ;;  %847 = vmatpush.bf16.msra.mxu3 %v754_v18  ;;  %v374_v41 = vmax.f32 %v774_v32, 0.0  ;;  %v375_v42 = vmax.f32 %v775_v33, 0.0  ;;  %v378_v43 = vmax.f32 %v782_v34, 0.0  ;;  %v379_v44 = vmax.f32 %v783_v35, 0.0  ;;  %v394_v10 = vld [vmem:[#allocation2 + $0x50] sm:$0xff]  ;;  %v398_v15 = vld [vmem:[#allocation2 + $0x40] sm:$0xff] }
  0x46   : > { %v382_v45 = vpack.c.bf16 %v367_v37, %v366_v36  ;;  %v384_v46 = vpack.c.bf16 %v371_v39, %v370_v38  ;;  %v762_v53 = vunpack.c.l.bf16 %v828_v49  ;;  %v763_v54 = vunpack.c.h.bf16 %v828_v49  ;;  %v402_v16 = vld [vmem:[#allocation2 + $0x60] sm:$0xff]  ;;  %v395_v18 = vld [vmem:[#allocation2 + $0x68] sm:$0xff]  ;;  %v403_v28 = vld [vmem:[#allocation2 + $0x70] sm:$0xff] }
  0x47   : > { %v386_v47 = vpack.c.bf16 %v375_v42, %v374_v41  ;;  %v388_v48 = vpack.c.bf16 %v379_v44, %v378_v43  ;;  %v770_v55 = vunpack.c.l.bf16 %v830_v50  ;;  %v771_v56 = vunpack.c.h.bf16 %v830_v50  ;;  %v391_v17 = vld [vmem:[#allocation2] sm:$0xff]  ;;  %v392_v29 = vld [vmem:[#allocation2 + $0x58] sm:$0xff]  ;;  %v396_v30 = vld [vmem:[#allocation2 + $0x8] sm:$0xff] }
  0x48   : > { %472 = vmatpush.bf16.msra.mxu0 %v753_v19  ;;  %848 = vmatpush.bf16.msra.mxu1 %v753_v19  ;;  %v778_v57 = vunpack.c.l.bf16 %v832_v51  ;;  %v779_v58 = vunpack.c.h.bf16 %v832_v51  ;;  %v786_v59 = vunpack.c.l.bf16 %v834_v52  ;;  %v787_v60 = vunpack.c.h.bf16 %v834_v52  ;;  %v399_v27 = vld [vmem:[#allocation2 + $0x20] sm:$0xff]  ;;  %v400_v39 = vld [vmem:[#allocation2 + $0x10] sm:$0xff]  ;;  %v393_v41 = vld [vmem:[#allocation2 + $0x18] sm:$0xff] }
  0x49   : > { %849 = vmatpush.bf16.msra.mxu2 %v753_v19  ;;  %850 = vmatpush.bf16.msra.mxu3 %v753_v19  ;;  %v368_v61 = vmax.f32 %v762_v53, 0.0  ;;  %v369_v62 = vmax.f32 %v763_v54, 0.0  ;;  %v372_v63 = vmax.f32 %v770_v55, 0.0  ;;  %v373_v0 = vmax.f32 %v771_v56, 0.0  ;;  %v397_v42 = vld [vmem:[#allocation2 + $0x48] sm:$0xff]  ;;  %v401_v51 = vld [vmem:[#allocation2 + $0x38] sm:$0xff] }
  0x4a   : > { %v376_v1 = vmax.f32 %v778_v57, 0.0  ;;  %v377_v2 = vmax.f32 %v779_v58, 0.0  ;;  %v380_v3 = vmax.f32 %v786_v59, 0.0  ;;  %v381_v4 = vmax.f32 %v787_v60, 0.0  ;;  %v405_v52 = vld [vmem:[#allocation2 + $0x28] sm:$0xff] }
  0x4b   : > { %v383_v5 = vpack.c.bf16 %v369_v62, %v368_v61  ;;  %v385_v6 = vpack.c.bf16 %v373_v0, %v372_v63 }
  0x4c   : > { %473 = vmatpush.bf16.msra.mxu0 %v752_v20  ;;  %851 = vmatpush.bf16.msra.mxu1 %v752_v20  ;;  %v387_v7 = vpack.c.bf16 %v377_v2, %v376_v1  ;;  %v389_v8 = vpack.c.bf16 %v381_v4, %v380_v3 }
  0x4d   : > { %852 = vmatpush.bf16.msra.mxu2 %v752_v20  ;;  %853 = vmatpush.bf16.msra.mxu3 %v752_v20 }
  0x50   : > { %474 = vmatpush.bf16.msra.mxu0 %v751_v21  ;;  %854 = vmatpush.bf16.msra.mxu1 %v751_v21 }
  0x51   : > { %855 = vmatpush.bf16.msra.mxu2 %v751_v21  ;;  %856 = vmatpush.bf16.msra.mxu3 %v751_v21 }
  0x54   : > { %475 = vmatpush.bf16.msra.mxu0 %v750_v22  ;;  %857 = vmatpush.bf16.msra.mxu1 %v750_v22 }
  0x55   : > { %858 = vmatpush.bf16.msra.mxu2 %v750_v22  ;;  %859 = vmatpush.bf16.msra.mxu3 %v750_v22 }
  0x58   : > { %476 = vmatpush.bf16.msra.mxu0 %v749_v31  ;;  %860 = vmatpush.bf16.msra.mxu1 %v749_v31 }
  0x59   : > { %861 = vmatpush.bf16.msra.mxu2 %v749_v31  ;;  %862 = vmatpush.bf16.msra.mxu3 %v749_v31 }
  0x5c   : > { %477 = vmatpush.bf16.msra.mxu0 %v748_v40  ;;  %863 = vmatpush.bf16.msra.mxu1 %v748_v40 }
  0x5d   : > { %864 = vmatpush.bf16.msra.mxu2 %v748_v40  ;;  %865 = vmatpush.bf16.msra.mxu3 %v748_v40  ;;  %v404_v40 = vld [vmem:[#allocation2 + $0x78] sm:$0xff] }
  0x5f   : > { %478 = vmatmul.bf16.vlgmr.msra.gmra.mxu0 %v382_v45  ;;  %488 = vmatmul.bf16.vlgmr.msra.gmra.mxu1 %v384_v46 }
  0x60   : > { %498 = vmatmul.bf16.vlgmr.msra.gmra.mxu2 %v386_v47  ;;  %508 = vmatmul.bf16.vlgmr.msra.gmra.mxu3 %v388_v48 }
  0x6f   : > { %483 = vmatmul.bf16.gmra.mxu0 %v383_v5  ;;  %493 = vmatmul.bf16.gmra.mxu1 %v385_v6 }
  0x70   : > { %503 = vmatmul.bf16.gmra.mxu2 %v387_v7  ;;  %513 = vmatmul.bf16.gmra.mxu3 %v389_v8 }
  0xdc   : > { %v479_v11 = vpop.f32.mrf.mxu0  ;;  %v489_v12 = vpop.f32.mrf.mxu1 }
  0xdd   : > { %v519_v13 = vadd.f32 %v479_v11, %v390_v9  ;;  %v523_v14 = vadd.f32 %v489_v12, %v394_v10 }
  0xdf   : > { %535 = vst [vmem:[#allocation2 + $0x30] sm:$0xff] %v519_v13 }
  0xe0   : > { %539 = vst [vmem:[#allocation2 + $0x50] sm:$0xff] %v523_v14 }
  0xe3   : > { %v499_v19 = vpop.f32.mrf.mxu2  ;;  %v509_v20 = vpop.f32.mrf.mxu3 }
  0xe4   : > { %v527_v21 = vadd.f32 %v499_v19, %v398_v15  ;;  %v531_v22 = vadd.f32 %v509_v20, %v402_v16  ;;  %v481_v23 = vpop.f32.mrf.mxu0  ;;  %v491_v24 = vpop.f32.mrf.mxu1 }
  0xe5   : > { %v520_v25 = vadd.f32 %v481_v23, %v391_v17  ;;  %v524_v26 = vadd.f32 %v491_v24, %v395_v18 }
  0xe6   : > { %543 = vst [vmem:[#allocation2 + $0x40] sm:$0xff] %v527_v21 }
  0xe7   : > { %547 = vst [vmem:[#allocation2 + $0x60] sm:$0xff] %v531_v22 }
  0xe8   : > { %536 = vst [vmem:[#allocation2] sm:$0xff] %v520_v25 }
  0xe9   : > { %540 = vst [vmem:[#allocation2 + $0x68] sm:$0xff] %v524_v26 }
  0xeb   : > { %v501_v31 = vpop.f32.mrf.mxu2  ;;  %v511_v32 = vpop.f32.mrf.mxu3 }
  0xec   : > { %v528_v33 = vadd.f32 %v501_v31, %v399_v27  ;;  %v532_v34 = vadd.f32 %v511_v32, %v403_v28  ;;  %v484_v35 = vpop.f32.mrf.mxu0  ;;  %v494_v36 = vpop.f32.mrf.mxu1 }
  0xed   : > { %v521_v37 = vadd.f32 %v484_v35, %v392_v29  ;;  %v525_v38 = vadd.f32 %v494_v36, %v396_v30 }
  0xee   : > { %544 = vst [vmem:[#allocation2 + $0x20] sm:$0xff] %v528_v33 }
  0xef   : > { %548 = vst [vmem:[#allocation2 + $0x70] sm:$0xff] %v532_v34 }
  0xf0   : > { %537 = vst [vmem:[#allocation2 + $0x58] sm:$0xff] %v521_v37 }
  0xf1   : > { %541 = vst [vmem:[#allocation2 + $0x8] sm:$0xff] %v525_v38 }
  0xf3   : > { %v504_v43 = vpop.f32.mrf.mxu2  ;;  %v514_v44 = vpop.f32.mrf.mxu3 }
  0xf4   : > { %v529_v45 = vadd.f32 %v504_v43, %v400_v39  ;;  %v533_v46 = vadd.f32 %v514_v44, %v404_v40  ;;  %v486_v47 = vpop.f32.mrf.mxu0  ;;  %v496_v48 = vpop.f32.mrf.mxu1 }
  0xf5   : > { %v522_v49 = vadd.f32 %v486_v47, %v393_v41  ;;  %v526_v50 = vadd.f32 %v496_v48, %v397_v42 }
  0xf6   : > { %545 = vst [vmem:[#allocation2 + $0x10] sm:$0xff] %v529_v45 }
  0xf7   : > { %549 = vst [vmem:[#allocation2 + $0x78] sm:$0xff] %v533_v46 }
  0xf8   : > { %538 = vst [vmem:[#allocation2 + $0x18] sm:$0xff] %v522_v49 }
  0xf9   : > { %542 = vst [vmem:[#allocation2 + $0x48] sm:$0xff] %v526_v50 }
  0xfb   : > { %v506_v53 = vpop.f32.mrf.mxu2  ;;  %v516_v54 = vpop.f32.mrf.mxu3  ;;  %554 = sbr.rel (%p743_p11) target bundleno = 267 (0x10b), region = 77 }
  0xfc   : > { %v530_v55 = vadd.f32 %v506_v53, %v401_v51  ;;  %v534_v56 = vadd.f32 %v516_v54, %v405_v52 }
  0xfe   : > { %546 = vst [vmem:[#allocation2 + $0x38] sm:$0xff] %v530_v55 }
  0xff   : > { %550 = vst [vmem:[#allocation2 + $0x28] sm:$0xff] %v534_v56 }
 0x100   : > { %v555_v57 = vld [vmem:[#allocation2 + $0x30] sm:$0xff]  ;;  %v556_v58 = vld [vmem:[#allocation2] sm:$0xff]  ;;  %v557_v59 = vld [vmem:[#allocation2 + $0x58] sm:$0xff] }
 0x101   : > { %v791_v60 = vpack.c.bf16 %v556_v58, %v555_v57  ;;  %v558_v61 = vld [vmem:[#allocation2 + $0x18] sm:$0xff]  ;;  %v559_v62 = vld [vmem:[#allocation2 + $0x50] sm:$0xff]  ;;  %v560_v63 = vld [vmem:[#allocation2 + $0x68] sm:$0xff] }
 0x102   : > { %v796_v0 = vpack.c.bf16 %v558_v61, %v557_v59  ;;  %v801_v1 = vpack.c.bf16 %v560_v63, %v559_v62  ;;  %v561_v2 = vld [vmem:[#allocation2 + $0x8] sm:$0xff]  ;;  %v563_v4 = vld [vmem:[#allocation2 + $0x40] sm:$0xff]  ;;  %v565_v7 = vld [vmem:[#allocation2 + $0x10] sm:$0xff] }
 0x103   : > { %v562_v3 = vld [vmem:[#allocation2 + $0x48] sm:$0xff]  ;;  %792 = vst [vmem:[%s1094_s2] sm:$0xff] %v791_v60   ;;  %v564_v6 = vld [vmem:[#allocation2 + $0x20] sm:$0xff]  ;;  %v568_v12 = vld [vmem:[#allocation2 + $0x70] sm:$0xff] }
 0x104   : > { %v806_v5 = vpack.c.bf16 %v562_v3, %v561_v2  ;;  %835 = vst [vmem:[%s1094_s2 + $0x8] sm:$0xff] %v796_v0   ;;  %v811_v9 = vpack.c.bf16 %v564_v6, %v563_v4  ;;  %v567_v11 = vld [vmem:[#allocation2 + $0x60] sm:$0xff]  ;;  %v569_v13 = vld [vmem:[#allocation2 + $0x78] sm:$0xff] }
 0x105   : > { %v566_v8 = vld [vmem:[#allocation2 + $0x38] sm:$0xff]  ;;  %836 = vst [vmem:[%s1094_s2 + $0x10] sm:$0xff] %v801_v1   ;;  %v821_v14 = vpack.c.bf16 %v568_v12, %v567_v11 }
 0x106   : > { %v816_v10 = vpack.c.bf16 %v566_v8, %v565_v7  ;;  %v570_v15 = vld [vmem:[#allocation2 + $0x28] sm:$0xff]  ;;  %837 = vst [vmem:[%s1094_s2 + $0x18] sm:$0xff] %v806_v5  }
 0x107   : > { %v826_v16 = vpack.c.bf16 %v570_v15, %v569_v13  ;;  %838 = vst [vmem:[%s1094_s2 + $0x20] sm:$0xff] %v811_v9  }
 0x108   : > { %839 = vst [vmem:[%s1094_s2 + $0x28] sm:$0xff] %v816_v10  }
 0x109   : > { %840 = vst [vmem:[%s1094_s2 + $0x30] sm:$0xff] %v821_v14  }
 0x10a   : > { %841 = vst [vmem:[%s1094_s2 + $0x38] sm:$0xff] %v826_v16  }
 0x10b PF: > { %s12_s13 = sadd.s32 1, %s945_s13   ;;  %s1095_s9 = smov %s933_s10 }
 0x10c   : > { %p9_p12 = scmp.ge.s32.totalorder %s12_s13, 13   ;;  %s1096_s10 = smov %s998_s17 }
 0x10d   : > { %s1097_s11 = smov %s941_s12  ;;  %s1098_s12 = smov %s1100_s14 }
 0x10e   :  { %11 = sbr.rel (!%p9_p12) target bundleno = 3 (0x3), region = 115 }

// kernel: mfnet_forward.111
= control target key start
LH: loop header
LB: loop body
LE: loop exit
PB: predicated region body
PF: predicated region fallthrough
CT: control target
= control target key end

     0   :  { %s1325_s9 = smov 0   ;;  %s1327_s10 = smov 0   ;;  %s1462_s0 = inlined_call_operand.vmem [shape: bf16[512,256], index: 0, kind: input, shape index: {}]   ;;  %s1463_s1 = inlined_call_operand.vmem [shape: bf16[256,128], index: 1, kind: input, shape index: {}]   ;;  %s1464_s2 = inlined_call_operand.vmem [shape: bf16[512,128], index: 2, kind: output, shape index: {}]  }
   0x1   :  { %s1329_s11 = smov 0  }
   0x2 LB: > { %s31_s12 = sadd.s32 1, %s1304_s10  ;;  %p1062_p0 = scmp.ge.s32.totalorder %s1308_s11, 1  ;;  %s1308_s11 = sphi %s1329_s11, %s12_s11   ;;  %s1304_s10 = sphi %s1327_s10, %s1466_s10   ;;  %s1300_s9 = sphi %s1325_s9, %s1465_s9  }
   0x3   : > { %p33_p1 = scmp.ge.s32.totalorder %s31_s12, 2  ;;  %p158_p2 = scmp.lt.s32.totalorder %s1308_s11, 3 }
   0x5   : > { %s1468_s12 = smov (%p33_p1, %s31_s12), 0  ;;  %p159_p3 = pnand %p1062_p0, %p158_p2 }
   0x6   : > { %s1063_s17 = sshll.u32 (!%p159_p3), %s1300_s9, 5 }
   0x7   : > { %162 = sbr.rel (%p159_p3) target bundleno = 302 (0x12e), region = 28  ;;  %p198_p4 = scmp.lt.s32.totalorder (!%p159_p3), %s1063_s17, 63 }
   0xc   : > { %v1142_v0 = vld [vmem:[%s1463_s1 + $0x38] sm:$0xff]  ;;  %v1141_v2 = vld [vmem:[%s1463_s1 + $0x30] sm:$0xff]  ;;  %v1140_v4 = vld [vmem:[%s1463_s1 + $0x28] sm:$0xff]  ;;  %s1470_s17 = smov (!%p198_p4, %s1063_s17), 63 }
   0xd   : > { %v1150_v1 = vld [vmem:[%s1463_s1 + $0x78] sm:$0xff]  ;;  %614 = vmatpush.bf16.msra.mxu0 %v1142_v0  ;;  %1246 = vmatpush.bf16.msra.mxu2 %v1142_v0  ;;  %v1149_v3 = vld [vmem:[%s1463_s1 + $0x70] sm:$0xff]  ;;  %v1148_v5 = vld [vmem:[%s1463_s1 + $0x68] sm:$0xff]  ;;  %s1134_s30 = sshll.u32 %s1470_s17, 3  ;;  %s1067_s26 = sshll.u32 %s1470_s17, 2 }
   0xe   : > { %703 = vmatpush.bf16.msra.mxu1 %v1150_v1  ;;  %1254 = vmatpush.bf16.msra.mxu3 %v1150_v1  ;;  %v1139_v6 = vld [vmem:[%s1463_s1 + $0x20] sm:$0xff]  ;;  %v1138_v8 = vld [vmem:[%s1463_s1 + $0x18] sm:$0xff]  ;;  %s1376_s7 = scalar_lea.vmem %s1462_s0, %s1134_s30  ;;  %v1137_v10 = vld [vmem:[%s1463_s1 + $0x10] sm:$0xff]  ;;  %s1435_s29 = scalar_lea.vmem %s1464_s2, %s1067_s26 }
   0xf   : > { %v1147_v7 = vld [vmem:[%s1463_s1 + $0x60] sm:$0xff]  ;;  %v1146_v9 = vld [vmem:[%s1463_s1 + $0x58] sm:$0xff]  ;;  %v263_v12 = vld [vmem:[%s1376_s7 + $0x8] sm:$0xff] }
  0x10   : > { %v262_v11 = vld [vmem:[%s1376_s7] sm:$0xff]  ;;  %v279_v14 = vld [vmem:[%s1376_s7 + $0x88] sm:$0xff]  ;;  %v1145_v15 = vld [vmem:[%s1463_s1 + $0x50] sm:$0xff]  ;;  %v296_v17 = vunpack.c.l.bf16 %v263_v12  ;;  %v297_v22 = vunpack.c.h.bf16 %v263_v12 }
  0x11   : > { %615 = vmatpush.bf16.msra.mxu0 %v1141_v2  ;;  %1247 = vmatpush.bf16.msra.mxu2 %v1141_v2  ;;  %v278_v13 = vld [vmem:[%s1376_s7 + $0x80] sm:$0xff]  ;;  %v294_v16 = vunpack.c.l.bf16 %v262_v11  ;;  %v328_v19 = vunpack.c.l.bf16 %v279_v14  ;;  %v1136_v20 = vld [vmem:[%s1463_s1 + $0x8] sm:$0xff]  ;;  %v295_v21 = vunpack.c.h.bf16 %v262_v11  ;;  %v329_v24 = vunpack.c.h.bf16 %v279_v14  ;;  %v264_v40 = vld [vmem:[%s1376_s7 + $0x10] sm:$0xff] }
  0x12   : > { %704 = vmatpush.bf16.msra.mxu1 %v1149_v3  ;;  %1255 = vmatpush.bf16.msra.mxu3 %v1149_v3  ;;  %v326_v18 = vunpack.c.l.bf16 %v278_v13  ;;  %v327_v23 = vunpack.c.h.bf16 %v278_v13  ;;  %v1144_v25 = vld [vmem:[%s1463_s1 + $0x48] sm:$0xff]  ;;  %v360_v27 = vmax.f32 %v296_v17, 0.0  ;;  %v1135_v30 = vld [vmem:[%s1463_s1] sm:$0xff]  ;;  %v361_v32 = vmax.f32 %v297_v22, 0.0  ;;  %v265_v41 = vld [vmem:[%s1376_s7 + $0x18] sm:$0xff] }
  0x13   : > { %v358_v26 = vmax.f32 %v294_v16, 0.0  ;;  %v392_v29 = vmax.f32 %v328_v19, 0.0  ;;  %v359_v31 = vmax.f32 %v295_v21, 0.0  ;;  %v393_v34 = vmax.f32 %v329_v24, 0.0  ;;  %v1143_v35 = vld [vmem:[%s1463_s1 + $0x40] sm:$0xff]  ;;  %v280_v42 = vld [vmem:[%s1376_s7 + $0x90] sm:$0xff] }
  0x14   : > { %v390_v28 = vmax.f32 %v326_v18, 0.0  ;;  %v391_v33 = vmax.f32 %v327_v23, 0.0  ;;  %v281_v43 = vld [vmem:[%s1376_s7 + $0x98] sm:$0xff]  ;;  %v298_v44 = vunpack.c.l.bf16 %v264_v40  ;;  %v300_v45 = vunpack.c.l.bf16 %v265_v41  ;;  %v266_v0 = vld [vmem:[%s1376_s7 + $0x20] sm:$0xff]  ;;  %v267_v1 = vld [vmem:[%s1376_s7 + $0x28] sm:$0xff] }
  0x15   : > { %616 = vmatpush.bf16.msra.mxu0 %v1140_v4  ;;  %1248 = vmatpush.bf16.msra.mxu2 %v1140_v4  ;;  %v422_v36 = vpack.c.bf16 %v360_v27, %v358_v26  ;;  %v423_v38 = vpack.c.bf16 %v361_v32, %v359_v31  ;;  %v330_v46 = vunpack.c.l.bf16 %v280_v42  ;;  %v332_v47 = vunpack.c.l.bf16 %v281_v43  ;;  %v282_v2 = vld [vmem:[%s1376_s7 + $0xa0] sm:$0xff]  ;;  %v283_v3 = vld [vmem:[%s1376_s7 + $0xa8] sm:$0xff]  ;;  %v268_v24 = vld [vmem:[%s1376_s7 + $0x30] sm:$0xff] }
  0x16   : > { %705 = vmatpush.bf16.msra.mxu1 %v1148_v5  ;;  %1256 = vmatpush.bf16.msra.mxu3 %v1148_v5  ;;  %v438_v37 = vpack.c.bf16 %v392_v29, %v390_v28  ;;  %v439_v39 = vpack.c.bf16 %v393_v34, %v391_v33  ;;  %v299_v48 = vunpack.c.h.bf16 %v264_v40  ;;  %v301_v49 = vunpack.c.h.bf16 %v265_v41  ;;  %v284_v26 = vld [vmem:[%s1376_s7 + $0xb0] sm:$0xff]  ;;  %v285_v27 = vld [vmem:[%s1376_s7 + $0xb8] sm:$0xff] }
  0x17   : > { %v331_v50 = vunpack.c.h.bf16 %v280_v42  ;;  %v333_v51 = vunpack.c.h.bf16 %v281_v43  ;;  %v362_v52 = vmax.f32 %v298_v44, 0.0  ;;  %v364_v53 = vmax.f32 %v300_v45, 0.0 }
  0x18   : > { %v394_v54 = vmax.f32 %v330_v46, 0.0  ;;  %v396_v55 = vmax.f32 %v332_v47, 0.0  ;;  %v363_v56 = vmax.f32 %v299_v48, 0.0  ;;  %v365_v57 = vmax.f32 %v301_v49, 0.0  ;;  %v270_v48 = vld [vmem:[%s1376_s7 + $0x40] sm:$0xff]  ;;  %v271_v49 = vld [vmem:[%s1376_s7 + $0x48] sm:$0xff] }
  0x19   : > { %617 = vmatpush.bf16.msra.mxu0 %v1139_v6  ;;  %1249 = vmatpush.bf16.msra.mxu2 %v1139_v6  ;;  %v395_v58 = vmax.f32 %v331_v50, 0.0  ;;  %v397_v59 = vmax.f32 %v333_v51, 0.0  ;;  %v424_v60 = vpack.c.bf16 %v364_v53, %v362_v52  ;;  %v302_v4 = vunpack.c.l.bf16 %v266_v0  ;;  %v286_v50 = vld [vmem:[%s1376_s7 + $0xc0] sm:$0xff]  ;;  %v287_v51 = vld [vmem:[%s1376_s7 + $0xc8] sm:$0xff] }
  0x1a   : > { %706 = vmatpush.bf16.msra.mxu1 %v1147_v7  ;;  %1257 = vmatpush.bf16.msra.mxu3 %v1147_v7  ;;  %v440_v61 = vpack.c.bf16 %v396_v55, %v394_v54  ;;  %v425_v62 = vpack.c.bf16 %v365_v57, %v363_v56  ;;  %v304_v5 = vunpack.c.l.bf16 %v267_v1  ;;  %v334_v6 = vunpack.c.l.bf16 %v282_v2 }
  0x1b   : > { %v441_v63 = vpack.c.bf16 %v397_v59, %v395_v58  ;;  %v336_v7 = vunpack.c.l.bf16 %v283_v3  ;;  %v337_v11 = vunpack.c.h.bf16 %v283_v3  ;;  %v366_v12 = vmax.f32 %v302_v4, 0.0 }
  0x1c   : > { %v368_v13 = vmax.f32 %v304_v5, 0.0  ;;  %v398_v14 = vmax.f32 %v334_v6, 0.0  ;;  %v306_v28 = vunpack.c.l.bf16 %v268_v24  ;;  %v340_v31 = vunpack.c.l.bf16 %v285_v27 }
  0x1d   : > { %618 = vmatpush.bf16.msra.mxu0 %v1138_v8  ;;  %1250 = vmatpush.bf16.msra.mxu2 %v1138_v8  ;;  %v303_v8 = vunpack.c.h.bf16 %v266_v0  ;;  %v401_v19 = vmax.f32 %v337_v11, 0.0  ;;  %v307_v32 = vunpack.c.h.bf16 %v268_v24  ;;  %v339_v34 = vunpack.c.h.bf16 %v284_v26  ;;  %v289_v11 = vld [vmem:[%s1376_s7 + $0xd8] sm:$0xff] }
  0x1e   : > { %707 = vmatpush.bf16.msra.mxu1 %v1146_v9  ;;  %1258 = vmatpush.bf16.msra.mxu3 %v1146_v9  ;;  %v305_v9 = vunpack.c.h.bf16 %v267_v1  ;;  %v310_v52 = vunpack.c.l.bf16 %v270_v48  ;;  %v312_v53 = vunpack.c.l.bf16 %v271_v49  ;;  %v342_v54 = vunpack.c.l.bf16 %v286_v50 }
  0x1f   : > { %v367_v16 = vmax.f32 %v303_v8, 0.0  ;;  %v371_v40 = vmax.f32 %v307_v32, 0.0  ;;  %v403_v42 = vmax.f32 %v339_v34, 0.0  ;;  %v344_v55 = vunpack.c.l.bf16 %v287_v51  ;;  %v272_v8 = vld [vmem:[%s1376_s7 + $0x50] sm:$0xff]  ;;  %v274_v32 = vld [vmem:[%s1376_s7 + $0x60] sm:$0xff] }
  0x20   : > { %v369_v17 = vmax.f32 %v305_v9, 0.0  ;;  %v311_v56 = vunpack.c.h.bf16 %v270_v48  ;;  %v313_v57 = vunpack.c.h.bf16 %v271_v49  ;;  %v343_v58 = vunpack.c.h.bf16 %v286_v50  ;;  %v273_v9 = vld [vmem:[%s1376_s7 + $0x58] sm:$0xff]  ;;  %v290_v34 = vld [vmem:[%s1376_s7 + $0xe0] sm:$0xff] }
  0x21   : > { %619 = vmatpush.bf16.msra.mxu0 %v1137_v10  ;;  %1251 = vmatpush.bf16.msra.mxu2 %v1137_v10  ;;  %v335_v10 = vunpack.c.h.bf16 %v282_v2  ;;  %v345_v59 = vunpack.c.h.bf16 %v287_v51 }
  0x22   : > { %708 = vmatpush.bf16.msra.mxu1 %v1145_v15  ;;  %1259 = vmatpush.bf16.msra.mxu3 %v1145_v15  ;;  %v400_v15 = vmax.f32 %v336_v7, 0.0  ;;  %v427_v22 = vpack.c.bf16 %v369_v17, %v367_v16  ;;  %v375_v0 = vmax.f32 %v311_v56, 0.0  ;;  %v377_v1 = vmax.f32 %v313_v57, 0.0  ;;  %v276_v56 = vld [vmem:[%s1376_s7 + $0x70] sm:$0xff]  ;;  %v277_v57 = vld [vmem:[%s1376_s7 + $0x78] sm:$0xff] }
  0x23   : > { %v399_v18 = vmax.f32 %v335_v10, 0.0  ;;  %v407_v2 = vmax.f32 %v343_v58, 0.0  ;;  %v409_v3 = vmax.f32 %v345_v59, 0.0  ;;  %v288_v10 = vld [vmem:[%s1376_s7 + $0xd0] sm:$0xff]  ;;  %v315_v16 = vunpack.c.h.bf16 %v272_v8  ;;  %v293_v59 = vld [vmem:[%s1376_s7 + $0xf8] sm:$0xff] }
  0x24   : > { %v442_v21 = vpack.c.bf16 %v400_v15, %v398_v14  ;;  %v431_v6 = vpack.c.bf16 %v377_v1, %v375_v0  ;;  %v346_v14 = vunpack.c.l.bf16 %v288_v10  ;;  %v348_v15 = vunpack.c.l.bf16 %v289_v11  ;;  %v292_v58 = vld [vmem:[%s1376_s7 + $0xf0] sm:$0xff] }
  0x25   : > { %620 = vmatpush.bf16.msra.mxu0 %v1136_v20  ;;  %1252 = vmatpush.bf16.msra.mxu2 %v1136_v20  ;;  %v426_v20 = vpack.c.bf16 %v368_v13, %v366_v12  ;;  %v443_v23 = vpack.c.bf16 %v401_v19, %v399_v18  ;;  %v447_v7 = vpack.c.bf16 %v409_v3, %v407_v2  ;;  %v314_v12 = vunpack.c.l.bf16 %v272_v8 }
  0x26   : > { %709 = vmatpush.bf16.msra.mxu1 %v1144_v25  ;;  %1260 = vmatpush.bf16.msra.mxu3 %v1144_v25  ;;  %v269_v25 = vld [vmem:[%s1376_s7 + $0x38] sm:$0xff]  ;;  %v316_v13 = vunpack.c.l.bf16 %v273_v9  ;;  %v317_v17 = vunpack.c.h.bf16 %v273_v9  ;;  %v347_v18 = vunpack.c.h.bf16 %v288_v10  ;;  %v349_v19 = vunpack.c.h.bf16 %v289_v11 }
  0x27   : > { %v308_v29 = vunpack.c.l.bf16 %v269_v25  ;;  %v309_v33 = vunpack.c.h.bf16 %v269_v25  ;;  %v379_v24 = vmax.f32 %v315_v16, 0.0  ;;  %v323_v0 = vunpack.c.h.bf16 %v276_v56 }
  0x28   : > { %v381_v25 = vmax.f32 %v317_v17, 0.0  ;;  %v325_v1 = vunpack.c.h.bf16 %v277_v57  ;;  %v355_v2 = vunpack.c.h.bf16 %v292_v58  ;;  %v357_v3 = vunpack.c.h.bf16 %v293_v59 }
  0x29   : > { %621 = vmatpush.bf16.msra.mxu0 %v1135_v30  ;;  %1253 = vmatpush.bf16.msra.mxu2 %v1135_v30  ;;  %v338_v30 = vunpack.c.l.bf16 %v284_v26  ;;  %v373_v41 = vmax.f32 %v309_v33, 0.0  ;;  %v411_v26 = vmax.f32 %v347_v18, 0.0  ;;  %v275_v33 = vld [vmem:[%s1376_s7 + $0x68] sm:$0xff]  ;;  %v387_v8 = vmax.f32 %v323_v0, 0.0 }
  0x2a   : > { %710 = vmatpush.bf16.msra.mxu1 %v1143_v35  ;;  %1261 = vmatpush.bf16.msra.mxu3 %v1143_v35  ;;  %v341_v35 = vunpack.c.h.bf16 %v285_v27  ;;  %v413_v27 = vmax.f32 %v349_v19, 0.0  ;;  %v389_v9 = vmax.f32 %v325_v1, 0.0  ;;  %v419_v10 = vmax.f32 %v355_v2, 0.0 }
  0x2b   : > { %v429_v46 = vpack.c.bf16 %v373_v41, %v371_v40  ;;  %v319_v40 = vunpack.c.h.bf16 %v274_v32  ;;  %v321_v41 = vunpack.c.h.bf16 %v275_v33  ;;  %v421_v11 = vmax.f32 %v357_v3, 0.0 }
  0x2c   : > { %622 = vmatmul.bf16.vlgmr.msra.gmra.mxu0 %v422_v36  ;;  %662 = vmatmul.bf16.vlgmr.msra.gmra.mxu2 %v438_v37  ;;  %v370_v36 = vmax.f32 %v306_v28, 0.0  ;;  %v372_v37 = vmax.f32 %v308_v29, 0.0  ;;  %v405_v43 = vmax.f32 %v341_v35, 0.0  ;;  %v291_v35 = vld [vmem:[%s1376_s7 + $0xe8] sm:$0xff] }
  0x2d   : > { %711 = vmatmul.bf16.vlgmr.msra.gmra.mxu1 %v423_v38  ;;  %751 = vmatmul.bf16.vlgmr.msra.gmra.mxu3 %v439_v39  ;;  %v402_v38 = vmax.f32 %v338_v30, 0.0  ;;  %v404_v39 = vmax.f32 %v340_v31, 0.0  ;;  %v433_v30 = vpack.c.bf16 %v381_v25, %v379_v24  ;;  %v449_v31 = vpack.c.bf16 %v413_v27, %v411_v26 }
  0x2e   : > { %v428_v44 = vpack.c.bf16 %v372_v37, %v370_v36  ;;  %v445_v47 = vpack.c.bf16 %v405_v43, %v403_v42  ;;  %v318_v36 = vunpack.c.l.bf16 %v274_v32  ;;  %v320_v37 = vunpack.c.l.bf16 %v275_v33 }
  0x2f   : > { %v444_v45 = vpack.c.bf16 %v404_v39, %v402_v38  ;;  %v350_v38 = vunpack.c.l.bf16 %v290_v34  ;;  %v352_v39 = vunpack.c.l.bf16 %v291_v35  ;;  %v351_v42 = vunpack.c.h.bf16 %v290_v34 }
  0x30   : > { %v353_v43 = vunpack.c.h.bf16 %v291_v35  ;;  %v383_v48 = vmax.f32 %v319_v40, 0.0  ;;  %v385_v49 = vmax.f32 %v321_v41, 0.0 }
  0x31   : > { %v415_v50 = vmax.f32 %v351_v42, 0.0 }
  0x32   : > { %v417_v51 = vmax.f32 %v353_v43, 0.0 }
  0x3c   : > { %627 = vmatmul.bf16.gmra.mxu0 %v424_v60  ;;  %667 = vmatmul.bf16.gmra.mxu2 %v440_v61  ;;  %v374_v60 = vmax.f32 %v310_v52, 0.0  ;;  %v376_v61 = vmax.f32 %v312_v53, 0.0 }
  0x3d   : > { %716 = vmatmul.bf16.gmra.mxu1 %v425_v62  ;;  %756 = vmatmul.bf16.gmra.mxu3 %v441_v63  ;;  %v406_v62 = vmax.f32 %v342_v54, 0.0  ;;  %v408_v63 = vmax.f32 %v344_v55, 0.0  ;;  %v435_v54 = vpack.c.bf16 %v385_v49, %v383_v48  ;;  %v451_v55 = vpack.c.bf16 %v417_v51, %v415_v50 }
  0x3e   : > { %v430_v4 = vpack.c.bf16 %v376_v61, %v374_v60  ;;  %v322_v60 = vunpack.c.l.bf16 %v276_v56  ;;  %v324_v61 = vunpack.c.l.bf16 %v277_v57 }
  0x3f   : > { %v446_v5 = vpack.c.bf16 %v408_v63, %v406_v62  ;;  %v354_v62 = vunpack.c.l.bf16 %v292_v58  ;;  %v356_v63 = vunpack.c.l.bf16 %v293_v59 }
  0x4c   : > { %632 = vmatmul.bf16.gmra.mxu0 %v426_v20  ;;  %672 = vmatmul.bf16.gmra.mxu2 %v442_v21  ;;  %v378_v20 = vmax.f32 %v314_v12, 0.0  ;;  %v380_v21 = vmax.f32 %v316_v13, 0.0 }
  0x4d   : > { %721 = vmatmul.bf16.gmra.mxu1 %v427_v22  ;;  %761 = vmatmul.bf16.gmra.mxu3 %v443_v23  ;;  %v410_v22 = vmax.f32 %v346_v14, 0.0  ;;  %v412_v23 = vmax.f32 %v348_v15, 0.0  ;;  %v437_v14 = vpack.c.bf16 %v389_v9, %v387_v8  ;;  %v453_v15 = vpack.c.bf16 %v421_v11, %v419_v10 }
  0x4e   : > { %v432_v28 = vpack.c.bf16 %v380_v21, %v378_v20 }
  0x4f   : > { %v448_v29 = vpack.c.bf16 %v412_v23, %v410_v22 }
  0x5c   : > { %637 = vmatmul.bf16.gmra.mxu0 %v428_v44  ;;  %677 = vmatmul.bf16.gmra.mxu2 %v444_v45  ;;  %v382_v44 = vmax.f32 %v318_v36, 0.0  ;;  %v384_v45 = vmax.f32 %v320_v37, 0.0 }
  0x5d   : > { %726 = vmatmul.bf16.gmra.mxu1 %v429_v46  ;;  %766 = vmatmul.bf16.gmra.mxu3 %v445_v47  ;;  %v414_v46 = vmax.f32 %v350_v38, 0.0  ;;  %v416_v47 = vmax.f32 %v352_v39, 0.0 }
  0x5e   : > { %v434_v52 = vpack.c.bf16 %v384_v45, %v382_v44 }
  0x5f   : > { %v450_v53 = vpack.c.bf16 %v416_v47, %v414_v46 }
  0x6c   : > { %642 = vmatmul.bf16.gmra.mxu0 %v430_v4  ;;  %682 = vmatmul.bf16.gmra.mxu2 %v446_v5  ;;  %v386_v4 = vmax.f32 %v322_v60, 0.0  ;;  %v388_v5 = vmax.f32 %v324_v61, 0.0 }
  0x6d   : > { %731 = vmatmul.bf16.gmra.mxu1 %v431_v6  ;;  %771 = vmatmul.bf16.gmra.mxu3 %v447_v7  ;;  %v418_v6 = vmax.f32 %v354_v62, 0.0  ;;  %v420_v7 = vmax.f32 %v356_v63, 0.0 }
  0x6e   : > { %v436_v12 = vpack.c.bf16 %v388_v5, %v386_v4 }
  0x6f   : > { %v452_v13 = vpack.c.bf16 %v420_v7, %v418_v6 }
  0x7c   : > { %647 = vmatmul.bf16.gmra.mxu0 %v432_v28  ;;  %687 = vmatmul.bf16.gmra.mxu2 %v448_v29 }
  0x7d   : > { %736 = vmatmul.bf16.gmra.mxu1 %v433_v30  ;;  %776 = vmatmul.bf16.gmra.mxu3 %v449_v31 }
  0x8c   : > { %652 = vmatmul.bf16.gmra.mxu0 %v434_v52  ;;  %692 = vmatmul.bf16.gmra.mxu2 %v450_v53 }
  0x8d   : > { %741 = vmatmul.bf16.gmra.mxu1 %v435_v54  ;;  %781 = vmatmul.bf16.gmra.mxu3 %v451_v55 }
  0x9c   : > { %657 = vmatmul.bf16.gmra.mxu0 %v436_v12  ;;  %697 = vmatmul.bf16.gmra.mxu2 %v452_v13 }
  0x9d   : > { %746 = vmatmul.bf16.gmra.mxu1 %v437_v14  ;;  %786 = vmatmul.bf16.gmra.mxu3 %v453_v15 }
  0xa9   : > { %v623_v16 = vpop.f32.mrf.mxu0 }
  0xaa   : > { %v712_v17 = vpop.f32.mrf.mxu1 }
  0xab   : > { %v713_v22 = vadd.f32 %v712_v17, %v623_v16 }
  0xaf   : > { %v663_v18 = vpop.f32.mrf.mxu2 }
  0xb0   : > { %v752_v19 = vpop.f32.mrf.mxu3 }
  0xb1   : > { %v625_v20 = vpop.f32.mrf.mxu0  ;;  %v753_v27 = vadd.f32 %v752_v19, %v663_v18 }
  0xb2   : > { %v714_v21 = vpop.f32.mrf.mxu1 }
  0xb3   : > { %v715_v23 = vadd.f32 %v714_v21, %v625_v20 }
  0xb5   : > { %v1154_v24 = vpack.c.bf16 %v715_v23, %v713_v22 }
  0xb7   : > { %1155 = vst [vmem:[%s1435_s29] sm:$0xff] %v1154_v24   ;;  %v665_v25 = vpop.f32.mrf.mxu2 }
  0xb8   : > { %v754_v26 = vpop.f32.mrf.mxu3 }
  0xb9   : > { %v755_v28 = vadd.f32 %v754_v26, %v665_v25  ;;  %v628_v29 = vpop.f32.mrf.mxu0 }
  0xba   : > { %v717_v30 = vpop.f32.mrf.mxu1 }
  0xbb   : > { %v1194_v31 = vpack.c.bf16 %v755_v28, %v753_v27  ;;  %v718_v36 = vadd.f32 %v717_v30, %v628_v29 }
  0xbd   : > { %1238 = vst [vmem:[%s1435_s29 + $0x40] sm:$0xff] %v1194_v31  }
  0xbf   : > { %v668_v32 = vpop.f32.mrf.mxu2 }
  0xc0   : > { %v757_v33 = vpop.f32.mrf.mxu3 }
  0xc1   : > { %v630_v34 = vpop.f32.mrf.mxu0  ;;  %v758_v41 = vadd.f32 %v757_v33, %v668_v32 }
  0xc2   : > { %v719_v35 = vpop.f32.mrf.mxu1 }
  0xc3   : > { %v720_v37 = vadd.f32 %v719_v35, %v630_v34 }
  0xc5   : > { %v1159_v38 = vpack.c.bf16 %v720_v37, %v718_v36 }
  0xc7   : > { %1231 = vst [vmem:[%s1435_s29 + $0x8] sm:$0xff] %v1159_v38   ;;  %v670_v39 = vpop.f32.mrf.mxu2 }
  0xc8   : > { %v759_v40 = vpop.f32.mrf.mxu3 }
  0xc9   : > { %v760_v42 = vadd.f32 %v759_v40, %v670_v39  ;;  %v633_v43 = vpop.f32.mrf.mxu0 }
  0xca   : > { %v722_v44 = vpop.f32.mrf.mxu1 }
  0xcb   : > { %v1199_v45 = vpack.c.bf16 %v760_v42, %v758_v41  ;;  %v723_v50 = vadd.f32 %v722_v44, %v633_v43 }
  0xcd   : > { %1239 = vst [vmem:[%s1435_s29 + $0x48] sm:$0xff] %v1199_v45  }
  0xcf   : > { %v673_v46 = vpop.f32.mrf.mxu2 }
  0xd0   : > { %v762_v47 = vpop.f32.mrf.mxu3 }
  0xd1   : > { %v635_v48 = vpop.f32.mrf.mxu0  ;;  %v763_v55 = vadd.f32 %v762_v47, %v673_v46 }
  0xd2   : > { %v724_v49 = vpop.f32.mrf.mxu1 }
  0xd3   : > { %v725_v51 = vadd.f32 %v724_v49, %v635_v48 }
  0xd5   : > { %v1164_v52 = vpack.c.bf16 %v725_v51, %v723_v50 }
  0xd7   : > { %1232 = vst [vmem:[%s1435_s29 + $0x10] sm:$0xff] %v1164_v52   ;;  %v675_v53 = vpop.f32.mrf.mxu2 }
  0xd8   : > { %v764_v54 = vpop.f32.mrf.mxu3 }
  0xd9   : > { %v765_v56 = vadd.f32 %v764_v54, %v675_v53  ;;  %v638_v57 = vpop.f32.mrf.mxu0 }
  0xda   : > { %v727_v58 = vpop.f32.mrf.mxu1 }
  0xdb   : > { %v1204_v59 = vpack.c.bf16 %v765_v56, %v763_v55  ;;  %v728_v0 = vadd.f32 %v727_v58, %v638_v57 }
  0xdd   : > { %1240 = vst [vmem:[%s1435_s29 + $0x50] sm:$0xff] %v1204_v59  }
  0xdf   : > { %v678_v60 = vpop.f32.mrf.mxu2 }
  0xe0   : > { %v767_v61 = vpop.f32.mrf.mxu3 }
  0xe1   : > { %v640_v62 = vpop.f32.mrf.mxu0  ;;  %v768_v5 = vadd.f32 %v767_v61, %v678_v60 }
  0xe2   : > { %v729_v63 = vpop.f32.mrf.mxu1 }
  0xe3   : > { %v730_v1 = vadd.f32 %v729_v63, %v640_v62 }
  0xe5   : > { %v1169_v2 = vpack.c.bf16 %v730_v1, %v728_v0 }
  0xe7   : > { %1233 = vst [vmem:[%s1435_s29 + $0x18] sm:$0xff] %v1169_v2   ;;  %v680_v3 = vpop.f32.mrf.mxu2 }
  0xe8   : > { %v769_v4 = vpop.f32.mrf.mxu3 }
  0xe9   : > { %v770_v6 = vadd.f32 %v769_v4, %v680_v3  ;;  %v643_v7 = vpop.f32.mrf.mxu0 }
  0xea   : > { %v732_v8 = vpop.f32.mrf.mxu1 }
  0xeb   : > { %v1209_v9 = vpack.c.bf16 %v770_v6, %v768_v5  ;;  %v733_v14 = vadd.f32 %v732_v8, %v643_v7 }
  0xed   : > { %1241 = vst [vmem:[%s1435_s29 + $0x58] sm:$0xff] %v1209_v9  }
  0xef   : > { %v683_v10 = vpop.f32.mrf.mxu2 }
  0xf0   : > { %v772_v11 = vpop.f32.mrf.mxu3 }
  0xf1   : > { %v645_v12 = vpop.f32.mrf.mxu0  ;;  %v773_v19 = vadd.f32 %v772_v11, %v683_v10 }
  0xf2   : > { %v734_v13 = vpop.f32.mrf.mxu1 }
  0xf3   : > { %v735_v15 = vadd.f32 %v734_v13, %v645_v12 }
  0xf5   : > { %v1174_v16 = vpack.c.bf16 %v735_v15, %v733_v14 }
  0xf7   : > { %1234 = vst [vmem:[%s1435_s29 + $0x20] sm:$0xff] %v1174_v16   ;;  %v685_v17 = vpop.f32.mrf.mxu2 }
  0xf8   : > { %v774_v18 = vpop.f32.mrf.mxu3 }
  0xf9   : > { %v775_v20 = vadd.f32 %v774_v18, %v685_v17  ;;  %v648_v21 = vpop.f32.mrf.mxu0 }
  0xfa   : > { %v737_v22 = vpop.f32.mrf.mxu1 }
  0xfb   : > { %v1214_v23 = vpack.c.bf16 %v775_v20, %v773_v19  ;;  %v738_v28 = vadd.f32 %v737_v22, %v648_v21 }
  0xfd   : > { %1242 = vst [vmem:[%s1435_s29 + $0x60] sm:$0xff] %v1214_v23  }
  0xff   : > { %v688_v24 = vpop.f32.mrf.mxu2 }
 0x100   : > { %v777_v25 = vpop.f32.mrf.mxu3 }
 0x101   : > { %v650_v26 = vpop.f32.mrf.mxu0  ;;  %v778_v33 = vadd.f32 %v777_v25, %v688_v24 }
 0x102   : > { %v739_v27 = vpop.f32.mrf.mxu1 }
 0x103   : > { %v740_v29 = vadd.f32 %v739_v27, %v650_v26 }
 0x105   : > { %v1179_v30 = vpack.c.bf16 %v740_v29, %v738_v28 }
 0x107   : > { %1235 = vst [vmem:[%s1435_s29 + $0x28] sm:$0xff] %v1179_v30   ;;  %v690_v31 = vpop.f32.mrf.mxu2 }
 0x108   : > { %v779_v32 = vpop.f32.mrf.mxu3 }
 0x109   : > { %v780_v34 = vadd.f32 %v779_v32, %v690_v31  ;;  %v653_v35 = vpop.f32.mrf.mxu0 }
 0x10a   : > { %v742_v36 = vpop.f32.mrf.mxu1 }
 0x10b   : > { %v1219_v37 = vpack.c.bf16 %v780_v34, %v778_v33  ;;  %v743_v42 = vadd.f32 %v742_v36, %v653_v35 }
 0x10d   : > { %1243 = vst [vmem:[%s1435_s29 + $0x68] sm:$0xff] %v1219_v37  }
 0x10f   : > { %v693_v38 = vpop.f32.mrf.mxu2 }
 0x110   : > { %v782_v39 = vpop.f32.mrf.mxu3 }
 0x111   : > { %v655_v40 = vpop.f32.mrf.mxu0  ;;  %v783_v47 = vadd.f32 %v782_v39, %v693_v38 }
 0x112   : > { %v744_v41 = vpop.f32.mrf.mxu1 }
 0x113   : > { %v745_v43 = vadd.f32 %v744_v41, %v655_v40 }
 0x115   : > { %v1184_v44 = vpack.c.bf16 %v745_v43, %v743_v42 }
 0x117   : > { %1236 = vst [vmem:[%s1435_s29 + $0x30] sm:$0xff] %v1184_v44   ;;  %v695_v45 = vpop.f32.mrf.mxu2 }
 0x118   : > { %v784_v46 = vpop.f32.mrf.mxu3 }
 0x119   : > { %v785_v48 = vadd.f32 %v784_v46, %v695_v45  ;;  %v658_v49 = vpop.f32.mrf.mxu0 }
 0x11a   : > { %v747_v50 = vpop.f32.mrf.mxu1 }
 0x11b   : > { %v1224_v51 = vpack.c.bf16 %v785_v48, %v783_v47  ;;  %v748_v56 = vadd.f32 %v747_v50, %v658_v49 }
 0x11d   : > { %1244 = vst [vmem:[%s1435_s29 + $0x70] sm:$0xff] %v1224_v51  }
 0x11f   : > { %v698_v52 = vpop.f32.mrf.mxu2 }
 0x120   : > { %v787_v53 = vpop.f32.mrf.mxu3 }
 0x121   : > { %v660_v54 = vpop.f32.mrf.mxu0  ;;  %v788_v61 = vadd.f32 %v787_v53, %v698_v52 }
 0x122   : > { %v749_v55 = vpop.f32.mrf.mxu1 }
 0x123   : > { %v750_v57 = vadd.f32 %v749_v55, %v660_v54 }
 0x125   : > { %v1189_v58 = vpack.c.bf16 %v750_v57, %v748_v56 }
 0x127   : > { %1237 = vst [vmem:[%s1435_s29 + $0x38] sm:$0xff] %v1189_v58   ;;  %v700_v59 = vpop.f32.mrf.mxu2 }
 0x128   : > { %v789_v60 = vpop.f32.mrf.mxu3 }
 0x129   : > { %v790_v62 = vadd.f32 %v789_v60, %v700_v59 }
 0x12b   : > { %v1229_v63 = vpack.c.bf16 %v790_v62, %v788_v61 }
 0x12d   : > { %1245 = vst [vmem:[%s1435_s29 + $0x78] sm:$0xff] %v1229_v63  }
 0x12e PF: > { %s12_s11 = sadd.s32 1, %s1308_s11   ;;  %s1465_s9 = smov %s1304_s10 }
 0x12f   : > { %p9_p5 = scmp.ge.s32.totalorder %s12_s11, 4   ;;  %s1466_s10 = smov %s1468_s12 }
 0x131   :  { %11 = sbr.rel (!%p9_p5) target bundleno = 2 (0x2), region = 69 }

// kernel: mfnet_forward.113
= control target key start
LH: loop header
LB: loop body
LE: loop exit
PB: predicated region body
PF: predicated region fallthrough
CT: control target
= control target key end

     0   :  { %s1383_s12 = smov 0   ;;  %s1385_s13 = smov 0   ;;  %s1502_s0 = inlined_call_operand.vmem [shape: bf16[512,128], index: 0, kind: input, shape index: {}]   ;;  %s1503_s1 = inlined_call_operand.vmem [shape: bf16[128,128], index: 1, kind: input, shape index: {}]   ;;  %s1504_s2 = inlined_call_operand.vmem [shape: bf16[512,128], index: 2, kind: input, shape index: {}]   ;;  %s1505_s3 = inlined_call_operand.vmem [shape: bf16[512,128], index: 3, kind: output, shape index: {}]  }
   0x1   :  { %s1387_s14 = smov 0  }
   0x2 LB: > { %s32_s15 = sadd.s32 1, %s1357_s13  ;;  %p989_p0 = scmp.ge.s32.totalorder %s1361_s14, 1  ;;  %s1361_s14 = sphi %s1387_s14, %s13_s14   ;;  %s1357_s13 = sphi %s1385_s13, %s1507_s13   ;;  %s1353_s12 = sphi %s1383_s12, %s1506_s12  }
   0x3   : > { %p34_p1 = scmp.ge.s32.totalorder %s32_s15, 2  ;;  %p196_p2 = scmp.lt.s32.totalorder %s1361_s14, 3 }
   0x5   : > { %s1509_s15 = smov (%p34_p1, %s32_s15), 0  ;;  %p197_p3 = pnand %p989_p0, %p196_p2 }
   0x6   : > { %s990_s18 = sshll.u32 (!%p197_p3), %s1353_s12, 5 }
   0x7   : > { %200 = sbr.rel (%p197_p3) target bundleno = 239 (0xef), region = 32  ;;  %p243_p4 = scmp.lt.s32.totalorder (!%p197_p3), %s990_s18, 63 }
   0xc   : > { %v1037_v0 = vld [vmem:[%s1503_s1 + $0x38] sm:$0xff]  ;;  %v1036_v1 = vld [vmem:[%s1503_s1 + $0x30] sm:$0xff]  ;;  %v1035_v2 = vld [vmem:[%s1503_s1 + $0x28] sm:$0xff]  ;;  %s1511_s18 = smov (!%p243_p4, %s990_s18), 63 }
   0xd   : > { %522 = vmatpush.bf16.msra.mxu0 %v1037_v0  ;;  %1291 = vmatpush.bf16.msra.mxu1 %v1037_v0  ;;  %v1034_v3 = vld [vmem:[%s1503_s1 + $0x20] sm:$0xff]  ;;  %s1413_s25 = sshll.u32 %s1511_s18, 2  ;;  %v1033_v4 = vld [vmem:[%s1503_s1 + $0x18] sm:$0xff]  ;;  %v1032_v5 = vld [vmem:[%s1503_s1 + $0x10] sm:$0xff] }
   0xe   : > { %1292 = vmatpush.bf16.msra.mxu2 %v1037_v0  ;;  %1293 = vmatpush.bf16.msra.mxu3 %v1037_v0  ;;  %s1422_s30 = scalar_lea.vmem %s1502_s0, %s1413_s25  ;;  %v1031_v14 = vld [vmem:[%s1503_s1 + $0x8] sm:$0xff]  ;;  %v1030_v23 = vld [vmem:[%s1503_s1] sm:$0xff]  ;;  %s1453_s12 = scalar_lea.vmem %s1504_s2, %s1413_s25 }
   0xf   : > { %v1039_v6 = vld [vmem:[%s1422_s30] sm:$0xff]   ;;  %v1246_v32 = vld [vmem:[%s1422_s30 + $0x8] sm:$0xff]   ;;  %v1247_v56 = vld [vmem:[%s1422_s30 + $0x10] sm:$0xff]   ;;  %s1463_s18 = scalar_lea.vmem %s1505_s3, %s1413_s25 }
  0x10   : > { %v1249_v7 = vld [vmem:[%s1422_s30 + $0x20] sm:$0xff]   ;;  %v1040_v10 = vunpack.c.l.bf16 %v1039_v6  ;;  %v1041_v11 = vunpack.c.h.bf16 %v1039_v6  ;;  %v1250_v33 = vld [vmem:[%s1422_s30 + $0x28] sm:$0xff]   ;;  %v1044_v36 = vunpack.c.l.bf16 %v1246_v32  ;;  %v1045_v37 = vunpack.c.h.bf16 %v1246_v32  ;;  %v1251_v57 = vld [vmem:[%s1422_s30 + $0x30] sm:$0xff]  }
  0x11   : > { %523 = vmatpush.bf16.msra.mxu0 %v1036_v1  ;;  %1294 = vmatpush.bf16.msra.mxu1 %v1036_v1  ;;  %v1253_v8 = vld [vmem:[%s1422_s30 + $0x40] sm:$0xff]   ;;  %v1056_v12 = vunpack.c.l.bf16 %v1249_v7  ;;  %v1057_v13 = vunpack.c.h.bf16 %v1249_v7  ;;  %v1254_v34 = vld [vmem:[%s1422_s30 + $0x48] sm:$0xff]   ;;  %v1060_v38 = vunpack.c.l.bf16 %v1250_v33  ;;  %v1061_v39 = vunpack.c.h.bf16 %v1250_v33  ;;  %v1255_v58 = vld [vmem:[%s1422_s30 + $0x50] sm:$0xff]  }
  0x12   : > { %1295 = vmatpush.bf16.msra.mxu2 %v1036_v1  ;;  %1296 = vmatpush.bf16.msra.mxu3 %v1036_v1  ;;  %v1257_v9 = vld [vmem:[%s1422_s30 + $0x60] sm:$0xff]   ;;  %v1072_v15 = vunpack.c.l.bf16 %v1253_v8  ;;  %v1073_v16 = vunpack.c.h.bf16 %v1253_v8  ;;  %v378_v19 = vmax.f32 %v1040_v10, 0.0  ;;  %v379_v20 = vmax.f32 %v1041_v11, 0.0  ;;  %v1258_v35 = vld [vmem:[%s1422_s30 + $0x68] sm:$0xff]   ;;  %v1259_v59 = vld [vmem:[%s1422_s30 + $0x70] sm:$0xff]  }
  0x13   : > { %v1088_v17 = vunpack.c.l.bf16 %v1257_v9  ;;  %v1089_v18 = vunpack.c.h.bf16 %v1257_v9  ;;  %v386_v21 = vmax.f32 %v1056_v12, 0.0  ;;  %v387_v22 = vmax.f32 %v1057_v13, 0.0 }
  0x14   : > { %v394_v24 = vmax.f32 %v1072_v15, 0.0  ;;  %v395_v25 = vmax.f32 %v1073_v16, 0.0  ;;  %v410_v28 = vpack.c.bf16 %v379_v20, %v378_v19  ;;  %v1076_v40 = vunpack.c.l.bf16 %v1254_v34  ;;  %v1248_v16 = vld [vmem:[%s1422_s30 + $0x18] sm:$0xff]  }
  0x15   : > { %524 = vmatpush.bf16.msra.mxu0 %v1035_v2  ;;  %1297 = vmatpush.bf16.msra.mxu1 %v1035_v2  ;;  %v402_v26 = vmax.f32 %v1088_v17, 0.0  ;;  %v403_v27 = vmax.f32 %v1089_v18, 0.0  ;;  %v414_v29 = vpack.c.bf16 %v387_v22, %v386_v21  ;;  %v1077_v41 = vunpack.c.h.bf16 %v1254_v34  ;;  %v1252_v17 = vld [vmem:[%s1422_s30 + $0x38] sm:$0xff]  }
  0x16   : > { %1298 = vmatpush.bf16.msra.mxu2 %v1035_v2  ;;  %1299 = vmatpush.bf16.msra.mxu3 %v1035_v2  ;;  %v418_v30 = vpack.c.bf16 %v395_v25, %v394_v24  ;;  %v1092_v42 = vunpack.c.l.bf16 %v1258_v35  ;;  %v1093_v43 = vunpack.c.h.bf16 %v1258_v35  ;;  %v380_v44 = vmax.f32 %v1044_v36, 0.0  ;;  %v1256_v18 = vld [vmem:[%s1422_s30 + $0x58] sm:$0xff]  }
  0x17   : > { %v422_v31 = vpack.c.bf16 %v403_v27, %v402_v26  ;;  %v381_v45 = vmax.f32 %v1045_v37, 0.0  ;;  %v388_v46 = vmax.f32 %v1060_v38, 0.0  ;;  %v389_v47 = vmax.f32 %v1061_v39, 0.0  ;;  %v1260_v19 = vld [vmem:[%s1422_s30 + $0x78] sm:$0xff]  }
  0x18   : > { %v396_v48 = vmax.f32 %v1076_v40, 0.0  ;;  %v397_v49 = vmax.f32 %v1077_v41, 0.0  ;;  %v404_v50 = vmax.f32 %v1092_v42, 0.0  ;;  %v405_v51 = vmax.f32 %v1093_v43, 0.0  ;;  %v1103_v42 = vld [vmem:[%s1453_s12] sm:$0xff]  }
  0x19   : > { %525 = vmatpush.bf16.msra.mxu0 %v1034_v3  ;;  %1300 = vmatpush.bf16.msra.mxu1 %v1034_v3  ;;  %v411_v52 = vpack.c.bf16 %v381_v45, %v380_v44  ;;  %v415_v53 = vpack.c.bf16 %v389_v47, %v388_v46  ;;  %v1048_v60 = vunpack.c.l.bf16 %v1247_v56  ;;  %v1049_v61 = vunpack.c.h.bf16 %v1247_v56  ;;  %v1264_v43 = vld [vmem:[%s1453_s12 + $0x20] sm:$0xff]  }
  0x1a   : > { %1301 = vmatpush.bf16.msra.mxu2 %v1034_v3  ;;  %1302 = vmatpush.bf16.msra.mxu3 %v1034_v3  ;;  %v419_v54 = vpack.c.bf16 %v397_v49, %v396_v48  ;;  %v423_v55 = vpack.c.bf16 %v405_v51, %v404_v50  ;;  %v1064_v62 = vunpack.c.l.bf16 %v1251_v57  ;;  %v1065_v63 = vunpack.c.h.bf16 %v1251_v57 }
  0x1b   : > { %v1080_v0 = vunpack.c.l.bf16 %v1255_v58  ;;  %v1081_v1 = vunpack.c.h.bf16 %v1255_v58  ;;  %v1096_v2 = vunpack.c.l.bf16 %v1259_v59  ;;  %v1097_v3 = vunpack.c.h.bf16 %v1259_v59 }
  0x1c   : > { %v390_v6 = vmax.f32 %v1064_v62, 0.0  ;;  %v391_v7 = vmax.f32 %v1065_v63, 0.0  ;;  %v1052_v20 = vunpack.c.l.bf16 %v1248_v16  ;;  %v1053_v21 = vunpack.c.h.bf16 %v1248_v16 }
  0x1d   : > { %526 = vmatpush.bf16.msra.mxu0 %v1033_v4  ;;  %1303 = vmatpush.bf16.msra.mxu1 %v1033_v4  ;;  %v398_v8 = vmax.f32 %v1080_v0, 0.0  ;;  %v399_v9 = vmax.f32 %v1081_v1, 0.0  ;;  %v406_v10 = vmax.f32 %v1096_v2, 0.0  ;;  %v407_v11 = vmax.f32 %v1097_v3, 0.0 }
  0x1e   : > { %1304 = vmatpush.bf16.msra.mxu2 %v1033_v4  ;;  %1305 = vmatpush.bf16.msra.mxu3 %v1033_v4  ;;  %v382_v4 = vmax.f32 %v1048_v60, 0.0  ;;  %v416_v13 = vpack.c.bf16 %v391_v7, %v390_v6  ;;  %v1068_v22 = vunpack.c.l.bf16 %v1252_v17  ;;  %v1084_v24 = vunpack.c.l.bf16 %v1256_v18 }
  0x1f   : > { %v424_v15 = vpack.c.bf16 %v407_v11, %v406_v10  ;;  %v1085_v25 = vunpack.c.h.bf16 %v1256_v18  ;;  %v1100_v26 = vunpack.c.l.bf16 %v1260_v19  ;;  %v1101_v27 = vunpack.c.h.bf16 %v1260_v19  ;;  %v1261_v10 = vld [vmem:[%s1453_s12 + $0x8] sm:$0xff]  }
  0x20   : > { %v400_v32 = vmax.f32 %v1084_v24, 0.0  ;;  %v1104_v44 = vunpack.c.l.bf16 %v1103_v42  ;;  %v1120_v45 = vunpack.c.l.bf16 %v1264_v43  ;;  %v1105_v46 = vunpack.c.h.bf16 %v1103_v42  ;;  %v1265_v11 = vld [vmem:[%s1453_s12 + $0x28] sm:$0xff]   ;;  %v1262_v42 = vld [vmem:[%s1453_s12 + $0x10] sm:$0xff]  }
  0x21   : > { %527 = vmatpush.bf16.msra.mxu0 %v1032_v5  ;;  %1306 = vmatpush.bf16.msra.mxu1 %v1032_v5  ;;  %v401_v33 = vmax.f32 %v1085_v25, 0.0  ;;  %v408_v34 = vmax.f32 %v1100_v26, 0.0  ;;  %v409_v35 = vmax.f32 %v1101_v27, 0.0  ;;  %v1121_v47 = vunpack.c.h.bf16 %v1264_v43  ;;  %v1266_v43 = vld [vmem:[%s1453_s12 + $0x30] sm:$0xff]  }
  0x22   : > { %1307 = vmatpush.bf16.msra.mxu2 %v1032_v5  ;;  %1308 = vmatpush.bf16.msra.mxu3 %v1032_v5  ;;  %v383_v5 = vmax.f32 %v1049_v61, 0.0 }
  0x23   : > { %v421_v38 = vpack.c.bf16 %v401_v33, %v400_v32  ;;  %v425_v39 = vpack.c.bf16 %v409_v35, %v408_v34 }
  0x24   : > { %v412_v12 = vpack.c.bf16 %v383_v5, %v382_v4 }
  0x25   : > { %528 = vmatpush.bf16.msra.mxu0 %v1031_v14  ;;  %1309 = vmatpush.bf16.msra.mxu1 %v1031_v14 }
  0x26   : > { %1310 = vmatpush.bf16.msra.mxu2 %v1031_v14  ;;  %1311 = vmatpush.bf16.msra.mxu3 %v1031_v14  ;;  %v420_v14 = vpack.c.bf16 %v399_v9, %v398_v8 }
  0x29   : > { %529 = vmatpush.bf16.msra.mxu0 %v1030_v23  ;;  %1312 = vmatpush.bf16.msra.mxu1 %v1030_v23 }
  0x2a   : > { %1313 = vmatpush.bf16.msra.mxu2 %v1030_v23  ;;  %1314 = vmatpush.bf16.msra.mxu3 %v1030_v23  ;;  %v1069_v23 = vunpack.c.h.bf16 %v1252_v17 }
  0x2c   : > { %530 = vmatmul.bf16.vlgmr.msra.gmra.mxu0 %v410_v28  ;;  %550 = vmatmul.bf16.vlgmr.msra.gmra.mxu1 %v414_v29  ;;  %v384_v28 = vmax.f32 %v1052_v20, 0.0  ;;  %v385_v29 = vmax.f32 %v1053_v21, 0.0 }
  0x2d   : > { %570 = vmatmul.bf16.vlgmr.msra.gmra.mxu2 %v418_v30  ;;  %590 = vmatmul.bf16.vlgmr.msra.gmra.mxu3 %v422_v31  ;;  %v392_v30 = vmax.f32 %v1068_v22, 0.0  ;;  %v393_v31 = vmax.f32 %v1069_v23, 0.0  ;;  %v1269_v22 = vld [vmem:[%s1453_s12 + $0x48] sm:$0xff]  }
  0x2e   : > { %v413_v36 = vpack.c.bf16 %v385_v29, %v384_v28  ;;  %v1273_v23 = vld [vmem:[%s1453_s12 + $0x68] sm:$0xff]   ;;  %v1140_v28 = vunpack.c.l.bf16 %v1269_v22 }
  0x2f   : > { %v417_v37 = vpack.c.bf16 %v393_v31, %v392_v30  ;;  %v1156_v29 = vunpack.c.l.bf16 %v1273_v23  ;;  %v1141_v30 = vunpack.c.h.bf16 %v1269_v22  ;;  %v1157_v31 = vunpack.c.h.bf16 %v1273_v23  ;;  %v1271_v22 = vld [vmem:[%s1453_s12 + $0x58] sm:$0xff]  }
  0x30   : > { %v1275_v23 = vld [vmem:[%s1453_s12 + $0x78] sm:$0xff]  }
  0x3c   : > { %535 = vmatmul.bf16.gmra.mxu0 %v411_v52  ;;  %555 = vmatmul.bf16.gmra.mxu1 %v415_v53 }
  0x3d   : > { %575 = vmatmul.bf16.gmra.mxu2 %v419_v54  ;;  %595 = vmatmul.bf16.gmra.mxu3 %v423_v55  ;;  %v1268_v54 = vld [vmem:[%s1453_s12 + $0x40] sm:$0xff]  }
  0x3e   : > { %v1272_v55 = vld [vmem:[%s1453_s12 + $0x60] sm:$0xff]   ;;  %v1136_v60 = vunpack.c.l.bf16 %v1268_v54  ;;  %v1137_v62 = vunpack.c.h.bf16 %v1268_v54  ;;  %v1270_v54 = vld [vmem:[%s1453_s12 + $0x50] sm:$0xff]  }
  0x3f   : > { %v1152_v61 = vunpack.c.l.bf16 %v1272_v55  ;;  %v1153_v63 = vunpack.c.h.bf16 %v1272_v55  ;;  %v1274_v55 = vld [vmem:[%s1453_s12 + $0x70] sm:$0xff]  }
  0x4c   : > { %540 = vmatmul.bf16.gmra.mxu0 %v412_v12  ;;  %560 = vmatmul.bf16.gmra.mxu1 %v416_v13  ;;  %v1108_v12 = vunpack.c.l.bf16 %v1261_v10  ;;  %v1124_v13 = vunpack.c.l.bf16 %v1265_v11 }
  0x4d   : > { %580 = vmatmul.bf16.gmra.mxu2 %v420_v14  ;;  %600 = vmatmul.bf16.gmra.mxu3 %v424_v15  ;;  %v1109_v14 = vunpack.c.h.bf16 %v1261_v10  ;;  %v1125_v15 = vunpack.c.h.bf16 %v1265_v11  ;;  %v1263_v10 = vld [vmem:[%s1453_s12 + $0x18] sm:$0xff]  }
  0x4e   : > { %v1267_v11 = vld [vmem:[%s1453_s12 + $0x38] sm:$0xff]  }
  0x5c   : > { %545 = vmatmul.bf16.gmra.mxu0 %v413_v36  ;;  %565 = vmatmul.bf16.gmra.mxu1 %v417_v37 }
  0x5d   : > { %585 = vmatmul.bf16.gmra.mxu2 %v421_v38  ;;  %605 = vmatmul.bf16.gmra.mxu3 %v425_v39 }
  0xa9   : > { %v531_v40 = vpop.f32.mrf.mxu0  ;;  %v551_v41 = vpop.f32.mrf.mxu1 }
  0xaa   : > { %v774_v52 = vadd.f32 %v1104_v44, %v531_v40  ;;  %v782_v53 = vadd.f32 %v1120_v45, %v551_v41  ;;  %v1112_v44 = vunpack.c.l.bf16 %v1262_v42  ;;  %v1128_v45 = vunpack.c.l.bf16 %v1266_v43 }
  0xb0   : > { %v571_v48 = vpop.f32.mrf.mxu2  ;;  %v591_v49 = vpop.f32.mrf.mxu3 }
  0xb1   : > { %v533_v50 = vpop.f32.mrf.mxu0  ;;  %v553_v51 = vpop.f32.mrf.mxu1  ;;  %v790_v2 = vadd.f32 %v1136_v60, %v571_v48  ;;  %v798_v3 = vadd.f32 %v1152_v61, %v591_v49  ;;  %v1144_v60 = vunpack.c.l.bf16 %v1270_v54  ;;  %v1160_v61 = vunpack.c.l.bf16 %v1274_v55 }
  0xb2   : > { %v775_v56 = vadd.f32 %v1105_v46, %v533_v50  ;;  %v783_v57 = vadd.f32 %v1121_v47, %v553_v51  ;;  %v1113_v46 = vunpack.c.h.bf16 %v1262_v42  ;;  %v1129_v47 = vunpack.c.h.bf16 %v1266_v43 }
  0xb4   : > { %v1169_v58 = vpack.c.bf16 %v775_v56, %v774_v52  ;;  %v1189_v59 = vpack.c.bf16 %v783_v57, %v782_v53 }
  0xb6   : > { %1170 = vst [vmem:[%s1463_s18] sm:$0xff] %v1169_v58  }
  0xb7   : > { %1279 = vst [vmem:[%s1463_s18 + $0x20] sm:$0xff] %v1189_v59  }
  0xb8   : > { %v573_v0 = vpop.f32.mrf.mxu2  ;;  %v593_v1 = vpop.f32.mrf.mxu3 }
  0xb9   : > { %v791_v4 = vadd.f32 %v1137_v62, %v573_v0  ;;  %v799_v5 = vadd.f32 %v1153_v63, %v593_v1  ;;  %v536_v6 = vpop.f32.mrf.mxu0  ;;  %v556_v7 = vpop.f32.mrf.mxu1  ;;  %v1145_v62 = vunpack.c.h.bf16 %v1270_v54  ;;  %v1161_v63 = vunpack.c.h.bf16 %v1274_v55 }
  0xba   : > { %v776_v20 = vadd.f32 %v1108_v12, %v536_v6  ;;  %v784_v21 = vadd.f32 %v1124_v13, %v556_v7  ;;  %v1116_v12 = vunpack.c.l.bf16 %v1263_v10  ;;  %v1132_v13 = vunpack.c.l.bf16 %v1267_v11 }
  0xbb   : > { %v1209_v8 = vpack.c.bf16 %v791_v4, %v790_v2  ;;  %v1229_v9 = vpack.c.bf16 %v799_v5, %v798_v3 }
  0xbd   : > { %1283 = vst [vmem:[%s1463_s18 + $0x40] sm:$0xff] %v1209_v8  }
  0xbe   : > { %1287 = vst [vmem:[%s1463_s18 + $0x60] sm:$0xff] %v1229_v9  }
  0xc0   : > { %v576_v16 = vpop.f32.mrf.mxu2  ;;  %v596_v17 = vpop.f32.mrf.mxu3 }
  0xc1   : > { %v538_v18 = vpop.f32.mrf.mxu0  ;;  %v558_v19 = vpop.f32.mrf.mxu1  ;;  %v792_v34 = vadd.f32 %v1140_v28, %v576_v16  ;;  %v800_v35 = vadd.f32 %v1156_v29, %v596_v17  ;;  %v1148_v28 = vunpack.c.l.bf16 %v1271_v22  ;;  %v1164_v29 = vunpack.c.l.bf16 %v1275_v23 }
  0xc2   : > { %v777_v24 = vadd.f32 %v1109_v14, %v538_v18  ;;  %v785_v25 = vadd.f32 %v1125_v15, %v558_v19  ;;  %v1117_v14 = vunpack.c.h.bf16 %v1263_v10  ;;  %v1133_v15 = vunpack.c.h.bf16 %v1267_v11 }
  0xc4   : > { %v1174_v26 = vpack.c.bf16 %v777_v24, %v776_v20  ;;  %v1194_v27 = vpack.c.bf16 %v785_v25, %v784_v21 }
  0xc6   : > { %1276 = vst [vmem:[%s1463_s18 + $0x8] sm:$0xff] %v1174_v26  }
  0xc7   : > { %1280 = vst [vmem:[%s1463_s18 + $0x28] sm:$0xff] %v1194_v27  }
  0xc8   : > { %v578_v32 = vpop.f32.mrf.mxu2  ;;  %v598_v33 = vpop.f32.mrf.mxu3 }
  0xc9   : > { %v793_v36 = vadd.f32 %v1141_v30, %v578_v32  ;;  %v801_v37 = vadd.f32 %v1157_v31, %v598_v33  ;;  %v541_v38 = vpop.f32.mrf.mxu0  ;;  %v561_v39 = vpop.f32.mrf.mxu1  ;;  %v1149_v30 = vunpack.c.h.bf16 %v1271_v22  ;;  %v1165_v31 = vunpack.c.h.bf16 %v1275_v23 }
  0xca   : > { %v778_v52 = vadd.f32 %v1112_v44, %v541_v38  ;;  %v786_v53 = vadd.f32 %v1128_v45, %v561_v39 }
  0xcb   : > { %v1214_v40 = vpack.c.bf16 %v793_v36, %v792_v34  ;;  %v1234_v41 = vpack.c.bf16 %v801_v37, %v800_v35 }
  0xcd   : > { %1284 = vst [vmem:[%s1463_s18 + $0x48] sm:$0xff] %v1214_v40  }
  0xce   : > { %1288 = vst [vmem:[%s1463_s18 + $0x68] sm:$0xff] %v1234_v41  }
  0xd0   : > { %v581_v48 = vpop.f32.mrf.mxu2  ;;  %v601_v49 = vpop.f32.mrf.mxu3 }
  0xd1   : > { %v543_v50 = vpop.f32.mrf.mxu0  ;;  %v563_v51 = vpop.f32.mrf.mxu1  ;;  %v794_v2 = vadd.f32 %v1144_v60, %v581_v48  ;;  %v802_v3 = vadd.f32 %v1160_v61, %v601_v49 }
  0xd2   : > { %v779_v56 = vadd.f32 %v1113_v46, %v543_v50  ;;  %v787_v57 = vadd.f32 %v1129_v47, %v563_v51 }
  0xd4   : > { %v1179_v58 = vpack.c.bf16 %v779_v56, %v778_v52  ;;  %v1199_v59 = vpack.c.bf16 %v787_v57, %v786_v53 }
  0xd6   : > { %1277 = vst [vmem:[%s1463_s18 + $0x10] sm:$0xff] %v1179_v58  }
  0xd7   : > { %1281 = vst [vmem:[%s1463_s18 + $0x30] sm:$0xff] %v1199_v59  }
  0xd8   : > { %v583_v0 = vpop.f32.mrf.mxu2  ;;  %v603_v1 = vpop.f32.mrf.mxu3 }
  0xd9   : > { %v795_v4 = vadd.f32 %v1145_v62, %v583_v0  ;;  %v803_v5 = vadd.f32 %v1161_v63, %v603_v1  ;;  %v546_v6 = vpop.f32.mrf.mxu0  ;;  %v566_v7 = vpop.f32.mrf.mxu1 }
  0xda   : > { %v780_v20 = vadd.f32 %v1116_v12, %v546_v6  ;;  %v788_v21 = vadd.f32 %v1132_v13, %v566_v7 }
  0xdb   : > { %v1219_v8 = vpack.c.bf16 %v795_v4, %v794_v2  ;;  %v1239_v9 = vpack.c.bf16 %v803_v5, %v802_v3 }
  0xdd   : > { %1285 = vst [vmem:[%s1463_s18 + $0x50] sm:$0xff] %v1219_v8  }
  0xde   : > { %1289 = vst [vmem:[%s1463_s18 + $0x70] sm:$0xff] %v1239_v9  }
  0xe0   : > { %v586_v16 = vpop.f32.mrf.mxu2  ;;  %v606_v17 = vpop.f32.mrf.mxu3 }
  0xe1   : > { %v548_v18 = vpop.f32.mrf.mxu0  ;;  %v568_v19 = vpop.f32.mrf.mxu1  ;;  %v796_v34 = vadd.f32 %v1148_v28, %v586_v16  ;;  %v804_v35 = vadd.f32 %v1164_v29, %v606_v17 }
  0xe2   : > { %v781_v24 = vadd.f32 %v1117_v14, %v548_v18  ;;  %v789_v25 = vadd.f32 %v1133_v15, %v568_v19 }
  0xe4   : > { %v1184_v26 = vpack.c.bf16 %v781_v24, %v780_v20  ;;  %v1204_v27 = vpack.c.bf16 %v789_v25, %v788_v21 }
  0xe6   : > { %1278 = vst [vmem:[%s1463_s18 + $0x18] sm:$0xff] %v1184_v26  }
  0xe7   : > { %1282 = vst [vmem:[%s1463_s18 + $0x38] sm:$0xff] %v1204_v27  }
  0xe8   : > { %v588_v32 = vpop.f32.mrf.mxu2  ;;  %v608_v33 = vpop.f32.mrf.mxu3 }
  0xe9   : > { %v797_v36 = vadd.f32 %v1149_v30, %v588_v32  ;;  %v805_v37 = vadd.f32 %v1165_v31, %v608_v33 }
  0xeb   : > { %v1224_v38 = vpack.c.bf16 %v797_v36, %v796_v34  ;;  %v1244_v39 = vpack.c.bf16 %v805_v37, %v804_v35 }
  0xed   : > { %1286 = vst [vmem:[%s1463_s18 + $0x58] sm:$0xff] %v1224_v38  }
  0xee   : > { %1290 = vst [vmem:[%s1463_s18 + $0x78] sm:$0xff] %v1244_v39  }
  0xef PF: > { %s13_s14 = sadd.s32 1, %s1361_s14   ;;  %s1506_s12 = smov %s1357_s13 }
  0xf0   : > { %p10_p5 = scmp.ge.s32.totalorder %s13_s14, 4   ;;  %s1507_s13 = smov %s1509_s15 }
  0xf2   :  { %12 = sbr.rel (!%p10_p5) target bundleno = 2 (0x2), region = 76 }

// kernel: mfnet_forward.114
= control target key start
LH: loop header
LB: loop body
LE: loop exit
PB: predicated region body
PF: predicated region fallthrough
CT: control target
= control target key end

     0   :  { %s1016_s9 = smov 0   ;;  %s1018_s10 = smov 0   ;;  %s1132_s0 = inlined_call_operand.vmem [shape: bf16[4096,128], index: 0, kind: input, shape index: {}]   ;;  %s1133_s1 = inlined_call_operand.vmem [shape: bf16[128,128], index: 1, kind: input, shape index: {}]   ;;  %s1134_s2 = inlined_call_operand.vmem [shape: f32[4096,128], index: 2, kind: output, shape index: {}]  }
   0x1   :  { %s1020_s11 = smov 0  }
   0x2 LB: > { %s31_s12 = sadd.s32 1, %s995_s10  ;;  %p802_p0 = scmp.ge.s32.totalorder %s999_s11, 1  ;;  %s999_s11 = sphi %s1020_s11, %s12_s11   ;;  %s995_s10 = sphi %s1018_s10, %s1136_s10   ;;  %s991_s9 = sphi %s1016_s9, %s1135_s9  }
   0x3   : > { %p33_p1 = scmp.ge.s32.totalorder %s31_s12, 16  ;;  %p155_p2 = scmp.lt.s32.totalorder %s999_s11, 17 }
   0x5   : > { %s1138_s12 = smov (%p33_p1, %s31_s12), 0  ;;  %p156_p3 = pnand %p802_p0, %p155_p2 }
   0x6   : > { %s803_s21 = sshll.u32 (!%p156_p3), %s991_s9, 5 }
   0x7   : > { %159 = sbr.rel (%p156_p3) target bundleno = 235 (0xeb), region = 28  ;;  %p192_p4 = scmp.lt.s32.totalorder (!%p156_p3), %s803_s21, 511 }
   0xc   : > { %v928_v0 = vld [vmem:[%s1133_s1 + $0x38] sm:$0xff]  ;;  %v927_v1 = vld [vmem:[%s1133_s1 + $0x30] sm:$0xff]  ;;  %v926_v2 = vld [vmem:[%s1133_s1 + $0x28] sm:$0xff]  ;;  %s1140_s21 = smov (!%p192_p4, %s803_s21), 511 }
   0xd   : > { %478 = vmatpush.bf16.msra.mxu0 %v928_v0  ;;  %929 = vmatpush.bf16.msra.mxu1 %v928_v0  ;;  %v925_v3 = vld [vmem:[%s1133_s1 + $0x20] sm:$0xff]  ;;  %v924_v4 = vld [vmem:[%s1133_s1 + $0x18] sm:$0xff]  ;;  %v923_v5 = vld [vmem:[%s1133_s1 + $0x10] sm:$0xff]  ;;  %s804_s28 = sshll.u32 %s1140_s21, 2  ;;  %s806_s6 = sshll.u32 %s1140_s21, 3 }
   0xe   : > { %930 = vmatpush.bf16.msra.mxu2 %v928_v0  ;;  %931 = vmatpush.bf16.msra.mxu3 %v928_v0  ;;  %v922_v6 = vld [vmem:[%s1133_s1 + $0x8] sm:$0xff]  ;;  %v921_v7 = vld [vmem:[%s1133_s1] sm:$0xff]  ;;  %s1067_s5 = scalar_lea.vmem %s1132_s0, %s804_s28  ;;  %s1089_s9 = scalar_lea.vmem %s1134_s2, %s806_s6 }
   0xf   : > { %v905_v8 = vld [vmem:[%s1067_s5] sm:$0xff]  ;;  %v906_v12 = vld [vmem:[%s1067_s5 + $0x8] sm:$0xff]  ;;  %v907_v16 = vld [vmem:[%s1067_s5 + $0x10] sm:$0xff] }
  0x10   : > { %v909_v9 = vld [vmem:[%s1067_s5 + $0x20] sm:$0xff]  ;;  %v910_v13 = vld [vmem:[%s1067_s5 + $0x28] sm:$0xff]  ;;  %v911_v17 = vld [vmem:[%s1067_s5 + $0x30] sm:$0xff] }
  0x11   : > { %479 = vmatpush.bf16.msra.mxu0 %v927_v1  ;;  %932 = vmatpush.bf16.msra.mxu1 %v927_v1  ;;  %v913_v10 = vld [vmem:[%s1067_s5 + $0x40] sm:$0xff]  ;;  %v914_v14 = vld [vmem:[%s1067_s5 + $0x48] sm:$0xff]  ;;  %v915_v18 = vld [vmem:[%s1067_s5 + $0x50] sm:$0xff] }
  0x12   : > { %933 = vmatpush.bf16.msra.mxu2 %v927_v1  ;;  %934 = vmatpush.bf16.msra.mxu3 %v927_v1  ;;  %v917_v11 = vld [vmem:[%s1067_s5 + $0x60] sm:$0xff]  ;;  %v918_v15 = vld [vmem:[%s1067_s5 + $0x68] sm:$0xff]  ;;  %v919_v19 = vld [vmem:[%s1067_s5 + $0x70] sm:$0xff] }
  0x13   : > { %v908_v20 = vld [vmem:[%s1067_s5 + $0x18] sm:$0xff] }
  0x14   : > { %v912_v21 = vld [vmem:[%s1067_s5 + $0x38] sm:$0xff] }
  0x15   : > { %480 = vmatpush.bf16.msra.mxu0 %v926_v2  ;;  %935 = vmatpush.bf16.msra.mxu1 %v926_v2  ;;  %v916_v22 = vld [vmem:[%s1067_s5 + $0x58] sm:$0xff] }
  0x16   : > { %936 = vmatpush.bf16.msra.mxu2 %v926_v2  ;;  %937 = vmatpush.bf16.msra.mxu3 %v926_v2  ;;  %v920_v23 = vld [vmem:[%s1067_s5 + $0x78] sm:$0xff] }
  0x19   : > { %481 = vmatpush.bf16.msra.mxu0 %v925_v3  ;;  %938 = vmatpush.bf16.msra.mxu1 %v925_v3 }
  0x1a   : > { %939 = vmatpush.bf16.msra.mxu2 %v925_v3  ;;  %940 = vmatpush.bf16.msra.mxu3 %v925_v3 }
  0x1d   : > { %482 = vmatpush.bf16.msra.mxu0 %v924_v4  ;;  %941 = vmatpush.bf16.msra.mxu1 %v924_v4 }
  0x1e   : > { %942 = vmatpush.bf16.msra.mxu2 %v924_v4  ;;  %943 = vmatpush.bf16.msra.mxu3 %v924_v4 }
  0x21   : > { %483 = vmatpush.bf16.msra.mxu0 %v923_v5  ;;  %944 = vmatpush.bf16.msra.mxu1 %v923_v5 }
  0x22   : > { %945 = vmatpush.bf16.msra.mxu2 %v923_v5  ;;  %946 = vmatpush.bf16.msra.mxu3 %v923_v5 }
  0x25   : > { %484 = vmatpush.bf16.msra.mxu0 %v922_v6  ;;  %947 = vmatpush.bf16.msra.mxu1 %v922_v6 }
  0x26   : > { %948 = vmatpush.bf16.msra.mxu2 %v922_v6  ;;  %949 = vmatpush.bf16.msra.mxu3 %v922_v6 }
  0x29   : > { %485 = vmatpush.bf16.msra.mxu0 %v921_v7  ;;  %950 = vmatpush.bf16.msra.mxu1 %v921_v7 }
  0x2a   : > { %951 = vmatpush.bf16.msra.mxu2 %v921_v7  ;;  %952 = vmatpush.bf16.msra.mxu3 %v921_v7 }
  0x2c   : > { %486 = vmatmul.bf16.vlgmr.msra.gmra.mxu0 %v905_v8  ;;  %506 = vmatmul.bf16.vlgmr.msra.gmra.mxu1 %v909_v9 }
  0x2d   : > { %526 = vmatmul.bf16.vlgmr.msra.gmra.mxu2 %v913_v10  ;;  %546 = vmatmul.bf16.vlgmr.msra.gmra.mxu3 %v917_v11 }
  0x3c   : > { %491 = vmatmul.bf16.gmra.mxu0 %v906_v12  ;;  %511 = vmatmul.bf16.gmra.mxu1 %v910_v13 }
  0x3d   : > { %531 = vmatmul.bf16.gmra.mxu2 %v914_v14  ;;  %551 = vmatmul.bf16.gmra.mxu3 %v918_v15 }
  0x4c   : > { %496 = vmatmul.bf16.gmra.mxu0 %v907_v16  ;;  %516 = vmatmul.bf16.gmra.mxu1 %v911_v17 }
  0x4d   : > { %536 = vmatmul.bf16.gmra.mxu2 %v915_v18  ;;  %556 = vmatmul.bf16.gmra.mxu3 %v919_v19 }
  0x5c   : > { %501 = vmatmul.bf16.gmra.mxu0 %v908_v20  ;;  %521 = vmatmul.bf16.gmra.mxu1 %v912_v21 }
  0x5d   : > { %541 = vmatmul.bf16.gmra.mxu2 %v916_v22  ;;  %561 = vmatmul.bf16.gmra.mxu3 %v920_v23 }
  0xa9   : > { %v487_v24 = vpop.f32.mrf.mxu0  ;;  %v507_v25 = vpop.f32.mrf.mxu1 }
  0xaa   : > { %666 = vst [vmem:[%s1089_s9] sm:$0xff] %v487_v24 }
  0xab   : > { %674 = vst [vmem:[%s1089_s9 + $0x40] sm:$0xff] %v507_v25 }
  0xb0   : > { %v527_v26 = vpop.f32.mrf.mxu2  ;;  %v547_v27 = vpop.f32.mrf.mxu3 }
  0xb1   : > { %682 = vst [vmem:[%s1089_s9 + $0x80] sm:$0xff] %v527_v26  ;;  %v489_v28 = vpop.f32.mrf.mxu0  ;;  %v509_v29 = vpop.f32.mrf.mxu1 }
  0xb2   : > { %690 = vst [vmem:[%s1089_s9 + $0xc0] sm:$0xff] %v547_v27 }
  0xb3   : > { %667 = vst [vmem:[%s1089_s9 + $0x8] sm:$0xff] %v489_v28 }
  0xb4   : > { %675 = vst [vmem:[%s1089_s9 + $0x48] sm:$0xff] %v509_v29 }
  0xb8   : > { %v529_v30 = vpop.f32.mrf.mxu2  ;;  %v549_v31 = vpop.f32.mrf.mxu3 }
  0xb9   : > { %683 = vst [vmem:[%s1089_s9 + $0x88] sm:$0xff] %v529_v30  ;;  %v492_v32 = vpop.f32.mrf.mxu0  ;;  %v512_v33 = vpop.f32.mrf.mxu1 }
  0xba   : > { %691 = vst [vmem:[%s1089_s9 + $0xc8] sm:$0xff] %v549_v31 }
  0xbb   : > { %668 = vst [vmem:[%s1089_s9 + $0x10] sm:$0xff] %v492_v32 }
  0xbc   : > { %676 = vst [vmem:[%s1089_s9 + $0x50] sm:$0xff] %v512_v33 }
  0xc0   : > { %v532_v34 = vpop.f32.mrf.mxu2  ;;  %v552_v35 = vpop.f32.mrf.mxu3 }
  0xc1   : > { %684 = vst [vmem:[%s1089_s9 + $0x90] sm:$0xff] %v532_v34  ;;  %v494_v36 = vpop.f32.mrf.mxu0  ;;  %v514_v37 = vpop.f32.mrf.mxu1 }
  0xc2   : > { %692 = vst [vmem:[%s1089_s9 + $0xd0] sm:$0xff] %v552_v35 }
  0xc3   : > { %669 = vst [vmem:[%s1089_s9 + $0x18] sm:$0xff] %v494_v36 }
  0xc4   : > { %677 = vst [vmem:[%s1089_s9 + $0x58] sm:$0xff] %v514_v37 }
  0xc8   : > { %v534_v38 = vpop.f32.mrf.mxu2  ;;  %v554_v39 = vpop.f32.mrf.mxu3 }
  0xc9   : > { %685 = vst [vmem:[%s1089_s9 + $0x98] sm:$0xff] %v534_v38  ;;  %v497_v40 = vpop.f32.mrf.mxu0  ;;  %v517_v41 = vpop.f32.mrf.mxu1 }
  0xca   : > { %693 = vst [vmem:[%s1089_s9 + $0xd8] sm:$0xff] %v554_v39 }
  0xcb   : > { %670 = vst [vmem:[%s1089_s9 + $0x20] sm:$0xff] %v497_v40 }
  0xcc   : > { %678 = vst [vmem:[%s1089_s9 + $0x60] sm:$0xff] %v517_v41 }
  0xd0   : > { %v537_v42 = vpop.f32.mrf.mxu2  ;;  %v557_v43 = vpop.f32.mrf.mxu3 }
  0xd1   : > { %686 = vst [vmem:[%s1089_s9 + $0xa0] sm:$0xff] %v537_v42  ;;  %v499_v44 = vpop.f32.mrf.mxu0  ;;  %v519_v45 = vpop.f32.mrf.mxu1 }
  0xd2   : > { %694 = vst [vmem:[%s1089_s9 + $0xe0] sm:$0xff] %v557_v43 }
  0xd3   : > { %671 = vst [vmem:[%s1089_s9 + $0x28] sm:$0xff] %v499_v44 }
  0xd4   : > { %679 = vst [vmem:[%s1089_s9 + $0x68] sm:$0xff] %v519_v45 }
  0xd8   : > { %v539_v46 = vpop.f32.mrf.mxu2  ;;  %v559_v47 = vpop.f32.mrf.mxu3 }
  0xd9   : > { %687 = vst [vmem:[%s1089_s9 + $0xa8] sm:$0xff] %v539_v46  ;;  %v502_v48 = vpop.f32.mrf.mxu0  ;;  %v522_v49 = vpop.f32.mrf.mxu1 }
  0xda   : > { %695 = vst [vmem:[%s1089_s9 + $0xe8] sm:$0xff] %v559_v47 }
  0xdb   : > { %672 = vst [vmem:[%s1089_s9 + $0x30] sm:$0xff] %v502_v48 }
  0xdc   : > { %680 = vst [vmem:[%s1089_s9 + $0x70] sm:$0xff] %v522_v49 }
  0xe0   : > { %v542_v50 = vpop.f32.mrf.mxu2  ;;  %v562_v51 = vpop.f32.mrf.mxu3 }
  0xe1   : > { %688 = vst [vmem:[%s1089_s9 + $0xb0] sm:$0xff] %v542_v50  ;;  %v504_v52 = vpop.f32.mrf.mxu0  ;;  %v524_v53 = vpop.f32.mrf.mxu1 }
  0xe2   : > { %696 = vst [vmem:[%s1089_s9 + $0xf0] sm:$0xff] %v562_v51 }
  0xe3   : > { %673 = vst [vmem:[%s1089_s9 + $0x38] sm:$0xff] %v504_v52 }
  0xe4   : > { %681 = vst [vmem:[%s1089_s9 + $0x78] sm:$0xff] %v524_v53 }
  0xe8   : > { %v544_v54 = vpop.f32.mrf.mxu2  ;;  %v564_v55 = vpop.f32.mrf.mxu3 }
  0xe9   : > { %689 = vst [vmem:[%s1089_s9 + $0xb8] sm:$0xff] %v544_v54 }
  0xea   : > { %697 = vst [vmem:[%s1089_s9 + $0xf8] sm:$0xff] %v564_v55 }
  0xeb PF: > { %s12_s11 = sadd.s32 1, %s999_s11   ;;  %s1135_s9 = smov %s995_s10 }
  0xec   : > { %p9_p5 = scmp.ge.s32.totalorder %s12_s11, 18   ;;  %s1136_s10 = smov %s1138_s12 }
  0xee   :  { %11 = sbr.rel (!%p9_p5) target bundleno = 2 (0x2), region = 69 }

// kernel: mfnet_forward.115
= control target key start
LH: loop header
LB: loop body
LE: loop exit
PB: predicated region body
PF: predicated region fallthrough
CT: control target
= control target key end

     0   :  { %s911_s6 = smov 0   ;;  %s913_s7 = smov 0   ;;  %s1150_s0 = inlined_call_operand.vmem [shape: f32[1,4,4096], index: 0, kind: input, shape index: {}]   ;;  %s1151_s1 = inlined_call_operand.vmem [shape: f32[1,4,4096], index: 1, kind: output, shape index: {}]  }
   0x1   :  { %s915_s8 = smov 0  }
   0x2 LB: > { %s20_s9 = sadd.s32 1, %s895_s7  ;;  %p814_p0 = scmp.ge.s32.totalorder %s899_s8, 1  ;;  %s899_s8 = sphi %s915_s8, %s11_s8   ;;  %s895_s7 = sphi %s913_s7, %s1159_s7   ;;  %s891_s6 = sphi %s911_s6, %s1158_s6  }
   0x3   : > { %p21_p1 = scmp.ge.s32.totalorder %s20_s9, 2  ;;  %p108_p2 = scmp.lt.s32.totalorder %s899_s8, 3 }
   0x5   : > { %s1161_s9 = smov (%p21_p1, %s20_s9), 0  ;;  %p109_p3 = pnand %p814_p0, %p108_p2 }
   0x6   : > { %s815_s10 = sshll.u32 (!%p109_p3), %s891_s6, 4 }
   0x7   : > { %112 = sbr.rel (%p109_p3) target bundleno = 141 (0x8d), region = 24  ;;  %p139_p4 = scmp.lt.s32.totalorder (!%p109_p3), %s815_s10, 31 }
   0xc   : > { %s1163_s10 = smov (!%p139_p4, %s815_s10), 31  ;;  %vm215_vm0 = vcmask 1043456  }
   0xd   : > { %s816_s11 = sshll.u32 %s1163_s10, 2 }
   0xe   : > { %s937_s14 = scalar_lea.vmem %s1150_s0, %s816_s11  ;;  %s1097_s17 = scalar_lea.vmem %s1151_s1, %s816_s11 }
   0xf   : > { %v940_v0 = vld [vmem:[%s937_s14] sm:$0xff]  ;;  %v943_v1 = vld [vmem:[%s937_s14 + $0x8] sm:$0xff]  ;;  %v946_v2 = vld [vmem:[%s937_s14 + $0x10] sm:$0xff] }
  0x10   : > { %172 = vst [vmem:[#allocation1] ss:$2 sm:$0xff] %v940_v0  ;;  %v950_v3 = vld [vmem:[%s937_s14 + $0x18] sm:$0xff]  ;;  %v960_v16 = vld [vmem:[%s937_s14 + $0x20] sm:$0xff]  ;;  %v964_v22 = vld [vmem:[%s937_s14 + $0x28] sm:$0xff] }
  0x11   : > { %174 = vst [vmem:[#allocation1 + $0x10] ss:$2 sm:$0xff] %v943_v1  ;;  %v968_v27 = vld [vmem:[%s937_s14 + $0x30] sm:$0xff]  ;;  %v974_v37 = vld [vmem:[%s937_s14 + $0x38] sm:$0xff] }
  0x12   : > { %176 = vst [vmem:[#allocation1 + $0x20] ss:$2 sm:$0xff] %v946_v2 }
  0x13   : > { %178 = vst [vmem:[#allocation1 + $0x30] ss:$2 sm:$0xff] %v950_v3 }
  0x17   : > { %v179_v4 = vld.sshfl [vmem:[#allocation1] sm:$0xff pattern:$0x75316420]  ;;  %v180_v5 = vld.sshfl [vmem:[#allocation1 + $0x8] sm:$0xff pattern:$0x75316420] }
  0x18   : > { %v216_v6 = vsel %vm215_vm0, %v179_v4, -inf  ;;  %v223_v7 = vsel %vm215_vm0, %v180_v5, -inf  ;;  %v181_v8 = vld.sshfl [vmem:[#allocation1 + $0x10] sm:$0xff pattern:$0x75316420] }
  0x19   : > { %v217_v9 = vrot.slane %v216_v6, 4  ;;  %v224_v10 = vrot.slane %v223_v7, 4  ;;  %v182_v11 = vld.sshfl [vmem:[#allocation1 + $0x18] sm:$0xff pattern:$0x75316420]  ;;  %v230_v12 = vsel %vm215_vm0, %v181_v8, -inf }
  0x1a   : > { %v231_v13 = vrot.slane %v230_v12, 4  ;;  %v237_v14 = vsel %vm215_vm0, %v182_v11, -inf  ;;  %v183_v15 = vld.sshfl [vmem:[#allocation1 + $0x20] sm:$0xff pattern:$0x75316420] }
  0x1b   : > { %v218_v17 = vmax.f32 %v216_v6, %v217_v9  ;;  %v225_v18 = vmax.f32 %v223_v7, %v224_v10  ;;  %v238_v19 = vrot.slane %v237_v14, 4  ;;  %v184_v20 = vld.sshfl [vmem:[#allocation1 + $0x28] sm:$0xff pattern:$0x75316420]  ;;  %v244_v21 = vsel %vm215_vm0, %v183_v15, -inf }
  0x1c   : > { %v232_v23 = vmax.f32 %v230_v12, %v231_v13  ;;  %v245_v24 = vrot.slane %v244_v21, 4  ;;  %v251_v25 = vsel %vm215_vm0, %v184_v20, -inf  ;;  %v185_v26 = vld.sshfl [vmem:[#allocation1 + $0x30] sm:$0xff pattern:$0x75316420] }
  0x1d   : > { %v219_v28 = vrot.slane %v218_v17, 2  ;;  %v226_v29 = vrot.slane %v225_v18, 2  ;;  %v239_v30 = vmax.f32 %v237_v14, %v238_v19  ;;  %v252_v31 = vrot.slane %v251_v25, 4  ;;  %v186_v32 = vld.sshfl [vmem:[#allocation1 + $0x38] sm:$0xff pattern:$0x75316420] }
  0x1e   : > { %v233_v33 = vrot.slane %v232_v23, 2  ;;  %v246_v34 = vmax.f32 %v244_v21, %v245_v24  ;;  %v258_v35 = vsel %vm215_vm0, %v185_v26, -inf  ;;  %v265_v36 = vsel %vm215_vm0, %v186_v32, -inf  ;;  %187 = vst [vmem:[#allocation1] ss:$2 sm:$0xff] %v960_v16 }
  0x1f   : > { %v220_v38 = vmax.f32 %v218_v17, %v219_v28  ;;  %v227_v39 = vmax.f32 %v225_v18, %v226_v29  ;;  %v240_v40 = vrot.slane %v239_v30, 2  ;;  %v253_v41 = vmax.f32 %v251_v25, %v252_v31  ;;  %188 = vst [vmem:[#allocation1 + $0x10] ss:$2 sm:$0xff] %v964_v22 }
  0x20   : > { %v234_v42 = vmax.f32 %v232_v23, %v233_v33  ;;  %v247_v43 = vrot.slane %v246_v34, 2  ;;  %v259_v44 = vrot.slane %v258_v35, 4  ;;  %v266_v45 = vrot.slane %v265_v36, 4  ;;  %189 = vst [vmem:[#allocation1 + $0x20] ss:$2 sm:$0xff] %v968_v27 }
  0x21   : > { %v221_v46 = vrot.slane %v220_v38, 1  ;;  %v228_v47 = vrot.slane %v227_v39, 1  ;;  %v241_v48 = vmax.f32 %v239_v30, %v240_v40  ;;  %v254_v49 = vrot.slane %v253_v41, 2  ;;  %190 = vst [vmem:[#allocation1 + $0x30] ss:$2 sm:$0xff] %v974_v37 }
  0x22   : > { %v235_v50 = vrot.slane %v234_v42, 1  ;;  %v248_v51 = vmax.f32 %v246_v34, %v247_v43  ;;  %v260_v52 = vmax.f32 %v258_v35, %v259_v44  ;;  %v267_v53 = vmax.f32 %v265_v36, %v266_v45 }
  0x23   : > { %v229_v54 = vmax.f32 %v227_v39, %v228_v47  ;;  %v242_v55 = vrot.slane %v241_v48, 1  ;;  %v255_v56 = vmax.f32 %v253_v41, %v254_v49  ;;  %v222_v57 = vmax.f32 %v220_v38, %v221_v46 }
  0x24   : > { %v249_v58 = vrot.slane %v248_v51, 1  ;;  %v261_v59 = vrot.slane %v260_v52, 2  ;;  %v268_v60 = vrot.slane %v267_v53, 2  ;;  %v236_v62 = vmax.f32 %v234_v42, %v235_v50 }
  0x25   : > { %v344_v61 = vrot.slane %v229_v54, 4  ;;  %v243_v63 = vmax.f32 %v241_v48, %v242_v55  ;;  %v256_v4 = vrot.slane %v255_v56, 1  ;;  %v191_v5 = vld.sshfl [vmem:[#allocation1] sm:$0xff pattern:$0x75316420] }
  0x26   : > { %v250_v6 = vmax.f32 %v248_v51, %v249_v58  ;;  %v262_v7 = vmax.f32 %v260_v52, %v261_v59  ;;  %v269_v8 = vmax.f32 %v267_v53, %v268_v60  ;;  %v192_v9 = vld.sshfl [vmem:[#allocation1 + $0x8] sm:$0xff pattern:$0x75316420]  ;;  %v272_v10 = vsel %vm215_vm0, %v191_v5, -inf }
  0x27   : > { %v352_v11 = vsel %vm215_vm0, %v222_v57, %v344_v61  ;;  %v345_v12 = vrot.slane %v243_v63, 4  ;;  %v257_v13 = vmax.f32 %v255_v56, %v256_v4  ;;  %v273_v14 = vrot.slane %v272_v10, 4  ;;  %v193_v20 = vld.sshfl [vmem:[#allocation1 + $0x10] sm:$0xff pattern:$0x75316420] }
  0x28   : > { %v368_v15 = vsub.f32 %v940_v0, %v352_v11  ;;  %v263_v17 = vrot.slane %v262_v7, 1  ;;  %v270_v18 = vrot.slane %v269_v8, 1  ;;  %v279_v19 = vsel %vm215_vm0, %v192_v9, -inf  ;;  %v194_v31 = vld.sshfl [vmem:[#allocation1 + $0x18] sm:$0xff pattern:$0x75316420] }
  0x29   : > { %v353_v21 = vsel %vm215_vm0, %v236_v62, %v345_v12  ;;  %v346_v23 = vrot.slane %v257_v13, 4  ;;  %v274_v24 = vmax.f32 %v272_v10, %v273_v14  ;;  %v280_v25 = vrot.slane %v279_v19, 4  ;;  %v195_v39 = vld.sshfl [vmem:[#allocation1 + $0x20] sm:$0xff pattern:$0x75316420] }
  0x2a   : > { %v376_v26 = vmul.f32 1.442695, %v368_v15  ;;  %v369_v28 = vsub.f32 %v943_v1, %v353_v21  ;;  %v264_v29 = vmax.f32 %v262_v7, %v263_v17  ;;  %v271_v30 = vmax.f32 %v269_v8, %v270_v18  ;;  %v196_v43 = vld.sshfl [vmem:[#allocation1 + $0x28] sm:$0xff pattern:$0x75316420] }
  0x2b   : > { %v354_v32 = vsel %vm215_vm0, %v250_v6, %v346_v23  ;;  %v275_v33 = vrot.slane %v274_v24, 2  ;;  %v281_v0 = vmax.f32 %v279_v19, %v280_v25  ;;  %v286_v34 = vsel %vm215_vm0, %v193_v20, -inf  ;;  %v197_v51 = vld.sshfl [vmem:[#allocation1 + $0x30] sm:$0xff pattern:$0x75316420] }
  0x2c   : > { %845 = vpow2.f32 %v376_v26  ;;  %v378_v35 = vmul.f32 1.442695, %v369_v28  ;;  %v370_v36 = vsub.f32 %v946_v2, %v354_v32  ;;  %v347_v38 = vrot.slane %v271_v30, 4  ;;  %v198_v54 = vld.sshfl [vmem:[#allocation1 + $0x38] sm:$0xff pattern:$0x75316420] }
  0x2d   : > { %v276_v40 = vmax.f32 %v274_v24, %v275_v33  ;;  %v282_v41 = vrot.slane %v281_v0, 2  ;;  %v287_v42 = vrot.slane %v286_v34, 4  ;;  %v293_v1 = vsel %vm215_vm0, %v194_v31, -inf }
  0x2e   : > { %847 = vpow2.f32 %v378_v35  ;;  %v380_v44 = vmul.f32 1.442695, %v370_v36  ;;  %v355_v45 = vsel %vm215_vm0, %v264_v29, %v347_v38  ;;  %v294_v46 = vrot.slane %v293_v1, 4 }
  0x2f   : > { %v371_v47 = vsub.f32 %v950_v3, %v355_v45  ;;  %v277_v48 = vrot.slane %v276_v40, 1  ;;  %v283_v49 = vmax.f32 %v281_v0, %v282_v41  ;;  %v288_v50 = vmax.f32 %v286_v34, %v287_v42 }
  0x30   : > { %849 = vpow2.f32 %v380_v44  ;;  %v295_v2 = vmax.f32 %v293_v1, %v294_v46  ;;  %v300_v52 = vsel %vm215_vm0, %v195_v39, -inf  ;;  %v307_v53 = vsel %vm215_vm0, %v196_v43, -inf }
  0x31   : > { %v382_v55 = vmul.f32 1.442695, %v371_v47  ;;  %v278_v56 = vmax.f32 %v276_v40, %v277_v48  ;;  %v284_v57 = vrot.slane %v283_v49, 1  ;;  %v289_v58 = vrot.slane %v288_v50, 2 }
  0x32   : > { %v993_v59 = vpop.eup %845  ;;  %v296_v60 = vrot.slane %v295_v2, 2  ;;  %v301_v61 = vrot.slane %v300_v52, 4  ;;  %v308_v3 = vrot.slane %v307_v53, 4  ;;  %v314_v62 = vsel %vm215_vm0, %v197_v51, -inf }
  0x33   : > { %851 = vpow2.f32 %v382_v55  ;;  %v285_v63 = vmax.f32 %v283_v49, %v284_v57  ;;  %400 = vst [vmem:[#allocation1] ss:$2 sm:$0xff] %v993_v59  ;;  %v290_v4 = vmax.f32 %v288_v50, %v289_v58  ;;  %v315_v5 = vrot.slane %v314_v62, 4 }
  0x34   : > { %v997_v6 = vpop.eup %847  ;;  %v297_v7 = vmax.f32 %v295_v2, %v296_v60  ;;  %v302_v8 = vmax.f32 %v300_v52, %v301_v61  ;;  %v309_v9 = vmax.f32 %v307_v53, %v308_v3  ;;  %v321_v10 = vsel %vm215_vm0, %v198_v54, -inf }
  0x35   : > { %v348_v11 = vrot.slane %v285_v63, 4  ;;  %v291_v12 = vrot.slane %v290_v4, 1  ;;  %402 = vst [vmem:[#allocation1 + $0x10] ss:$2 sm:$0xff] %v997_v6  ;;  %v316_v13 = vmax.f32 %v314_v62, %v315_v5  ;;  %v322_v14 = vrot.slane %v321_v10, 4 }
  0x36   : > { %v1001_v15 = vpop.eup %849  ;;  %v298_v17 = vrot.slane %v297_v7, 1  ;;  %v303_v18 = vrot.slane %v302_v8, 2  ;;  %v310_v19 = vrot.slane %v309_v9, 2 }
  0x37   : > { %v356_v20 = vsel %vm215_vm0, %v278_v56, %v348_v11  ;;  %404 = vst [vmem:[#allocation1 + $0x20] ss:$2 sm:$0xff] %v1001_v15  ;;  %v317_v21 = vrot.slane %v316_v13, 2  ;;  %v323_v23 = vmax.f32 %v321_v10, %v322_v14  ;;  %v292_v30 = vmax.f32 %v290_v4, %v291_v12 }
  0x38   : > { %v372_v24 = vsub.f32 %v960_v16, %v356_v20  ;;  %v299_v25 = vmax.f32 %v297_v7, %v298_v17  ;;  %v304_v26 = vmax.f32 %v302_v8, %v303_v18  ;;  %v311_v28 = vmax.f32 %v309_v9, %v310_v19 }
  0x39   : > { %v1006_v29 = vpop.eup %851  ;;  %v318_v31 = vmax.f32 %v316_v13, %v317_v21  ;;  %v324_v32 = vrot.slane %v323_v23, 2 }
  0x3a   : > { %v384_v33 = vmul.f32 1.442695, %v372_v24  ;;  %v349_v0 = vrot.slane %v299_v25, 4  ;;  %v305_v34 = vrot.slane %v304_v26, 1  ;;  %v312_v35 = vrot.slane %v311_v28, 1 }
  0x3b   : > { %v319_v36 = vrot.slane %v318_v31, 1  ;;  %v325_v38 = vmax.f32 %v323_v23, %v324_v32  ;;  %406 = vst [vmem:[#allocation1 + $0x30] ss:$2 sm:$0xff] %v1006_v29  ;;  %v407_v39 = vld.sshfl [vmem:[#allocation1] sm:$0xff pattern:$0x75316420] }
  0x3c   : > { %853 = vpow2.f32 %v384_v33  ;;  %v357_v16 = vsel %vm215_vm0, %v292_v30, %v349_v0  ;;  %v313_v40 = vmax.f32 %v311_v28, %v312_v35  ;;  %v408_v41 = vld.sshfl [vmem:[#allocation1 + $0x8] sm:$0xff pattern:$0x75316420]  ;;  %v409_v42 = vld.sshfl [vmem:[#allocation1 + $0x10] sm:$0xff pattern:$0x75316420]  ;;  %v306_v43 = vmax.f32 %v304_v26, %v305_v34 }
  0x3d   : > { %v373_v1 = vsub.f32 %v964_v22, %v357_v16  ;;  %v326_v44 = vrot.slane %v325_v38, 1  ;;  %v443_v45 = vsel %vm215_vm0, %v407_v39, 0.0  ;;  %v410_v46 = vld.sshfl [vmem:[#allocation1 + $0x18] sm:$0xff pattern:$0x75316420]  ;;  %v450_v49 = vsel %vm215_vm0, %v408_v41, 0.0 }
  0x3e   : > { %v350_v47 = vrot.slane %v313_v40, 4  ;;  %v444_v48 = vrot.slane %v443_v45, 4  ;;  %v457_v50 = vsel %vm215_vm0, %v409_v42, 0.0  ;;  %v451_v52 = vrot.slane %v450_v49, 4 }
  0x3f   : > { %v386_v51 = vmul.f32 1.442695, %v373_v1  ;;  %v327_v2 = vmax.f32 %v325_v38, %v326_v44  ;;  %v458_v53 = vrot.slane %v457_v50, 4  ;;  %v320_v55 = vmax.f32 %v318_v31, %v319_v36  ;;  %v411_v57 = vld.sshfl [vmem:[#allocation1 + $0x20] sm:$0xff pattern:$0x75316420] }
  0x40   : > { %v358_v54 = vsel %vm215_vm0, %v306_v43, %v350_v47  ;;  %v445_v56 = vadd.f32 %v444_v48, %v443_v45  ;;  %v464_v22 = vsel %vm215_vm0, %v410_v46, 0.0  ;;  %v452_v61 = vadd.f32 %v451_v52, %v450_v49  ;;  %v412_v3 = vld.sshfl [vmem:[#allocation1 + $0x28] sm:$0xff pattern:$0x75316420] }
  0x41   : > { %855 = vpow2.f32 %v386_v51  ;;  %v374_v58 = vsub.f32 %v968_v27, %v358_v54  ;;  %v351_v60 = vrot.slane %v327_v2, 4  ;;  %v459_v4 = vadd.f32 %v458_v53, %v457_v50 }
  0x42   : > { %v1017_v62 = vpop.eup %853  ;;  %v446_v63 = vrot.slane %v445_v56, 2  ;;  %v465_v5 = vrot.slane %v464_v22, 4  ;;  %v471_v7 = vsel %vm215_vm0, %v411_v57, 0.0  ;;  %v413_v8 = vld.sshfl [vmem:[#allocation1 + $0x30] sm:$0xff pattern:$0x75316420] }
  0x43   : > { %v388_v9 = vmul.f32 1.442695, %v374_v58  ;;  %v359_v10 = vsel %vm215_vm0, %v320_v55, %v351_v60  ;;  %415 = vst [vmem:[#allocation1] ss:$2 sm:$0xff] %v1017_v62  ;;  %v453_v11 = vrot.slane %v452_v61, 2  ;;  %v472_v12 = vrot.slane %v471_v7, 4 }
  0x44   : > { %v375_v27 = vsub.f32 %v974_v37, %v359_v10  ;;  %v460_v13 = vrot.slane %v459_v4, 2  ;;  %v466_v14 = vadd.f32 %v465_v5, %v464_v22  ;;  %v478_v17 = vsel %vm215_vm0, %v412_v3, 0.0  ;;  %v414_v18 = vld.sshfl [vmem:[#allocation1 + $0x38] sm:$0xff pattern:$0x75316420] }
  0x45   : > { %857 = vpow2.f32 %v388_v9  ;;  %v473_v19 = vadd.f32 %v472_v12, %v471_v7  ;;  %v479_v20 = vrot.slane %v478_v17, 4  ;;  %v485_v21 = vsel %vm215_vm0, %v413_v8, 0.0 }
  0x46   : > { %v390_v23 = vmul.f32 1.442695, %v375_v27  ;;  %v467_v24 = vrot.slane %v466_v14, 2  ;;  %v486_v25 = vrot.slane %v485_v21, 4  ;;  %v492_v26 = vsel %vm215_vm0, %v414_v18, 0.0 }
  0x47   : > { %v1026_v28 = vpop.eup %855  ;;  %v474_v30 = vrot.slane %v473_v19, 2  ;;  %v480_v31 = vadd.f32 %v479_v20, %v478_v17  ;;  %v493_v37 = vrot.slane %v492_v26, 4  ;;  %v447_v32 = vadd.f32 %v446_v63, %v445_v56 }
  0x48   : > { %859 = vpow2.f32 %v390_v23  ;;  %416 = vst [vmem:[#allocation1 + $0x10] ss:$2 sm:$0xff] %v1026_v28  ;;  %v487_v33 = vadd.f32 %v486_v25, %v485_v21  ;;  %v454_v0 = vadd.f32 %v453_v11, %v452_v61  ;;  %v461_v34 = vadd.f32 %v460_v13, %v459_v4 }
  0x49   : > { %v481_v35 = vrot.slane %v480_v31, 2  ;;  %v494_v36 = vadd.f32 %v493_v37, %v492_v26  ;;  %v468_v38 = vadd.f32 %v467_v24, %v466_v14  ;;  %v448_v16 = vrot.slane %v447_v32, 1 }
  0x4a   : > { %v488_v39 = vrot.slane %v487_v33, 2  ;;  %v455_v40 = vrot.slane %v454_v0, 1  ;;  %v475_v41 = vadd.f32 %v474_v30, %v473_v19  ;;  %v419_v42 = vld.sshfl [vmem:[#allocation1] sm:$0xff pattern:$0x75316420]  ;;  %v462_v47 = vrot.slane %v461_v34, 1 }
  0x4b   : > { %v1029_v1 = vpop.eup %857  ;;  %v495_v43 = vrot.slane %v494_v36, 2  ;;  %v469_v44 = vrot.slane %v468_v38, 1  ;;  %v482_v45 = vadd.f32 %v481_v35, %v480_v31  ;;  %v499_v52 = vsel %vm215_vm0, %v419_v42, 0.0  ;;  %v420_v56 = vld.sshfl [vmem:[#allocation1 + $0x8] sm:$0xff pattern:$0x75316420] }
  0x4c   : > { %417 = vst [vmem:[#allocation1 + $0x20] ss:$2 sm:$0xff] %v1029_v1  ;;  %v456_v46 = vadd.f32 %v455_v40, %v454_v0  ;;  %v476_v48 = vrot.slane %v475_v41, 1  ;;  %v489_v49 = vadd.f32 %v488_v39, %v487_v33  ;;  %v449_v54 = vadd.f32 %v448_v16, %v447_v32 }
  0x4d   : > { %v470_v50 = vadd.f32 %v469_v44, %v468_v38  ;;  %v483_v51 = vrot.slane %v482_v45, 1  ;;  %v496_v2 = vadd.f32 %v495_v43, %v494_v36  ;;  %v500_v22 = vrot.slane %v499_v52, 4 }
  0x4e   : > { %v1033_v53 = vpop.eup %859  ;;  %v571_v55 = vrot.slane %v456_v46, 4  ;;  %v490_v60 = vrot.slane %v489_v49, 1  ;;  %v463_v63 = vadd.f32 %v462_v47, %v461_v34  ;;  %v477_v5 = vadd.f32 %v476_v48, %v475_v41 }
  0x4f   : > { %418 = vst [vmem:[#allocation1 + $0x30] ss:$2 sm:$0xff] %v1033_v53  ;;  %v572_v57 = vrot.slane %v470_v50, 4  ;;  %v484_v58 = vadd.f32 %v483_v51, %v482_v45  ;;  %v497_v61 = vrot.slane %v496_v2, 1  ;;  %v501_v4 = vadd.f32 %v500_v22, %v499_v52 }
  0x50   : > { %v1037_v3 = vsel %vm215_vm0, %v449_v54, %v571_v55  ;;  %v506_v7 = vsel %vm215_vm0, %v420_v56, 0.0  ;;  %v491_v27 = vadd.f32 %v490_v60, %v489_v49  ;;  %v421_v25 = vld.sshfl [vmem:[#allocation1 + $0x10] sm:$0xff pattern:$0x75316420] }
  0x51   : > { %861 = vrcp.f32 %v1037_v3  ;;  %v1042_v8 = vsel %vm215_vm0, %v463_v63, %v572_v57  ;;  %v573_v9 = vrot.slane %v484_v58, 4  ;;  %v498_v10 = vadd.f32 %v497_v61, %v496_v2  ;;  %v422_v37 = vld.sshfl [vmem:[#allocation1 + $0x18] sm:$0xff pattern:$0x75316420] }
  0x52   : > { %v502_v11 = vrot.slane %v501_v4, 2  ;;  %v606_v12 = vand.u32 2147483648, %v1037_v3  ;;  %863 = vrcp.f32 %v1042_v8  ;;  %v604_v13 = vand.u32 2147483647, %v1037_v3 }
  0x53   : > { %v621_v14 = vand.u32 2147483648, %v1042_v8  ;;  %v1049_v17 = vsel %vm215_vm0, %v477_v5, %v573_v9  ;;  %v574_v18 = vrot.slane %v498_v10, 4  ;;  %v507_v20 = vrot.slane %v506_v7, 4  ;;  %v423_v45 = vld.sshfl [vmem:[#allocation1 + $0x20] sm:$0xff pattern:$0x75316420] }
  0x54   : > { %865 = vrcp.f32 %v1049_v17  ;;  %v636_v19 = vand.u32 2147483648, %v1049_v17  ;;  %v619_v21 = vand.u32 2147483647, %v1042_v8  ;;  %v1057_v24 = vadd.f32 %v502_v11, %v501_v4 }
  0x55   : > { %v1055_v23 = vsel %vm215_vm0, %v491_v27, %v574_v18  ;;  %vm600_vm1 = vweird.f32 %v1037_v3  ;;  %v607_v30 = vor.u32 1.1754944e-38, %v606_v12  ;;  %v634_v31 = vand.u32 2147483647, %v1049_v17 }
  0x56   : > { %867 = vrcp.f32 %v1055_v23  ;;  %vm1063_vm2 = vcmp.eq.f32.partialorder %v604_v13, 8.507059e+37  ;;  %vm615_vm3 = vweird.f32 %v1042_v8  ;;  %v622_v0 = vor.u32 1.1754944e-38, %v621_v14 }
  0x57   : > { %v862_v26 = vpop.eup %861  ;;  %v1068_v34 = vor.u32 1.1754944e-38, %v636_v19  ;;  %v651_v35 = vand.u32 2147483648, %v1055_v23  ;;  %v649_v38 = vand.u32 2147483647, %v1055_v23  ;;  %v508_v39 = vadd.f32 %v507_v20, %v506_v7 }
  0x58   : > { %v596_v32 = vmul.f32 %v862_v26, %v1037_v3  ;;  %v864_v36 = vpop.eup %863  ;;  %vm601_vm4 = vweird.f32 %v862_v26  ;;  %v513_v16 = vsel %vm215_vm0, %v421_v25, 0.0  ;;  %vm1074_vm5 = vcmp.eq.f32.partialorder %v619_v21, 8.507059e+37 }
  0x59   : > { %v611_v41 = vmul.f32 %v864_v36, %v1042_v8  ;;  %vm630_vm6 = vweird.f32 %v1049_v17  ;;  %v504_v43 = vrot.slane %v1057_v24, 1  ;;  %v520_v44 = vsel %vm215_vm0, %v422_v37, 0.0  ;;  %vm602_vm11 = vmor %vm600_vm1, %vm601_vm4 }
  0x5a   : > { %v597_v40 = vsub.f32 1.0, %v596_v32  ;;  %v866_v46 = vpop.eup %865  ;;  %vm616_vm7 = vweird.f32 %v864_v36  ;;  %v652_v47 = vor.u32 1.1754944e-38, %v651_v35  ;;  %v509_v48 = vrot.slane %v508_v39, 2  ;;  %v424_v32 = vld.sshfl [vmem:[#allocation1 + $0x28] sm:$0xff pattern:$0x75316420] }
  0x5b   : > { %v514_v49 = vrot.slane %v513_v16, 4  ;;  %v612_v51 = vsub.f32 1.0, %v611_v41  ;;  %v626_v2 = vmul.f32 %v866_v46, %v1049_v17  ;;  %vm631_vm8 = vweird.f32 %v866_v46  ;;  %vm617_vm13 = vmor %vm615_vm3, %vm616_vm7 }
  0x5c   : > { %v598_v50 = vmul.f32 %v862_v26, %v597_v40  ;;  %vm1082_vm9 = vcmp.eq.f32.partialorder %v634_v31, 8.507059e+37  ;;  %vm645_vm10 = vweird.f32 %v1055_v23  ;;  %v868_v54 = vpop.eup %867  ;;  %v510_v55 = vadd.f32 %v509_v48, %v508_v39  ;;  %vm632_vm14 = vmor %vm630_vm6, %vm631_vm8  ;;  %v426_v40 = vld.sshfl [vmem:[#allocation1 + $0x38] sm:$0xff pattern:$0x75316420] }
  0x5d   : > { %v515_v56 = vadd.f32 %v514_v49, %v513_v16  ;;  %v521_v22 = vrot.slane %v520_v44, 4  ;;  %v527_v57 = vsel %vm215_vm0, %v423_v45, 0.0  ;;  %v613_v60 = vmul.f32 %v864_v36, %v612_v51 }
  0x5e   : > { %v599_v58 = vadd.f32 %v862_v26, %v598_v50  ;;  %v627_v61 = vsub.f32 1.0, %v626_v2  ;;  %v641_v63 = vmul.f32 %v868_v54, %v1055_v23  ;;  %vm646_vm12 = vweird.f32 %v868_v54 }
  0x5f   : > { %v511_v4 = vrot.slane %v510_v55, 1  ;;  %v516_v5 = vrot.slane %v515_v56, 2  ;;  %v522_v7 = vadd.f32 %v521_v22, %v520_v44  ;;  %v614_v10 = vadd.f32 %v864_v36, %v613_v60  ;;  %vm647_vm15 = vmor %vm645_vm10, %vm646_vm12 }
  0x60   : > { %v603_v9 = vsel %vm602_vm11, %v862_v26, %v599_v58  ;;  %v628_v11 = vmul.f32 %v866_v46, %v627_v61  ;;  %v642_v12 = vsub.f32 1.0, %v641_v63  ;;  %v505_v26 = vadd.f32 %v504_v43, %v1057_v24 }
  0x61   : > { %v608_v27 = vsel %vm1063_vm2, %v607_v30, %v603_v9  ;;  %v512_v3 = vadd.f32 %v511_v4, %v510_v55  ;;  %v517_v13 = vadd.f32 %v516_v5, %v515_v56  ;;  %v523_v14 = vrot.slane %v522_v7, 2 }
  0x62   : > { %v609_v18 = vmul.f32 %v993_v59, %v608_v27  ;;  %v618_v19 = vsel %vm617_vm13, %v864_v36, %v614_v10  ;;  %v629_v20 = vadd.f32 %v866_v46, %v628_v11  ;;  %v643_v21 = vmul.f32 %v868_v54, %v642_v12  ;;  %v425_v36 = vld.sshfl [vmem:[#allocation1 + $0x30] sm:$0xff pattern:$0x75316420] }
  0x63   : > { %v623_v25 = vsel %vm1074_vm5, %v622_v0, %v618_v19  ;;  %v575_v8 = vrot.slane %v512_v3, 4  ;;  %v524_v30 = vadd.f32 %v523_v14, %v522_v7  ;;  %v528_v33 = vrot.slane %v527_v57, 4 }
  0x64   : > { %715 = vst [vmem:[%s1097_s17] sm:$0xff] %v609_v18  ;;  %v624_v31 = vmul.f32 %v997_v6, %v623_v25  ;;  %v633_v37 = vsel %vm632_vm14, %v866_v46, %v629_v20  ;;  %v644_v59 = vadd.f32 %v868_v54, %v643_v21  ;;  %v518_v24 = vrot.slane %v517_v13, 1 }
  0x65   : > { %v638_v0 = vsel %vm1082_vm9, %v1068_v34, %v633_v37  ;;  %v583_v17 = vsel %vm215_vm0, %v505_v26, %v575_v8  ;;  %v525_v35 = vrot.slane %v524_v30, 1  ;;  %vm650_vm1 = vcmp.eq.f32.partialorder %v649_v38, 8.507059e+37 }
  0x66   : > { %716 = vst [vmem:[%s1097_s17 + $0x8] sm:$0xff] %v624_v31  ;;  %v639_v6 = vmul.f32 %v1001_v15, %v638_v0  ;;  %v648_v39 = vsel %vm647_vm15, %v868_v54, %v644_v59  ;;  %869 = vrcp.f32 %v583_v17  ;;  %v529_v42 = vadd.f32 %v528_v33, %v527_v57 }
  0x67   : > { %v653_v16 = vsel %vm650_vm1, %v652_v47, %v648_v39  ;;  %v526_v34 = vadd.f32 %v525_v35, %v524_v30  ;;  %v534_v43 = vsel %vm215_vm0, %v424_v32, 0.0  ;;  %v541_v44 = vsel %vm215_vm0, %v425_v36, 0.0 }
  0x68   : > { %717 = vst [vmem:[%s1097_s17 + $0x10] sm:$0xff] %v639_v6  ;;  %v654_v41 = vmul.f32 %v1006_v29, %v653_v16  ;;  %v519_v45 = vadd.f32 %v518_v24, %v517_v13  ;;  %v535_v48 = vrot.slane %v534_v43, 4  ;;  %v530_v15 = vrot.slane %v529_v42, 2 }
  0x69   : > { %v576_v46 = vrot.slane %v526_v34, 4  ;;  %v542_v49 = vrot.slane %v541_v44, 4  ;;  %v548_v23 = vsel %vm215_vm0, %v426_v40, 0.0  ;;  %v664_v22 = vand.u32 2147483647, %v583_v17 }
  0x6a   : > { %718 = vst [vmem:[%s1097_s17 + $0x18] sm:$0xff] %v654_v41  ;;  %v536_v47 = vadd.f32 %v535_v48, %v534_v43  ;;  %v549_v50 = vrot.slane %v548_v23, 4  ;;  %v531_v2 = vadd.f32 %v530_v15, %v529_v42  ;;  %v666_v58 = vand.u32 2147483648, %v583_v17 }
  0x6b   : > { %v584_v38 = vsel %vm215_vm0, %v519_v45, %v576_v46  ;;  %v543_v54 = vadd.f32 %v542_v49, %v541_v44  ;;  %vm660_vm3 = vweird.f32 %v583_v17  ;;  %vm665_vm5 = vcmp.eq.f32.partialorder %v664_v22, 8.507059e+37 }
  0x6c   : > { %v870_v51 = vpop.eup %869  ;;  %871 = vrcp.f32 %v584_v38  ;;  %v537_v52 = vrot.slane %v536_v47, 2  ;;  %v550_v55 = vadd.f32 %v549_v50, %v548_v23  ;;  %v532_v60 = vrot.slane %v531_v2, 1 }
  0x6d   : > { %v656_v29 = vmul.f32 %v870_v51, %v583_v17  ;;  %v544_v61 = vrot.slane %v543_v54, 2  ;;  %vm661_vm2 = vweird.f32 %v870_v51  ;;  %v667_v3 = vor.u32 1.1754944e-38, %v666_v58 }
  0x6e   : > { %v538_v57 = vadd.f32 %v537_v52, %v536_v47  ;;  %v551_v63 = vrot.slane %v550_v55, 2  ;;  %vm662_vm4 = vmor %vm660_vm3, %vm661_vm2  ;;  %v533_v13 = vadd.f32 %v532_v60, %v531_v2  ;;  %v679_v26 = vand.u32 2147483647, %v584_v38 }
  0x6f   : > { %v657_v56 = vsub.f32 1.0, %v656_v29  ;;  %v545_v9 = vadd.f32 %v544_v61, %v543_v54  ;;  %v681_v8 = vand.u32 2147483648, %v584_v38  ;;  %vm675_vm7 = vweird.f32 %v584_v38 }
  0x70   : > { %v539_v5 = vrot.slane %v538_v57, 1  ;;  %v552_v10 = vadd.f32 %v551_v63, %v550_v55  ;;  %vm680_vm9 = vcmp.eq.f32.partialorder %v679_v26, 8.507059e+37 }
  0x71   : > { %v658_v4 = vmul.f32 %v870_v51, %v657_v56  ;;  %v546_v21 = vrot.slane %v545_v9, 1  ;;  %v682_v17 = vor.u32 1.1754944e-38, %v681_v8 }
  0x72   : > { %v872_v7 = vpop.eup %871  ;;  %v540_v27 = vadd.f32 %v539_v5, %v538_v57  ;;  %v553_v14 = vrot.slane %v552_v10, 1 }
  0x73   : > { %v659_v11 = vadd.f32 %v870_v51, %v658_v4  ;;  %v671_v12 = vmul.f32 %v872_v7, %v584_v38  ;;  %vm676_vm6 = vweird.f32 %v872_v7  ;;  %v547_v33 = vadd.f32 %v546_v21, %v545_v9 }
  0x74   : > { %v577_v20 = vrot.slane %v540_v27, 4  ;;  %v554_v30 = vadd.f32 %v553_v14, %v552_v10  ;;  %vm677_vm8 = vmor %vm675_vm7, %vm676_vm6 }
  0x75   : > { %v663_v18 = vsel %vm662_vm4, %v870_v51, %v659_v11  ;;  %v672_v19 = vsub.f32 1.0, %v671_v12 }
  0x76   : > { %v668_v25 = vsel %vm665_vm5, %v667_v3, %v663_v18  ;;  %v585_v59 = vsel %vm215_vm0, %v533_v13, %v577_v20  ;;  %v578_v0 = vrot.slane %v554_v30, 4 }
  0x77   : > { %v669_v31 = vmul.f32 %v1017_v62, %v668_v25  ;;  %v673_v37 = vmul.f32 %v872_v7, %v672_v19  ;;  %873 = vrcp.f32 %v585_v59  ;;  %v694_v40 = vand.u32 2147483647, %v585_v59 }
  0x78   : > { %v586_v35 = vsel %vm215_vm0, %v547_v33, %v578_v0  ;;  %v696_v41 = vand.u32 2147483648, %v585_v59  ;;  %vm690_vm11 = vweird.f32 %v585_v59 }
  0x79   : > { %719 = vst [vmem:[%s1097_s17 + $0x20] sm:$0xff] %v669_v31  ;;  %v674_v32 = vadd.f32 %v872_v7, %v673_v37  ;;  %875 = vrcp.f32 %v586_v35  ;;  %vm695_vm0 = vcmp.eq.f32.partialorder %v694_v40, 8.507059e+37  ;;  %v711_v48 = vand.u32 2147483648, %v586_v35 }
  0x7a   : > { %v697_v46 = vor.u32 1.1754944e-38, %v696_v41  ;;  %v709_v49 = vand.u32 2147483647, %v586_v35  ;;  %vm705_vm14 = vweird.f32 %v586_v35 }
  0x7b   : > { %v678_v24 = vsel %vm677_vm8, %v872_v7, %v674_v32  ;;  %v712_v50 = vor.u32 1.1754944e-38, %v711_v48 }
  0x7c   : > { %v683_v36 = vsel %vm680_vm9, %v682_v17, %v678_v24  ;;  %vm710_vm1 = vcmp.eq.f32.partialorder %v709_v49, 8.507059e+37 }
  0x7d   : > { %v684_v62 = vmul.f32 %v1026_v28, %v683_v36  ;;  %v874_v6 = vpop.eup %873 }
  0x7e   : > { %v686_v39 = vmul.f32 %v874_v6, %v585_v59  ;;  %vm691_vm10 = vweird.f32 %v874_v6 }
  0x7f   : > { %720 = vst [vmem:[%s1097_s17 + $0x28] sm:$0xff] %v684_v62  ;;  %v876_v34 = vpop.eup %875  ;;  %vm692_vm12 = vmor %vm690_vm11, %vm691_vm10 }
  0x80   : > { %v687_v16 = vsub.f32 1.0, %v686_v39  ;;  %v701_v43 = vmul.f32 %v876_v34, %v586_v35  ;;  %vm706_vm13 = vweird.f32 %v876_v34 }
  0x81   : > { %vm707_vm15 = vmor %vm705_vm14, %vm706_vm13 }
  0x82   : > { %v688_v42 = vmul.f32 %v874_v6, %v687_v16  ;;  %v702_v45 = vsub.f32 1.0, %v701_v43 }
  0x84   : > { %v689_v44 = vadd.f32 %v874_v6, %v688_v42  ;;  %v703_v15 = vmul.f32 %v876_v34, %v702_v45 }
  0x86   : > { %v693_v28 = vsel %vm692_vm12, %v874_v6, %v689_v44  ;;  %v704_v47 = vadd.f32 %v876_v34, %v703_v15 }
  0x87   : > { %v698_v23 = vsel %vm695_vm0, %v697_v46, %v693_v28 }
  0x88   : > { %v699_v38 = vmul.f32 %v1029_v1, %v698_v23  ;;  %v708_v51 = vsel %vm707_vm15, %v876_v34, %v704_v47 }
  0x89   : > { %v713_v29 = vsel %vm710_vm1, %v712_v50, %v708_v51 }
  0x8a   : > { %721 = vst [vmem:[%s1097_s17 + $0x30] sm:$0xff] %v699_v38  ;;  %v714_v2 = vmul.f32 %v1033_v53, %v713_v29 }
  0x8c   : > { %722 = vst [vmem:[%s1097_s17 + $0x38] sm:$0xff] %v714_v2 }
  0x8d PF: > { %s11_s8 = sadd.s32 1, %s899_s8   ;;  %s1158_s6 = smov %s895_s7 }
  0x8e   : > { %p8_p5 = scmp.ge.s32.totalorder %s11_s8, 4   ;;  %s1159_s7 = smov %s1161_s9 }
  0x90   :  { %10 = sbr.rel (!%p8_p5) target bundleno = 2 (0x2), region = 60 }

</bundles_post_ra>
